<compile_context>
chip_gen: v7x
topology: tpu7x:2x2x1
jax: 0.10.0
libtpu: 0.0.40
codegen_flags: <defaults>
</compile_context>

<pallas_src>
import functools
import math

import jax
import jax.numpy as jnp
from jax import lax
from jax.experimental import pallas as pl
from jax.experimental.pallas import tpu as pltpu


def _round_up(x, m):
    return ((x + m - 1) // m) * m


# ----------------------------------------------------------------------------
# Fused kernel: the full T-1 step recurrence inside one pallas_call invocation
# ----------------------------------------------------------------------------
def _joint_lstm_kernel(n_layers, n_steps, hp, unroll,
                       sched_ref,                       # int32 [n_steps] (SMEM)
                       gt_ref,                          # [n_steps, Bp, Dp]
                       w11_ref, b11_ref, w12_ref, b12_ref,
                       wlstm_ref, blstm_ref,
                       w21_ref, b21_ref, w22_ref, b22_ref,
                       out_ref):                        # [n_steps, Bp, Dp]
    f32 = jnp.float32
    cd = w11_ref.dtype                                  # matmul compute dtype
    bp = gt_ref.shape[1]
    dp = gt_ref.shape[2]

    def step_fn(t, carry):
        hs, cs, prev = carry
        # Teacher-forced ground truth vs. previous prediction (gt is
        # VMEM-resident, so this is a cheap VMEM load, never an HBM DMA).
        use_gt = sched_ref[t] == 1
        gt_t = gt_ref[pl.ds(t, 1)][0]                   # [Bp, Dp]
        ins = jnp.where(use_gt, gt_t, prev)

        # fc1_1 -> relu, fc1_2 -> relu (per-atom Linear folded into padded
        # block-diagonal weights; padded lanes stay 0 because their bias is 0).
        x = jnp.maximum(jnp.dot(ins.astype(cd), w11_ref[...],
                                preferred_element_type=f32) + b11_ref[...], 0.0)
        # TODO(synk): F.dropout omitted (inference semantics / do_prob == 0).
        x = jnp.maximum(jnp.dot(x.astype(cd), w12_ref[...],
                                preferred_element_type=f32) + b12_ref[...], 0.0)

        # Stacked LSTM cells: ONE fused MXU matmul per layer; gate blocks are
        # lane-aligned (width hp multiples of 128), so the slices below never
        # cross a 128-lane boundary.  Gate order (i, f, g, o).
        new_hs, new_cs = [], []
        for l in range(n_layers):
            xh = jnp.concatenate([x, hs[l]], axis=-1)   # [Bp, 2*Hp]
            gates = (jnp.dot(xh.astype(cd), wlstm_ref[l],
                             preferred_element_type=f32) + blstm_ref[l])
            i_g = jax.nn.sigmoid(gates[:, 0 * hp:1 * hp])
            f_g = jax.nn.sigmoid(gates[:, 1 * hp:2 * hp])
            g_g = jnp.tanh(gates[:, 2 * hp:3 * hp])
            o_g = jax.nn.sigmoid(gates[:, 3 * hp:4 * hp])
            c_new = f_g * cs[l] + i_g * g_g             # all state math in f32
            h_new = o_g * jnp.tanh(c_new)
            new_hs.append(h_new)
            new_cs.append(c_new)
            x = h_new

        # fc2_1 -> relu, fc2_2, residual.  (ww=True handled by zero-padded
        # w22/b22 columns at init time, so `y + ins` is always correct.)
        y = jnp.maximum(jnp.dot(x.astype(cd), w21_ref[...],
                                preferred_element_type=f32) + b21_ref[...], 0.0)
        y = jnp.dot(y.astype(cd), w22_ref[...],
                    preferred_element_type=f32) + b22_ref[...]
        out = y + ins                                   # [Bp, Dp] f32
        out_ref[pl.ds(t, 1)] = out[None]                # lane-dense store
        return (tuple(new_hs), tuple(new_cs), out)

    init = (tuple(jnp.zeros((bp, hp), f32) for _ in range(n_layers)),   # h
            tuple(jnp.zeros((bp, hp), f32) for _ in range(n_layers)),   # c
            jnp.zeros((bp, dp), f32))                                    # prev
    lax.fori_loop(0, n_steps, step_fn, init, unroll=unroll)


# ----------------------------------------------------------------------------
# Wrapper building the single fused pallas_call
# ----------------------------------------------------------------------------
def make_forward_fn(n_atoms, n_in, n_hid, n_layers):
    H = n_atoms * n_hid
    D_in = n_atoms * n_in

    @functools.partial(jax.jit,
                       static_argnames=("prediction_steps", "burn_in", "burn_in_steps"))
    def forward(params, inputs, prediction_steps, burn_in=False, burn_in_steps=1):
        B, A, T, _ = inputs.shape
        n_steps = T - 1
        H_pad = params["w21"].shape[0]
        D_pad = params["w22"].shape[1]
        B_pad = _round_up(max(B, 8), 8)                 # >= 8 sublanes

        # Per-step "use ground truth" schedule, prefetched into SMEM.
        steps = jnp.arange(n_steps)
        use_gt = (steps <= burn_in_steps) if burn_in else ((steps % prediction_steps) == 0)
        sched = use_gt.astype(jnp.int32)

        # Time-major, lane-dense, (8,128)-padded ground-truth inputs.
        gt = jnp.transpose(inputs[:, :, :n_steps, :], (2, 0, 1, 3)).reshape(
            n_steps, B, D_in)
        gt = jnp.pad(gt, ((0, 0), (0, B_pad - B), (0, D_pad - D_in)))

        unroll = True if n_steps <= 32 else False
        kernel = functools.partial(_joint_lstm_kernel, n_layers, n_steps, H_pad, unroll)

        def resident(arr):
            # Whole array in VMEM, constant block index -> DMA'd exactly once.
            nd = arr.ndim
            return pl.BlockSpec(arr.shape, lambda i, s, _nd=nd: (0,) * _nd)

        grid_spec = pltpu.PrefetchScalarGridSpec(
            num_scalar_prefetch=1,
            grid=(1,),          # whole recurrence in one step; time loop in-kernel
            in_specs=[
                resident(gt),
                resident(params["w11"]), resident(params["b11"]),
                resident(params["w12"]), resident(params["b12"]),
                resident(params["wlstm"]), resident(params["blstm"]),
                resident(params["w21"]), resident(params["b21"]),
                resident(params["w22"]), resident(params["b22"]),
            ],
            out_specs=pl.BlockSpec((n_steps, B_pad, D_pad),
                                   lambda i, s: (0, 0, 0)),
        )

        out_tm = pl.pallas_call(
            kernel,
            grid_spec=grid_spec,
            out_shape=jax.ShapeDtypeStruct((n_steps, B_pad, D_pad), jnp.float32),
            compiler_params=pltpu.CompilerParams(
                dimension_semantics=("arbitrary",),      # sequential recurrence
                vmem_limit_bytes=32 * 1024 * 1024),      # explicit v7x-safe budget
        )(sched, gt,
          params["w11"], params["b11"], params["w12"], params["b12"],
          params["wlstm"], params["blstm"],
          params["w21"], params["b21"], params["w22"], params["b22"])

        # Strip padding: [T-1, Bp, Dp] -> [B, A, T-1, n_in]  (layout plumbing).
        out = out_tm[:, :B, :D_in].reshape(n_steps, B, A, n_in)
        return jnp.transpose(out, (1, 2, 0, 3))

    return forward


# ----------------------------------------------------------------------------
# Parameter initialization (mirrors the PyTorch module's shapes / init)
# ----------------------------------------------------------------------------
def init_params(key, n_in, n_hid, n_out, n_atoms, n_layers, ww=False,
                compute_dtype=jnp.float32):
    """Returns (kernel_params, raw_params).

    raw_params mirror the PyTorch module's weights (for the plain-JAX
    reference).  kernel_params are padded/packed for the Pallas kernel:
      * fc1_1 / fc1_2 as zero-padded block-diagonal [D_pad, H_pad] matrices,
      * per LSTM layer one fused [2*H_pad, 4*H_pad] weight, gates laid out in
        four lane-aligned blocks of width H_pad (gate order i, f, g, o),
      * fc2_2 packed into the [H_pad, D_pad] residual layout (ww=True handled
        by a zero column at each atom's last feature).
    Matmul weights are stored in `compute_dtype`; biases stay float32.
    """
    f32 = jnp.float32
    A, L = n_atoms, n_layers
    H = A * n_hid
    D_in = A * n_in
    H_pad = _round_up(H, 128)
    D_pad = _round_up(D_in, 128)

    keys = jax.random.split(key, 8)

    def xavier(k, fan_in, fan_out):
        std = math.sqrt(2.0 / (fan_in + fan_out))
        return std * jax.random.normal(k, (fan_in, fan_out), f32)   # [in, out]

    w11 = xavier(keys[0], n_in, n_hid)
    w12 = xavier(keys[1], n_hid, n_hid)
    w21 = xavier(keys[2], H, H)
    w22 = xavier(keys[3], H, A * n_out)
    b11 = jnp.full((n_hid,), 0.1, f32)
    b12 = jnp.full((n_hid,), 0.1, f32)
    b21 = jnp.full((H,), 0.1, f32)
    b22 = jnp.full((A * n_out,), 0.1, f32)

    # LSTM(A*n_hid -> A*n_hid, n_layers); PyTorch default U(-k, k), gate order i,f,g,o.
    k_lstm = 1.0 / math.sqrt(H)
    wih = jax.random.uniform(keys[4], (L, H, 4 * H), f32, -k_lstm, k_lstm)
    whh = jax.random.uniform(keys[5], (L, H, 4 * H), f32, -k_lstm, k_lstm)
    bih = jax.random.uniform(keys[6], (L, 4 * H), f32, -k_lstm, k_lstm)
    bhh = jax.random.uniform(keys[7], (L, 4 * H), f32, -k_lstm, k_lstm)
    blstm = bih + bhh

    if compute_dtype != f32:
        # Round matmul weights once so the kernel (compute_dtype operands) and
        # the reference (float32 copies of the same rounded values) agree.
        rnd = lambda w: w.astype(compute_dtype).astype(f32)
        w11, w12, w21, w22, wih, whh = (rnd(w) for w in (w11, w12, w21, w22, wih, whh))

    raw = dict(w11=w11, b11=b11, w12=w12, b12=b12, wih=wih, whh=whh,
               blstm=blstm, w21=w21, b21=b21, w22=w22, b22=b22)

    def pad2(m, rows, cols):
        return jnp.zeros((rows, cols), f32).at[:m.shape[0], :m.shape[1]].set(m)

    # Per-atom fc1 layers as zero-padded block-diagonal matrices.
    w11k = pad2(jax.scipy.linalg.block_diag(*([w11] * A)), D_pad, H_pad)
    w12k = pad2(jax.scipy.linalg.block_diag(*([w12] * A)), H_pad, H_pad)
    w21k = pad2(w21, H_pad, H_pad)
    b11k = jnp.zeros((1, H_pad), f32).at[0, :H].set(jnp.tile(b11, A))
    b12k = jnp.zeros((1, H_pad), f32).at[0, :H].set(jnp.tile(b12, A))
    b21k = jnp.zeros((1, H_pad), f32).at[0, :H].set(b21)

    # Fused, lane-aligned LSTM weights: rows [0:H] = Wih, rows [H_pad:H_pad+H]
    # = Whh; gate g occupies columns [g*H_pad, g*H_pad + H).  Padded gate lanes
    # see zero pre-activations, so padded h/c lanes stay exactly 0.
    wlstm = jnp.zeros((L, 2 * H_pad, 4 * H_pad), f32)
    blstmk = jnp.zeros((L, 1, 4 * H_pad), f32)
    for g in range(4):
        wlstm = wlstm.at[:, 0:H, g * H_pad:g * H_pad + H].set(
            wih[:, :, g * H:(g + 1) * H])
        wlstm = wlstm.at[:, H_pad:H_pad + H, g * H_pad:g * H_pad + H].set(
            whh[:, :, g * H:(g + 1) * H])
        blstmk = blstmk.at[:, 0, g * H_pad:g * H_pad + H].set(
            blstm[:, g * H:(g + 1) * H])

    # fc2_2 packed into the [H_pad, D_pad] residual layout.
    w22k = jnp.zeros((H_pad, D_pad), f32)
    b22k = jnp.zeros((1, D_pad), f32)
    if ww:
        assert n_out == n_in - 1, "ww=True requires n_out == n_in - 1"
        for a in range(A):
            w22k = w22k.at[:H, a * n_in:a * n_in + n_out].set(
                w22[:, a * n_out:(a + 1) * n_out])
            b22k = b22k.at[0, a * n_in:a * n_in + n_out].set(
                b22[a * n_out:(a + 1) * n_out])
    else:
        assert n_out == n_in, "ww=False requires n_out == n_in (residual add)"
        w22k = w22k.at[:H, :D_in].set(w22)
        b22k = b22k.at[0, :D_in].set(b22)

    cd = compute_dtype
    # TODO(synk): self.bn (BatchNorm1d) is never used in forward(); omitted.
    kparams = dict(w11=w11k.astype(cd), b11=b11k, w12=w12k.astype(cd), b12=b12k,
                   wlstm=wlstm.astype(cd), blstm=blstmk,
                   w21=w21k.astype(cd), b21=b21k, w22=w22k.astype(cd), b22=b22k)
    return kparams, raw


# ----------------------------------------------------------------------------
# Pure-JAX reference following the original PyTorch forward (unpacked params)
# ----------------------------------------------------------------------------
def reference_forward(raw, inputs, prediction_steps, n_hid, n_layers, ww=False,
                      burn_in=False, burn_in_steps=1, compute_dtype=jnp.float32):
    f32 = jnp.float32
    cd = compute_dtype

    def mm(a, b):   # precision-matched with the kernel's matmuls
        return jnp.dot(a.astype(cd), b.astype(cd), preferred_element_type=f32)

    B, A, T, n_in = inputs.shape
    H = A * n_hid
    n_out = raw["w22"].shape[1] // A
    hs = [jnp.zeros((B, H), f32) for _ in range(n_layers)]
    cs = [jnp.zeros((B, H), f32) for _ in range(n_layers)]
    outs = []
    for step in range(T - 1):
        use_gt = (step <= burn_in_steps) if burn_in else (step % prediction_steps == 0)
        ins = inputs[:, :, step, :] if use_gt else outs[step - 1]      # [B, A, n_in]
        x = jax.nn.relu(mm(ins.reshape(B * A, n_in), raw["w11"]) + raw["b11"])
        x = jax.nn.relu(mm(x, raw["w12"]) + raw["b12"])
        x = x.reshape(B, H)
        for l in range(n_layers):
            g = mm(x, raw["wih"][l]) + mm(hs[l], raw["whh"][l]) + raw["blstm"][l]
            i_g = jax.nn.sigmoid(g[:, :H])
            f_g = jax.nn.sigmoid(g[:, H:2 * H])
            g_g = jnp.tanh(g[:, 2 * H:3 * H])
            o_g = jax.nn.sigmoid(g[:, 3 * H:])
            c_new = f_g * cs[l] + i_g * g_g
            h_new = o_g * jnp.tanh(c_new)
            hs[l], cs[l] = h_new, c_new
            x = h_new
        y = jax.nn.relu(mm(x, raw["w21"]) + raw["b21"])
        y = (mm(y, raw["w22"]) + raw["b22"]).reshape(B, A, n_out)
        if ww:
            out = jnp.concatenate([y + ins[..., :-1], ins[..., -1:]], axis=-1)
        else:
            out = y + ins
        outs.append(out)
    return jnp.stack(outs, axis=2)                                     # [B, A, T-1, .]


# ----------------------------------------------------------------------------
if __name__ == "__main__":
    n_in, n_hid, n_out = 4, 8, 4        # ww=False requires n_out == n_in
    n_atoms, n_layers = 3, 2
    B, T = 2, 8
    prediction_steps = 4
    compute_dtype = jnp.bfloat16        # MXU operands; biases/gates/state stay f32

    key = jax.random.PRNGKey(0)
    pkey, xkey = jax.random.split(key)
    kparams, raw = init_params(pkey, n_in, n_hid, n_out, n_atoms, n_layers,
                               ww=False, compute_dtype=compute_dtype)
    inputs = jax.random.normal(xkey, (B, n_atoms, T, n_in), jnp.float32)

    forward = make_forward_fn(n_atoms, n_in, n_hid, n_layers)
    out = forward(kparams, inputs, prediction_steps=prediction_steps, burn_in=False)
    jax.block_until_ready(out)
    assert out.shape == (B, n_atoms, T - 1, n_in), out.shape

    # Sanity check vs. plain-JAX reference at matched matmul precision.
    ref = reference_forward(raw, inputs, prediction_steps, n_hid, n_layers,
                            ww=False, burn_in=False, compute_dtype=compute_dtype)
    max_err = float(jnp.max(jnp.abs(out - ref)))
    assert jnp.allclose(out, ref, atol=2e-2, rtol=2e-2), max_err

    print("KERNEL_OK")
</pallas_src>

<mosaic_0001>
module attributes {stable_mosaic.version = 11 : i64} {
  func.func @_joint_lstm_kernel(%arg0: i32, %arg1: memref<7xi32, #tpu.memory_space<smem>>, %arg2: memref<7x8x128xf32, #tpu.memory_space<vmem>>, %arg3: memref<128x128xbf16, #tpu.memory_space<vmem>>, %arg4: memref<1x128xf32, #tpu.memory_space<vmem>>, %arg5: memref<128x128xbf16, #tpu.memory_space<vmem>>, %arg6: memref<1x128xf32, #tpu.memory_space<vmem>>, %arg7: memref<2x256x512xbf16, #tpu.memory_space<vmem>>, %arg8: memref<2x1x512xf32, #tpu.memory_space<vmem>>, %arg9: memref<128x128xbf16, #tpu.memory_space<vmem>>, %arg10: memref<1x128xf32, #tpu.memory_space<vmem>>, %arg11: memref<128x128xbf16, #tpu.memory_space<vmem>>, %arg12: memref<1x128xf32, #tpu.memory_space<vmem>>, %arg13: memref<7x8x128xf32, #tpu.memory_space<vmem>>) attributes {dimension_semantics = [#tpu.dimension_semantics<arbitrary>], iteration_bounds = array<i64: 1>, scalar_prefetch = 1 : i64, scratch_operands = 0 : i64, tpu.core_type = #tpu.core_type<tc>, window_params = [{pipeline_mode = #tpu.pipeline_mode<synchronous>, transform_indices = @transform_0, window_bounds = array<i64: 7, 8, 128>}, {pipeline_mode = #tpu.pipeline_mode<synchronous>, transform_indices = @transform_1, window_bounds = array<i64: 128, 128>}, {pipeline_mode = #tpu.pipeline_mode<synchronous>, transform_indices = @transform_2, window_bounds = array<i64: 1, 128>}, {pipeline_mode = #tpu.pipeline_mode<synchronous>, transform_indices = @transform_3, window_bounds = array<i64: 128, 128>}, {pipeline_mode = #tpu.pipeline_mode<synchronous>, transform_indices = @transform_4, window_bounds = array<i64: 1, 128>}, {pipeline_mode = #tpu.pipeline_mode<synchronous>, transform_indices = @transform_5, window_bounds = array<i64: 2, 256, 512>}, {pipeline_mode = #tpu.pipeline_mode<synchronous>, transform_indices = @transform_6, window_bounds = array<i64: 2, 1, 512>}, {pipeline_mode = #tpu.pipeline_mode<synchronous>, transform_indices = @transform_7, window_bounds = array<i64: 128, 128>}, {pipeline_mode = #tpu.pipeline_mode<synchronous>, transform_indices = @transform_8, window_bounds = array<i64: 1, 128>}, {pipeline_mode = #tpu.pipeline_mode<synchronous>, transform_indices = @transform_9, window_bounds = array<i64: 128, 128>}, {pipeline_mode = #tpu.pipeline_mode<synchronous>, transform_indices = @transform_10, window_bounds = array<i64: 1, 128>}, {pipeline_mode = #tpu.pipeline_mode<synchronous>, transform_indices = @transform_11, window_bounds = array<i64: 7, 8, 128>}]} {
    %cst = arith.constant 0.000000e+00 : f32
    %0 = vector.broadcast %cst : f32 to vector<8x128xf32>
    %cst_0 = arith.constant 0.000000e+00 : f32
    %1 = vector.broadcast %cst_0 : f32 to vector<8x128xf32>
    %cst_1 = arith.constant 0.000000e+00 : f32
    %2 = vector.broadcast %cst_1 : f32 to vector<8x128xf32>
    %cst_2 = arith.constant 0.000000e+00 : f32
    %3 = vector.broadcast %cst_2 : f32 to vector<8x128xf32>
    %cst_3 = arith.constant 0.000000e+00 : f32
    %4 = vector.broadcast %cst_3 : f32 to vector<8x128xf32>
    %c0_i32 = arith.constant 0 : i32
    %5 = arith.index_cast %c0_i32 : i32 to index
    %6 = memref.load %arg1[%5] : memref<7xi32, #tpu.memory_space<smem>>
    %c1_i32 = arith.constant 1 : i32
    %7 = arith.cmpi eq, %6, %c1_i32 : i32
    %8 = arith.index_cast %c0_i32 : i32 to index
    %c0 = arith.constant 0 : index
    %c0_4 = arith.constant 0 : index
    %9 = vector.load %arg2[%8, %c0, %c0_4] : memref<7x8x128xf32, #tpu.memory_space<vmem>>, vector<1x8x128xf32>
    %10 = vector.shape_cast %9 : vector<1x8x128xf32> to vector<8x128xf32>
    %11 = arith.select %7, %10, %4 : vector<8x128xf32>
    %12 = arith.truncf %11 : vector<8x128xf32> to vector<8x128xbf16>
    %c0_5 = arith.constant 0 : index
    %c0_6 = arith.constant 0 : index
    %13 = vector.load %arg3[%c0_5, %c0_6] : memref<128x128xbf16, #tpu.memory_space<vmem>>, vector<128x128xbf16>
    %cst_7 = arith.constant dense<0.000000e+00> : vector<8x128xf32>
    %14 = tpu.matmul %12, %13, %cst_7 {dimension_numbers = #tpu.dot_dimension_numbers<[1], [0], [0], [1], [0, 0, 1, 1], [], []>} : vector<8x128xbf16>, vector<128x128xbf16>, vector<8x128xf32> -> vector<8x128xf32>
    %c0_8 = arith.constant 0 : index
    %c0_9 = arith.constant 0 : index
    %15 = vector.load %arg4[%c0_8, %c0_9] : memref<1x128xf32, #tpu.memory_space<vmem>>, vector<1x128xf32>
    %16 = vector.broadcast %15 : vector<1x128xf32> to vector<8x128xf32>
    %17 = arith.addf %14, %16 : vector<8x128xf32>
    %cst_10 = arith.constant 0.000000e+00 : f32
    %18 = vector.broadcast %cst_10 : f32 to vector<8x128xf32>
    %19 = arith.maximumf %17, %18 : vector<8x128xf32>
    %20 = arith.truncf %19 : vector<8x128xf32> to vector<8x128xbf16>
    %c0_11 = arith.constant 0 : index
    %c0_12 = arith.constant 0 : index
    %21 = vector.load %arg5[%c0_11, %c0_12] : memref<128x128xbf16, #tpu.memory_space<vmem>>, vector<128x128xbf16>
    %cst_13 = arith.constant dense<0.000000e+00> : vector<8x128xf32>
    %22 = tpu.matmul %20, %21, %cst_13 {dimension_numbers = #tpu.dot_dimension_numbers<[1], [0], [0], [1], [0, 0, 1, 1], [], []>} : vector<8x128xbf16>, vector<128x128xbf16>, vector<8x128xf32> -> vector<8x128xf32>
    %c0_14 = arith.constant 0 : index
    %c0_15 = arith.constant 0 : index
    %23 = vector.load %arg6[%c0_14, %c0_15] : memref<1x128xf32, #tpu.memory_space<vmem>>, vector<1x128xf32>
    %24 = vector.broadcast %23 : vector<1x128xf32> to vector<8x128xf32>
    %25 = arith.addf %22, %24 : vector<8x128xf32>
    %cst_16 = arith.constant 0.000000e+00 : f32
    %26 = vector.broadcast %cst_16 : f32 to vector<8x128xf32>
    %27 = arith.maximumf %25, %26 : vector<8x128xf32>
    %28 = tpu.concatenate %27, %0 in 1 : vector<8x128xf32>, vector<8x128xf32> -> vector<8x256xf32>
    %29 = arith.truncf %28 : vector<8x256xf32> to vector<8x256xbf16>
    %c0_17 = arith.constant 0 : index
    %c0_18 = arith.constant 0 : index
    %c0_19 = arith.constant 0 : index
    %30 = vector.load %arg7[%c0_17, %c0_18, %c0_19] : memref<2x256x512xbf16, #tpu.memory_space<vmem>>, vector<1x256x512xbf16>
    %31 = vector.shape_cast %30 : vector<1x256x512xbf16> to vector<256x512xbf16>
    %cst_20 = arith.constant dense<0.000000e+00> : vector<8x512xf32>
    %32 = tpu.matmul %29, %31, %cst_20 {dimension_numbers = #tpu.dot_dimension_numbers<[1], [0], [0], [1], [0, 0, 1, 1], [], []>} : vector<8x256xbf16>, vector<256x512xbf16>, vector<8x512xf32> -> vector<8x512xf32>
    %c0_21 = arith.constant 0 : index
    %c0_22 = arith.constant 0 : index
    %c0_23 = arith.constant 0 : index
    %33 = vector.load %arg8[%c0_21, %c0_22, %c0_23] : memref<2x1x512xf32, #tpu.memory_space<vmem>>, vector<1x1x512xf32>
    %34 = vector.shape_cast %33 : vector<1x1x512xf32> to vector<1x512xf32>
    %35 = vector.broadcast %34 : vector<1x512xf32> to vector<8x512xf32>
    %36 = arith.addf %32, %35 : vector<8x512xf32>
    %37 = vector.extract_strided_slice %36 {offsets = [0, 0], sizes = [8, 128], strides = [1, 1]} : vector<8x512xf32> to vector<8x128xf32>
    %38 = arith.negf %37 : vector<8x128xf32>
    %39 = math.exp %38 : vector<8x128xf32>
    %cst_24 = arith.constant 1.000000e+00 : f32
    %40 = vector.broadcast %cst_24 : f32 to vector<8x128xf32>
    %41 = arith.addf %40, %39 : vector<8x128xf32>
    %42 = arith.divf %40, %41 : vector<8x128xf32>
    %43 = vector.extract_strided_slice %36 {offsets = [0, 128], sizes = [8, 128], strides = [1, 1]} : vector<8x512xf32> to vector<8x128xf32>
    %44 = arith.negf %43 : vector<8x128xf32>
    %45 = math.exp %44 : vector<8x128xf32>
    %cst_25 = arith.constant 1.000000e+00 : f32
    %46 = vector.broadcast %cst_25 : f32 to vector<8x128xf32>
    %47 = arith.addf %46, %45 : vector<8x128xf32>
    %48 = arith.divf %46, %47 : vector<8x128xf32>
    %49 = vector.extract_strided_slice %36 {offsets = [0, 256], sizes = [8, 128], strides = [1, 1]} : vector<8x512xf32> to vector<8x128xf32>
    %50 = math.tanh %49 : vector<8x128xf32>
    %51 = vector.extract_strided_slice %36 {offsets = [0, 384], sizes = [8, 128], strides = [1, 1]} : vector<8x512xf32> to vector<8x128xf32>
    %52 = arith.negf %51 : vector<8x128xf32>
    %53 = math.exp %52 : vector<8x128xf32>
    %cst_26 = arith.constant 1.000000e+00 : f32
    %54 = vector.broadcast %cst_26 : f32 to vector<8x128xf32>
    %55 = arith.addf %54, %53 : vector<8x128xf32>
    %56 = arith.divf %54, %55 : vector<8x128xf32>
    %57 = arith.mulf %48, %2 : vector<8x128xf32>
    %58 = arith.mulf %42, %50 : vector<8x128xf32>
    %59 = arith.addf %57, %58 : vector<8x128xf32>
    %60 = math.tanh %59 : vector<8x128xf32>
    %61 = arith.mulf %56, %60 : vector<8x128xf32>
    %62 = tpu.concatenate %61, %1 in 1 : vector<8x128xf32>, vector<8x128xf32> -> vector<8x256xf32>
    %63 = arith.truncf %62 : vector<8x256xf32> to vector<8x256xbf16>
    %c1 = arith.constant 1 : index
    %c0_27 = arith.constant 0 : index
    %c0_28 = arith.constant 0 : index
    %64 = vector.load %arg7[%c1, %c0_27, %c0_28] : memref<2x256x512xbf16, #tpu.memory_space<vmem>>, vector<1x256x512xbf16>
    %65 = vector.shape_cast %64 : vector<1x256x512xbf16> to vector<256x512xbf16>
    %cst_29 = arith.constant dense<0.000000e+00> : vector<8x512xf32>
    %66 = tpu.matmul %63, %65, %cst_29 {dimension_numbers = #tpu.dot_dimension_numbers<[1], [0], [0], [1], [0, 0, 1, 1], [], []>} : vector<8x256xbf16>, vector<256x512xbf16>, vector<8x512xf32> -> vector<8x512xf32>
    %c1_30 = arith.constant 1 : index
    %c0_31 = arith.constant 0 : index
    %c0_32 = arith.constant 0 : index
    %67 = vector.load %arg8[%c1_30, %c0_31, %c0_32] : memref<2x1x512xf32, #tpu.memory_space<vmem>>, vector<1x1x512xf32>
    %68 = vector.shape_cast %67 : vector<1x1x512xf32> to vector<1x512xf32>
    %69 = vector.broadcast %68 : vector<1x512xf32> to vector<8x512xf32>
    %70 = arith.addf %66, %69 : vector<8x512xf32>
    %71 = vector.extract_strided_slice %70 {offsets = [0, 0], sizes = [8, 128], strides = [1, 1]} : vector<8x512xf32> to vector<8x128xf32>
    %72 = arith.negf %71 : vector<8x128xf32>
    %73 = math.exp %72 : vector<8x128xf32>
    %cst_33 = arith.constant 1.000000e+00 : f32
    %74 = vector.broadcast %cst_33 : f32 to vector<8x128xf32>
    %75 = arith.addf %74, %73 : vector<8x128xf32>
    %76 = arith.divf %74, %75 : vector<8x128xf32>
    %77 = vector.extract_strided_slice %70 {offsets = [0, 128], sizes = [8, 128], strides = [1, 1]} : vector<8x512xf32> to vector<8x128xf32>
    %78 = arith.negf %77 : vector<8x128xf32>
    %79 = math.exp %78 : vector<8x128xf32>
    %cst_34 = arith.constant 1.000000e+00 : f32
    %80 = vector.broadcast %cst_34 : f32 to vector<8x128xf32>
    %81 = arith.addf %80, %79 : vector<8x128xf32>
    %82 = arith.divf %80, %81 : vector<8x128xf32>
    %83 = vector.extract_strided_slice %70 {offsets = [0, 256], sizes = [8, 128], strides = [1, 1]} : vector<8x512xf32> to vector<8x128xf32>
    %84 = math.tanh %83 : vector<8x128xf32>
    %85 = vector.extract_strided_slice %70 {offsets = [0, 384], sizes = [8, 128], strides = [1, 1]} : vector<8x512xf32> to vector<8x128xf32>
    %86 = arith.negf %85 : vector<8x128xf32>
    %87 = math.exp %86 : vector<8x128xf32>
    %cst_35 = arith.constant 1.000000e+00 : f32
    %88 = vector.broadcast %cst_35 : f32 to vector<8x128xf32>
    %89 = arith.addf %88, %87 : vector<8x128xf32>
    %90 = arith.divf %88, %89 : vector<8x128xf32>
    %91 = arith.mulf %82, %3 : vector<8x128xf32>
    %92 = arith.mulf %76, %84 : vector<8x128xf32>
    %93 = arith.addf %91, %92 : vector<8x128xf32>
    %94 = math.tanh %93 : vector<8x128xf32>
    %95 = arith.mulf %90, %94 : vector<8x128xf32>
    %96 = arith.truncf %95 : vector<8x128xf32> to vector<8x128xbf16>
    %c0_36 = arith.constant 0 : index
    %c0_37 = arith.constant 0 : index
    %97 = vector.load %arg9[%c0_36, %c0_37] : memref<128x128xbf16, #tpu.memory_space<vmem>>, vector<128x128xbf16>
    %cst_38 = arith.constant dense<0.000000e+00> : vector<8x128xf32>
    %98 = tpu.matmul %96, %97, %cst_38 {dimension_numbers = #tpu.dot_dimension_numbers<[1], [0], [0], [1], [0, 0, 1, 1], [], []>} : vector<8x128xbf16>, vector<128x128xbf16>, vector<8x128xf32> -> vector<8x128xf32>
    %c0_39 = arith.constant 0 : index
    %c0_40 = arith.constant 0 : index
    %99 = vector.load %arg10[%c0_39, %c0_40] : memref<1x128xf32, #tpu.memory_space<vmem>>, vector<1x128xf32>
    %100 = vector.broadcast %99 : vector<1x128xf32> to vector<8x128xf32>
    %101 = arith.addf %98, %100 : vector<8x128xf32>
    %cst_41 = arith.constant 0.000000e+00 : f32
    %102 = vector.broadcast %cst_41 : f32 to vector<8x128xf32>
    %103 = arith.maximumf %101, %102 : vector<8x128xf32>
    %104 = arith.truncf %103 : vector<8x128xf32> to vector<8x128xbf16>
    %c0_42 = arith.constant 0 : index
    %c0_43 = arith.constant 0 : index
    %105 = vector.load %arg11[%c0_42, %c0_43] : memref<128x128xbf16, #tpu.memory_space<vmem>>, vector<128x128xbf16>
    %cst_44 = arith.constant dense<0.000000e+00> : vector<8x128xf32>
    %106 = tpu.matmul %104, %105, %cst_44 {dimension_numbers = #tpu.dot_dimension_numbers<[1], [0], [0], [1], [0, 0, 1, 1], [], []>} : vector<8x128xbf16>, vector<128x128xbf16>, vector<8x128xf32> -> vector<8x128xf32>
    %c0_45 = arith.constant 0 : index
    %c0_46 = arith.constant 0 : index
    %107 = vector.load %arg12[%c0_45, %c0_46] : memref<1x128xf32, #tpu.memory_space<vmem>>, vector<1x128xf32>
    %108 = vector.broadcast %107 : vector<1x128xf32> to vector<8x128xf32>
    %109 = arith.addf %106, %108 : vector<8x128xf32>
    %110 = arith.addf %109, %11 : vector<8x128xf32>
    %111 = vector.shape_cast %110 : vector<8x128xf32> to vector<1x8x128xf32>
    %112 = arith.index_cast %c0_i32 : i32 to index
    %c0_47 = arith.constant 0 : index
    %c0_48 = arith.constant 0 : index
    %113 = vector.load %arg13[%112, %c0_47, %c0_48] : memref<7x8x128xf32, #tpu.memory_space<vmem>>, vector<1x8x128xf32>
    tpu.vector_store %arg13[%112, %c0_47, %c0_48], %111 {strides = array<i32>} : memref<7x8x128xf32, #tpu.memory_space<vmem>>, vector<1x8x128xf32>,
    %c1_i32_49 = arith.constant 1 : i32
    %114 = arith.index_cast %c1_i32_49 : i32 to index
    %115 = memref.load %arg1[%114] : memref<7xi32, #tpu.memory_space<smem>>
    %c1_i32_50 = arith.constant 1 : i32
    %116 = arith.cmpi eq, %115, %c1_i32_50 : i32
    %117 = arith.index_cast %c1_i32_49 : i32 to index
    %c0_51 = arith.constant 0 : index
    %c0_52 = arith.constant 0 : index
    %118 = vector.load %arg2[%117, %c0_51, %c0_52] : memref<7x8x128xf32, #tpu.memory_space<vmem>>, vector<1x8x128xf32>
    %119 = vector.shape_cast %118 : vector<1x8x128xf32> to vector<8x128xf32>
    %120 = arith.select %116, %119, %110 : vector<8x128xf32>
    %121 = arith.truncf %120 : vector<8x128xf32> to vector<8x128xbf16>
    %c0_53 = arith.constant 0 : index
    %c0_54 = arith.constant 0 : index
    %122 = vector.load %arg3[%c0_53, %c0_54] : memref<128x128xbf16, #tpu.memory_space<vmem>>, vector<128x128xbf16>
    %cst_55 = arith.constant dense<0.000000e+00> : vector<8x128xf32>
    %123 = tpu.matmul %121, %122, %cst_55 {dimension_numbers = #tpu.dot_dimension_numbers<[1], [0], [0], [1], [0, 0, 1, 1], [], []>} : vector<8x128xbf16>, vector<128x128xbf16>, vector<8x128xf32> -> vector<8x128xf32>
    %c0_56 = arith.constant 0 : index
    %c0_57 = arith.constant 0 : index
    %124 = vector.load %arg4[%c0_56, %c0_57] : memref<1x128xf32, #tpu.memory_space<vmem>>, vector<1x128xf32>
    %125 = vector.broadcast %124 : vector<1x128xf32> to vector<8x128xf32>
    %126 = arith.addf %123, %125 : vector<8x128xf32>
    %cst_58 = arith.constant 0.000000e+00 : f32
    %127 = vector.broadcast %cst_58 : f32 to vector<8x128xf32>
    %128 = arith.maximumf %126, %127 : vector<8x128xf32>
    %129 = arith.truncf %128 : vector<8x128xf32> to vector<8x128xbf16>
    %c0_59 = arith.constant 0 : index
    %c0_60 = arith.constant 0 : index
    %130 = vector.load %arg5[%c0_59, %c0_60] : memref<128x128xbf16, #tpu.memory_space<vmem>>, vector<128x128xbf16>
    %cst_61 = arith.constant dense<0.000000e+00> : vector<8x128xf32>
    %131 = tpu.matmul %129, %130, %cst_61 {dimension_numbers = #tpu.dot_dimension_numbers<[1], [0], [0], [1], [0, 0, 1, 1], [], []>} : vector<8x128xbf16>, vector<128x128xbf16>, vector<8x128xf32> -> vector<8x128xf32>
    %c0_62 = arith.constant 0 : index
    %c0_63 = arith.constant 0 : index
    %132 = vector.load %arg6[%c0_62, %c0_63] : memref<1x128xf32, #tpu.memory_space<vmem>>, vector<1x128xf32>
    %133 = vector.broadcast %132 : vector<1x128xf32> to vector<8x128xf32>
    %134 = arith.addf %131, %133 : vector<8x128xf32>
    %cst_64 = arith.constant 0.000000e+00 : f32
    %135 = vector.broadcast %cst_64 : f32 to vector<8x128xf32>
    %136 = arith.maximumf %134, %135 : vector<8x128xf32>
    %137 = tpu.concatenate %136, %61 in 1 : vector<8x128xf32>, vector<8x128xf32> -> vector<8x256xf32>
    %138 = arith.truncf %137 : vector<8x256xf32> to vector<8x256xbf16>
    %c0_65 = arith.constant 0 : index
    %c0_66 = arith.constant 0 : index
    %c0_67 = arith.constant 0 : index
    %139 = vector.load %arg7[%c0_65, %c0_66, %c0_67] : memref<2x256x512xbf16, #tpu.memory_space<vmem>>, vector<1x256x512xbf16>
    %140 = vector.shape_cast %139 : vector<1x256x512xbf16> to vector<256x512xbf16>
    %cst_68 = arith.constant dense<0.000000e+00> : vector<8x512xf32>
    %141 = tpu.matmul %138, %140, %cst_68 {dimension_numbers = #tpu.dot_dimension_numbers<[1], [0], [0], [1], [0, 0, 1, 1], [], []>} : vector<8x256xbf16>, vector<256x512xbf16>, vector<8x512xf32> -> vector<8x512xf32>
    %c0_69 = arith.constant 0 : index
    %c0_70 = arith.constant 0 : index
    %c0_71 = arith.constant 0 : index
    %142 = vector.load %arg8[%c0_69, %c0_70, %c0_71] : memref<2x1x512xf32, #tpu.memory_space<vmem>>, vector<1x1x512xf32>
    %143 = vector.shape_cast %142 : vector<1x1x512xf32> to vector<1x512xf32>
    %144 = vector.broadcast %143 : vector<1x512xf32> to vector<8x512xf32>
    %145 = arith.addf %141, %144 : vector<8x512xf32>
    %146 = vector.extract_strided_slice %145 {offsets = [0, 0], sizes = [8, 128], strides = [1, 1]} : vector<8x512xf32> to vector<8x128xf32>
    %147 = arith.negf %146 : vector<8x128xf32>
    %148 = math.exp %147 : vector<8x128xf32>
    %cst_72 = arith.constant 1.000000e+00 : f32
    %149 = vector.broadcast %cst_72 : f32 to vector<8x128xf32>
    %150 = arith.addf %149, %148 : vector<8x128xf32>
    %151 = arith.divf %149, %150 : vector<8x128xf32>
    %152 = vector.extract_strided_slice %145 {offsets = [0, 128], sizes = [8, 128], strides = [1, 1]} : vector<8x512xf32> to vector<8x128xf32>
    %153 = arith.negf %152 : vector<8x128xf32>
    %154 = math.exp %153 : vector<8x128xf32>
    %cst_73 = arith.constant 1.000000e+00 : f32
    %155 = vector.broadcast %cst_73 : f32 to vector<8x128xf32>
    %156 = arith.addf %155, %154 : vector<8x128xf32>
    %157 = arith.divf %155, %156 : vector<8x128xf32>
    %158 = vector.extract_strided_slice %145 {offsets = [0, 256], sizes = [8, 128], strides = [1, 1]} : vector<8x512xf32> to vector<8x128xf32>
    %159 = math.tanh %158 : vector<8x128xf32>
    %160 = vector.extract_strided_slice %145 {offsets = [0, 384], sizes = [8, 128], strides = [1, 1]} : vector<8x512xf32> to vector<8x128xf32>
    %161 = arith.negf %160 : vector<8x128xf32>
    %162 = math.exp %161 : vector<8x128xf32>
    %cst_74 = arith.constant 1.000000e+00 : f32
    %163 = vector.broadcast %cst_74 : f32 to vector<8x128xf32>
    %164 = arith.addf %163, %162 : vector<8x128xf32>
    %165 = arith.divf %163, %164 : vector<8x128xf32>
    %166 = arith.mulf %157, %59 : vector<8x128xf32>
    %167 = arith.mulf %151, %159 : vector<8x128xf32>
    %168 = arith.addf %166, %167 : vector<8x128xf32>
    %169 = math.tanh %168 : vector<8x128xf32>
    %170 = arith.mulf %165, %169 : vector<8x128xf32>
    %171 = tpu.concatenate %170, %95 in 1 : vector<8x128xf32>, vector<8x128xf32> -> vector<8x256xf32>
    %172 = arith.truncf %171 : vector<8x256xf32> to vector<8x256xbf16>
    %c1_75 = arith.constant 1 : index
    %c0_76 = arith.constant 0 : index
    %c0_77 = arith.constant 0 : index
    %173 = vector.load %arg7[%c1_75, %c0_76, %c0_77] : memref<2x256x512xbf16, #tpu.memory_space<vmem>>, vector<1x256x512xbf16>
    %174 = vector.shape_cast %173 : vector<1x256x512xbf16> to vector<256x512xbf16>
    %cst_78 = arith.constant dense<0.000000e+00> : vector<8x512xf32>
    %175 = tpu.matmul %172, %174, %cst_78 {dimension_numbers = #tpu.dot_dimension_numbers<[1], [0], [0], [1], [0, 0, 1, 1], [], []>} : vector<8x256xbf16>, vector<256x512xbf16>, vector<8x512xf32> -> vector<8x512xf32>
    %c1_79 = arith.constant 1 : index
    %c0_80 = arith.constant 0 : index
    %c0_81 = arith.constant 0 : index
    %176 = vector.load %arg8[%c1_79, %c0_80, %c0_81] : memref<2x1x512xf32, #tpu.memory_space<vmem>>, vector<1x1x512xf32>
    %177 = vector.shape_cast %176 : vector<1x1x512xf32> to vector<1x512xf32>
    %178 = vector.broadcast %177 : vector<1x512xf32> to vector<8x512xf32>
    %179 = arith.addf %175, %178 : vector<8x512xf32>
    %180 = vector.extract_strided_slice %179 {offsets = [0, 0], sizes = [8, 128], strides = [1, 1]} : vector<8x512xf32> to vector<8x128xf32>
    %181 = arith.negf %180 : vector<8x128xf32>
    %182 = math.exp %181 : vector<8x128xf32>
    %cst_82 = arith.constant 1.000000e+00 : f32
    %183 = vector.broadcast %cst_82 : f32 to vector<8x128xf32>
    %184 = arith.addf %183, %182 : vector<8x128xf32>
    %185 = arith.divf %183, %184 : vector<8x128xf32>
    %186 = vector.extract_strided_slice %179 {offsets = [0, 128], sizes = [8, 128], strides = [1, 1]} : vector<8x512xf32> to vector<8x128xf32>
    %187 = arith.negf %186 : vector<8x128xf32>
    %188 = math.exp %187 : vector<8x128xf32>
    %cst_83 = arith.constant 1.000000e+00 : f32
    %189 = vector.broadcast %cst_83 : f32 to vector<8x128xf32>
    %190 = arith.addf %189, %188 : vector<8x128xf32>
    %191 = arith.divf %189, %190 : vector<8x128xf32>
    %192 = vector.extract_strided_slice %179 {offsets = [0, 256], sizes = [8, 128], strides = [1, 1]} : vector<8x512xf32> to vector<8x128xf32>
    %193 = math.tanh %192 : vector<8x128xf32>
    %194 = vector.extract_strided_slice %179 {offsets = [0, 384], sizes = [8, 128], strides = [1, 1]} : vector<8x512xf32> to vector<8x128xf32>
    %195 = arith.negf %194 : vector<8x128xf32>
    %196 = math.exp %195 : vector<8x128xf32>
    %cst_84 = arith.constant 1.000000e+00 : f32
    %197 = vector.broadcast %cst_84 : f32 to vector<8x128xf32>
    %198 = arith.addf %197, %196 : vector<8x128xf32>
    %199 = arith.divf %197, %198 : vector<8x128xf32>
    %200 = arith.mulf %191, %93 : vector<8x128xf32>
    %201 = arith.mulf %185, %193 : vector<8x128xf32>
    %202 = arith.addf %200, %201 : vector<8x128xf32>
    %203 = math.tanh %202 : vector<8x128xf32>
    %204 = arith.mulf %199, %203 : vector<8x128xf32>
    %205 = arith.truncf %204 : vector<8x128xf32> to vector<8x128xbf16>
    %c0_85 = arith.constant 0 : index
    %c0_86 = arith.constant 0 : index
    %206 = vector.load %arg9[%c0_85, %c0_86] : memref<128x128xbf16, #tpu.memory_space<vmem>>, vector<128x128xbf16>
    %cst_87 = arith.constant dense<0.000000e+00> : vector<8x128xf32>
    %207 = tpu.matmul %205, %206, %cst_87 {dimension_numbers = #tpu.dot_dimension_numbers<[1], [0], [0], [1], [0, 0, 1, 1], [], []>} : vector<8x128xbf16>, vector<128x128xbf16>, vector<8x128xf32> -> vector<8x128xf32>
    %c0_88 = arith.constant 0 : index
    %c0_89 = arith.constant 0 : index
    %208 = vector.load %arg10[%c0_88, %c0_89] : memref<1x128xf32, #tpu.memory_space<vmem>>, vector<1x128xf32>
    %209 = vector.broadcast %208 : vector<1x128xf32> to vector<8x128xf32>
    %210 = arith.addf %207, %209 : vector<8x128xf32>
    %cst_90 = arith.constant 0.000000e+00 : f32
    %211 = vector.broadcast %cst_90 : f32 to vector<8x128xf32>
    %212 = arith.maximumf %210, %211 : vector<8x128xf32>
    %213 = arith.truncf %212 : vector<8x128xf32> to vector<8x128xbf16>
    %c0_91 = arith.constant 0 : index
    %c0_92 = arith.constant 0 : index
    %214 = vector.load %arg11[%c0_91, %c0_92] : memref<128x128xbf16, #tpu.memory_space<vmem>>, vector<128x128xbf16>
    %cst_93 = arith.constant dense<0.000000e+00> : vector<8x128xf32>
    %215 = tpu.matmul %213, %214, %cst_93 {dimension_numbers = #tpu.dot_dimension_numbers<[1], [0], [0], [1], [0, 0, 1, 1], [], []>} : vector<8x128xbf16>, vector<128x128xbf16>, vector<8x128xf32> -> vector<8x128xf32>
    %c0_94 = arith.constant 0 : index
    %c0_95 = arith.constant 0 : index
    %216 = vector.load %arg12[%c0_94, %c0_95] : memref<1x128xf32, #tpu.memory_space<vmem>>, vector<1x128xf32>
    %217 = vector.broadcast %216 : vector<1x128xf32> to vector<8x128xf32>
    %218 = arith.addf %215, %217 : vector<8x128xf32>
    %219 = arith.addf %218, %120 : vector<8x128xf32>
    %220 = vector.shape_cast %219 : vector<8x128xf32> to vector<1x8x128xf32>
    %221 = arith.index_cast %c1_i32_49 : i32 to index
    %c0_96 = arith.constant 0 : index
    %c0_97 = arith.constant 0 : index
    %222 = vector.load %arg13[%221, %c0_96, %c0_97] : memref<7x8x128xf32, #tpu.memory_space<vmem>>, vector<1x8x128xf32>
    tpu.vector_store %arg13[%221, %c0_96, %c0_97], %220 {strides = array<i32>} : memref<7x8x128xf32, #tpu.memory_space<vmem>>, vector<1x8x128xf32>,
    %c2_i32 = arith.constant 2 : i32
    %223 = arith.index_cast %c2_i32 : i32 to index
    %224 = memref.load %arg1[%223] : memref<7xi32, #tpu.memory_space<smem>>
    %c1_i32_98 = arith.constant 1 : i32
    %225 = arith.cmpi eq, %224, %c1_i32_98 : i32
    %226 = arith.index_cast %c2_i32 : i32 to index
    %c0_99 = arith.constant 0 : index
    %c0_100 = arith.constant 0 : index
    %227 = vector.load %arg2[%226, %c0_99, %c0_100] : memref<7x8x128xf32, #tpu.memory_space<vmem>>, vector<1x8x128xf32>
    %228 = vector.shape_cast %227 : vector<1x8x128xf32> to vector<8x128xf32>
    %229 = arith.select %225, %228, %219 : vector<8x128xf32>
    %230 = arith.truncf %229 : vector<8x128xf32> to vector<8x128xbf16>
    %c0_101 = arith.constant 0 : index
    %c0_102 = arith.constant 0 : index
    %231 = vector.load %arg3[%c0_101, %c0_102] : memref<128x128xbf16, #tpu.memory_space<vmem>>, vector<128x128xbf16>
    %cst_103 = arith.constant dense<0.000000e+00> : vector<8x128xf32>
    %232 = tpu.matmul %230, %231, %cst_103 {dimension_numbers = #tpu.dot_dimension_numbers<[1], [0], [0], [1], [0, 0, 1, 1], [], []>} : vector<8x128xbf16>, vector<128x128xbf16>, vector<8x128xf32> -> vector<8x128xf32>
    %c0_104 = arith.constant 0 : index
    %c0_105 = arith.constant 0 : index
    %233 = vector.load %arg4[%c0_104, %c0_105] : memref<1x128xf32, #tpu.memory_space<vmem>>, vector<1x128xf32>
    %234 = vector.broadcast %233 : vector<1x128xf32> to vector<8x128xf32>
    %235 = arith.addf %232, %234 : vector<8x128xf32>
    %cst_106 = arith.constant 0.000000e+00 : f32
    %236 = vector.broadcast %cst_106 : f32 to vector<8x128xf32>
    %237 = arith.maximumf %235, %236 : vector<8x128xf32>
    %238 = arith.truncf %237 : vector<8x128xf32> to vector<8x128xbf16>
    %c0_107 = arith.constant 0 : index
    %c0_108 = arith.constant 0 : index
    %239 = vector.load %arg5[%c0_107, %c0_108] : memref<128x128xbf16, #tpu.memory_space<vmem>>, vector<128x128xbf16>
    %cst_109 = arith.constant dense<0.000000e+00> : vector<8x128xf32>
    %240 = tpu.matmul %238, %239, %cst_109 {dimension_numbers = #tpu.dot_dimension_numbers<[1], [0], [0], [1], [0, 0, 1, 1], [], []>} : vector<8x128xbf16>, vector<128x128xbf16>, vector<8x128xf32> -> vector<8x128xf32>
    %c0_110 = arith.constant 0 : index
    %c0_111 = arith.constant 0 : index
    %241 = vector.load %arg6[%c0_110, %c0_111] : memref<1x128xf32, #tpu.memory_space<vmem>>, vector<1x128xf32>
    %242 = vector.broadcast %241 : vector<1x128xf32> to vector<8x128xf32>
    %243 = arith.addf %240, %242 : vector<8x128xf32>
    %cst_112 = arith.constant 0.000000e+00 : f32
    %244 = vector.broadcast %cst_112 : f32 to vector<8x128xf32>
    %245 = arith.maximumf %243, %244 : vector<8x128xf32>
    %246 = tpu.concatenate %245, %170 in 1 : vector<8x128xf32>, vector<8x128xf32> -> vector<8x256xf32>
    %247 = arith.truncf %246 : vector<8x256xf32> to vector<8x256xbf16>
    %c0_113 = arith.constant 0 : index
    %c0_114 = arith.constant 0 : index
    %c0_115 = arith.constant 0 : index
    %248 = vector.load %arg7[%c0_113, %c0_114, %c0_115] : memref<2x256x512xbf16, #tpu.memory_space<vmem>>, vector<1x256x512xbf16>
    %249 = vector.shape_cast %248 : vector<1x256x512xbf16> to vector<256x512xbf16>
    %cst_116 = arith.constant dense<0.000000e+00> : vector<8x512xf32>
    %250 = tpu.matmul %247, %249, %cst_116 {dimension_numbers = #tpu.dot_dimension_numbers<[1], [0], [0], [1], [0, 0, 1, 1], [], []>} : vector<8x256xbf16>, vector<256x512xbf16>, vector<8x512xf32> -> vector<8x512xf32>
    %c0_117 = arith.constant 0 : index
    %c0_118 = arith.constant 0 : index
    %c0_119 = arith.constant 0 : index
    %251 = vector.load %arg8[%c0_117, %c0_118, %c0_119] : memref<2x1x512xf32, #tpu.memory_space<vmem>>, vector<1x1x512xf32>
    %252 = vector.shape_cast %251 : vector<1x1x512xf32> to vector<1x512xf32>
    %253 = vector.broadcast %252 : vector<1x512xf32> to vector<8x512xf32>
    %254 = arith.addf %250, %253 : vector<8x512xf32>
    %255 = vector.extract_strided_slice %254 {offsets = [0, 0], sizes = [8, 128], strides = [1, 1]} : vector<8x512xf32> to vector<8x128xf32>
    %256 = arith.negf %255 : vector<8x128xf32>
    %257 = math.exp %256 : vector<8x128xf32>
    %cst_120 = arith.constant 1.000000e+00 : f32
    %258 = vector.broadcast %cst_120 : f32 to vector<8x128xf32>
    %259 = arith.addf %258, %257 : vector<8x128xf32>
    %260 = arith.divf %258, %259 : vector<8x128xf32>
    %261 = vector.extract_strided_slice %254 {offsets = [0, 128], sizes = [8, 128], strides = [1, 1]} : vector<8x512xf32> to vector<8x128xf32>
    %262 = arith.negf %261 : vector<8x128xf32>
    %263 = math.exp %262 : vector<8x128xf32>
    %cst_121 = arith.constant 1.000000e+00 : f32
    %264 = vector.broadcast %cst_121 : f32 to vector<8x128xf32>
    %265 = arith.addf %264, %263 : vector<8x128xf32>
    %266 = arith.divf %264, %265 : vector<8x128xf32>
    %267 = vector.extract_strided_slice %254 {offsets = [0, 256], sizes = [8, 128], strides = [1, 1]} : vector<8x512xf32> to vector<8x128xf32>
    %268 = math.tanh %267 : vector<8x128xf32>
    %269 = vector.extract_strided_slice %254 {offsets = [0, 384], sizes = [8, 128], strides = [1, 1]} : vector<8x512xf32> to vector<8x128xf32>
    %270 = arith.negf %269 : vector<8x128xf32>
    %271 = math.exp %270 : vector<8x128xf32>
    %cst_122 = arith.constant 1.000000e+00 : f32
    %272 = vector.broadcast %cst_122 : f32 to vector<8x128xf32>
    %273 = arith.addf %272, %271 : vector<8x128xf32>
    %274 = arith.divf %272, %273 : vector<8x128xf32>
    %275 = arith.mulf %266, %168 : vector<8x128xf32>
    %276 = arith.mulf %260, %268 : vector<8x128xf32>
    %277 = arith.addf %275, %276 : vector<8x128xf32>
    %278 = math.tanh %277 : vector<8x128xf32>
    %279 = arith.mulf %274, %278 : vector<8x128xf32>
    %280 = tpu.concatenate %279, %204 in 1 : vector<8x128xf32>, vector<8x128xf32> -> vector<8x256xf32>
    %281 = arith.truncf %280 : vector<8x256xf32> to vector<8x256xbf16>
    %c1_123 = arith.constant 1 : index
    %c0_124 = arith.constant 0 : index
    %c0_125 = arith.constant 0 : index
    %282 = vector.load %arg7[%c1_123, %c0_124, %c0_125] : memref<2x256x512xbf16, #tpu.memory_space<vmem>>, vector<1x256x512xbf16>
    %283 = vector.shape_cast %282 : vector<1x256x512xbf16> to vector<256x512xbf16>
    %cst_126 = arith.constant dense<0.000000e+00> : vector<8x512xf32>
    %284 = tpu.matmul %281, %283, %cst_126 {dimension_numbers = #tpu.dot_dimension_numbers<[1], [0], [0], [1], [0, 0, 1, 1], [], []>} : vector<8x256xbf16>, vector<256x512xbf16>, vector<8x512xf32> -> vector<8x512xf32>
    %c1_127 = arith.constant 1 : index
    %c0_128 = arith.constant 0 : index
    %c0_129 = arith.constant 0 : index
    %285 = vector.load %arg8[%c1_127, %c0_128, %c0_129] : memref<2x1x512xf32, #tpu.memory_space<vmem>>, vector<1x1x512xf32>
    %286 = vector.shape_cast %285 : vector<1x1x512xf32> to vector<1x512xf32>
    %287 = vector.broadcast %286 : vector<1x512xf32> to vector<8x512xf32>
    %288 = arith.addf %284, %287 : vector<8x512xf32>
    %289 = vector.extract_strided_slice %288 {offsets = [0, 0], sizes = [8, 128], strides = [1, 1]} : vector<8x512xf32> to vector<8x128xf32>
    %290 = arith.negf %289 : vector<8x128xf32>
    %291 = math.exp %290 : vector<8x128xf32>
    %cst_130 = arith.constant 1.000000e+00 : f32
    %292 = vector.broadcast %cst_130 : f32 to vector<8x128xf32>
    %293 = arith.addf %292, %291 : vector<8x128xf32>
    %294 = arith.divf %292, %293 : vector<8x128xf32>
    %295 = vector.extract_strided_slice %288 {offsets = [0, 128], sizes = [8, 128], strides = [1, 1]} : vector<8x512xf32> to vector<8x128xf32>
    %296 = arith.negf %295 : vector<8x128xf32>
    %297 = math.exp %296 : vector<8x128xf32>
    %cst_131 = arith.constant 1.000000e+00 : f32
    %298 = vector.broadcast %cst_131 : f32 to vector<8x128xf32>
    %299 = arith.addf %298, %297 : vector<8x128xf32>
    %300 = arith.divf %298, %299 : vector<8x128xf32>
    %301 = vector.extract_strided_slice %288 {offsets = [0, 256], sizes = [8, 128], strides = [1, 1]} : vector<8x512xf32> to vector<8x128xf32>
    %302 = math.tanh %301 : vector<8x128xf32>
    %303 = vector.extract_strided_slice %288 {offsets = [0, 384], sizes = [8, 128], strides = [1, 1]} : vector<8x512xf32> to vector<8x128xf32>
    %304 = arith.negf %303 : vector<8x128xf32>
    %305 = math.exp %304 : vector<8x128xf32>
    %cst_132 = arith.constant 1.000000e+00 : f32
    %306 = vector.broadcast %cst_132 : f32 to vector<8x128xf32>
    %307 = arith.addf %306, %305 : vector<8x128xf32>
    %308 = arith.divf %306, %307 : vector<8x128xf32>
    %309 = arith.mulf %300, %202 : vector<8x128xf32>
    %310 = arith.mulf %294, %302 : vector<8x128xf32>
    %311 = arith.addf %309, %310 : vector<8x128xf32>
    %312 = math.tanh %311 : vector<8x128xf32>
    %313 = arith.mulf %308, %312 : vector<8x128xf32>
    %314 = arith.truncf %313 : vector<8x128xf32> to vector<8x128xbf16>
    %c0_133 = arith.constant 0 : index
    %c0_134 = arith.constant 0 : index
    %315 = vector.load %arg9[%c0_133, %c0_134] : memref<128x128xbf16, #tpu.memory_space<vmem>>, vector<128x128xbf16>
    %cst_135 = arith.constant dense<0.000000e+00> : vector<8x128xf32>
    %316 = tpu.matmul %314, %315, %cst_135 {dimension_numbers = #tpu.dot_dimension_numbers<[1], [0], [0], [1], [0, 0, 1, 1], [], []>} : vector<8x128xbf16>, vector<128x128xbf16>, vector<8x128xf32> -> vector<8x128xf32>
    %c0_136 = arith.constant 0 : index
    %c0_137 = arith.constant 0 : index
    %317 = vector.load %arg10[%c0_136, %c0_137] : memref<1x128xf32, #tpu.memory_space<vmem>>, vector<1x128xf32>
    %318 = vector.broadcast %317 : vector<1x128xf32> to vector<8x128xf32>
    %319 = arith.addf %316, %318 : vector<8x128xf32>
    %cst_138 = arith.constant 0.000000e+00 : f32
    %320 = vector.broadcast %cst_138 : f32 to vector<8x128xf32>
    %321 = arith.maximumf %319, %320 : vector<8x128xf32>
    %322 = arith.truncf %321 : vector<8x128xf32> to vector<8x128xbf16>
    %c0_139 = arith.constant 0 : index
    %c0_140 = arith.constant 0 : index
    %323 = vector.load %arg11[%c0_139, %c0_140] : memref<128x128xbf16, #tpu.memory_space<vmem>>, vector<128x128xbf16>
    %cst_141 = arith.constant dense<0.000000e+00> : vector<8x128xf32>
    %324 = tpu.matmul %322, %323, %cst_141 {dimension_numbers = #tpu.dot_dimension_numbers<[1], [0], [0], [1], [0, 0, 1, 1], [], []>} : vector<8x128xbf16>, vector<128x128xbf16>, vector<8x128xf32> -> vector<8x128xf32>
    %c0_142 = arith.constant 0 : index
    %c0_143 = arith.constant 0 : index
    %325 = vector.load %arg12[%c0_142, %c0_143] : memref<1x128xf32, #tpu.memory_space<vmem>>, vector<1x128xf32>
    %326 = vector.broadcast %325 : vector<1x128xf32> to vector<8x128xf32>
    %327 = arith.addf %324, %326 : vector<8x128xf32>
    %328 = arith.addf %327, %229 : vector<8x128xf32>
    %329 = vector.shape_cast %328 : vector<8x128xf32> to vector<1x8x128xf32>
    %330 = arith.index_cast %c2_i32 : i32 to index
    %c0_144 = arith.constant 0 : index
    %c0_145 = arith.constant 0 : index
    %331 = vector.load %arg13[%330, %c0_144, %c0_145] : memref<7x8x128xf32, #tpu.memory_space<vmem>>, vector<1x8x128xf32>
    tpu.vector_store %arg13[%330, %c0_144, %c0_145], %329 {strides = array<i32>} : memref<7x8x128xf32, #tpu.memory_space<vmem>>, vector<1x8x128xf32>,
    %c3_i32 = arith.constant 3 : i32
    %332 = arith.index_cast %c3_i32 : i32 to index
    %333 = memref.load %arg1[%332] : memref<7xi32, #tpu.memory_space<smem>>
    %c1_i32_146 = arith.constant 1 : i32
    %334 = arith.cmpi eq, %333, %c1_i32_146 : i32
    %335 = arith.index_cast %c3_i32 : i32 to index
    %c0_147 = arith.constant 0 : index
    %c0_148 = arith.constant 0 : index
    %336 = vector.load %arg2[%335, %c0_147, %c0_148] : memref<7x8x128xf32, #tpu.memory_space<vmem>>, vector<1x8x128xf32>
    %337 = vector.shape_cast %336 : vector<1x8x128xf32> to vector<8x128xf32>
    %338 = arith.select %334, %337, %328 : vector<8x128xf32>
    %339 = arith.truncf %338 : vector<8x128xf32> to vector<8x128xbf16>
    %c0_149 = arith.constant 0 : index
    %c0_150 = arith.constant 0 : index
    %340 = vector.load %arg3[%c0_149, %c0_150] : memref<128x128xbf16, #tpu.memory_space<vmem>>, vector<128x128xbf16>
    %cst_151 = arith.constant dense<0.000000e+00> : vector<8x128xf32>
    %341 = tpu.matmul %339, %340, %cst_151 {dimension_numbers = #tpu.dot_dimension_numbers<[1], [0], [0], [1], [0, 0, 1, 1], [], []>} : vector<8x128xbf16>, vector<128x128xbf16>, vector<8x128xf32> -> vector<8x128xf32>
    %c0_152 = arith.constant 0 : index
    %c0_153 = arith.constant 0 : index
    %342 = vector.load %arg4[%c0_152, %c0_153] : memref<1x128xf32, #tpu.memory_space<vmem>>, vector<1x128xf32>
    %343 = vector.broadcast %342 : vector<1x128xf32> to vector<8x128xf32>
    %344 = arith.addf %341, %343 : vector<8x128xf32>
    %cst_154 = arith.constant 0.000000e+00 : f32
    %345 = vector.broadcast %cst_154 : f32 to vector<8x128xf32>
    %346 = arith.maximumf %344, %345 : vector<8x128xf32>
    %347 = arith.truncf %346 : vector<8x128xf32> to vector<8x128xbf16>
    %c0_155 = arith.constant 0 : index
    %c0_156 = arith.constant 0 : index
    %348 = vector.load %arg5[%c0_155, %c0_156] : memref<128x128xbf16, #tpu.memory_space<vmem>>, vector<128x128xbf16>
    %cst_157 = arith.constant dense<0.000000e+00> : vector<8x128xf32>
    %349 = tpu.matmul %347, %348, %cst_157 {dimension_numbers = #tpu.dot_dimension_numbers<[1], [0], [0], [1], [0, 0, 1, 1], [], []>} : vector<8x128xbf16>, vector<128x128xbf16>, vector<8x128xf32> -> vector<8x128xf32>
    %c0_158 = arith.constant 0 : index
    %c0_159 = arith.constant 0 : index
    %350 = vector.load %arg6[%c0_158, %c0_159] : memref<1x128xf32, #tpu.memory_space<vmem>>, vector<1x128xf32>
    %351 = vector.broadcast %350 : vector<1x128xf32> to vector<8x128xf32>
    %352 = arith.addf %349, %351 : vector<8x128xf32>
    %cst_160 = arith.constant 0.000000e+00 : f32
    %353 = vector.broadcast %cst_160 : f32 to vector<8x128xf32>
    %354 = arith.maximumf %352, %353 : vector<8x128xf32>
    %355 = tpu.concatenate %354, %279 in 1 : vector<8x128xf32>, vector<8x128xf32> -> vector<8x256xf32>
    %356 = arith.truncf %355 : vector<8x256xf32> to vector<8x256xbf16>
    %c0_161 = arith.constant 0 : index
    %c0_162 = arith.constant 0 : index
    %c0_163 = arith.constant 0 : index
    %357 = vector.load %arg7[%c0_161, %c0_162, %c0_163] : memref<2x256x512xbf16, #tpu.memory_space<vmem>>, vector<1x256x512xbf16>
    %358 = vector.shape_cast %357 : vector<1x256x512xbf16> to vector<256x512xbf16>
    %cst_164 = arith.constant dense<0.000000e+00> : vector<8x512xf32>
    %359 = tpu.matmul %356, %358, %cst_164 {dimension_numbers = #tpu.dot_dimension_numbers<[1], [0], [0], [1], [0, 0, 1, 1], [], []>} : vector<8x256xbf16>, vector<256x512xbf16>, vector<8x512xf32> -> vector<8x512xf32>
    %c0_165 = arith.constant 0 : index
    %c0_166 = arith.constant 0 : index
    %c0_167 = arith.constant 0 : index
    %360 = vector.load %arg8[%c0_165, %c0_166, %c0_167] : memref<2x1x512xf32, #tpu.memory_space<vmem>>, vector<1x1x512xf32>
    %361 = vector.shape_cast %360 : vector<1x1x512xf32> to vector<1x512xf32>
    %362 = vector.broadcast %361 : vector<1x512xf32> to vector<8x512xf32>
    %363 = arith.addf %359, %362 : vector<8x512xf32>
    %364 = vector.extract_strided_slice %363 {offsets = [0, 0], sizes = [8, 128], strides = [1, 1]} : vector<8x512xf32> to vector<8x128xf32>
    %365 = arith.negf %364 : vector<8x128xf32>
    %366 = math.exp %365 : vector<8x128xf32>
    %cst_168 = arith.constant 1.000000e+00 : f32
    %367 = vector.broadcast %cst_168 : f32 to vector<8x128xf32>
    %368 = arith.addf %367, %366 : vector<8x128xf32>
    %369 = arith.divf %367, %368 : vector<8x128xf32>
    %370 = vector.extract_strided_slice %363 {offsets = [0, 128], sizes = [8, 128], strides = [1, 1]} : vector<8x512xf32> to vector<8x128xf32>
    %371 = arith.negf %370 : vector<8x128xf32>
    %372 = math.exp %371 : vector<8x128xf32>
    %cst_169 = arith.constant 1.000000e+00 : f32
    %373 = vector.broadcast %cst_169 : f32 to vector<8x128xf32>
    %374 = arith.addf %373, %372 : vector<8x128xf32>
    %375 = arith.divf %373, %374 : vector<8x128xf32>
    %376 = vector.extract_strided_slice %363 {offsets = [0, 256], sizes = [8, 128], strides = [1, 1]} : vector<8x512xf32> to vector<8x128xf32>
    %377 = math.tanh %376 : vector<8x128xf32>
    %378 = vector.extract_strided_slice %363 {offsets = [0, 384], sizes = [8, 128], strides = [1, 1]} : vector<8x512xf32> to vector<8x128xf32>
    %379 = arith.negf %378 : vector<8x128xf32>
    %380 = math.exp %379 : vector<8x128xf32>
    %cst_170 = arith.constant 1.000000e+00 : f32
    %381 = vector.broadcast %cst_170 : f32 to vector<8x128xf32>
    %382 = arith.addf %381, %380 : vector<8x128xf32>
    %383 = arith.divf %381, %382 : vector<8x128xf32>
    %384 = arith.mulf %375, %277 : vector<8x128xf32>
    %385 = arith.mulf %369, %377 : vector<8x128xf32>
    %386 = arith.addf %384, %385 : vector<8x128xf32>
    %387 = math.tanh %386 : vector<8x128xf32>
    %388 = arith.mulf %383, %387 : vector<8x128xf32>
    %389 = tpu.concatenate %388, %313 in 1 : vector<8x128xf32>, vector<8x128xf32> -> vector<8x256xf32>
    %390 = arith.truncf %389 : vector<8x256xf32> to vector<8x256xbf16>
    %c1_171 = arith.constant 1 : index
    %c0_172 = arith.constant 0 : index
    %c0_173 = arith.constant 0 : index
    %391 = vector.load %arg7[%c1_171, %c0_172, %c0_173] : memref<2x256x512xbf16, #tpu.memory_space<vmem>>, vector<1x256x512xbf16>
    %392 = vector.shape_cast %391 : vector<1x256x512xbf16> to vector<256x512xbf16>
    %cst_174 = arith.constant dense<0.000000e+00> : vector<8x512xf32>
    %393 = tpu.matmul %390, %392, %cst_174 {dimension_numbers = #tpu.dot_dimension_numbers<[1], [0], [0], [1], [0, 0, 1, 1], [], []>} : vector<8x256xbf16>, vector<256x512xbf16>, vector<8x512xf32> -> vector<8x512xf32>
    %c1_175 = arith.constant 1 : index
    %c0_176 = arith.constant 0 : index
    %c0_177 = arith.constant 0 : index
    %394 = vector.load %arg8[%c1_175, %c0_176, %c0_177] : memref<2x1x512xf32, #tpu.memory_space<vmem>>, vector<1x1x512xf32>
    %395 = vector.shape_cast %394 : vector<1x1x512xf32> to vector<1x512xf32>
    %396 = vector.broadcast %395 : vector<1x512xf32> to vector<8x512xf32>
    %397 = arith.addf %393, %396 : vector<8x512xf32>
    %398 = vector.extract_strided_slice %397 {offsets = [0, 0], sizes = [8, 128], strides = [1, 1]} : vector<8x512xf32> to vector<8x128xf32>
    %399 = arith.negf %398 : vector<8x128xf32>
    %400 = math.exp %399 : vector<8x128xf32>
    %cst_178 = arith.constant 1.000000e+00 : f32
    %401 = vector.broadcast %cst_178 : f32 to vector<8x128xf32>
    %402 = arith.addf %401, %400 : vector<8x128xf32>
    %403 = arith.divf %401, %402 : vector<8x128xf32>
    %404 = vector.extract_strided_slice %397 {offsets = [0, 128], sizes = [8, 128], strides = [1, 1]} : vector<8x512xf32> to vector<8x128xf32>
    %405 = arith.negf %404 : vector<8x128xf32>
    %406 = math.exp %405 : vector<8x128xf32>
    %cst_179 = arith.constant 1.000000e+00 : f32
    %407 = vector.broadcast %cst_179 : f32 to vector<8x128xf32>
    %408 = arith.addf %407, %406 : vector<8x128xf32>
    %409 = arith.divf %407, %408 : vector<8x128xf32>
    %410 = vector.extract_strided_slice %397 {offsets = [0, 256], sizes = [8, 128], strides = [1, 1]} : vector<8x512xf32> to vector<8x128xf32>
    %411 = math.tanh %410 : vector<8x128xf32>
    %412 = vector.extract_strided_slice %397 {offsets = [0, 384], sizes = [8, 128], strides = [1, 1]} : vector<8x512xf32> to vector<8x128xf32>
    %413 = arith.negf %412 : vector<8x128xf32>
    %414 = math.exp %413 : vector<8x128xf32>
    %cst_180 = arith.constant 1.000000e+00 : f32
    %415 = vector.broadcast %cst_180 : f32 to vector<8x128xf32>
    %416 = arith.addf %415, %414 : vector<8x128xf32>
    %417 = arith.divf %415, %416 : vector<8x128xf32>
    %418 = arith.mulf %409, %311 : vector<8x128xf32>
    %419 = arith.mulf %403, %411 : vector<8x128xf32>
    %420 = arith.addf %418, %419 : vector<8x128xf32>
    %421 = math.tanh %420 : vector<8x128xf32>
    %422 = arith.mulf %417, %421 : vector<8x128xf32>
    %423 = arith.truncf %422 : vector<8x128xf32> to vector<8x128xbf16>
    %c0_181 = arith.constant 0 : index
    %c0_182 = arith.constant 0 : index
    %424 = vector.load %arg9[%c0_181, %c0_182] : memref<128x128xbf16, #tpu.memory_space<vmem>>, vector<128x128xbf16>
    %cst_183 = arith.constant dense<0.000000e+00> : vector<8x128xf32>
    %425 = tpu.matmul %423, %424, %cst_183 {dimension_numbers = #tpu.dot_dimension_numbers<[1], [0], [0], [1], [0, 0, 1, 1], [], []>} : vector<8x128xbf16>, vector<128x128xbf16>, vector<8x128xf32> -> vector<8x128xf32>
    %c0_184 = arith.constant 0 : index
    %c0_185 = arith.constant 0 : index
    %426 = vector.load %arg10[%c0_184, %c0_185] : memref<1x128xf32, #tpu.memory_space<vmem>>, vector<1x128xf32>
    %427 = vector.broadcast %426 : vector<1x128xf32> to vector<8x128xf32>
    %428 = arith.addf %425, %427 : vector<8x128xf32>
    %cst_186 = arith.constant 0.000000e+00 : f32
    %429 = vector.broadcast %cst_186 : f32 to vector<8x128xf32>
    %430 = arith.maximumf %428, %429 : vector<8x128xf32>
    %431 = arith.truncf %430 : vector<8x128xf32> to vector<8x128xbf16>
    %c0_187 = arith.constant 0 : index
    %c0_188 = arith.constant 0 : index
    %432 = vector.load %arg11[%c0_187, %c0_188] : memref<128x128xbf16, #tpu.memory_space<vmem>>, vector<128x128xbf16>
    %cst_189 = arith.constant dense<0.000000e+00> : vector<8x128xf32>
    %433 = tpu.matmul %431, %432, %cst_189 {dimension_numbers = #tpu.dot_dimension_numbers<[1], [0], [0], [1], [0, 0, 1, 1], [], []>} : vector<8x128xbf16>, vector<128x128xbf16>, vector<8x128xf32> -> vector<8x128xf32>
    %c0_190 = arith.constant 0 : index
    %c0_191 = arith.constant 0 : index
    %434 = vector.load %arg12[%c0_190, %c0_191] : memref<1x128xf32, #tpu.memory_space<vmem>>, vector<1x128xf32>
    %435 = vector.broadcast %434 : vector<1x128xf32> to vector<8x128xf32>
    %436 = arith.addf %433, %435 : vector<8x128xf32>
    %437 = arith.addf %436, %338 : vector<8x128xf32>
    %438 = vector.shape_cast %437 : vector<8x128xf32> to vector<1x8x128xf32>
    %439 = arith.index_cast %c3_i32 : i32 to index
    %c0_192 = arith.constant 0 : index
    %c0_193 = arith.constant 0 : index
    %440 = vector.load %arg13[%439, %c0_192, %c0_193] : memref<7x8x128xf32, #tpu.memory_space<vmem>>, vector<1x8x128xf32>
    tpu.vector_store %arg13[%439, %c0_192, %c0_193], %438 {strides = array<i32>} : memref<7x8x128xf32, #tpu.memory_space<vmem>>, vector<1x8x128xf32>,
    %c4_i32 = arith.constant 4 : i32
    %441 = arith.index_cast %c4_i32 : i32 to index
    %442 = memref.load %arg1[%441] : memref<7xi32, #tpu.memory_space<smem>>
    %c1_i32_194 = arith.constant 1 : i32
    %443 = arith.cmpi eq, %442, %c1_i32_194 : i32
    %444 = arith.index_cast %c4_i32 : i32 to index
    %c0_195 = arith.constant 0 : index
    %c0_196 = arith.constant 0 : index
    %445 = vector.load %arg2[%444, %c0_195, %c0_196] : memref<7x8x128xf32, #tpu.memory_space<vmem>>, vector<1x8x128xf32>
    %446 = vector.shape_cast %445 : vector<1x8x128xf32> to vector<8x128xf32>
    %447 = arith.select %443, %446, %437 : vector<8x128xf32>
    %448 = arith.truncf %447 : vector<8x128xf32> to vector<8x128xbf16>
    %c0_197 = arith.constant 0 : index
    %c0_198 = arith.constant 0 : index
    %449 = vector.load %arg3[%c0_197, %c0_198] : memref<128x128xbf16, #tpu.memory_space<vmem>>, vector<128x128xbf16>
    %cst_199 = arith.constant dense<0.000000e+00> : vector<8x128xf32>
    %450 = tpu.matmul %448, %449, %cst_199 {dimension_numbers = #tpu.dot_dimension_numbers<[1], [0], [0], [1], [0, 0, 1, 1], [], []>} : vector<8x128xbf16>, vector<128x128xbf16>, vector<8x128xf32> -> vector<8x128xf32>
    %c0_200 = arith.constant 0 : index
    %c0_201 = arith.constant 0 : index
    %451 = vector.load %arg4[%c0_200, %c0_201] : memref<1x128xf32, #tpu.memory_space<vmem>>, vector<1x128xf32>
    %452 = vector.broadcast %451 : vector<1x128xf32> to vector<8x128xf32>
    %453 = arith.addf %450, %452 : vector<8x128xf32>
    %cst_202 = arith.constant 0.000000e+00 : f32
    %454 = vector.broadcast %cst_202 : f32 to vector<8x128xf32>
    %455 = arith.maximumf %453, %454 : vector<8x128xf32>
    %456 = arith.truncf %455 : vector<8x128xf32> to vector<8x128xbf16>
    %c0_203 = arith.constant 0 : index
    %c0_204 = arith.constant 0 : index
    %457 = vector.load %arg5[%c0_203, %c0_204] : memref<128x128xbf16, #tpu.memory_space<vmem>>, vector<128x128xbf16>
    %cst_205 = arith.constant dense<0.000000e+00> : vector<8x128xf32>
    %458 = tpu.matmul %456, %457, %cst_205 {dimension_numbers = #tpu.dot_dimension_numbers<[1], [0], [0], [1], [0, 0, 1, 1], [], []>} : vector<8x128xbf16>, vector<128x128xbf16>, vector<8x128xf32> -> vector<8x128xf32>
    %c0_206 = arith.constant 0 : index
    %c0_207 = arith.constant 0 : index
    %459 = vector.load %arg6[%c0_206, %c0_207] : memref<1x128xf32, #tpu.memory_space<vmem>>, vector<1x128xf32>
    %460 = vector.broadcast %459 : vector<1x128xf32> to vector<8x128xf32>
    %461 = arith.addf %458, %460 : vector<8x128xf32>
    %cst_208 = arith.constant 0.000000e+00 : f32
    %462 = vector.broadcast %cst_208 : f32 to vector<8x128xf32>
    %463 = arith.maximumf %461, %462 : vector<8x128xf32>
    %464 = tpu.concatenate %463, %388 in 1 : vector<8x128xf32>, vector<8x128xf32> -> vector<8x256xf32>
    %465 = arith.truncf %464 : vector<8x256xf32> to vector<8x256xbf16>
    %c0_209 = arith.constant 0 : index
    %c0_210 = arith.constant 0 : index
    %c0_211 = arith.constant 0 : index
    %466 = vector.load %arg7[%c0_209, %c0_210, %c0_211] : memref<2x256x512xbf16, #tpu.memory_space<vmem>>, vector<1x256x512xbf16>
    %467 = vector.shape_cast %466 : vector<1x256x512xbf16> to vector<256x512xbf16>
    %cst_212 = arith.constant dense<0.000000e+00> : vector<8x512xf32>
    %468 = tpu.matmul %465, %467, %cst_212 {dimension_numbers = #tpu.dot_dimension_numbers<[1], [0], [0], [1], [0, 0, 1, 1], [], []>} : vector<8x256xbf16>, vector<256x512xbf16>, vector<8x512xf32> -> vector<8x512xf32>
    %c0_213 = arith.constant 0 : index
    %c0_214 = arith.constant 0 : index
    %c0_215 = arith.constant 0 : index
    %469 = vector.load %arg8[%c0_213, %c0_214, %c0_215] : memref<2x1x512xf32, #tpu.memory_space<vmem>>, vector<1x1x512xf32>
    %470 = vector.shape_cast %469 : vector<1x1x512xf32> to vector<1x512xf32>
    %471 = vector.broadcast %470 : vector<1x512xf32> to vector<8x512xf32>
    %472 = arith.addf %468, %471 : vector<8x512xf32>
    %473 = vector.extract_strided_slice %472 {offsets = [0, 0], sizes = [8, 128], strides = [1, 1]} : vector<8x512xf32> to vector<8x128xf32>
    %474 = arith.negf %473 : vector<8x128xf32>
    %475 = math.exp %474 : vector<8x128xf32>
    %cst_216 = arith.constant 1.000000e+00 : f32
    %476 = vector.broadcast %cst_216 : f32 to vector<8x128xf32>
    %477 = arith.addf %476, %475 : vector<8x128xf32>
    %478 = arith.divf %476, %477 : vector<8x128xf32>
    %479 = vector.extract_strided_slice %472 {offsets = [0, 128], sizes = [8, 128], strides = [1, 1]} : vector<8x512xf32> to vector<8x128xf32>
    %480 = arith.negf %479 : vector<8x128xf32>
    %481 = math.exp %480 : vector<8x128xf32>
    %cst_217 = arith.constant 1.000000e+00 : f32
    %482 = vector.broadcast %cst_217 : f32 to vector<8x128xf32>
    %483 = arith.addf %482, %481 : vector<8x128xf32>
    %484 = arith.divf %482, %483 : vector<8x128xf32>
    %485 = vector.extract_strided_slice %472 {offsets = [0, 256], sizes = [8, 128], strides = [1, 1]} : vector<8x512xf32> to vector<8x128xf32>
    %486 = math.tanh %485 : vector<8x128xf32>
    %487 = vector.extract_strided_slice %472 {offsets = [0, 384], sizes = [8, 128], strides = [1, 1]} : vector<8x512xf32> to vector<8x128xf32>
    %488 = arith.negf %487 : vector<8x128xf32>
    %489 = math.exp %488 : vector<8x128xf32>
    %cst_218 = arith.constant 1.000000e+00 : f32
    %490 = vector.broadcast %cst_218 : f32 to vector<8x128xf32>
    %491 = arith.addf %490, %489 : vector<8x128xf32>
    %492 = arith.divf %490, %491 : vector<8x128xf32>
    %493 = arith.mulf %484, %386 : vector<8x128xf32>
    %494 = arith.mulf %478, %486 : vector<8x128xf32>
    %495 = arith.addf %493, %494 : vector<8x128xf32>
    %496 = math.tanh %495 : vector<8x128xf32>
    %497 = arith.mulf %492, %496 : vector<8x128xf32>
    %498 = tpu.concatenate %497, %422 in 1 : vector<8x128xf32>, vector<8x128xf32> -> vector<8x256xf32>
    %499 = arith.truncf %498 : vector<8x256xf32> to vector<8x256xbf16>
    %c1_219 = arith.constant 1 : index
    %c0_220 = arith.constant 0 : index
    %c0_221 = arith.constant 0 : index
    %500 = vector.load %arg7[%c1_219, %c0_220, %c0_221] : memref<2x256x512xbf16, #tpu.memory_space<vmem>>, vector<1x256x512xbf16>
    %501 = vector.shape_cast %500 : vector<1x256x512xbf16> to vector<256x512xbf16>
    %cst_222 = arith.constant dense<0.000000e+00> : vector<8x512xf32>
    %502 = tpu.matmul %499, %501, %cst_222 {dimension_numbers = #tpu.dot_dimension_numbers<[1], [0], [0], [1], [0, 0, 1, 1], [], []>} : vector<8x256xbf16>, vector<256x512xbf16>, vector<8x512xf32> -> vector<8x512xf32>
    %c1_223 = arith.constant 1 : index
    %c0_224 = arith.constant 0 : index
    %c0_225 = arith.constant 0 : index
    %503 = vector.load %arg8[%c1_223, %c0_224, %c0_225] : memref<2x1x512xf32, #tpu.memory_space<vmem>>, vector<1x1x512xf32>
    %504 = vector.shape_cast %503 : vector<1x1x512xf32> to vector<1x512xf32>
    %505 = vector.broadcast %504 : vector<1x512xf32> to vector<8x512xf32>
    %506 = arith.addf %502, %505 : vector<8x512xf32>
    %507 = vector.extract_strided_slice %506 {offsets = [0, 0], sizes = [8, 128], strides = [1, 1]} : vector<8x512xf32> to vector<8x128xf32>
    %508 = arith.negf %507 : vector<8x128xf32>
    %509 = math.exp %508 : vector<8x128xf32>
    %cst_226 = arith.constant 1.000000e+00 : f32
    %510 = vector.broadcast %cst_226 : f32 to vector<8x128xf32>
    %511 = arith.addf %510, %509 : vector<8x128xf32>
    %512 = arith.divf %510, %511 : vector<8x128xf32>
    %513 = vector.extract_strided_slice %506 {offsets = [0, 128], sizes = [8, 128], strides = [1, 1]} : vector<8x512xf32> to vector<8x128xf32>
    %514 = arith.negf %513 : vector<8x128xf32>
    %515 = math.exp %514 : vector<8x128xf32>
    %cst_227 = arith.constant 1.000000e+00 : f32
    %516 = vector.broadcast %cst_227 : f32 to vector<8x128xf32>
    %517 = arith.addf %516, %515 : vector<8x128xf32>
    %518 = arith.divf %516, %517 : vector<8x128xf32>
    %519 = vector.extract_strided_slice %506 {offsets = [0, 256], sizes = [8, 128], strides = [1, 1]} : vector<8x512xf32> to vector<8x128xf32>
    %520 = math.tanh %519 : vector<8x128xf32>
    %521 = vector.extract_strided_slice %506 {offsets = [0, 384], sizes = [8, 128], strides = [1, 1]} : vector<8x512xf32> to vector<8x128xf32>
    %522 = arith.negf %521 : vector<8x128xf32>
    %523 = math.exp %522 : vector<8x128xf32>
    %cst_228 = arith.constant 1.000000e+00 : f32
    %524 = vector.broadcast %cst_228 : f32 to vector<8x128xf32>
    %525 = arith.addf %524, %523 : vector<8x128xf32>
    %526 = arith.divf %524, %525 : vector<8x128xf32>
    %527 = arith.mulf %518, %420 : vector<8x128xf32>
    %528 = arith.mulf %512, %520 : vector<8x128xf32>
    %529 = arith.addf %527, %528 : vector<8x128xf32>
    %530 = math.tanh %529 : vector<8x128xf32>
    %531 = arith.mulf %526, %530 : vector<8x128xf32>
    %532 = arith.truncf %531 : vector<8x128xf32> to vector<8x128xbf16>
    %c0_229 = arith.constant 0 : index
    %c0_230 = arith.constant 0 : index
    %533 = vector.load %arg9[%c0_229, %c0_230] : memref<128x128xbf16, #tpu.memory_space<vmem>>, vector<128x128xbf16>
    %cst_231 = arith.constant dense<0.000000e+00> : vector<8x128xf32>
    %534 = tpu.matmul %532, %533, %cst_231 {dimension_numbers = #tpu.dot_dimension_numbers<[1], [0], [0], [1], [0, 0, 1, 1], [], []>} : vector<8x128xbf16>, vector<128x128xbf16>, vector<8x128xf32> -> vector<8x128xf32>
    %c0_232 = arith.constant 0 : index
    %c0_233 = arith.constant 0 : index
    %535 = vector.load %arg10[%c0_232, %c0_233] : memref<1x128xf32, #tpu.memory_space<vmem>>, vector<1x128xf32>
    %536 = vector.broadcast %535 : vector<1x128xf32> to vector<8x128xf32>
    %537 = arith.addf %534, %536 : vector<8x128xf32>
    %cst_234 = arith.constant 0.000000e+00 : f32
    %538 = vector.broadcast %cst_234 : f32 to vector<8x128xf32>
    %539 = arith.maximumf %537, %538 : vector<8x128xf32>
    %540 = arith.truncf %539 : vector<8x128xf32> to vector<8x128xbf16>
    %c0_235 = arith.constant 0 : index
    %c0_236 = arith.constant 0 : index
    %541 = vector.load %arg11[%c0_235, %c0_236] : memref<128x128xbf16, #tpu.memory_space<vmem>>, vector<128x128xbf16>
    %cst_237 = arith.constant dense<0.000000e+00> : vector<8x128xf32>
    %542 = tpu.matmul %540, %541, %cst_237 {dimension_numbers = #tpu.dot_dimension_numbers<[1], [0], [0], [1], [0, 0, 1, 1], [], []>} : vector<8x128xbf16>, vector<128x128xbf16>, vector<8x128xf32> -> vector<8x128xf32>
    %c0_238 = arith.constant 0 : index
    %c0_239 = arith.constant 0 : index
    %543 = vector.load %arg12[%c0_238, %c0_239] : memref<1x128xf32, #tpu.memory_space<vmem>>, vector<1x128xf32>
    %544 = vector.broadcast %543 : vector<1x128xf32> to vector<8x128xf32>
    %545 = arith.addf %542, %544 : vector<8x128xf32>
    %546 = arith.addf %545, %447 : vector<8x128xf32>
    %547 = vector.shape_cast %546 : vector<8x128xf32> to vector<1x8x128xf32>
    %548 = arith.index_cast %c4_i32 : i32 to index
    %c0_240 = arith.constant 0 : index
    %c0_241 = arith.constant 0 : index
    %549 = vector.load %arg13[%548, %c0_240, %c0_241] : memref<7x8x128xf32, #tpu.memory_space<vmem>>, vector<1x8x128xf32>
    tpu.vector_store %arg13[%548, %c0_240, %c0_241], %547 {strides = array<i32>} : memref<7x8x128xf32, #tpu.memory_space<vmem>>, vector<1x8x128xf32>,
    %c5_i32 = arith.constant 5 : i32
    %550 = arith.index_cast %c5_i32 : i32 to index
    %551 = memref.load %arg1[%550] : memref<7xi32, #tpu.memory_space<smem>>
    %c1_i32_242 = arith.constant 1 : i32
    %552 = arith.cmpi eq, %551, %c1_i32_242 : i32
    %553 = arith.index_cast %c5_i32 : i32 to index
    %c0_243 = arith.constant 0 : index
    %c0_244 = arith.constant 0 : index
    %554 = vector.load %arg2[%553, %c0_243, %c0_244] : memref<7x8x128xf32, #tpu.memory_space<vmem>>, vector<1x8x128xf32>
    %555 = vector.shape_cast %554 : vector<1x8x128xf32> to vector<8x128xf32>
    %556 = arith.select %552, %555, %546 : vector<8x128xf32>
    %557 = arith.truncf %556 : vector<8x128xf32> to vector<8x128xbf16>
    %c0_245 = arith.constant 0 : index
    %c0_246 = arith.constant 0 : index
    %558 = vector.load %arg3[%c0_245, %c0_246] : memref<128x128xbf16, #tpu.memory_space<vmem>>, vector<128x128xbf16>
    %cst_247 = arith.constant dense<0.000000e+00> : vector<8x128xf32>
    %559 = tpu.matmul %557, %558, %cst_247 {dimension_numbers = #tpu.dot_dimension_numbers<[1], [0], [0], [1], [0, 0, 1, 1], [], []>} : vector<8x128xbf16>, vector<128x128xbf16>, vector<8x128xf32> -> vector<8x128xf32>
    %c0_248 = arith.constant 0 : index
    %c0_249 = arith.constant 0 : index
    %560 = vector.load %arg4[%c0_248, %c0_249] : memref<1x128xf32, #tpu.memory_space<vmem>>, vector<1x128xf32>
    %561 = vector.broadcast %560 : vector<1x128xf32> to vector<8x128xf32>
    %562 = arith.addf %559, %561 : vector<8x128xf32>
    %cst_250 = arith.constant 0.000000e+00 : f32
    %563 = vector.broadcast %cst_250 : f32 to vector<8x128xf32>
    %564 = arith.maximumf %562, %563 : vector<8x128xf32>
    %565 = arith.truncf %564 : vector<8x128xf32> to vector<8x128xbf16>
    %c0_251 = arith.constant 0 : index
    %c0_252 = arith.constant 0 : index
    %566 = vector.load %arg5[%c0_251, %c0_252] : memref<128x128xbf16, #tpu.memory_space<vmem>>, vector<128x128xbf16>
    %cst_253 = arith.constant dense<0.000000e+00> : vector<8x128xf32>
    %567 = tpu.matmul %565, %566, %cst_253 {dimension_numbers = #tpu.dot_dimension_numbers<[1], [0], [0], [1], [0, 0, 1, 1], [], []>} : vector<8x128xbf16>, vector<128x128xbf16>, vector<8x128xf32> -> vector<8x128xf32>
    %c0_254 = arith.constant 0 : index
    %c0_255 = arith.constant 0 : index
    %568 = vector.load %arg6[%c0_254, %c0_255] : memref<1x128xf32, #tpu.memory_space<vmem>>, vector<1x128xf32>
    %569 = vector.broadcast %568 : vector<1x128xf32> to vector<8x128xf32>
    %570 = arith.addf %567, %569 : vector<8x128xf32>
    %cst_256 = arith.constant 0.000000e+00 : f32
    %571 = vector.broadcast %cst_256 : f32 to vector<8x128xf32>
    %572 = arith.maximumf %570, %571 : vector<8x128xf32>
    %573 = tpu.concatenate %572, %497 in 1 : vector<8x128xf32>, vector<8x128xf32> -> vector<8x256xf32>
    %574 = arith.truncf %573 : vector<8x256xf32> to vector<8x256xbf16>
    %c0_257 = arith.constant 0 : index
    %c0_258 = arith.constant 0 : index
    %c0_259 = arith.constant 0 : index
    %575 = vector.load %arg7[%c0_257, %c0_258, %c0_259] : memref<2x256x512xbf16, #tpu.memory_space<vmem>>, vector<1x256x512xbf16>
    %576 = vector.shape_cast %575 : vector<1x256x512xbf16> to vector<256x512xbf16>
    %cst_260 = arith.constant dense<0.000000e+00> : vector<8x512xf32>
    %577 = tpu.matmul %574, %576, %cst_260 {dimension_numbers = #tpu.dot_dimension_numbers<[1], [0], [0], [1], [0, 0, 1, 1], [], []>} : vector<8x256xbf16>, vector<256x512xbf16>, vector<8x512xf32> -> vector<8x512xf32>
    %c0_261 = arith.constant 0 : index
    %c0_262 = arith.constant 0 : index
    %c0_263 = arith.constant 0 : index
    %578 = vector.load %arg8[%c0_261, %c0_262, %c0_263] : memref<2x1x512xf32, #tpu.memory_space<vmem>>, vector<1x1x512xf32>
    %579 = vector.shape_cast %578 : vector<1x1x512xf32> to vector<1x512xf32>
    %580 = vector.broadcast %579 : vector<1x512xf32> to vector<8x512xf32>
    %581 = arith.addf %577, %580 : vector<8x512xf32>
    %582 = vector.extract_strided_slice %581 {offsets = [0, 0], sizes = [8, 128], strides = [1, 1]} : vector<8x512xf32> to vector<8x128xf32>
    %583 = arith.negf %582 : vector<8x128xf32>
    %584 = math.exp %583 : vector<8x128xf32>
    %cst_264 = arith.constant 1.000000e+00 : f32
    %585 = vector.broadcast %cst_264 : f32 to vector<8x128xf32>
    %586 = arith.addf %585, %584 : vector<8x128xf32>
    %587 = arith.divf %585, %586 : vector<8x128xf32>
    %588 = vector.extract_strided_slice %581 {offsets = [0, 128], sizes = [8, 128], strides = [1, 1]} : vector<8x512xf32> to vector<8x128xf32>
    %589 = arith.negf %588 : vector<8x128xf32>
    %590 = math.exp %589 : vector<8x128xf32>
    %cst_265 = arith.constant 1.000000e+00 : f32
    %591 = vector.broadcast %cst_265 : f32 to vector<8x128xf32>
    %592 = arith.addf %591, %590 : vector<8x128xf32>
    %593 = arith.divf %591, %592 : vector<8x128xf32>
    %594 = vector.extract_strided_slice %581 {offsets = [0, 256], sizes = [8, 128], strides = [1, 1]} : vector<8x512xf32> to vector<8x128xf32>
    %595 = math.tanh %594 : vector<8x128xf32>
    %596 = vector.extract_strided_slice %581 {offsets = [0, 384], sizes = [8, 128], strides = [1, 1]} : vector<8x512xf32> to vector<8x128xf32>
    %597 = arith.negf %596 : vector<8x128xf32>
    %598 = math.exp %597 : vector<8x128xf32>
    %cst_266 = arith.constant 1.000000e+00 : f32
    %599 = vector.broadcast %cst_266 : f32 to vector<8x128xf32>
    %600 = arith.addf %599, %598 : vector<8x128xf32>
    %601 = arith.divf %599, %600 : vector<8x128xf32>
    %602 = arith.mulf %593, %495 : vector<8x128xf32>
    %603 = arith.mulf %587, %595 : vector<8x128xf32>
    %604 = arith.addf %602, %603 : vector<8x128xf32>
    %605 = math.tanh %604 : vector<8x128xf32>
    %606 = arith.mulf %601, %605 : vector<8x128xf32>
    %607 = tpu.concatenate %606, %531 in 1 : vector<8x128xf32>, vector<8x128xf32> -> vector<8x256xf32>
    %608 = arith.truncf %607 : vector<8x256xf32> to vector<8x256xbf16>
    %c1_267 = arith.constant 1 : index
    %c0_268 = arith.constant 0 : index
    %c0_269 = arith.constant 0 : index
    %609 = vector.load %arg7[%c1_267, %c0_268, %c0_269] : memref<2x256x512xbf16, #tpu.memory_space<vmem>>, vector<1x256x512xbf16>
    %610 = vector.shape_cast %609 : vector<1x256x512xbf16> to vector<256x512xbf16>
    %cst_270 = arith.constant dense<0.000000e+00> : vector<8x512xf32>
    %611 = tpu.matmul %608, %610, %cst_270 {dimension_numbers = #tpu.dot_dimension_numbers<[1], [0], [0], [1], [0, 0, 1, 1], [], []>} : vector<8x256xbf16>, vector<256x512xbf16>, vector<8x512xf32> -> vector<8x512xf32>
    %c1_271 = arith.constant 1 : index
    %c0_272 = arith.constant 0 : index
    %c0_273 = arith.constant 0 : index
    %612 = vector.load %arg8[%c1_271, %c0_272, %c0_273] : memref<2x1x512xf32, #tpu.memory_space<vmem>>, vector<1x1x512xf32>
    %613 = vector.shape_cast %612 : vector<1x1x512xf32> to vector<1x512xf32>
    %614 = vector.broadcast %613 : vector<1x512xf32> to vector<8x512xf32>
    %615 = arith.addf %611, %614 : vector<8x512xf32>
    %616 = vector.extract_strided_slice %615 {offsets = [0, 0], sizes = [8, 128], strides = [1, 1]} : vector<8x512xf32> to vector<8x128xf32>
    %617 = arith.negf %616 : vector<8x128xf32>
    %618 = math.exp %617 : vector<8x128xf32>
    %cst_274 = arith.constant 1.000000e+00 : f32
    %619 = vector.broadcast %cst_274 : f32 to vector<8x128xf32>
    %620 = arith.addf %619, %618 : vector<8x128xf32>
    %621 = arith.divf %619, %620 : vector<8x128xf32>
    %622 = vector.extract_strided_slice %615 {offsets = [0, 128], sizes = [8, 128], strides = [1, 1]} : vector<8x512xf32> to vector<8x128xf32>
    %623 = arith.negf %622 : vector<8x128xf32>
    %624 = math.exp %623 : vector<8x128xf32>
    %cst_275 = arith.constant 1.000000e+00 : f32
    %625 = vector.broadcast %cst_275 : f32 to vector<8x128xf32>
    %626 = arith.addf %625, %624 : vector<8x128xf32>
    %627 = arith.divf %625, %626 : vector<8x128xf32>
    %628 = vector.extract_strided_slice %615 {offsets = [0, 256], sizes = [8, 128], strides = [1, 1]} : vector<8x512xf32> to vector<8x128xf32>
    %629 = math.tanh %628 : vector<8x128xf32>
    %630 = vector.extract_strided_slice %615 {offsets = [0, 384], sizes = [8, 128], strides = [1, 1]} : vector<8x512xf32> to vector<8x128xf32>
    %631 = arith.negf %630 : vector<8x128xf32>
    %632 = math.exp %631 : vector<8x128xf32>
    %cst_276 = arith.constant 1.000000e+00 : f32
    %633 = vector.broadcast %cst_276 : f32 to vector<8x128xf32>
    %634 = arith.addf %633, %632 : vector<8x128xf32>
    %635 = arith.divf %633, %634 : vector<8x128xf32>
    %636 = arith.mulf %627, %529 : vector<8x128xf32>
    %637 = arith.mulf %621, %629 : vector<8x128xf32>
    %638 = arith.addf %636, %637 : vector<8x128xf32>
    %639 = math.tanh %638 : vector<8x128xf32>
    %640 = arith.mulf %635, %639 : vector<8x128xf32>
    %641 = arith.truncf %640 : vector<8x128xf32> to vector<8x128xbf16>
    %c0_277 = arith.constant 0 : index
    %c0_278 = arith.constant 0 : index
    %642 = vector.load %arg9[%c0_277, %c0_278] : memref<128x128xbf16, #tpu.memory_space<vmem>>, vector<128x128xbf16>
    %cst_279 = arith.constant dense<0.000000e+00> : vector<8x128xf32>
    %643 = tpu.matmul %641, %642, %cst_279 {dimension_numbers = #tpu.dot_dimension_numbers<[1], [0], [0], [1], [0, 0, 1, 1], [], []>} : vector<8x128xbf16>, vector<128x128xbf16>, vector<8x128xf32> -> vector<8x128xf32>
    %c0_280 = arith.constant 0 : index
    %c0_281 = arith.constant 0 : index
    %644 = vector.load %arg10[%c0_280, %c0_281] : memref<1x128xf32, #tpu.memory_space<vmem>>, vector<1x128xf32>
    %645 = vector.broadcast %644 : vector<1x128xf32> to vector<8x128xf32>
    %646 = arith.addf %643, %645 : vector<8x128xf32>
    %cst_282 = arith.constant 0.000000e+00 : f32
    %647 = vector.broadcast %cst_282 : f32 to vector<8x128xf32>
    %648 = arith.maximumf %646, %647 : vector<8x128xf32>
    %649 = arith.truncf %648 : vector<8x128xf32> to vector<8x128xbf16>
    %c0_283 = arith.constant 0 : index
    %c0_284 = arith.constant 0 : index
    %650 = vector.load %arg11[%c0_283, %c0_284] : memref<128x128xbf16, #tpu.memory_space<vmem>>, vector<128x128xbf16>
    %cst_285 = arith.constant dense<0.000000e+00> : vector<8x128xf32>
    %651 = tpu.matmul %649, %650, %cst_285 {dimension_numbers = #tpu.dot_dimension_numbers<[1], [0], [0], [1], [0, 0, 1, 1], [], []>} : vector<8x128xbf16>, vector<128x128xbf16>, vector<8x128xf32> -> vector<8x128xf32>
    %c0_286 = arith.constant 0 : index
    %c0_287 = arith.constant 0 : index
    %652 = vector.load %arg12[%c0_286, %c0_287] : memref<1x128xf32, #tpu.memory_space<vmem>>, vector<1x128xf32>
    %653 = vector.broadcast %652 : vector<1x128xf32> to vector<8x128xf32>
    %654 = arith.addf %651, %653 : vector<8x128xf32>
    %655 = arith.addf %654, %556 : vector<8x128xf32>
    %656 = vector.shape_cast %655 : vector<8x128xf32> to vector<1x8x128xf32>
    %657 = arith.index_cast %c5_i32 : i32 to index
    %c0_288 = arith.constant 0 : index
    %c0_289 = arith.constant 0 : index
    %658 = vector.load %arg13[%657, %c0_288, %c0_289] : memref<7x8x128xf32, #tpu.memory_space<vmem>>, vector<1x8x128xf32>
    tpu.vector_store %arg13[%657, %c0_288, %c0_289], %656 {strides = array<i32>} : memref<7x8x128xf32, #tpu.memory_space<vmem>>, vector<1x8x128xf32>,
    %c6_i32 = arith.constant 6 : i32
    %659 = arith.index_cast %c6_i32 : i32 to index
    %660 = memref.load %arg1[%659] : memref<7xi32, #tpu.memory_space<smem>>
    %c1_i32_290 = arith.constant 1 : i32
    %661 = arith.cmpi eq, %660, %c1_i32_290 : i32
    %662 = arith.index_cast %c6_i32 : i32 to index
    %c0_291 = arith.constant 0 : index
    %c0_292 = arith.constant 0 : index
    %663 = vector.load %arg2[%662, %c0_291, %c0_292] : memref<7x8x128xf32, #tpu.memory_space<vmem>>, vector<1x8x128xf32>
    %664 = vector.shape_cast %663 : vector<1x8x128xf32> to vector<8x128xf32>
    %665 = arith.select %661, %664, %655 : vector<8x128xf32>
    %666 = arith.truncf %665 : vector<8x128xf32> to vector<8x128xbf16>
    %c0_293 = arith.constant 0 : index
    %c0_294 = arith.constant 0 : index
    %667 = vector.load %arg3[%c0_293, %c0_294] : memref<128x128xbf16, #tpu.memory_space<vmem>>, vector<128x128xbf16>
    %cst_295 = arith.constant dense<0.000000e+00> : vector<8x128xf32>
    %668 = tpu.matmul %666, %667, %cst_295 {dimension_numbers = #tpu.dot_dimension_numbers<[1], [0], [0], [1], [0, 0, 1, 1], [], []>} : vector<8x128xbf16>, vector<128x128xbf16>, vector<8x128xf32> -> vector<8x128xf32>
    %c0_296 = arith.constant 0 : index
    %c0_297 = arith.constant 0 : index
    %669 = vector.load %arg4[%c0_296, %c0_297] : memref<1x128xf32, #tpu.memory_space<vmem>>, vector<1x128xf32>
    %670 = vector.broadcast %669 : vector<1x128xf32> to vector<8x128xf32>
    %671 = arith.addf %668, %670 : vector<8x128xf32>
    %cst_298 = arith.constant 0.000000e+00 : f32
    %672 = vector.broadcast %cst_298 : f32 to vector<8x128xf32>
    %673 = arith.maximumf %671, %672 : vector<8x128xf32>
    %674 = arith.truncf %673 : vector<8x128xf32> to vector<8x128xbf16>
    %c0_299 = arith.constant 0 : index
    %c0_300 = arith.constant 0 : index
    %675 = vector.load %arg5[%c0_299, %c0_300] : memref<128x128xbf16, #tpu.memory_space<vmem>>, vector<128x128xbf16>
    %cst_301 = arith.constant dense<0.000000e+00> : vector<8x128xf32>
    %676 = tpu.matmul %674, %675, %cst_301 {dimension_numbers = #tpu.dot_dimension_numbers<[1], [0], [0], [1], [0, 0, 1, 1], [], []>} : vector<8x128xbf16>, vector<128x128xbf16>, vector<8x128xf32> -> vector<8x128xf32>
    %c0_302 = arith.constant 0 : index
    %c0_303 = arith.constant 0 : index
    %677 = vector.load %arg6[%c0_302, %c0_303] : memref<1x128xf32, #tpu.memory_space<vmem>>, vector<1x128xf32>
    %678 = vector.broadcast %677 : vector<1x128xf32> to vector<8x128xf32>
    %679 = arith.addf %676, %678 : vector<8x128xf32>
    %cst_304 = arith.constant 0.000000e+00 : f32
    %680 = vector.broadcast %cst_304 : f32 to vector<8x128xf32>
    %681 = arith.maximumf %679, %680 : vector<8x128xf32>
    %682 = tpu.concatenate %681, %606 in 1 : vector<8x128xf32>, vector<8x128xf32> -> vector<8x256xf32>
    %683 = arith.truncf %682 : vector<8x256xf32> to vector<8x256xbf16>
    %c0_305 = arith.constant 0 : index
    %c0_306 = arith.constant 0 : index
    %c0_307 = arith.constant 0 : index
    %684 = vector.load %arg7[%c0_305, %c0_306, %c0_307] : memref<2x256x512xbf16, #tpu.memory_space<vmem>>, vector<1x256x512xbf16>
    %685 = vector.shape_cast %684 : vector<1x256x512xbf16> to vector<256x512xbf16>
    %cst_308 = arith.constant dense<0.000000e+00> : vector<8x512xf32>
    %686 = tpu.matmul %683, %685, %cst_308 {dimension_numbers = #tpu.dot_dimension_numbers<[1], [0], [0], [1], [0, 0, 1, 1], [], []>} : vector<8x256xbf16>, vector<256x512xbf16>, vector<8x512xf32> -> vector<8x512xf32>
    %c0_309 = arith.constant 0 : index
    %c0_310 = arith.constant 0 : index
    %c0_311 = arith.constant 0 : index
    %687 = vector.load %arg8[%c0_309, %c0_310, %c0_311] : memref<2x1x512xf32, #tpu.memory_space<vmem>>, vector<1x1x512xf32>
    %688 = vector.shape_cast %687 : vector<1x1x512xf32> to vector<1x512xf32>
    %689 = vector.broadcast %688 : vector<1x512xf32> to vector<8x512xf32>
    %690 = arith.addf %686, %689 : vector<8x512xf32>
    %691 = vector.extract_strided_slice %690 {offsets = [0, 0], sizes = [8, 128], strides = [1, 1]} : vector<8x512xf32> to vector<8x128xf32>
    %692 = arith.negf %691 : vector<8x128xf32>
    %693 = math.exp %692 : vector<8x128xf32>
    %cst_312 = arith.constant 1.000000e+00 : f32
    %694 = vector.broadcast %cst_312 : f32 to vector<8x128xf32>
    %695 = arith.addf %694, %693 : vector<8x128xf32>
    %696 = arith.divf %694, %695 : vector<8x128xf32>
    %697 = vector.extract_strided_slice %690 {offsets = [0, 128], sizes = [8, 128], strides = [1, 1]} : vector<8x512xf32> to vector<8x128xf32>
    %698 = arith.negf %697 : vector<8x128xf32>
    %699 = math.exp %698 : vector<8x128xf32>
    %cst_313 = arith.constant 1.000000e+00 : f32
    %700 = vector.broadcast %cst_313 : f32 to vector<8x128xf32>
    %701 = arith.addf %700, %699 : vector<8x128xf32>
    %702 = arith.divf %700, %701 : vector<8x128xf32>
    %703 = vector.extract_strided_slice %690 {offsets = [0, 256], sizes = [8, 128], strides = [1, 1]} : vector<8x512xf32> to vector<8x128xf32>
    %704 = math.tanh %703 : vector<8x128xf32>
    %705 = vector.extract_strided_slice %690 {offsets = [0, 384], sizes = [8, 128], strides = [1, 1]} : vector<8x512xf32> to vector<8x128xf32>
    %706 = arith.negf %705 : vector<8x128xf32>
    %707 = math.exp %706 : vector<8x128xf32>
    %cst_314 = arith.constant 1.000000e+00 : f32
    %708 = vector.broadcast %cst_314 : f32 to vector<8x128xf32>
    %709 = arith.addf %708, %707 : vector<8x128xf32>
    %710 = arith.divf %708, %709 : vector<8x128xf32>
    %711 = arith.mulf %702, %604 : vector<8x128xf32>
    %712 = arith.mulf %696, %704 : vector<8x128xf32>
    %713 = arith.addf %711, %712 : vector<8x128xf32>
    %714 = math.tanh %713 : vector<8x128xf32>
    %715 = arith.mulf %710, %714 : vector<8x128xf32>
    %716 = tpu.concatenate %715, %640 in 1 : vector<8x128xf32>, vector<8x128xf32> -> vector<8x256xf32>
    %717 = arith.truncf %716 : vector<8x256xf32> to vector<8x256xbf16>
    %c1_315 = arith.constant 1 : index
    %c0_316 = arith.constant 0 : index
    %c0_317 = arith.constant 0 : index
    %718 = vector.load %arg7[%c1_315, %c0_316, %c0_317] : memref<2x256x512xbf16, #tpu.memory_space<vmem>>, vector<1x256x512xbf16>
    %719 = vector.shape_cast %718 : vector<1x256x512xbf16> to vector<256x512xbf16>
    %cst_318 = arith.constant dense<0.000000e+00> : vector<8x512xf32>
    %720 = tpu.matmul %717, %719, %cst_318 {dimension_numbers = #tpu.dot_dimension_numbers<[1], [0], [0], [1], [0, 0, 1, 1], [], []>} : vector<8x256xbf16>, vector<256x512xbf16>, vector<8x512xf32> -> vector<8x512xf32>
    %c1_319 = arith.constant 1 : index
    %c0_320 = arith.constant 0 : index
    %c0_321 = arith.constant 0 : index
    %721 = vector.load %arg8[%c1_319, %c0_320, %c0_321] : memref<2x1x512xf32, #tpu.memory_space<vmem>>, vector<1x1x512xf32>
    %722 = vector.shape_cast %721 : vector<1x1x512xf32> to vector<1x512xf32>
    %723 = vector.broadcast %722 : vector<1x512xf32> to vector<8x512xf32>
    %724 = arith.addf %720, %723 : vector<8x512xf32>
    %725 = vector.extract_strided_slice %724 {offsets = [0, 0], sizes = [8, 128], strides = [1, 1]} : vector<8x512xf32> to vector<8x128xf32>
    %726 = arith.negf %725 : vector<8x128xf32>
    %727 = math.exp %726 : vector<8x128xf32>
    %cst_322 = arith.constant 1.000000e+00 : f32
    %728 = vector.broadcast %cst_322 : f32 to vector<8x128xf32>
    %729 = arith.addf %728, %727 : vector<8x128xf32>
    %730 = arith.divf %728, %729 : vector<8x128xf32>
    %731 = vector.extract_strided_slice %724 {offsets = [0, 128], sizes = [8, 128], strides = [1, 1]} : vector<8x512xf32> to vector<8x128xf32>
    %732 = arith.negf %731 : vector<8x128xf32>
    %733 = math.exp %732 : vector<8x128xf32>
    %cst_323 = arith.constant 1.000000e+00 : f32
    %734 = vector.broadcast %cst_323 : f32 to vector<8x128xf32>
    %735 = arith.addf %734, %733 : vector<8x128xf32>
    %736 = arith.divf %734, %735 : vector<8x128xf32>
    %737 = vector.extract_strided_slice %724 {offsets = [0, 256], sizes = [8, 128], strides = [1, 1]} : vector<8x512xf32> to vector<8x128xf32>
    %738 = math.tanh %737 : vector<8x128xf32>
    %739 = vector.extract_strided_slice %724 {offsets = [0, 384], sizes = [8, 128], strides = [1, 1]} : vector<8x512xf32> to vector<8x128xf32>
    %740 = arith.negf %739 : vector<8x128xf32>
    %741 = math.exp %740 : vector<8x128xf32>
    %cst_324 = arith.constant 1.000000e+00 : f32
    %742 = vector.broadcast %cst_324 : f32 to vector<8x128xf32>
    %743 = arith.addf %742, %741 : vector<8x128xf32>
    %744 = arith.divf %742, %743 : vector<8x128xf32>
    %745 = arith.mulf %736, %638 : vector<8x128xf32>
    %746 = arith.mulf %730, %738 : vector<8x128xf32>
    %747 = arith.addf %745, %746 : vector<8x128xf32>
    %748 = math.tanh %747 : vector<8x128xf32>
    %749 = arith.mulf %744, %748 : vector<8x128xf32>
    %750 = arith.truncf %749 : vector<8x128xf32> to vector<8x128xbf16>
    %c0_325 = arith.constant 0 : index
    %c0_326 = arith.constant 0 : index
    %751 = vector.load %arg9[%c0_325, %c0_326] : memref<128x128xbf16, #tpu.memory_space<vmem>>, vector<128x128xbf16>
    %cst_327 = arith.constant dense<0.000000e+00> : vector<8x128xf32>
    %752 = tpu.matmul %750, %751, %cst_327 {dimension_numbers = #tpu.dot_dimension_numbers<[1], [0], [0], [1], [0, 0, 1, 1], [], []>} : vector<8x128xbf16>, vector<128x128xbf16>, vector<8x128xf32> -> vector<8x128xf32>
    %c0_328 = arith.constant 0 : index
    %c0_329 = arith.constant 0 : index
    %753 = vector.load %arg10[%c0_328, %c0_329] : memref<1x128xf32, #tpu.memory_space<vmem>>, vector<1x128xf32>
    %754 = vector.broadcast %753 : vector<1x128xf32> to vector<8x128xf32>
    %755 = arith.addf %752, %754 : vector<8x128xf32>
    %cst_330 = arith.constant 0.000000e+00 : f32
    %756 = vector.broadcast %cst_330 : f32 to vector<8x128xf32>
    %757 = arith.maximumf %755, %756 : vector<8x128xf32>
    %758 = arith.truncf %757 : vector<8x128xf32> to vector<8x128xbf16>
    %c0_331 = arith.constant 0 : index
    %c0_332 = arith.constant 0 : index
    %759 = vector.load %arg11[%c0_331, %c0_332] : memref<128x128xbf16, #tpu.memory_space<vmem>>, vector<128x128xbf16>
    %cst_333 = arith.constant dense<0.000000e+00> : vector<8x128xf32>
    %760 = tpu.matmul %758, %759, %cst_333 {dimension_numbers = #tpu.dot_dimension_numbers<[1], [0], [0], [1], [0, 0, 1, 1], [], []>} : vector<8x128xbf16>, vector<128x128xbf16>, vector<8x128xf32> -> vector<8x128xf32>
    %c0_334 = arith.constant 0 : index
    %c0_335 = arith.constant 0 : index
    %761 = vector.load %arg12[%c0_334, %c0_335] : memref<1x128xf32, #tpu.memory_space<vmem>>, vector<1x128xf32>
    %762 = vector.broadcast %761 : vector<1x128xf32> to vector<8x128xf32>
    %763 = arith.addf %760, %762 : vector<8x128xf32>
    %764 = arith.addf %763, %665 : vector<8x128xf32>
    %765 = vector.shape_cast %764 : vector<8x128xf32> to vector<1x8x128xf32>
    %766 = arith.index_cast %c6_i32 : i32 to index
    %c0_336 = arith.constant 0 : index
    %c0_337 = arith.constant 0 : index
    %767 = vector.load %arg13[%766, %c0_336, %c0_337] : memref<7x8x128xf32, #tpu.memory_space<vmem>>, vector<1x8x128xf32>
    tpu.vector_store %arg13[%766, %c0_336, %c0_337], %765 {strides = array<i32>} : memref<7x8x128xf32, #tpu.memory_space<vmem>>, vector<1x8x128xf32>,
    %c7_i32 = arith.constant 7 : i32
    return
  }
  func.func @transform_0(%arg0: i32, %arg1: memref<7xi32, #tpu.memory_space<smem>>) -> (i32, i32, i32) {
    %c0_i32 = arith.constant 0 : i32
    %c0_i32_0 = arith.constant 0 : i32
    %c0_i32_1 = arith.constant 0 : i32
    %c0_i32_2 = arith.constant 0 : i32
    return %c0_i32, %c0_i32_0, %c0_i32_1 : i32, i32, i32
  }
  func.func @transform_1(%arg0: i32, %arg1: memref<7xi32, #tpu.memory_space<smem>>) -> (i32, i32) {
    %c0_i32 = arith.constant 0 : i32
    %c0_i32_0 = arith.constant 0 : i32
    %c0_i32_1 = arith.constant 0 : i32
    return %c0_i32, %c0_i32_0 : i32, i32
  }
  func.func @transform_2(%arg0: i32, %arg1: memref<7xi32, #tpu.memory_space<smem>>) -> (i32, i32) {
    %c0_i32 = arith.constant 0 : i32
    %c0_i32_0 = arith.constant 0 : i32
    %c0_i32_1 = arith.constant 0 : i32
    return %c0_i32, %c0_i32_0 : i32, i32
  }
  func.func @transform_3(%arg0: i32, %arg1: memref<7xi32, #tpu.memory_space<smem>>) -> (i32, i32) {
    %c0_i32 = arith.constant 0 : i32
    %c0_i32_0 = arith.constant 0 : i32
    %c0_i32_1 = arith.constant 0 : i32
    return %c0_i32, %c0_i32_0 : i32, i32
  }
  func.func @transform_4(%arg0: i32, %arg1: memref<7xi32, #tpu.memory_space<smem>>) -> (i32, i32) {
    %c0_i32 = arith.constant 0 : i32
    %c0_i32_0 = arith.constant 0 : i32
    %c0_i32_1 = arith.constant 0 : i32
    return %c0_i32, %c0_i32_0 : i32, i32
  }
  func.func @transform_5(%arg0: i32, %arg1: memref<7xi32, #tpu.memory_space<smem>>) -> (i32, i32, i32) {
    %c0_i32 = arith.constant 0 : i32
    %c0_i32_0 = arith.constant 0 : i32
    %c0_i32_1 = arith.constant 0 : i32
    %c0_i32_2 = arith.constant 0 : i32
    return %c0_i32, %c0_i32_0, %c0_i32_1 : i32, i32, i32
  }
  func.func @transform_6(%arg0: i32, %arg1: memref<7xi32, #tpu.memory_space<smem>>) -> (i32, i32, i32) {
    %c0_i32 = arith.constant 0 : i32
    %c0_i32_0 = arith.constant 0 : i32
    %c0_i32_1 = arith.constant 0 : i32
    %c0_i32_2 = arith.constant 0 : i32
    return %c0_i32, %c0_i32_0, %c0_i32_1 : i32, i32, i32
  }
  func.func @transform_7(%arg0: i32, %arg1: memref<7xi32, #tpu.memory_space<smem>>) -> (i32, i32) {
    %c0_i32 = arith.constant 0 : i32
    %c0_i32_0 = arith.constant 0 : i32
    %c0_i32_1 = arith.constant 0 : i32
    return %c0_i32, %c0_i32_0 : i32, i32
  }
  func.func @transform_8(%arg0: i32, %arg1: memref<7xi32, #tpu.memory_space<smem>>) -> (i32, i32) {
    %c0_i32 = arith.constant 0 : i32
    %c0_i32_0 = arith.constant 0 : i32
    %c0_i32_1 = arith.constant 0 : i32
    return %c0_i32, %c0_i32_0 : i32, i32
  }
  func.func @transform_9(%arg0: i32, %arg1: memref<7xi32, #tpu.memory_space<smem>>) -> (i32, i32) {
    %c0_i32 = arith.constant 0 : i32
    %c0_i32_0 = arith.constant 0 : i32
    %c0_i32_1 = arith.constant 0 : i32
    return %c0_i32, %c0_i32_0 : i32, i32
  }
  func.func @transform_10(%arg0: i32, %arg1: memref<7xi32, #tpu.memory_space<smem>>) -> (i32, i32) {
    %c0_i32 = arith.constant 0 : i32
    %c0_i32_0 = arith.constant 0 : i32
    %c0_i32_1 = arith.constant 0 : i32
    return %c0_i32, %c0_i32_0 : i32, i32
  }
  func.func @transform_11(%arg0: i32, %arg1: memref<7xi32, #tpu.memory_space<smem>>) -> (i32, i32, i32) {
    %c0_i32 = arith.constant 0 : i32
    %c0_i32_0 = arith.constant 0 : i32
    %c0_i32_1 = arith.constant 0 : i32
    %c0_i32_2 = arith.constant 0 : i32
    return %c0_i32, %c0_i32_0, %c0_i32_1 : i32, i32, i32
  }
}

</mosaic_0001>

<bundles_post_ra>
// kernel: forward.1
= control target key start
LH: loop header
LB: loop body
LE: loop exit
PB: predicated region body
PF: predicated region fallthrough
CT: control target
= control target key end

     0   :  { %s15666_s0 = inlined_call_operand.vmem [shape: s32[7], index: 0, kind: input, shape index: {}]   ;;  %s15667_s1 = inlined_call_operand.vmem [shape: f32[7,8,128], index: 1, kind: input, shape index: {}]   ;;  %s15668_s2 = inlined_call_operand.vmem [shape: bf16[128,128], index: 2, kind: input, shape index: {}]   ;;  %s15669_s3 = inlined_call_operand.vmem [shape: f32[1,128], index: 3, kind: input, shape index: {}]   ;;  %s15670_s4 = inlined_call_operand.vmem [shape: bf16[128,128], index: 4, kind: input, shape index: {}]   ;;  %s15671_s5 = inlined_call_operand.vmem [shape: f32[1,128], index: 5, kind: input, shape index: {}]   ;;  %s15672_s6 = inlined_call_operand.hbm [shape: bf16[2,256,512], index: 6, kind: input, shape index: {}]   ;;  %s15673_s7 = inlined_call_operand.vmem [shape: f32[2,1,512], index: 7, kind: input, shape index: {}]   ;;  %s15674_s8 = inlined_call_operand.vmem [shape: bf16[128,128], index: 8, kind: input, shape index: {}]   ;;  %s15675_s9 = inlined_call_operand.vmem [shape: f32[1,128], index: 9, kind: input, shape index: {}]   ;;  %s15676_s10 = inlined_call_operand.hbm [shape: bf16[128,128], index: 10, kind: input, shape index: {}]   ;;  %s15677_s11 = inlined_call_operand.vmem [shape: f32[1,128], index: 11, kind: input, shape index: {}]   ;;  %s15678_s12 = inlined_call_operand.vmem [shape: f32[7,8,128], index: 12, kind: output, shape index: {}]  }
   0x1   :  { %s17_s23 = sshll.u32 %s15666_s0, 4  ;;  %s18_s23 = int_to_ptr.vmem [resolvable:$true] %s17_s23 }
   0x2   :  { %s14330_s24 = scalar_lea.vmem %s18_s23, 16  ;;  %p14335_p1 = scmp.lt.s32.totalorder %s18_s23, %s18_s23 }
   0x3   :  { %p14331_p0 = scmp.ne.s32.totalorder %s18_s23, %s14330_s24  ;;  %p14336_p2 = scmp.lt.s32.totalorder %s14330_s24, %s14330_s24 }
   0x5   :  { %p14337_p3 = por %p14336_p2, %p14335_p1 }
   0x7   :  { %p14338_p4 = pnand %p14337_p3, %p14331_p0 }
   0x9   :  { %14341 = shalt.err (!%p14338_p4)  }
   0xa   :  { %s14392_s25 = smov [#allocation3]  }
   0xb   :  { %20 = dma.vmem_to_smem %s18_s23, 16, %s14392_s25, [#allocation2] }
   0xc   :  { %14386 = dma.done.wait [#allocation2], 16 }
   0xd   :  { %14387 = vsyncadd [#allocation2], 4294967280 }
   0xe   :  { %22 = sfence }
   0xf   :  { %23 = vsyncpa [#allocation5], 0 }
  0x10   :  { %24 = vsyncpa [#allocation7], 0  ;;  %s14393_s26 = smov [#allocation4]   ;;  %s14342_s29 = scalar_lea.hbm %s15672_s6, 16384 }
  0x11   :  { %s40_s27 = sshll.u32 %s14393_s26, 4  ;;  %p14343_p5 = scmp.ne.s32.totalorder %s15672_s6, %s14342_s29  ;;  %s41_s27 = int_to_ptr.vmem [resolvable:$true] %s40_s27 }
  0x12   :  { %p14346_p6 = scmp.lt.u32.totalorder %s14342_s29, %s15672_s6 }
  0x14   :  { %p14348_p7 = pnand %p14346_p6, %p14343_p5 }
  0x16   :  { %14351 = shalt.err (!%p14348_p7)
}
  0x17   :  { %s14352_s16 = scalar_lea.vmem %s41_s27, 16384  ;;  %p14357_p9 = scmp.lt.s32.totalorder %s41_s27, %s41_s27 }
  0x18   :  { %p14353_p8 = scmp.ne.s32.totalorder %s41_s27, %s14352_s16  ;;  %p14358_p10 = scmp.lt.s32.totalorder %s14352_s16, %s14352_s16 }
  0x1a   :  { %p14359_p11 = por %p14358_p10, %p14357_p9 }
  0x1c   :  { %p14360_p12 = pnand %p14359_p11, %p14353_p8 }
  0x1e   :  { %14363 = shalt.err (!%p14360_p12)
}
  0x1f   :  { %s14394_s17 = smov 256   ;;  %s14395_s18 = smov 16  }
  0x20   :  { %46 = dma.hbm_to_vmem [thread:$0]  %s15672_s6, 16384, %s41_s27, [#allocation5], %s14394_s17, %s14394_s17, %s14395_s18  }
  0x21   :  { %s14396_s21 = smov [#allocation6]   ;;  %s14364_s25 = scalar_lea.hbm %s15676_s10, 1024 }
  0x22   :  { %s58_s22 = sshll.u32 %s14396_s21, 4  ;;  %p14365_p13 = scmp.ne.s32.totalorder %s15676_s10, %s14364_s25  ;;  %s59_s22 = int_to_ptr.vmem [resolvable:$true] %s58_s22 }
  0x23   :  { %p14368_p0 = scmp.lt.u32.totalorder %s14364_s25, %s15676_s10 }
  0x25   :  { %p14370_p1 = pnand %p14368_p0, %p14365_p13 }
  0x27   :  { %14373 = shalt.err (!%p14370_p1)
}
  0x28   :  { %s14374_s30 = scalar_lea.vmem %s59_s22, 1024  ;;  %p14379_p3 = scmp.lt.s32.totalorder %s59_s22, %s59_s22 }
  0x29   :  { %p14375_p2 = scmp.ne.s32.totalorder %s59_s22, %s14374_s30  ;;  %p14380_p4 = scmp.lt.s32.totalorder %s14374_s30, %s14374_s30 }
  0x2b   :  { %p14381_p5 = por %p14380_p4, %p14379_p3 }
  0x2d   :  { %p14382_p6 = pnand %p14381_p5, %p14375_p2 }
  0x2f   :  { %14385 = shalt.err (!%p14382_p6)
}
  0x30   :  { %s14397_s6 = smov 64   ;;  %s14398_s27 = smov 4  }
  0x31   :  { %64 = dma.hbm_to_vmem [thread:$0]  %s15676_s10, 1024, %s59_s22, [#allocation7], %s14397_s6, %s14397_s6, %s14398_s27  }
  0x32   :  { %14388 = dma.done.wait [#allocation5], 16384  }
  0x33   :  { %14389 = vsyncadd [#allocation5], 4294950912 }
  0x34   :  { %14390 = dma.done.wait [#allocation7], 1024  }
  0x35   :  { %14391 = vsyncadd [#allocation7], 4294966272  ;;  %v14399_v0 = vmov 0.0   ;;  %vm14400_vm0 = vmmov 0   ;;  %s74_s15 = sld [smem:[#allocation3]]  ;;  %v12537_v1 = vld [vmem:[%s15668_s2] sm:$0xff]  }
  0x36   :  { %11967 = vmatprep.subr.bf16.mxu0 %v14399_v0  ;;  %11983 = vmatprep.mubr.msk.bf16.mxu0 %vm14400_vm0, %v14399_v0  ;;  %v12538_v2 = vld [vmem:[%s15668_s2 + $0x8] sm:$0xff]   ;;  %v12539_v3 = vld [vmem:[%s15668_s2 + $0x10] sm:$0xff]   ;;  %v12540_v4 = vld [vmem:[%s15668_s2 + $0x18] sm:$0xff]   ;;  %s10671_s20 = sld [smem:[#allocation3 + $0x1]]  ;;  %s10845_s25 = sld [smem:[#allocation3 + $0x2]] }
  0x37   :  { %11987 = vmatprep.subr.bf16.mxu1 %v14399_v0  ;;  %12003 = vmatprep.mubr.msk.bf16.mxu1 %vm14400_vm0, %v14399_v0  ;;  %v12545_v5 = vld [vmem:[%s15670_s4] sm:$0xff]   ;;  %v12546_v6 = vld [vmem:[%s15670_s4 + $0x8] sm:$0xff]   ;;  %v12547_v8 = vld [vmem:[%s15670_s4 + $0x10] sm:$0xff]   ;;  %s11019_s0 = sld [smem:[#allocation3 + $0x3]]  ;;  %s11193_s6 = sld [smem:[#allocation3 + $0x4]] }
  0x38   :  { %11968 = vmatpush3.bf16.msra.mxu0 %v12537_v1  ;;  %11988 = vmatpush3.bf16.msra.mxu1 %v12545_v5  ;;  %v12541_v7 = vld [vmem:[%s15668_s2 + $0x20] sm:$0xff]   ;;  %v12542_v9 = vld [vmem:[%s15668_s2 + $0x28] sm:$0xff]   ;;  %v12548_v11 = vld [vmem:[%s15670_s4 + $0x18] sm:$0xff]   ;;  %s11367_s14 = sld [smem:[#allocation3 + $0x5]]  ;;  %s11541_s16 = sld [smem:[#allocation3 + $0x6]] }
  0x39   :  { %11969 = vmatprep.subr.bf16.mxu0 %v14399_v0  ;;  %11989 = vmatprep.subr.bf16.mxu1 %v14399_v0  ;;  %v12543_v13 = vld [vmem:[%s15668_s2 + $0x30] sm:$0xff]   ;;  %v12549_v14 = vld [vmem:[%s15670_s4 + $0x20] sm:$0xff]   ;;  %v12544_v15 = vld [vmem:[%s15668_s2 + $0x38] sm:$0xff]  }
  0x3a   :  { %v76_v16 = vld [vmem:[%s15667_s1] sm:$0xff]  ;;  %v12550_v17 = vld [vmem:[%s15670_s4 + $0x28] sm:$0xff]   ;;  %v12551_v19 = vld [vmem:[%s15670_s4 + $0x30] sm:$0xff]  }
  0x3b   :  { %p75_p7 = scmp.eq.s32.totalorder %s74_s15, 1  ;;  %v10507_v18 = vpack.c.bf16 %v76_v16, %v76_v16  ;;  %v12552_v20 = vld [vmem:[%s15670_s4 + $0x38] sm:$0xff]   ;;  %v12553_v21 = vld [vmem:[#allocation4] ss:$16 sps:$4 sm:$0xff]   ;;  %v12555_v22 = vld [vmem:[#allocation4 + $0x4] ss:$16 sps:$4 sm:$0xff]  }
  0x3c   :  { %11970 = vmatpush3.bf16.msra.mxu0 %v12538_v2  ;;  %11990 = vmatpush3.bf16.msra.mxu1 %v12546_v6  ;;  %v12558_v23 = vld [vmem:[#allocation4 + $0xc] ss:$16 sps:$4 sm:$0xff]   ;;  %v12561_v24 = vld [vmem:[#allocation4 + $0x24] ss:$16 sps:$4 sm:$0xff]   ;;  %v12559_v25 = vld [vmem:[#allocation4 + $0x20] ss:$16 sps:$4 sm:$0xff]  }
  0x3d   :  { %11971 = vmatprep.subr.bf16.mxu0 %v14399_v0  ;;  %s77_s28 = scalar_select %p75_p7, 1, 0  ;;  %11991 = vmatprep.subr.bf16.mxu1 %v14399_v0  ;;  %v12567_v26 = vld [vmem:[#allocation4 + $0x44] ss:$16 sps:$4 sm:$0xff]   ;;  %v12565_v27 = vld [vmem:[#allocation4 + $0x40] ss:$16 sps:$4 sm:$0xff]  }
  0x3e   :  { %v12573_v28 = vld [vmem:[#allocation4 + $0x64] ss:$16 sps:$4 sm:$0xff]   ;;  %v12571_v29 = vld [vmem:[#allocation4 + $0x60] ss:$16 sps:$4 sm:$0xff]   ;;  %v12556_v57 = vld [vmem:[#allocation4 + $0x8] ss:$16 sps:$4 sm:$0xff]  }
  0x3f   :  { %v78_v10 = vstv %s77_s28  ;;  %v12579_v30 = vld [vmem:[#allocation4 + $0x84] ss:$16 sps:$4 sm:$0xff]   ;;  %v12577_v31 = vld [vmem:[#allocation4 + $0x80] ss:$16 sps:$4 sm:$0xff]   ;;  %v12564_v60 = vld [vmem:[#allocation4 + $0x2c] ss:$16 sps:$4 sm:$0xff]  }
  0x40   :  { %11972 = vmatpush3.bf16.msra.mxu0 %v12539_v3  ;;  %11992 = vmatpush3.bf16.msra.mxu1 %v12547_v8  ;;  %vm14537_vm1 = vcmp.eq.s32.totalorder %v78_v10, 1  ;;  %v12585_v32 = vld [vmem:[#allocation4 + $0xa4] ss:$16 sps:$4 sm:$0xff]   ;;  %v12583_v33 = vld [vmem:[#allocation4 + $0xa0] ss:$16 sps:$4 sm:$0xff]   ;;  %p1564_p8 = scmp.eq.s32.totalorder %s10671_s20, 1 }
  0x41   :  { %11973 = vmatprep.subr.bf16.mxu0 %v14399_v0  ;;  %11993 = vmatprep.subr.bf16.mxu1 %v14399_v0  ;;  %vm10506_vm2 = vmpackc.low %vm14537_vm1, %vm14537_vm1  ;;  %v12591_v34 = vld [vmem:[#allocation4 + $0xc4] ss:$16 sps:$4 sm:$0xff]   ;;  %v12589_v35 = vld [vmem:[#allocation4 + $0xc0] ss:$16 sps:$4 sm:$0xff]   ;;  %p3052_p9 = scmp.eq.s32.totalorder %s10845_s25, 1  ;;  %p4540_p10 = scmp.eq.s32.totalorder %s11019_s0, 1 }
  0x42   :  { %v12597_v36 = vld [vmem:[#allocation4 + $0xe4] ss:$16 sps:$4 sm:$0xff]   ;;  %v12595_v37 = vld [vmem:[#allocation4 + $0xe0] ss:$16 sps:$4 sm:$0xff]   ;;  %v12562_v62 = vld [vmem:[#allocation4 + $0x28] ss:$16 sps:$4 sm:$0xff]  }
  0x43   :  { %v12603_v38 = vld [vmem:[#allocation4 + $0x104] ss:$16 sps:$4 sm:$0xff]   ;;  %v12601_v39 = vld [vmem:[#allocation4 + $0x100] ss:$16 sps:$4 sm:$0xff]   ;;  %v12570_v63 = vld [vmem:[#allocation4 + $0x4c] ss:$16 sps:$4 sm:$0xff]  }
  0x44   :  { %11974 = vmatpush3.bf16.msra.mxu0 %v12540_v4  ;;  %11994 = vmatpush3.bf16.msra.mxu1 %v12548_v11  ;;  %v12609_v40 = vld [vmem:[#allocation4 + $0x124] ss:$16 sps:$4 sm:$0xff]   ;;  %v12607_v41 = vld [vmem:[#allocation4 + $0x120] ss:$16 sps:$4 sm:$0xff]   ;;  %v12568_v1 = vld [vmem:[#allocation4 + $0x48] ss:$16 sps:$4 sm:$0xff]  }
  0x45   :  { %11975 = vmatprep.subr.bf16.mxu0 %v14399_v0  ;;  %11995 = vmatprep.subr.bf16.mxu1 %v14399_v0  ;;  %v12615_v42 = vld [vmem:[#allocation4 + $0x144] ss:$16 sps:$4 sm:$0xff]   ;;  %v12613_v43 = vld [vmem:[#allocation4 + $0x140] ss:$16 sps:$4 sm:$0xff]   ;;  %v12576_v2 = vld [vmem:[#allocation4 + $0x6c] ss:$16 sps:$4 sm:$0xff]  }
  0x46   :  { %v12621_v44 = vld [vmem:[#allocation4 + $0x164] ss:$16 sps:$4 sm:$0xff]   ;;  %v12619_v45 = vld [vmem:[#allocation4 + $0x160] ss:$16 sps:$4 sm:$0xff]   ;;  %v12574_v3 = vld [vmem:[#allocation4 + $0x68] ss:$16 sps:$4 sm:$0xff]  }
  0x47   :  { %v12627_v46 = vld [vmem:[#allocation4 + $0x184] ss:$16 sps:$4 sm:$0xff]   ;;  %v12625_v47 = vld [vmem:[#allocation4 + $0x180] ss:$16 sps:$4 sm:$0xff]   ;;  %v12582_v4 = vld [vmem:[#allocation4 + $0x8c] ss:$16 sps:$4 sm:$0xff]  }
  0x48   :  { %11976 = vmatpush3.bf16.msra.mxu0 %v12541_v7  ;;  %11996 = vmatpush3.bf16.msra.mxu1 %v12549_v14  ;;  %v12633_v48 = vld [vmem:[#allocation4 + $0x1a4] ss:$16 sps:$4 sm:$0xff]   ;;  %v12631_v49 = vld [vmem:[#allocation4 + $0x1a0] ss:$16 sps:$4 sm:$0xff]   ;;  %v12580_v5 = vld [vmem:[#allocation4 + $0x88] ss:$16 sps:$4 sm:$0xff]  }
  0x49   :  { %11977 = vmatprep.subr.bf16.mxu0 %v14399_v0  ;;  %11997 = vmatprep.subr.bf16.mxu1 %v14399_v0  ;;  %v12639_v50 = vld [vmem:[#allocation4 + $0x1c4] ss:$16 sps:$4 sm:$0xff]   ;;  %v12637_v51 = vld [vmem:[#allocation4 + $0x1c0] ss:$16 sps:$4 sm:$0xff]   ;;  %v12588_v6 = vld [vmem:[#allocation4 + $0xac] ss:$16 sps:$4 sm:$0xff]  }
  0x4a   :  { %v10497_v52 = vld [vmem:[%s15669_s3] ss:$0 sm:$0xff]  ;;  %v12586_v7 = vld [vmem:[#allocation4 + $0xa8] ss:$16 sps:$4 sm:$0xff]   ;;  %v12594_v8 = vld [vmem:[#allocation4 + $0xcc] ss:$16 sps:$4 sm:$0xff]  }
  0x4b   :  { %v12600_v10 = vld [vmem:[#allocation4 + $0xec] ss:$16 sps:$4 sm:$0xff]   ;;  %v12598_v11 = vld [vmem:[#allocation4 + $0xe8] ss:$16 sps:$4 sm:$0xff]   ;;  %s1567_s21 = scalar_select %p1564_p8, 1, 0 }
  0x4c   :  { %11978 = vmatpush3.bf16.msra.mxu0 %v12542_v9  ;;  %11998 = vmatpush3.bf16.msra.mxu1 %v12550_v17  ;;  %v12592_v9 = vld [vmem:[#allocation4 + $0xc8] ss:$16 sps:$4 sm:$0xff]   ;;  %v12618_v17 = vld [vmem:[#allocation4 + $0x14c] ss:$16 sps:$4 sm:$0xff]   ;;  %s3055_s26 = scalar_select %p3052_p9, 1, 0 }
  0x4d   :  { %11979 = vmatprep.subr.bf16.mxu0 %v14399_v0  ;;  %11999 = vmatprep.subr.bf16.mxu1 %v14399_v0  ;;  %v12604_v14 = vld [vmem:[#allocation4 + $0x108] ss:$16 sps:$4 sm:$0xff]   ;;  %s4543_s29 = scalar_select %p4540_p10, 1, 0 }
  0x4e   :  { %v12610_v16 = vld [vmem:[#allocation4 + $0x128] ss:$16 sps:$4 sm:$0xff]   ;;  %p6028_p11 = scmp.eq.s32.totalorder %s11193_s6, 1  ;;  %p7516_p12 = scmp.eq.s32.totalorder %s11367_s14, 1 }
  0x4f   :  { %p9004_p13 = scmp.eq.s32.totalorder %s11541_s16, 1 }
  0x50   :  { %11980 = vmatpush3.bf16.msra.mxu0 %v12543_v13  ;;  %12000 = vmatpush3.bf16.msra.mxu1 %v12551_v19  ;;  %v12606_v13 = vld [vmem:[#allocation4 + $0x10c] ss:$16 sps:$4 sm:$0xff]   ;;  %s6031_s27 = scalar_select %p6028_p11, 1, 0 }
  0x51   :  { %11981 = vmatprep.subr.bf16.mxu0 %v14399_v0  ;;  %12001 = vmatprep.subr.bf16.mxu1 %v14399_v0  ;;  %v12624_v19 = vld [vmem:[#allocation4 + $0x16c] ss:$16 sps:$4 sm:$0xff]   ;;  %s7519_s15 = scalar_select %p7516_p12, 1, 0 }
  0x52   :  { %s9007_s17 = scalar_select %p9004_p13, 1, 0 }
  0x54   :  { %11982 = vmatpush3.bf16.msra.mxu0 %v12544_v15  ;;  %12002 = vmatpush3.bf16.msra.mxu1 %v12552_v20  ;;  %v12612_v15 = vld [vmem:[#allocation4 + $0x12c] ss:$16 sps:$4 sm:$0xff]   ;;  %v12622_v20 = vld [vmem:[#allocation4 + $0x168] ss:$16 sps:$4 sm:$0xff]  }
  0x55   :  { %715 = vmatprep.subr.bf16.mxu0 %v12555_v22  ;;  %756 = vmatprep.subr.bf16.mxu1 %v12558_v23  ;;  %v12628_v22 = vld [vmem:[#allocation4 + $0x188] ss:$16 sps:$4 sm:$0xff]   ;;  %v12636_v23 = vld [vmem:[#allocation4 + $0x1ac] ss:$16 sps:$4 sm:$0xff]  }
  0x57   :  { %11984 = vmatmul.mubr.msk.bf16.vlgmr.msra.gmra.mrb[0].mxu0 %vm10506_vm2, %v10507_v18  ;;  %v12616_v18 = vld [vmem:[#allocation4 + $0x148] ss:$16 sps:$4 sm:$0xff]  }
  0x58   :  { %716 = vmatpush1.bf16.msra.mxu0 %v12553_v21  ;;  %v12630_v21 = vld [vmem:[#allocation4 + $0x18c] ss:$16 sps:$4 sm:$0xff]  }
  0x59   :  { %717 = vmatprep.subr.bf16.mxu0 %v12561_v24  ;;  %v12634_v24 = vld [vmem:[#allocation4 + $0x1a8] ss:$16 sps:$4 sm:$0xff]  }
  0x5c   :  { %718 = vmatpush1.bf16.msra.mxu0 %v12559_v25  ;;  %v12642_v25 = vld [vmem:[#allocation4 + $0x1cc] ss:$16 sps:$4 sm:$0xff]  }
  0x5d   :  { %719 = vmatprep.subr.bf16.mxu0 %v12567_v26  ;;  %v12640_v26 = vld [vmem:[#allocation4 + $0x1c8] ss:$16 sps:$4 sm:$0xff]  }
  0x60   :  { %720 = vmatpush1.bf16.msra.mxu0 %v12565_v27  ;;  %v12645_v27 = vld [vmem:[#allocation4 + $0x1e4] ss:$16 sps:$4 sm:$0xff]  }
  0x61   :  { %721 = vmatprep.subr.bf16.mxu0 %v12573_v28  ;;  %v12648_v28 = vld [vmem:[#allocation4 + $0x1ec] ss:$16 sps:$4 sm:$0xff]  }
  0x64   :  { %722 = vmatpush1.bf16.msra.mxu0 %v12571_v29  ;;  %v12643_v29 = vld [vmem:[#allocation4 + $0x1e0] ss:$16 sps:$4 sm:$0xff]  }
  0x65   :  { %723 = vmatprep.subr.bf16.mxu0 %v12579_v30  ;;  %v12646_v30 = vld [vmem:[#allocation4 + $0x1e8] ss:$16 sps:$4 sm:$0xff]  }
  0x68   :  { %724 = vmatpush1.bf16.msra.mxu0 %v12577_v31  ;;  %v14401_v31 = vmov 0.0|0.0  }
  0x69   :  { %725 = vmatprep.subr.bf16.mxu0 %v12585_v32  ;;  %747 = vmatprep.mubr.bf16.mxu0 %v14401_v31  ;;  %v12651_v32 = vld [vmem:[#allocation4 + $0x204] ss:$16 sps:$4 sm:$0xff]  }
  0x6c   :  { %726 = vmatpush1.bf16.msra.mxu0 %v12583_v33  ;;  %v12654_v33 = vld [vmem:[#allocation4 + $0x20c] ss:$16 sps:$4 sm:$0xff]  }
  0x6d   :  { %727 = vmatprep.subr.bf16.mxu0 %v12591_v34  ;;  %v10509_v34 = vld [vmem:[%s15671_s5] ss:$0 sm:$0xff] }
  0x70   :  { %728 = vmatpush1.bf16.msra.mxu0 %v12589_v35 }
  0x71   :  { %729 = vmatprep.subr.bf16.mxu0 %v12597_v36 }
  0x74   :  { %730 = vmatpush1.bf16.msra.mxu0 %v12595_v37 }
  0x75   :  { %731 = vmatprep.subr.bf16.mxu0 %v12603_v38 }
  0x78   :  { %732 = vmatpush1.bf16.msra.mxu0 %v12601_v39  ;;  %v12649_v39 = vld [vmem:[#allocation4 + $0x200] ss:$16 sps:$4 sm:$0xff]  }
  0x79   :  { %733 = vmatprep.subr.bf16.mxu0 %v12609_v40  ;;  %v12652_v40 = vld [vmem:[#allocation4 + $0x208] ss:$16 sps:$4 sm:$0xff]  }
  0x7c   :  { %734 = vmatpush1.bf16.msra.mxu0 %v12607_v41 }
  0x7d   :  { %735 = vmatprep.subr.bf16.mxu0 %v12615_v42 }
  0x80   :  { %736 = vmatpush1.bf16.msra.mxu0 %v12613_v43  ;;  %v12657_v43 = vld [vmem:[#allocation4 + $0x224] ss:$16 sps:$4 sm:$0xff]  }
  0x81   :  { %737 = vmatprep.subr.bf16.mxu0 %v12621_v44  ;;  %v12660_v44 = vld [vmem:[#allocation4 + $0x22c] ss:$16 sps:$4 sm:$0xff]  }
  0x84   :  { %738 = vmatpush1.bf16.msra.mxu0 %v12619_v45 }
  0x85   :  { %739 = vmatprep.subr.bf16.mxu0 %v12627_v46  ;;  %v12655_v46 = vld [vmem:[#allocation4 + $0x220] ss:$16 sps:$4 sm:$0xff]  }
  0x88   :  { %740 = vmatpush1.bf16.msra.mxu0 %v12625_v47  ;;  %v12658_v47 = vld [vmem:[#allocation4 + $0x228] ss:$16 sps:$4 sm:$0xff]  }
  0x89   :  { %741 = vmatprep.subr.bf16.mxu0 %v12633_v48  ;;  %v12663_v48 = vld [vmem:[#allocation4 + $0x244] ss:$16 sps:$4 sm:$0xff]  }
  0x8c   :  { %742 = vmatpush1.bf16.msra.mxu0 %v12631_v49  ;;  %v12666_v49 = vld [vmem:[#allocation4 + $0x24c] ss:$16 sps:$4 sm:$0xff]  }
  0x8d   :  { %743 = vmatprep.subr.bf16.mxu0 %v12639_v50  ;;  %v12661_v50 = vld [vmem:[#allocation4 + $0x240] ss:$16 sps:$4 sm:$0xff]  }
  0x90   :  { %744 = vmatpush1.bf16.msra.mxu0 %v12637_v51  ;;  %v12664_v51 = vld [vmem:[#allocation4 + $0x248] ss:$16 sps:$4 sm:$0xff]  }
  0x91   :  { %745 = vmatprep.subr.bf16.mxu0 %v12645_v27  ;;  %v12726_v27 = vld [vmem:[#allocation4 + $0x38c] ss:$16 sps:$4 sm:$0xff]  }
  0x94   :  { %746 = vmatpush1.bf16.msra.mxu0 %v12643_v29  ;;  %v12724_v29 = vld [vmem:[#allocation4 + $0x388] ss:$16 sps:$4 sm:$0xff]  }
  0x95   :  { %1230 = vmatprep.subr.bf16.mxu0 %v12651_v32  ;;  %v12730_v32 = vld [vmem:[#allocation4 + $0x3a8] ss:$16 sps:$4 sm:$0xff]  }
 0x12a   :  { %v187_v53 = vpop.f32.mrb[0].mxu0 }
 0x12b   :  { %v188_v54 = vadd.f32 %v10497_v52, %v187_v53  ;;  %v11985_v55 = vpop.f32.mrb[1].mxu0  ;;  %v12669_v52 = vld [vmem:[#allocation4 + $0x264] ss:$16 sps:$4 sm:$0xff]   ;;  %v12672_v53 = vld [vmem:[#allocation4 + $0x26c] ss:$16 sps:$4 sm:$0xff]  }
 0x12c   :  { %v190_v56 = vpop.f32.mrb[2].mxu0  ;;  %v12670_v55 = vld [vmem:[#allocation4 + $0x268] ss:$16 sps:$4 sm:$0xff]  }
 0x12d   :  { %v193_v58 = vmax.f32 %v188_v54, 0.0  ;;  %v11986_v59 = vpop.f32.mrb[3].mxu0  ;;  %v12667_v54 = vld [vmem:[#allocation4 + $0x260] ss:$16 sps:$4 sm:$0xff]   ;;  %v12675_v56 = vld [vmem:[#allocation4 + $0x284] ss:$16 sps:$4 sm:$0xff]  }
 0x12e   :  { %v12676_v59 = vld [vmem:[#allocation4 + $0x288] ss:$16 sps:$4 sm:$0xff]  }
 0x12f   :  { %v194_v61 = vpack.c.bf16 %v193_v58, %v193_v58  ;;  %v12673_v58 = vld [vmem:[#allocation4 + $0x280] ss:$16 sps:$4 sm:$0xff]  }
 0x131   :  { %12004 = vmatmul.mubr.bf16.vlgmr.msra.gmra.mrb[0].mxu1 %v194_v61  ;;  %v12684_v61 = vld [vmem:[#allocation4 + $0x2ac] ss:$16 sps:$4 sm:$0xff]  }
 0x132   :  { %757 = vmatpush1.bf16.msra.mxu1 %v12556_v57  ;;  %788 = vmatprep.mubr.bf16.mxu1 %v14401_v31  ;;  %v12678_v57 = vld [vmem:[#allocation4 + $0x28c] ss:$16 sps:$4 sm:$0xff]  }
 0x133   :  { %758 = vmatprep.subr.bf16.mxu1 %v12564_v60  ;;  %v12681_v60 = vld [vmem:[#allocation4 + $0x2a4] ss:$16 sps:$4 sm:$0xff]  }
 0x136   :  { %759 = vmatpush1.bf16.msra.mxu1 %v12562_v62  ;;  %v12679_v62 = vld [vmem:[#allocation4 + $0x2a0] ss:$16 sps:$4 sm:$0xff]  }
 0x137   :  { %760 = vmatprep.subr.bf16.mxu1 %v12570_v63  ;;  %v12682_v63 = vld [vmem:[#allocation4 + $0x2a8] ss:$16 sps:$4 sm:$0xff]  }
 0x13a   :  { %761 = vmatpush1.bf16.msra.mxu1 %v12568_v1  ;;  %v12687_v1 = vld [vmem:[#allocation4 + $0x2c4] ss:$16 sps:$4 sm:$0xff]  }
 0x13b   :  { %762 = vmatprep.subr.bf16.mxu1 %v12576_v2  ;;  %v12690_v2 = vld [vmem:[#allocation4 + $0x2cc] ss:$16 sps:$4 sm:$0xff]  }
 0x13e   :  { %763 = vmatpush1.bf16.msra.mxu1 %v12574_v3  ;;  %v12685_v3 = vld [vmem:[#allocation4 + $0x2c0] ss:$16 sps:$4 sm:$0xff]  }
 0x13f   :  { %764 = vmatprep.subr.bf16.mxu1 %v12582_v4  ;;  %v12688_v4 = vld [vmem:[#allocation4 + $0x2c8] ss:$16 sps:$4 sm:$0xff]  }
 0x142   :  { %765 = vmatpush1.bf16.msra.mxu1 %v12580_v5  ;;  %v12693_v5 = vld [vmem:[#allocation4 + $0x2e4] ss:$16 sps:$4 sm:$0xff]  }
 0x143   :  { %766 = vmatprep.subr.bf16.mxu1 %v12588_v6  ;;  %v12696_v6 = vld [vmem:[#allocation4 + $0x2ec] ss:$16 sps:$4 sm:$0xff]  }
 0x146   :  { %767 = vmatpush1.bf16.msra.mxu1 %v12586_v7  ;;  %v12691_v7 = vld [vmem:[#allocation4 + $0x2e0] ss:$16 sps:$4 sm:$0xff]  }
 0x147   :  { %768 = vmatprep.subr.bf16.mxu1 %v12594_v8  ;;  %v12694_v8 = vld [vmem:[#allocation4 + $0x2e8] ss:$16 sps:$4 sm:$0xff]  }
 0x14a   :  { %769 = vmatpush1.bf16.msra.mxu1 %v12592_v9  ;;  %v12699_v9 = vld [vmem:[#allocation4 + $0x304] ss:$16 sps:$4 sm:$0xff]  }
 0x14b   :  { %770 = vmatprep.subr.bf16.mxu1 %v12600_v10  ;;  %v12702_v10 = vld [vmem:[#allocation4 + $0x30c] ss:$16 sps:$4 sm:$0xff]  }
 0x14e   :  { %771 = vmatpush1.bf16.msra.mxu1 %v12598_v11  ;;  %v12697_v11 = vld [vmem:[#allocation4 + $0x300] ss:$16 sps:$4 sm:$0xff]  }
 0x14f   :  { %772 = vmatprep.subr.bf16.mxu1 %v12606_v13  ;;  %v12700_v13 = vld [vmem:[#allocation4 + $0x308] ss:$16 sps:$4 sm:$0xff]  }
 0x152   :  { %773 = vmatpush1.bf16.msra.mxu1 %v12604_v14  ;;  %v12705_v14 = vld [vmem:[#allocation4 + $0x324] ss:$16 sps:$4 sm:$0xff]  }
 0x153   :  { %774 = vmatprep.subr.bf16.mxu1 %v12612_v15  ;;  %v12708_v15 = vld [vmem:[#allocation4 + $0x32c] ss:$16 sps:$4 sm:$0xff]  }
 0x156   :  { %775 = vmatpush1.bf16.msra.mxu1 %v12610_v16  ;;  %v12703_v16 = vld [vmem:[#allocation4 + $0x320] ss:$16 sps:$4 sm:$0xff]  }
 0x157   :  { %776 = vmatprep.subr.bf16.mxu1 %v12618_v17  ;;  %v12706_v17 = vld [vmem:[#allocation4 + $0x328] ss:$16 sps:$4 sm:$0xff]  }
 0x15a   :  { %777 = vmatpush1.bf16.msra.mxu1 %v12616_v18  ;;  %v12711_v18 = vld [vmem:[#allocation4 + $0x344] ss:$16 sps:$4 sm:$0xff]  }
 0x15b   :  { %778 = vmatprep.subr.bf16.mxu1 %v12624_v19  ;;  %v12714_v19 = vld [vmem:[#allocation4 + $0x34c] ss:$16 sps:$4 sm:$0xff]  }
 0x15e   :  { %779 = vmatpush1.bf16.msra.mxu1 %v12622_v20  ;;  %v12709_v20 = vld [vmem:[#allocation4 + $0x340] ss:$16 sps:$4 sm:$0xff]  }
 0x15f   :  { %780 = vmatprep.subr.bf16.mxu1 %v12630_v21  ;;  %v12712_v21 = vld [vmem:[#allocation4 + $0x348] ss:$16 sps:$4 sm:$0xff]  }
 0x162   :  { %781 = vmatpush1.bf16.msra.mxu1 %v12628_v22  ;;  %v12717_v22 = vld [vmem:[#allocation4 + $0x364] ss:$16 sps:$4 sm:$0xff]  }
 0x163   :  { %782 = vmatprep.subr.bf16.mxu1 %v12636_v23  ;;  %v12720_v23 = vld [vmem:[#allocation4 + $0x36c] ss:$16 sps:$4 sm:$0xff]  }
 0x166   :  { %783 = vmatpush1.bf16.msra.mxu1 %v12634_v24  ;;  %v12715_v24 = vld [vmem:[#allocation4 + $0x360] ss:$16 sps:$4 sm:$0xff]  }
 0x167   :  { %784 = vmatprep.subr.bf16.mxu1 %v12642_v25  ;;  %v12718_v25 = vld [vmem:[#allocation4 + $0x368] ss:$16 sps:$4 sm:$0xff]  }
 0x16a   :  { %785 = vmatpush1.bf16.msra.mxu1 %v12640_v26  ;;  %v12723_v26 = vld [vmem:[#allocation4 + $0x384] ss:$16 sps:$4 sm:$0xff]  }
 0x16b   :  { %786 = vmatprep.subr.bf16.mxu1 %v12648_v28  ;;  %v12721_v28 = vld [vmem:[#allocation4 + $0x380] ss:$16 sps:$4 sm:$0xff]  }
 0x16e   :  { %787 = vmatpush1.bf16.msra.mxu1 %v12646_v30  ;;  %v12729_v30 = vld [vmem:[#allocation4 + $0x3a4] ss:$16 sps:$4 sm:$0xff]  }
 0x16f   :  { %1271 = vmatprep.subr.bf16.mxu1 %v12654_v33  ;;  %v12732_v33 = vld [vmem:[#allocation4 + $0x3ac] ss:$16 sps:$4 sm:$0xff]  }
 0x204   :  { %v300_v35 = vpop.f32.mrb[0].mxu1 }
 0x205   :  { %v301_v36 = vadd.f32 %v10509_v34, %v300_v35  ;;  %v12005_v37 = vpop.f32.mrb[1].mxu1  ;;  %v12735_v34 = vld [vmem:[#allocation4 + $0x3c4] ss:$16 sps:$4 sm:$0xff]   ;;  %v12738_v35 = vld [vmem:[#allocation4 + $0x3cc] ss:$16 sps:$4 sm:$0xff]  }
 0x206   :  { %v303_v38 = vpop.f32.mrb[2].mxu1  ;;  %v12736_v37 = vld [vmem:[#allocation4 + $0x3c8] ss:$16 sps:$4 sm:$0xff]  }
 0x207   :  { %v306_v41 = vmax.f32 %v301_v36, 0.0  ;;  %v12006_v42 = vpop.f32.mrb[3].mxu1  ;;  %v12733_v36 = vld [vmem:[#allocation4 + $0x3c0] ss:$16 sps:$4 sm:$0xff]   ;;  %v12741_v38 = vld [vmem:[#allocation4 + $0x3e4] ss:$16 sps:$4 sm:$0xff]  }
 0x208   :  { %v375_v42 = vlaneseq }
 0x209   :  { %v307_v45 = vpack.c.bf16 %v306_v41, %v306_v41  ;;  %v12742_v41 = vld [vmem:[#allocation4 + $0x3e8] ss:$16 sps:$4 sm:$0xff]  }
 0x20b   :  { %748 = vmatmul.mubr.bf16.vlgmr.msra.gmra.mrb[4].mxu0 %v307_v45  ;;  %789 = vmatmul.mubr.bf16.vlgmr.msra.gmra.mrb[4].mxu1 %v307_v45  ;;  %v373_v45 = vld [vmem:[%s15673_s7] sm:$0xf] }
 0x20c   :  { %1231 = vmatpush1.bf16.msra.mxu0 %v12649_v39  ;;  %1272 = vmatpush1.bf16.msra.mxu1 %v12652_v40  ;;  %v12744_v39 = vld [vmem:[#allocation4 + $0x3ec] ss:$16 sps:$4 sm:$0xff]   ;;  %v12739_v40 = vld [vmem:[#allocation4 + $0x3e0] ss:$16 sps:$4 sm:$0xff]  }
 0x20d   :  { %1232 = vmatprep.subr.bf16.mxu0 %v12657_v43  ;;  %1273 = vmatprep.subr.bf16.mxu1 %v12660_v44  ;;  %v376_v43 = vshrl.u32 %v375_v42, 7 }
 0x20e   :  { %1262 = vmatprep.mubr.bf16.mxu0 %v14401_v31  ;;  %1303 = vmatprep.mubr.bf16.mxu1 %v14401_v31  ;;  %v12727_v31 = vld [vmem:[#allocation4 + $0x3a0] ss:$16 sps:$4 sm:$0xff]  }
 0x20f   :  { %v14580_v44 = vsub.s32 0, %v376_v43 }
 0x210   :  { %1233 = vmatpush1.bf16.msra.mxu0 %v12655_v46  ;;  %1274 = vmatpush1.bf16.msra.mxu1 %v12658_v47  ;;  %v14585_v46 = vsub.s32 1, %v376_v43 }
 0x211   :  { %1234 = vmatprep.subr.bf16.mxu0 %v12663_v48  ;;  %1275 = vmatprep.subr.bf16.mxu1 %v12666_v49  ;;  %v378_v47 = vrot.slane %v373_v45, %v14580_v44 }
 0x212   :  { %v382_v48 = vrot.slane %v373_v45, %v14585_v46 }
 0x214   :  { %1235 = vmatpush1.bf16.msra.mxu0 %v12661_v50  ;;  %1276 = vmatpush1.bf16.msra.mxu1 %v12664_v51  ;;  %v14589_v51 = vsub.s32 3, %v376_v43 }
 0x215   :  { %1236 = vmatprep.subr.bf16.mxu0 %v12669_v52  ;;  %1277 = vmatprep.subr.bf16.mxu1 %v12672_v53 }
 0x218   :  { %1237 = vmatpush1.bf16.msra.mxu0 %v12667_v54  ;;  %1278 = vmatpush1.bf16.msra.mxu1 %v12670_v55 }
 0x219   :  { %1238 = vmatprep.subr.bf16.mxu0 %v12675_v56  ;;  %1279 = vmatprep.subr.bf16.mxu1 %v12678_v57 }
 0x21c   :  { %1239 = vmatpush1.bf16.msra.mxu0 %v12673_v58  ;;  %1280 = vmatpush1.bf16.msra.mxu1 %v12676_v59 }
 0x21d   :  { %1240 = vmatprep.subr.bf16.mxu0 %v12681_v60  ;;  %1281 = vmatprep.subr.bf16.mxu1 %v12684_v61 }
 0x220   :  { %1241 = vmatpush1.bf16.msra.mxu0 %v12679_v62  ;;  %1282 = vmatpush1.bf16.msra.mxu1 %v12682_v63  ;;  %v390_v62 = vrot.slane %v373_v45, %v14589_v51  ;;  %v14592_v63 = vsub.s32 2, %v376_v43 }
 0x221   :  { %1242 = vmatprep.subr.bf16.mxu0 %v12687_v1  ;;  %1283 = vmatprep.subr.bf16.mxu1 %v12690_v2 }
 0x222   :  { %v386_v2 = vrot.slane %v373_v45, %v14592_v63 }
 0x224   :  { %1243 = vmatpush1.bf16.msra.mxu0 %v12685_v3  ;;  %1284 = vmatpush1.bf16.msra.mxu1 %v12688_v4 }
 0x225   :  { %1244 = vmatprep.subr.bf16.mxu0 %v12693_v5  ;;  %1285 = vmatprep.subr.bf16.mxu1 %v12696_v6 }
 0x228   :  { %1245 = vmatpush1.bf16.msra.mxu0 %v12691_v7  ;;  %1286 = vmatpush1.bf16.msra.mxu1 %v12694_v8 }
 0x229   :  { %1246 = vmatprep.subr.bf16.mxu0 %v12699_v9  ;;  %1287 = vmatprep.subr.bf16.mxu1 %v12702_v10 }
 0x22c   :  { %1247 = vmatpush1.bf16.msra.mxu0 %v12697_v11  ;;  %1288 = vmatpush1.bf16.msra.mxu1 %v12700_v13 }
 0x22d   :  { %1248 = vmatprep.subr.bf16.mxu0 %v12705_v14  ;;  %1289 = vmatprep.subr.bf16.mxu1 %v12708_v15 }
 0x230   :  { %1249 = vmatpush1.bf16.msra.mxu0 %v12703_v16  ;;  %1290 = vmatpush1.bf16.msra.mxu1 %v12706_v17 }
 0x231   :  { %1250 = vmatprep.subr.bf16.mxu0 %v12711_v18  ;;  %1291 = vmatprep.subr.bf16.mxu1 %v12714_v19 }
 0x234   :  { %1251 = vmatpush1.bf16.msra.mxu0 %v12709_v20  ;;  %1292 = vmatpush1.bf16.msra.mxu1 %v12712_v21 }
 0x235   :  { %1252 = vmatprep.subr.bf16.mxu0 %v12717_v22  ;;  %1293 = vmatprep.subr.bf16.mxu1 %v12720_v23  ;;  %v12745_v22 = vld [vmem:[%s15674_s8] sm:$0xff]   ;;  %v12746_v23 = vld [vmem:[%s15674_s8 + $0x8] sm:$0xff]  }
 0x238   :  { %1253 = vmatpush1.bf16.msra.mxu0 %v12715_v24  ;;  %1294 = vmatpush1.bf16.msra.mxu1 %v12718_v25  ;;  %v12747_v24 = vld [vmem:[%s15674_s8 + $0x10] sm:$0xff]   ;;  %v12748_v25 = vld [vmem:[%s15674_s8 + $0x18] sm:$0xff]  }
 0x239   :  { %1254 = vmatprep.subr.bf16.mxu0 %v12723_v26  ;;  %1295 = vmatprep.subr.bf16.mxu1 %v12726_v27  ;;  %v12749_v26 = vld [vmem:[%s15674_s8 + $0x20] sm:$0xff]   ;;  %v12750_v27 = vld [vmem:[%s15674_s8 + $0x28] sm:$0xff]  }
 0x23c   :  { %1255 = vmatpush1.bf16.msra.mxu0 %v12721_v28  ;;  %1296 = vmatpush1.bf16.msra.mxu1 %v12724_v29  ;;  %v12751_v28 = vld [vmem:[%s15674_s8 + $0x30] sm:$0xff]   ;;  %v12752_v29 = vld [vmem:[%s15674_s8 + $0x38] sm:$0xff]  }
 0x23d   :  { %1256 = vmatprep.subr.bf16.mxu0 %v12729_v30  ;;  %1297 = vmatprep.subr.bf16.mxu1 %v12732_v33  ;;  %v12753_v30 = vld [vmem:[#allocation6] sm:$0xff]   ;;  %v12756_v33 = vld [vmem:[#allocation6 + $0x18] sm:$0xff]  }
 0x240   :  { %1257 = vmatpush1.bf16.msra.mxu0 %v12727_v31  ;;  %1298 = vmatpush1.bf16.msra.mxu1 %v12730_v32  ;;  %v12754_v31 = vld [vmem:[#allocation6 + $0x8] sm:$0xff]   ;;  %v12755_v32 = vld [vmem:[#allocation6 + $0x10] sm:$0xff]  }
 0x241   :  { %1258 = vmatprep.subr.bf16.mxu0 %v12735_v34  ;;  %1299 = vmatprep.subr.bf16.mxu1 %v12738_v35  ;;  %v12757_v34 = vld [vmem:[#allocation6 + $0x20] sm:$0xff]   ;;  %v12758_v35 = vld [vmem:[#allocation6 + $0x28] sm:$0xff]  }
 0x244   :  { %1259 = vmatpush1.bf16.msra.mxu0 %v12733_v36  ;;  %1300 = vmatpush1.bf16.msra.mxu1 %v12736_v37  ;;  %v10585_v36 = vld [vmem:[%s15673_s7 + $0x4] sm:$0xf] }
 0x245   :  { %1260 = vmatprep.subr.bf16.mxu0 %v12741_v38  ;;  %1301 = vmatprep.subr.bf16.mxu1 %v12744_v39  ;;  %v893_v37 = vrot.slane %v10585_v36, %v14580_v44  ;;  %v897_v38 = vrot.slane %v10585_v36, %v14585_v46 }
 0x248   :  { %1261 = vmatpush1.bf16.msra.mxu0 %v12739_v40  ;;  %1302 = vmatpush1.bf16.msra.mxu1 %v12742_v41 }
 0x249   :  { %12007 = vmatprep.subr.bf16.mxu0 %v14399_v0  ;;  %12027 = vmatprep.subr.bf16.mxu1 %v14399_v0 }
 0x2de   :  { %v749_v49 = vpop.f32.mrb[4].mxu0  ;;  %v790_v50 = vpop.f32.mrb[4].mxu1 }
 0x2df   :  { %v750_v52 = vadd.f32 %v749_v49, %v378_v47  ;;  %v751_v53 = vpop.f32.mrb[5].mxu0  ;;  %v792_v54 = vpop.f32.mrb[5].mxu1  ;;  %v791_v4 = vadd.f32 %v790_v50, %v386_v2 }
 0x2e0   :  { %v752_v55 = vadd.f32 %v751_v53, %v382_v48  ;;  %v753_v56 = vpop.f32.mrb[6].mxu0  ;;  %v794_v57 = vpop.f32.mrb[6].mxu1  ;;  %v793_v1 = vadd.f32 %v792_v54, %v390_v62  ;;  %v905_v54 = vrot.slane %v10585_v36, %v14589_v51 }
 0x2e1   :  { %v10582_v58 = vmul.f32 -1.442695, %v750_v52  ;;  %v754_v59 = vpop.f32.mrb[7].mxu0  ;;  %v795_v60 = vpop.f32.mrb[7].mxu1  ;;  %v901_v56 = vrot.slane %v10585_v36, %v14592_v63  ;;  %v12771_v36 = vld [vmem:[%s15670_s4 + $0x10] sm:$0xff]  }
 0x2e2   :  { %v10583_v61 = vmul.f32 -1.442695, %v752_v55  ;;  %v10584_v3 = vmul.f32 -1.442695, %v793_v1 }
 0x2e3   :  { %14105 = vpow2.f32 %v10582_v58 }
 0x2e4   :  { %14107 = vpow2.f32 %v10583_v61 }
 0x2e5   :  { %14109 = vpow2.f32 %v10584_v3 }
 0x2e6   :  { %14111 = vtanh.f32 %v791_v4 }
 0x2ed   :  { %v14106_v5 = vpop.eup %14105 }
 0x2ee   :  { %v14108_v6 = vpop.eup %14107  ;;  %v800_v7 = vadd.f32 1.0, %v14106_v5 }
 0x2ef   :  { %v806_v8 = vadd.f32 1.0, %v14108_v6  ;;  %v14110_v9 = vpop.eup %14109 }
 0x2f0   :  { %14113 = vrcp.f32 %v800_v7  ;;  %v14112_v10 = vpop.eup %14111  ;;  %v813_v15 = vadd.f32 1.0, %v14110_v9 }
 0x2f1   :  { %14115 = vrcp.f32 %v806_v8 }
 0x2f2   :  { %14117 = vrcp.f32 %v813_v15  ;;  %v12760_v15 = vld [vmem:[#allocation6 + $0x38] sm:$0xff]  }
 0x2fa   :  { %v14114_v11 = vpop.eup %14113 }
 0x2fb   :  { %v14116_v13 = vpop.eup %14115  ;;  %v817_v14 = vmul.f32 %v14114_v11, %v14112_v10 }
 0x2fc   :  { %v816_v16 = vmul.f32 0.0, %v14116_v13  ;;  %v14118_v18 = vpop.eup %14117 }
 0x2fe   :  { %v14595_v17 = vadd.f32 %v817_v14, %v816_v16  ;;  %v12759_v14 = vld [vmem:[#allocation6 + $0x30] sm:$0xff]   ;;  %v12761_v16 = vld [vmem:[%s15668_s2] sm:$0xff]  }
 0x300   :  { %14119 = vtanh.f32 %v14595_v17 }
 0x30a   :  { %v14120_v19 = vpop.eup %14119 }
 0x30b   :  { %v820_v20 = vmul.f32 %v14120_v19, %v14118_v18  ;;  %v12762_v18 = vld [vmem:[%s15668_s2 + $0x8] sm:$0xff]   ;;  %v12763_v19 = vld [vmem:[%s15668_s2 + $0x10] sm:$0xff]  }
 0x30d   :  { %v14598_v21 = vpack.c.bf16 %v820_v20, %v820_v20  ;;  %v12764_v20 = vld [vmem:[%s15668_s2 + $0x18] sm:$0xff]  }
 0x30f   :  { %1263 = vmatmul.mubr.bf16.vlgmr.msra.gmra.mrb[8].mxu0 %v14598_v21  ;;  %1304 = vmatmul.mubr.bf16.vlgmr.msra.gmra.mrb[8].mxu1 %v14598_v21 }
 0x310   :  { %12023 = vmatprep.mubr.msk.bf16.mxu0 %vm14400_vm0, %v14399_v0  ;;  %12043 = vmatprep.mubr.msk.bf16.mxu1 %vm14400_vm0, %v14399_v0 }
 0x311   :  { %12008 = vmatpush3.bf16.msra.mxu0 %v12745_v22  ;;  %12028 = vmatpush3.bf16.msra.mxu1 %v12753_v30  ;;  %v12765_v22 = vld [vmem:[%s15668_s2 + $0x20] sm:$0xff]  }
 0x312   :  { %12009 = vmatprep.subr.bf16.mxu0 %v14399_v0  ;;  %12029 = vmatprep.subr.bf16.mxu1 %v14399_v0 }
 0x315   :  { %12010 = vmatpush3.bf16.msra.mxu0 %v12746_v23  ;;  %12030 = vmatpush3.bf16.msra.mxu1 %v12754_v31  ;;  %v12766_v23 = vld [vmem:[%s15668_s2 + $0x28] sm:$0xff]  }
 0x316   :  { %12011 = vmatprep.subr.bf16.mxu0 %v14399_v0  ;;  %12031 = vmatprep.subr.bf16.mxu1 %v14399_v0 }
 0x319   :  { %12012 = vmatpush3.bf16.msra.mxu0 %v12747_v24  ;;  %12032 = vmatpush3.bf16.msra.mxu1 %v12755_v32  ;;  %v10653_v24 = vld [vmem:[%s15675_s9] ss:$0 sm:$0xff]  ;;  %v12767_v32 = vld [vmem:[%s15668_s2 + $0x30] sm:$0xff]  }
 0x31a   :  { %12013 = vmatprep.subr.bf16.mxu0 %v14399_v0  ;;  %12033 = vmatprep.subr.bf16.mxu1 %v14399_v0 }
 0x31d   :  { %12014 = vmatpush3.bf16.msra.mxu0 %v12748_v25  ;;  %12034 = vmatpush3.bf16.msra.mxu1 %v12756_v33  ;;  %v12768_v33 = vld [vmem:[%s15668_s2 + $0x38] sm:$0xff]  }
 0x31e   :  { %12015 = vmatprep.subr.bf16.mxu0 %v14399_v0  ;;  %12035 = vmatprep.subr.bf16.mxu1 %v14399_v0 }
 0x321   :  { %12016 = vmatpush3.bf16.msra.mxu0 %v12749_v26  ;;  %12036 = vmatpush3.bf16.msra.mxu1 %v12757_v34  ;;  %v12769_v34 = vld [vmem:[%s15670_s4] sm:$0xff]  }
 0x322   :  { %12017 = vmatprep.subr.bf16.mxu0 %v14399_v0  ;;  %12037 = vmatprep.subr.bf16.mxu1 %v14399_v0 }
 0x325   :  { %12018 = vmatpush3.bf16.msra.mxu0 %v12750_v27  ;;  %12038 = vmatpush3.bf16.msra.mxu1 %v12758_v35  ;;  %v12770_v35 = vld [vmem:[%s15670_s4 + $0x8] sm:$0xff]  }
 0x326   :  { %12019 = vmatprep.subr.bf16.mxu0 %v14399_v0  ;;  %12039 = vmatprep.subr.bf16.mxu1 %v14399_v0 }
 0x329   :  { %12020 = vmatpush3.bf16.msra.mxu0 %v12751_v28  ;;  %12040 = vmatpush3.bf16.msra.mxu1 %v12759_v14  ;;  %v12819_v14 = vld [vmem:[#allocation4 + $0xe0] ss:$16 sps:$4 sm:$0xff]  }
 0x32a   :  { %12021 = vmatprep.subr.bf16.mxu0 %v14399_v0  ;;  %12041 = vmatprep.subr.bf16.mxu1 %v14399_v0 }
 0x32d   :  { %12022 = vmatpush3.bf16.msra.mxu0 %v12752_v29  ;;  %12042 = vmatpush3.bf16.msra.mxu1 %v12760_v15  ;;  %v12827_v15 = vld [vmem:[#allocation4 + $0x104] ss:$16 sps:$4 sm:$0xff]  }
 0x32e   :  { %12047 = vmatprep.subr.bf16.mxu0 %v14399_v0  ;;  %12067 = vmatprep.subr.bf16.mxu1 %v14399_v0 }
 0x3e2   :  { %v1264_v39 = vpop.f32.mrb[8].mxu0  ;;  %v1305_v40 = vpop.f32.mrb[8].mxu1 }
 0x3e3   :  { %v1265_v41 = vadd.f32 %v1264_v39, %v893_v37  ;;  %v1266_v42 = vpop.f32.mrb[9].mxu0  ;;  %v1307_v43 = vpop.f32.mrb[9].mxu1  ;;  %v1306_v58 = vadd.f32 %v1305_v40, %v901_v56  ;;  %v12772_v37 = vld [vmem:[%s15670_s4 + $0x18] sm:$0xff]   ;;  %v12774_v39 = vld [vmem:[%s15670_s4 + $0x28] sm:$0xff]   ;;  %v10662_v40 = vld [vmem:[%s15677_s11] ss:$0 sm:$0xff] }
 0x3e4   :  { %v1267_v45 = vadd.f32 %v1266_v42, %v897_v38  ;;  %v1268_v47 = vpop.f32.mrb[10].mxu0  ;;  %v1309_v48 = vpop.f32.mrb[10].mxu1  ;;  %v1308_v55 = vadd.f32 %v1307_v43, %v905_v54  ;;  %v12773_v38 = vld [vmem:[%s15670_s4 + $0x20] sm:$0xff]   ;;  %v12776_v56 = vld [vmem:[%s15670_s4 + $0x38] sm:$0xff]  }
 0x3e5   :  { %v10650_v49 = vmul.f32 -1.442695, %v1265_v41  ;;  %v1269_v50 = vpop.f32.mrb[11].mxu0  ;;  %v1310_v52 = vpop.f32.mrb[11].mxu1  ;;  %v1568_v41 = vstv %s1567_s21  ;;  %v14329_v42 = vld [vmem:[%s15667_s1] sm:$0xff] }
 0x3e6   :  { %v10651_v53 = vmul.f32 -1.442695, %v1267_v45  ;;  %v10652_v57 = vmul.f32 -1.442695, %v1308_v55  ;;  %v80_v43 = vsel %vm14537_vm1, %v14329_v42, 0.0  ;;  %vm1569_vm3 = vcmp.eq.s32.totalorder %v1568_v41, 1 }
 0x3e7   :  { %14121 = vpow2.f32 %v10650_v49  ;;  %v10672_v49 = vld [vmem:[%s15667_s1 + $0x8] sm:$0xff]  ;;  %v12775_v55 = vld [vmem:[%s15670_s4 + $0x30] sm:$0xff]  }
 0x3e8   :  { %14123 = vpow2.f32 %v10651_v53  ;;  %v12786_v41 = vld [vmem:[#allocation4 + $0x28] ss:$16 sps:$4 sm:$0xff]   ;;  %v12794_v42 = vld [vmem:[#allocation4 + $0x4c] ss:$16 sps:$4 sm:$0xff]  }
 0x3e9   :  { %14125 = vpow2.f32 %v10652_v57  ;;  %v12777_v57 = vld [vmem:[#allocation4] ss:$16 sps:$4 sm:$0xff]  }
 0x3ea   :  { %14127 = vtanh.f32 %v1306_v58  ;;  %v12779_v58 = vld [vmem:[#allocation4 + $0x4] ss:$16 sps:$4 sm:$0xff]  }
 0x3f1   :  { %v14122_v59 = vpop.eup %14121 }
 0x3f2   :  { %v14124_v60 = vpop.eup %14123  ;;  %v1315_v61 = vadd.f32 1.0, %v14122_v59  ;;  %v12782_v59 = vld [vmem:[#allocation4 + $0xc] ss:$16 sps:$4 sm:$0xff]  }
 0x3f3   :  { %v1321_v62 = vadd.f32 1.0, %v14124_v60  ;;  %v14126_v1 = vpop.eup %14125  ;;  %v12785_v60 = vld [vmem:[#allocation4 + $0x24] ss:$16 sps:$4 sm:$0xff]  }
 0x3f4   :  { %14129 = vrcp.f32 %v1315_v61  ;;  %v14128_v2 = vpop.eup %14127  ;;  %v1328_v6 = vadd.f32 1.0, %v14126_v1  ;;  %v12783_v61 = vld [vmem:[#allocation4 + $0x20] ss:$16 sps:$4 sm:$0xff]  }
 0x3f5   :  { %14131 = vrcp.f32 %v1321_v62  ;;  %v12791_v62 = vld [vmem:[#allocation4 + $0x44] ss:$16 sps:$4 sm:$0xff]   ;;  %v12789_v1 = vld [vmem:[#allocation4 + $0x40] ss:$16 sps:$4 sm:$0xff]  }
 0x3f6   :  { %14133 = vrcp.f32 %v1328_v6  ;;  %v12809_v6 = vld [vmem:[#allocation4 + $0xa4] ss:$16 sps:$4 sm:$0xff]  }
 0x3fe   :  { %v14130_v3 = vpop.eup %14129 }
 0x3ff   :  { %v14132_v4 = vpop.eup %14131  ;;  %v1332_v5 = vmul.f32 %v14130_v3, %v14128_v2  ;;  %v12797_v2 = vld [vmem:[#allocation4 + $0x64] ss:$16 sps:$4 sm:$0xff]   ;;  %v12795_v3 = vld [vmem:[#allocation4 + $0x60] ss:$16 sps:$4 sm:$0xff]  }
 0x400   :  { %v1331_v7 = vmul.f32 0.0, %v14132_v4  ;;  %v14134_v9 = vpop.eup %14133  ;;  %v12803_v4 = vld [vmem:[#allocation4 + $0x84] ss:$16 sps:$4 sm:$0xff]  }
 0x402   :  { %v14651_v8 = vadd.f32 %v1332_v5, %v1331_v7  ;;  %v12801_v5 = vld [vmem:[#allocation4 + $0x80] ss:$16 sps:$4 sm:$0xff]  }
 0x403   :  { %v12807_v7 = vld [vmem:[#allocation4 + $0xa0] ss:$16 sps:$4 sm:$0xff]  }
 0x404   :  { %14135 = vtanh.f32 %v14651_v8 }
 0x40e   :  { %v14136_v10 = vpop.eup %14135 }
 0x40f   :  { %v1335_v11 = vmul.f32 %v14136_v10, %v14134_v9  ;;  %v12815_v9 = vld [vmem:[#allocation4 + $0xc4] ss:$16 sps:$4 sm:$0xff]   ;;  %v12813_v10 = vld [vmem:[#allocation4 + $0xc0] ss:$16 sps:$4 sm:$0xff]  }
 0x411   :  { %v14654_v13 = vpack.c.bf16 %v1335_v11, %v1335_v11  ;;  %v12821_v11 = vld [vmem:[#allocation4 + $0xe4] ss:$16 sps:$4 sm:$0xff]  }
 0x413   :  { %12024 = vmatmul.mubr.bf16.vlgmr.msra.gmra.mrb[12].mxu0 %v14654_v13 }
 0x414   :  { %12063 = vmatprep.mubr.msk.bf16.mxu0 %vm14400_vm0, %v14399_v0  ;;  %12048 = vmatpush3.bf16.msra.mxu0 %v12761_v16  ;;  %v12825_v16 = vld [vmem:[#allocation4 + $0x100] ss:$16 sps:$4 sm:$0xff]  }
 0x415   :  { %12049 = vmatprep.subr.bf16.mxu0 %v14399_v0 }
 0x418   :  { %12050 = vmatpush3.bf16.msra.mxu0 %v12762_v18  ;;  %v12833_v18 = vld [vmem:[#allocation4 + $0x124] ss:$16 sps:$4 sm:$0xff]  }
 0x419   :  { %12051 = vmatprep.subr.bf16.mxu0 %v14399_v0 }
 0x41c   :  { %12052 = vmatpush3.bf16.msra.mxu0 %v12763_v19  ;;  %v12831_v19 = vld [vmem:[#allocation4 + $0x120] ss:$16 sps:$4 sm:$0xff]  }
 0x41d   :  { %12053 = vmatprep.subr.bf16.mxu0 %v14399_v0 }
 0x420   :  { %12054 = vmatpush3.bf16.msra.mxu0 %v12764_v20  ;;  %v12839_v20 = vld [vmem:[#allocation4 + $0x144] ss:$16 sps:$4 sm:$0xff]  }
 0x421   :  { %12055 = vmatprep.subr.bf16.mxu0 %v14399_v0 }
 0x424   :  { %12056 = vmatpush3.bf16.msra.mxu0 %v12765_v22  ;;  %v12837_v22 = vld [vmem:[#allocation4 + $0x140] ss:$16 sps:$4 sm:$0xff]  }
 0x425   :  { %12057 = vmatprep.subr.bf16.mxu0 %v14399_v0 }
 0x428   :  { %12058 = vmatpush3.bf16.msra.mxu0 %v12766_v23  ;;  %v12845_v23 = vld [vmem:[#allocation4 + $0x164] ss:$16 sps:$4 sm:$0xff]  }
 0x429   :  { %12059 = vmatprep.subr.bf16.mxu0 %v14399_v0 }
 0x42c   :  { %12060 = vmatpush3.bf16.msra.mxu0 %v12767_v32 }
 0x42d   :  { %12061 = vmatprep.subr.bf16.mxu0 %v14399_v0 }
 0x430   :  { %12062 = vmatpush3.bf16.msra.mxu0 %v12768_v33 }
 0x431   :  { %2204 = vmatprep.subr.bf16.mxu0 %v12779_v58  ;;  %v12836_v58 = vld [vmem:[#allocation4 + $0x12c] ss:$16 sps:$4 sm:$0xff]  }
 0x4e6   :  { %v1442_v25 = vpop.f32.mrb[12].mxu0 }
 0x4e7   :  { %v1443_v26 = vadd.f32 %v10653_v24, %v1442_v25  ;;  %v12025_v27 = vpop.f32.mrb[13].mxu0  ;;  %v12843_v24 = vld [vmem:[#allocation4 + $0x160] ss:$16 sps:$4 sm:$0xff]   ;;  %v12851_v25 = vld [vmem:[#allocation4 + $0x184] ss:$16 sps:$4 sm:$0xff]  }
 0x4e8   :  { %v1445_v28 = vpop.f32.mrb[14].mxu0  ;;  %v12857_v27 = vld [vmem:[#allocation4 + $0x1a4] ss:$16 sps:$4 sm:$0xff]  }
 0x4e9   :  { %v1448_v29 = vmax.f32 %v1443_v26, 0.0  ;;  %v12026_v30 = vpop.f32.mrb[15].mxu0  ;;  %v12849_v26 = vld [vmem:[#allocation4 + $0x180] ss:$16 sps:$4 sm:$0xff]  }
 0x4ea   :  { %v12855_v28 = vld [vmem:[#allocation4 + $0x1a0] ss:$16 sps:$4 sm:$0xff]  }
 0x4eb   :  { %v1449_v31 = vpack.c.bf16 %v1448_v29, %v1448_v29  ;;  %v12863_v29 = vld [vmem:[#allocation4 + $0x1c4] ss:$16 sps:$4 sm:$0xff]   ;;  %v12861_v30 = vld [vmem:[#allocation4 + $0x1c0] ss:$16 sps:$4 sm:$0xff]  }
 0x4ed   :  { %12044 = vmatmul.mubr.bf16.vlgmr.msra.gmra.mrb[12].mxu1 %v1449_v31  ;;  %v10673_v31 = vld [vmem:[%s15669_s3] ss:$0 sm:$0xff] }
 0x4ee   :  { %12083 = vmatprep.mubr.msk.bf16.mxu1 %vm14400_vm0, %v14399_v0  ;;  %12068 = vmatpush3.bf16.msra.mxu1 %v12769_v34 }
 0x4ef   :  { %12069 = vmatprep.subr.bf16.mxu1 %v14399_v0 }
 0x4f2   :  { %12070 = vmatpush3.bf16.msra.mxu1 %v12770_v35 }
 0x4f3   :  { %12071 = vmatprep.subr.bf16.mxu1 %v14399_v0 }
 0x4f6   :  { %12072 = vmatpush3.bf16.msra.mxu1 %v12771_v36 }
 0x4f7   :  { %12073 = vmatprep.subr.bf16.mxu1 %v14399_v0 }
 0x4fa   :  { %12074 = vmatpush3.bf16.msra.mxu1 %v12772_v37 }
 0x4fb   :  { %12075 = vmatprep.subr.bf16.mxu1 %v14399_v0 }
 0x4fe   :  { %12076 = vmatpush3.bf16.msra.mxu1 %v12773_v38  ;;  %v12780_v38 = vld [vmem:[#allocation4 + $0x8] ss:$16 sps:$4 sm:$0xff]  }
 0x4ff   :  { %12077 = vmatprep.subr.bf16.mxu1 %v14399_v0 }
 0x502   :  { %12078 = vmatpush3.bf16.msra.mxu1 %v12774_v39 }
 0x503   :  { %12079 = vmatprep.subr.bf16.mxu1 %v14399_v0 }
 0x506   :  { %12080 = vmatpush3.bf16.msra.mxu1 %v12775_v55  ;;  %v12822_v55 = vld [vmem:[#allocation4 + $0xe8] ss:$16 sps:$4 sm:$0xff]  }
 0x507   :  { %12081 = vmatprep.subr.bf16.mxu1 %v14399_v0 }
 0x50a   :  { %12082 = vmatpush3.bf16.msra.mxu1 %v12776_v56  ;;  %v12830_v56 = vld [vmem:[#allocation4 + $0x10c] ss:$16 sps:$4 sm:$0xff]  }
 0x50b   :  { %2245 = vmatprep.subr.bf16.mxu1 %v12782_v59  ;;  %v12834_v59 = vld [vmem:[#allocation4 + $0x128] ss:$16 sps:$4 sm:$0xff]  }
 0x5c0   :  { %v1555_v45 = vpop.f32.mrb[12].mxu1 }
 0x5c1   :  { %v1556_v47 = vadd.f32 %v10662_v40, %v1555_v45  ;;  %v12045_v48 = vpop.f32.mrb[13].mxu1  ;;  %v12788_v40 = vld [vmem:[#allocation4 + $0x2c] ss:$16 sps:$4 sm:$0xff]  }
 0x5c2   :  { %v1558_v50 = vpop.f32.mrb[14].mxu1  ;;  %v12800_v45 = vld [vmem:[#allocation4 + $0x6c] ss:$16 sps:$4 sm:$0xff]  }
 0x5c3   :  { %v1561_v52 = vadd.f32 %v1556_v47, %v80_v43  ;;  %v12046_v53 = vpop.f32.mrb[15].mxu1  ;;  %v12792_v43 = vld [vmem:[#allocation4 + $0x48] ss:$16 sps:$4 sm:$0xff]   ;;  %v12806_v48 = vld [vmem:[#allocation4 + $0x8c] ss:$16 sps:$4 sm:$0xff]  }
 0x5c4   :  { %v12798_v47 = vld [vmem:[#allocation4 + $0x68] ss:$16 sps:$4 sm:$0xff]   ;;  %v12812_v50 = vld [vmem:[#allocation4 + $0xac] ss:$16 sps:$4 sm:$0xff]  }
 0x5c5   :  { %1562 = vst [vmem:[%s15678_s12] sm:$0xff] %v1561_v52  ;;  %v14735_v54 = vsel %vm1569_vm3, %v10672_v49, %v1561_v52  ;;  %v12804_v49 = vld [vmem:[#allocation4 + $0x88] ss:$16 sps:$4 sm:$0xff]  }
 0x5c6   :  { %v1571_v12 = vpack.c.bf16 %v14735_v54, %v14735_v54  ;;  %v12810_v52 = vld [vmem:[#allocation4 + $0xa8] ss:$16 sps:$4 sm:$0xff]  }
 0x5c7   :  { %v12816_v53 = vld [vmem:[#allocation4 + $0xc8] ss:$16 sps:$4 sm:$0xff]  }
 0x5c8   :  { %12064 = vmatmul.mubr.bf16.vlgmr.msra.gmra.mrb[16].mxu0 %v1571_v12  ;;  %v12824_v12 = vld [vmem:[#allocation4 + $0xec] ss:$16 sps:$4 sm:$0xff]  }
 0x5c9   :  { %2236 = vmatprep.mubr.bf16.mxu0 %v14598_v21  ;;  %2205 = vmatpush1.bf16.msra.mxu0 %v12777_v57  ;;  %v12828_v57 = vld [vmem:[#allocation4 + $0x108] ss:$16 sps:$4 sm:$0xff]  }
 0x5ca   :  { %2206 = vmatprep.subr.bf16.mxu0 %v12785_v60  ;;  %v12842_v60 = vld [vmem:[#allocation4 + $0x14c] ss:$16 sps:$4 sm:$0xff]  }
 0x5cd   :  { %2207 = vmatpush1.bf16.msra.mxu0 %v12783_v61  ;;  %v12840_v61 = vld [vmem:[#allocation4 + $0x148] ss:$16 sps:$4 sm:$0xff]  }
 0x5ce   :  { %2208 = vmatprep.subr.bf16.mxu0 %v12791_v62  ;;  %v12848_v62 = vld [vmem:[#allocation4 + $0x16c] ss:$16 sps:$4 sm:$0xff]  }
 0x5d1   :  { %2209 = vmatpush1.bf16.msra.mxu0 %v12789_v1  ;;  %v12846_v1 = vld [vmem:[#allocation4 + $0x168] ss:$16 sps:$4 sm:$0xff]  }
 0x5d2   :  { %2210 = vmatprep.subr.bf16.mxu0 %v12797_v2  ;;  %v12854_v2 = vld [vmem:[#allocation4 + $0x18c] ss:$16 sps:$4 sm:$0xff]  }
 0x5d5   :  { %2211 = vmatpush1.bf16.msra.mxu0 %v12795_v3  ;;  %v12852_v3 = vld [vmem:[#allocation4 + $0x188] ss:$16 sps:$4 sm:$0xff]  }
 0x5d6   :  { %2212 = vmatprep.subr.bf16.mxu0 %v12803_v4  ;;  %v12860_v4 = vld [vmem:[#allocation4 + $0x1ac] ss:$16 sps:$4 sm:$0xff]  }
 0x5d9   :  { %2213 = vmatpush1.bf16.msra.mxu0 %v12801_v5  ;;  %v12858_v5 = vld [vmem:[#allocation4 + $0x1a8] ss:$16 sps:$4 sm:$0xff]  }
 0x5da   :  { %2214 = vmatprep.subr.bf16.mxu0 %v12809_v6  ;;  %v12866_v6 = vld [vmem:[#allocation4 + $0x1cc] ss:$16 sps:$4 sm:$0xff]  }
 0x5dd   :  { %2215 = vmatpush1.bf16.msra.mxu0 %v12807_v7  ;;  %v12864_v7 = vld [vmem:[#allocation4 + $0x1c8] ss:$16 sps:$4 sm:$0xff]  }
 0x5de   :  { %2216 = vmatprep.subr.bf16.mxu0 %v12815_v9  ;;  %v12869_v9 = vld [vmem:[#allocation4 + $0x1e4] ss:$16 sps:$4 sm:$0xff]  }
 0x5e1   :  { %2217 = vmatpush1.bf16.msra.mxu0 %v12813_v10  ;;  %v12872_v10 = vld [vmem:[#allocation4 + $0x1ec] ss:$16 sps:$4 sm:$0xff]  }
 0x5e2   :  { %2218 = vmatprep.subr.bf16.mxu0 %v12821_v11  ;;  %v12867_v11 = vld [vmem:[#allocation4 + $0x1e0] ss:$16 sps:$4 sm:$0xff]  }
 0x5e5   :  { %2219 = vmatpush1.bf16.msra.mxu0 %v12819_v14  ;;  %v12870_v14 = vld [vmem:[#allocation4 + $0x1e8] ss:$16 sps:$4 sm:$0xff]  }
 0x5e6   :  { %2220 = vmatprep.subr.bf16.mxu0 %v12827_v15  ;;  %v12875_v15 = vld [vmem:[#allocation4 + $0x204] ss:$16 sps:$4 sm:$0xff]  }
 0x5e9   :  { %2221 = vmatpush1.bf16.msra.mxu0 %v12825_v16  ;;  %v12878_v16 = vld [vmem:[#allocation4 + $0x20c] ss:$16 sps:$4 sm:$0xff]  }
 0x5ea   :  { %2222 = vmatprep.subr.bf16.mxu0 %v12833_v18  ;;  %v10682_v18 = vld [vmem:[%s15671_s5] ss:$0 sm:$0xff] }
 0x5ed   :  { %2223 = vmatpush1.bf16.msra.mxu0 %v12831_v19 }
 0x5ee   :  { %2224 = vmatprep.subr.bf16.mxu0 %v12839_v20 }
 0x5f1   :  { %2225 = vmatpush1.bf16.msra.mxu0 %v12837_v22 }
 0x5f2   :  { %2226 = vmatprep.subr.bf16.mxu0 %v12845_v23 }
 0x5f5   :  { %2227 = vmatpush1.bf16.msra.mxu0 %v12843_v24 }
 0x5f6   :  { %2228 = vmatprep.subr.bf16.mxu0 %v12851_v25 }
 0x5f9   :  { %2229 = vmatpush1.bf16.msra.mxu0 %v12849_v26 }
 0x5fa   :  { %2230 = vmatprep.subr.bf16.mxu0 %v12857_v27  ;;  %v12873_v27 = vld [vmem:[#allocation4 + $0x200] ss:$16 sps:$4 sm:$0xff]  }
 0x5fd   :  { %2231 = vmatpush1.bf16.msra.mxu0 %v12855_v28  ;;  %v12876_v28 = vld [vmem:[#allocation4 + $0x208] ss:$16 sps:$4 sm:$0xff]  }
 0x5fe   :  { %2232 = vmatprep.subr.bf16.mxu0 %v12863_v29  ;;  %v12881_v29 = vld [vmem:[#allocation4 + $0x224] ss:$16 sps:$4 sm:$0xff]  }
 0x601   :  { %2233 = vmatpush1.bf16.msra.mxu0 %v12861_v30  ;;  %v12884_v30 = vld [vmem:[#allocation4 + $0x22c] ss:$16 sps:$4 sm:$0xff]  }
 0x602   :  { %2234 = vmatprep.subr.bf16.mxu0 %v12869_v9  ;;  %v12941_v9 = vld [vmem:[#allocation4 + $0x364] ss:$16 sps:$4 sm:$0xff]  }
 0x605   :  { %2235 = vmatpush1.bf16.msra.mxu0 %v12867_v11  ;;  %v12939_v11 = vld [vmem:[#allocation4 + $0x360] ss:$16 sps:$4 sm:$0xff]  }
 0x606   :  { %2717 = vmatprep.subr.bf16.mxu0 %v12875_v15  ;;  %v12945_v15 = vld [vmem:[#allocation4 + $0x380] ss:$16 sps:$4 sm:$0xff]  }
 0x69b   :  { %v1677_v32 = vpop.f32.mrb[16].mxu0 }
 0x69c   :  { %v1678_v33 = vadd.f32 %v10673_v31, %v1677_v32  ;;  %v12065_v34 = vpop.f32.mrb[17].mxu0  ;;  %v12879_v31 = vld [vmem:[#allocation4 + $0x220] ss:$16 sps:$4 sm:$0xff]   ;;  %v12882_v32 = vld [vmem:[#allocation4 + $0x228] ss:$16 sps:$4 sm:$0xff]  }
 0x69d   :  { %v1680_v35 = vpop.f32.mrb[18].mxu0  ;;  %v12890_v34 = vld [vmem:[#allocation4 + $0x24c] ss:$16 sps:$4 sm:$0xff]  }
 0x69e   :  { %v1683_v36 = vmax.f32 %v1678_v33, 0.0  ;;  %v12066_v37 = vpop.f32.mrb[19].mxu0  ;;  %v12887_v33 = vld [vmem:[#allocation4 + $0x244] ss:$16 sps:$4 sm:$0xff]   ;;  %v12885_v35 = vld [vmem:[#allocation4 + $0x240] ss:$16 sps:$4 sm:$0xff]  }
 0x69f   :  { %v12893_v37 = vld [vmem:[#allocation4 + $0x264] ss:$16 sps:$4 sm:$0xff]  }
 0x6a0   :  { %v1684_v39 = vpack.c.bf16 %v1683_v36, %v1683_v36  ;;  %v12888_v36 = vld [vmem:[#allocation4 + $0x248] ss:$16 sps:$4 sm:$0xff]  }
 0x6a2   :  { %12084 = vmatmul.mubr.bf16.vlgmr.msra.gmra.mrb[16].mxu1 %v1684_v39  ;;  %v12891_v39 = vld [vmem:[#allocation4 + $0x260] ss:$16 sps:$4 sm:$0xff]  }
 0x6a3   :  { %2277 = vmatprep.mubr.bf16.mxu1 %v14598_v21  ;;  %2246 = vmatpush1.bf16.msra.mxu1 %v12780_v38  ;;  %v12818_v21 = vld [vmem:[#allocation4 + $0xcc] ss:$16 sps:$4 sm:$0xff]  }
 0x6a4   :  { %2247 = vmatprep.subr.bf16.mxu1 %v12788_v40  ;;  %v12896_v38 = vld [vmem:[#allocation4 + $0x26c] ss:$16 sps:$4 sm:$0xff]   ;;  %v12899_v40 = vld [vmem:[#allocation4 + $0x284] ss:$16 sps:$4 sm:$0xff]  }
 0x6a7   :  { %2248 = vmatpush1.bf16.msra.mxu1 %v12786_v41  ;;  %v12902_v41 = vld [vmem:[#allocation4 + $0x28c] ss:$16 sps:$4 sm:$0xff]  }
 0x6a8   :  { %2249 = vmatprep.subr.bf16.mxu1 %v12794_v42  ;;  %v12897_v42 = vld [vmem:[#allocation4 + $0x280] ss:$16 sps:$4 sm:$0xff]  }
 0x6ab   :  { %2250 = vmatpush1.bf16.msra.mxu1 %v12792_v43  ;;  %v12900_v43 = vld [vmem:[#allocation4 + $0x288] ss:$16 sps:$4 sm:$0xff]  }
 0x6ac   :  { %2251 = vmatprep.subr.bf16.mxu1 %v12800_v45  ;;  %v12905_v45 = vld [vmem:[#allocation4 + $0x2a4] ss:$16 sps:$4 sm:$0xff]  }
 0x6af   :  { %2252 = vmatpush1.bf16.msra.mxu1 %v12798_v47  ;;  %v12908_v47 = vld [vmem:[#allocation4 + $0x2ac] ss:$16 sps:$4 sm:$0xff]  }
 0x6b0   :  { %2253 = vmatprep.subr.bf16.mxu1 %v12806_v48  ;;  %v12903_v48 = vld [vmem:[#allocation4 + $0x2a0] ss:$16 sps:$4 sm:$0xff]  }
 0x6b3   :  { %2254 = vmatpush1.bf16.msra.mxu1 %v12804_v49  ;;  %v12906_v49 = vld [vmem:[#allocation4 + $0x2a8] ss:$16 sps:$4 sm:$0xff]  }
 0x6b4   :  { %2255 = vmatprep.subr.bf16.mxu1 %v12812_v50  ;;  %v12911_v50 = vld [vmem:[#allocation4 + $0x2c4] ss:$16 sps:$4 sm:$0xff]  }
 0x6b7   :  { %2256 = vmatpush1.bf16.msra.mxu1 %v12810_v52  ;;  %v12914_v52 = vld [vmem:[#allocation4 + $0x2cc] ss:$16 sps:$4 sm:$0xff]  }
 0x6b8   :  { %2257 = vmatprep.subr.bf16.mxu1 %v12818_v21  ;;  %v12909_v21 = vld [vmem:[#allocation4 + $0x2c0] ss:$16 sps:$4 sm:$0xff]  }
 0x6bb   :  { %2258 = vmatpush1.bf16.msra.mxu1 %v12816_v53  ;;  %v12912_v53 = vld [vmem:[#allocation4 + $0x2c8] ss:$16 sps:$4 sm:$0xff]  }
 0x6bc   :  { %2259 = vmatprep.subr.bf16.mxu1 %v12824_v12  ;;  %v12917_v12 = vld [vmem:[#allocation4 + $0x2e4] ss:$16 sps:$4 sm:$0xff]  }
 0x6bf   :  { %2260 = vmatpush1.bf16.msra.mxu1 %v12822_v55  ;;  %v12920_v55 = vld [vmem:[#allocation4 + $0x2ec] ss:$16 sps:$4 sm:$0xff]  }
 0x6c0   :  { %2261 = vmatprep.subr.bf16.mxu1 %v12830_v56  ;;  %v12915_v56 = vld [vmem:[#allocation4 + $0x2e0] ss:$16 sps:$4 sm:$0xff]  }
 0x6c3   :  { %2262 = vmatpush1.bf16.msra.mxu1 %v12828_v57  ;;  %v12918_v57 = vld [vmem:[#allocation4 + $0x2e8] ss:$16 sps:$4 sm:$0xff]  }
 0x6c4   :  { %2263 = vmatprep.subr.bf16.mxu1 %v12836_v58  ;;  %v12923_v58 = vld [vmem:[#allocation4 + $0x304] ss:$16 sps:$4 sm:$0xff]  }
 0x6c7   :  { %2264 = vmatpush1.bf16.msra.mxu1 %v12834_v59  ;;  %v12926_v59 = vld [vmem:[#allocation4 + $0x30c] ss:$16 sps:$4 sm:$0xff]  }
 0x6c8   :  { %2265 = vmatprep.subr.bf16.mxu1 %v12842_v60  ;;  %v12921_v60 = vld [vmem:[#allocation4 + $0x300] ss:$16 sps:$4 sm:$0xff]  }
 0x6cb   :  { %2266 = vmatpush1.bf16.msra.mxu1 %v12840_v61  ;;  %v12924_v61 = vld [vmem:[#allocation4 + $0x308] ss:$16 sps:$4 sm:$0xff]  }
 0x6cc   :  { %2267 = vmatprep.subr.bf16.mxu1 %v12848_v62  ;;  %v12929_v62 = vld [vmem:[#allocation4 + $0x324] ss:$16 sps:$4 sm:$0xff]  }
 0x6cf   :  { %2268 = vmatpush1.bf16.msra.mxu1 %v12846_v1  ;;  %v12932_v1 = vld [vmem:[#allocation4 + $0x32c] ss:$16 sps:$4 sm:$0xff]  }
 0x6d0   :  { %2269 = vmatprep.subr.bf16.mxu1 %v12854_v2  ;;  %v12927_v2 = vld [vmem:[#allocation4 + $0x320] ss:$16 sps:$4 sm:$0xff]  }
 0x6d3   :  { %2270 = vmatpush1.bf16.msra.mxu1 %v12852_v3  ;;  %v12930_v3 = vld [vmem:[#allocation4 + $0x328] ss:$16 sps:$4 sm:$0xff]  }
 0x6d4   :  { %2271 = vmatprep.subr.bf16.mxu1 %v12860_v4  ;;  %v12935_v4 = vld [vmem:[#allocation4 + $0x344] ss:$16 sps:$4 sm:$0xff]  }
 0x6d7   :  { %2272 = vmatpush1.bf16.msra.mxu1 %v12858_v5  ;;  %v12938_v5 = vld [vmem:[#allocation4 + $0x34c] ss:$16 sps:$4 sm:$0xff]  }
 0x6d8   :  { %2273 = vmatprep.subr.bf16.mxu1 %v12866_v6  ;;  %v12933_v6 = vld [vmem:[#allocation4 + $0x340] ss:$16 sps:$4 sm:$0xff]  }
 0x6db   :  { %2274 = vmatpush1.bf16.msra.mxu1 %v12864_v7  ;;  %v12936_v7 = vld [vmem:[#allocation4 + $0x348] ss:$16 sps:$4 sm:$0xff]  }
 0x6dc   :  { %2275 = vmatprep.subr.bf16.mxu1 %v12872_v10  ;;  %v12944_v10 = vld [vmem:[#allocation4 + $0x36c] ss:$16 sps:$4 sm:$0xff]  }
 0x6df   :  { %2276 = vmatpush1.bf16.msra.mxu1 %v12870_v14  ;;  %v12942_v14 = vld [vmem:[#allocation4 + $0x368] ss:$16 sps:$4 sm:$0xff]  }
 0x6e0   :  { %2758 = vmatprep.subr.bf16.mxu1 %v12878_v16  ;;  %v12947_v16 = vld [vmem:[#allocation4 + $0x384] ss:$16 sps:$4 sm:$0xff]  }
 0x775   :  { %v1790_v19 = vpop.f32.mrb[16].mxu1 }
 0x776   :  { %v1791_v20 = vadd.f32 %v10682_v18, %v1790_v19  ;;  %v12085_v22 = vpop.f32.mrb[17].mxu1  ;;  %v12948_v18 = vld [vmem:[#allocation4 + $0x388] ss:$16 sps:$4 sm:$0xff]   ;;  %v12950_v19 = vld [vmem:[#allocation4 + $0x38c] ss:$16 sps:$4 sm:$0xff]  }
 0x777   :  { %v1793_v23 = vpop.f32.mrb[18].mxu1  ;;  %v12956_v22 = vld [vmem:[#allocation4 + $0x3ac] ss:$16 sps:$4 sm:$0xff]  }
 0x778   :  { %v1796_v24 = vmax.f32 %v1791_v20, 0.0  ;;  %v12086_v25 = vpop.f32.mrb[19].mxu1  ;;  %v12953_v20 = vld [vmem:[#allocation4 + $0x3a4] ss:$16 sps:$4 sm:$0xff]   ;;  %v12951_v23 = vld [vmem:[#allocation4 + $0x3a0] ss:$16 sps:$4 sm:$0xff]  }
 0x779   :  { %v12959_v25 = vld [vmem:[#allocation4 + $0x3c4] ss:$16 sps:$4 sm:$0xff]  }
 0x77a   :  { %v1797_v26 = vpack.c.bf16 %v1796_v24, %v1796_v24  ;;  %v12954_v24 = vld [vmem:[#allocation4 + $0x3a8] ss:$16 sps:$4 sm:$0xff]  }
 0x77c   :  { %2237 = vmatmul.mubr.bf16.vlgmr.msra.gmra.mrb[20].mxu0 %v1797_v26  ;;  %2278 = vmatmul.mubr.bf16.vlgmr.msra.gmra.mrb[20].mxu1 %v1797_v26  ;;  %v12962_v26 = vld [vmem:[#allocation4 + $0x3cc] ss:$16 sps:$4 sm:$0xff]  }
 0x77d   :  { %2749 = vmatprep.mubr.bf16.mxu0 %v14654_v13  ;;  %2790 = vmatprep.mubr.bf16.mxu1 %v14654_v13  ;;  %v12894_v13 = vld [vmem:[#allocation4 + $0x268] ss:$16 sps:$4 sm:$0xff]  }
 0x77e   :  { %2718 = vmatpush1.bf16.msra.mxu0 %v12873_v27  ;;  %2759 = vmatpush1.bf16.msra.mxu1 %v12876_v28  ;;  %v12957_v27 = vld [vmem:[#allocation4 + $0x3c0] ss:$16 sps:$4 sm:$0xff]   ;;  %v12960_v28 = vld [vmem:[#allocation4 + $0x3c8] ss:$16 sps:$4 sm:$0xff]  }
 0x77f   :  { %2719 = vmatprep.subr.bf16.mxu0 %v12881_v29  ;;  %2760 = vmatprep.subr.bf16.mxu1 %v12884_v30  ;;  %v12965_v29 = vld [vmem:[#allocation4 + $0x3e4] ss:$16 sps:$4 sm:$0xff]   ;;  %v12968_v30 = vld [vmem:[#allocation4 + $0x3ec] ss:$16 sps:$4 sm:$0xff]  }
 0x782   :  { %2720 = vmatpush1.bf16.msra.mxu0 %v12879_v31  ;;  %2761 = vmatpush1.bf16.msra.mxu1 %v12882_v32  ;;  %v12963_v31 = vld [vmem:[#allocation4 + $0x3e0] ss:$16 sps:$4 sm:$0xff]   ;;  %v12966_v32 = vld [vmem:[#allocation4 + $0x3e8] ss:$16 sps:$4 sm:$0xff]  }
 0x783   :  { %2721 = vmatprep.subr.bf16.mxu0 %v12887_v33  ;;  %2762 = vmatprep.subr.bf16.mxu1 %v12890_v34  ;;  %v1862_v33 = vld [vmem:[%s15673_s7] sm:$0xf] }
 0x784   :  { %v1867_v34 = vrot.slane %v1862_v33, %v14580_v44 }
 0x786   :  { %2722 = vmatpush1.bf16.msra.mxu0 %v12885_v35  ;;  %2763 = vmatpush1.bf16.msra.mxu1 %v12888_v36  ;;  %v1871_v35 = vrot.slane %v1862_v33, %v14585_v46 }
 0x787   :  { %2723 = vmatprep.subr.bf16.mxu0 %v12893_v37  ;;  %2764 = vmatprep.subr.bf16.mxu1 %v12896_v38 }
 0x78a   :  { %2724 = vmatpush1.bf16.msra.mxu0 %v12891_v39  ;;  %2765 = vmatpush1.bf16.msra.mxu1 %v12894_v13 }
 0x78b   :  { %2725 = vmatprep.subr.bf16.mxu0 %v12899_v40  ;;  %2766 = vmatprep.subr.bf16.mxu1 %v12902_v41 }
 0x78e   :  { %2726 = vmatpush1.bf16.msra.mxu0 %v12897_v42  ;;  %2767 = vmatpush1.bf16.msra.mxu1 %v12900_v43 }
 0x78f   :  { %2727 = vmatprep.subr.bf16.mxu0 %v12905_v45  ;;  %2768 = vmatprep.subr.bf16.mxu1 %v12908_v47 }
 0x792   :  { %2728 = vmatpush1.bf16.msra.mxu0 %v12903_v48  ;;  %2769 = vmatpush1.bf16.msra.mxu1 %v12906_v49  ;;  %v1879_v49 = vrot.slane %v1862_v33, %v14589_v51 }
 0x793   :  { %2729 = vmatprep.subr.bf16.mxu0 %v12911_v50  ;;  %2770 = vmatprep.subr.bf16.mxu1 %v12914_v52  ;;  %v1875_v52 = vrot.slane %v1862_v33, %v14592_v63 }
 0x796   :  { %2730 = vmatpush1.bf16.msra.mxu0 %v12909_v21  ;;  %2771 = vmatpush1.bf16.msra.mxu1 %v12912_v53 }
 0x797   :  { %2731 = vmatprep.subr.bf16.mxu0 %v12917_v12  ;;  %2772 = vmatprep.subr.bf16.mxu1 %v12920_v55 }
 0x79a   :  { %2732 = vmatpush1.bf16.msra.mxu0 %v12915_v56  ;;  %2773 = vmatpush1.bf16.msra.mxu1 %v12918_v57 }
 0x79b   :  { %2733 = vmatprep.subr.bf16.mxu0 %v12923_v58  ;;  %2774 = vmatprep.subr.bf16.mxu1 %v12926_v59 }
 0x79e   :  { %2734 = vmatpush1.bf16.msra.mxu0 %v12921_v60  ;;  %2775 = vmatpush1.bf16.msra.mxu1 %v12924_v61 }
 0x79f   :  { %2735 = vmatprep.subr.bf16.mxu0 %v12929_v62  ;;  %2776 = vmatprep.subr.bf16.mxu1 %v12932_v1 }
 0x7a2   :  { %2736 = vmatpush1.bf16.msra.mxu0 %v12927_v2  ;;  %2777 = vmatpush1.bf16.msra.mxu1 %v12930_v3 }
 0x7a3   :  { %2737 = vmatprep.subr.bf16.mxu0 %v12935_v4  ;;  %2778 = vmatprep.subr.bf16.mxu1 %v12938_v5 }
 0x7a6   :  { %2738 = vmatpush1.bf16.msra.mxu0 %v12933_v6  ;;  %2779 = vmatpush1.bf16.msra.mxu1 %v12936_v7 }
 0x7a7   :  { %2739 = vmatprep.subr.bf16.mxu0 %v12941_v9  ;;  %2780 = vmatprep.subr.bf16.mxu1 %v12944_v10  ;;  %v12970_v9 = vld [vmem:[%s15674_s8 + $0x8] sm:$0xff]   ;;  %v12971_v10 = vld [vmem:[%s15674_s8 + $0x10] sm:$0xff]  }
 0x7aa   :  { %2740 = vmatpush1.bf16.msra.mxu0 %v12939_v11  ;;  %2781 = vmatpush1.bf16.msra.mxu1 %v12942_v14  ;;  %v12972_v11 = vld [vmem:[%s15674_s8 + $0x18] sm:$0xff]   ;;  %v12973_v14 = vld [vmem:[%s15674_s8 + $0x20] sm:$0xff]  }
 0x7ab   :  { %2741 = vmatprep.subr.bf16.mxu0 %v12947_v16  ;;  %2782 = vmatprep.subr.bf16.mxu1 %v12950_v19  ;;  %v12975_v16 = vld [vmem:[%s15674_s8 + $0x30] sm:$0xff]   ;;  %v12977_v19 = vld [vmem:[#allocation6] sm:$0xff]  }
 0x7ae   :  { %2742 = vmatpush1.bf16.msra.mxu0 %v12945_v15  ;;  %2783 = vmatpush1.bf16.msra.mxu1 %v12948_v18  ;;  %v12974_v15 = vld [vmem:[%s15674_s8 + $0x28] sm:$0xff]   ;;  %v12976_v18 = vld [vmem:[%s15674_s8 + $0x38] sm:$0xff]  }
 0x7af   :  { %2743 = vmatprep.subr.bf16.mxu0 %v12953_v20  ;;  %2784 = vmatprep.subr.bf16.mxu1 %v12956_v22  ;;  %v12978_v20 = vld [vmem:[#allocation6 + $0x8] sm:$0xff]   ;;  %v12979_v22 = vld [vmem:[#allocation6 + $0x10] sm:$0xff]  }
 0x7b2   :  { %2744 = vmatpush1.bf16.msra.mxu0 %v12951_v23  ;;  %2785 = vmatpush1.bf16.msra.mxu1 %v12954_v24  ;;  %v12980_v23 = vld [vmem:[#allocation6 + $0x18] sm:$0xff]   ;;  %v12981_v24 = vld [vmem:[#allocation6 + $0x20] sm:$0xff]  }
 0x7b3   :  { %2745 = vmatprep.subr.bf16.mxu0 %v12959_v25  ;;  %2786 = vmatprep.subr.bf16.mxu1 %v12962_v26  ;;  %v12982_v25 = vld [vmem:[#allocation6 + $0x28] sm:$0xff]   ;;  %v10758_v26 = vld [vmem:[%s15673_s7 + $0x4] sm:$0xf] }
 0x7b6   :  { %2746 = vmatpush1.bf16.msra.mxu0 %v12957_v27  ;;  %2787 = vmatpush1.bf16.msra.mxu1 %v12960_v28  ;;  %v2380_v27 = vrot.slane %v10758_v26, %v14580_v44  ;;  %v2384_v28 = vrot.slane %v10758_v26, %v14585_v46 }
 0x7b7   :  { %2747 = vmatprep.subr.bf16.mxu0 %v12965_v29  ;;  %2788 = vmatprep.subr.bf16.mxu1 %v12968_v30 }
 0x7ba   :  { %2748 = vmatpush1.bf16.msra.mxu0 %v12963_v31  ;;  %2789 = vmatpush1.bf16.msra.mxu1 %v12966_v32 }
 0x7bb   :  { %12087 = vmatprep.subr.bf16.mxu0 %v14399_v0  ;;  %12107 = vmatprep.subr.bf16.mxu1 %v14399_v0 }
 0x84f   :  { %v2238_v36 = vpop.f32.mrb[20].mxu0  ;;  %v2279_v37 = vpop.f32.mrb[20].mxu1 }
 0x850   :  { %v2239_v38 = vadd.f32 %v2238_v36, %v1867_v34  ;;  %v2240_v39 = vpop.f32.mrb[21].mxu0  ;;  %v2281_v13 = vpop.f32.mrb[21].mxu1  ;;  %v2280_v53 = vadd.f32 %v2279_v37, %v1875_v52 }
 0x851   :  { %v2241_v40 = vadd.f32 %v2240_v39, %v1871_v35  ;;  %v2242_v41 = vpop.f32.mrb[22].mxu0  ;;  %v2283_v42 = vpop.f32.mrb[22].mxu1  ;;  %v2282_v50 = vadd.f32 %v2281_v13, %v1879_v49 }
 0x852   :  { %v10755_v43 = vmul.f32 -1.442695, %v2239_v38  ;;  %v2243_v45 = vpop.f32.mrb[23].mxu0  ;;  %v2284_v47 = vpop.f32.mrb[23].mxu1  ;;  %v2388_v42 = vrot.slane %v10758_v26, %v14592_v63 }
 0x853   :  { %v10756_v48 = vmul.f32 -1.442695, %v2241_v40  ;;  %v10757_v21 = vmul.f32 -1.442695, %v2282_v50  ;;  %v2392_v40 = vrot.slane %v10758_v26, %v14589_v51  ;;  %v12995_v26 = vld [vmem:[%s15670_s4 + $0x10] sm:$0xff]  }
 0x854   :  { %14137 = vpow2.f32 %v10755_v43 }
 0x855   :  { %14139 = vpow2.f32 %v10756_v48 }
 0x856   :  { %14141 = vpow2.f32 %v10757_v21 }
 0x857   :  { %14143 = vtanh.f32 %v2280_v53 }
 0x85e   :  { %v14138_v12 = vpop.eup %14137 }
 0x85f   :  { %v14140_v55 = vpop.eup %14139  ;;  %v2289_v56 = vadd.f32 1.0, %v14138_v12 }
 0x860   :  { %v2295_v57 = vadd.f32 1.0, %v14140_v55  ;;  %v14142_v58 = vpop.eup %14141 }
 0x861   :  { %14145 = vrcp.f32 %v2289_v56  ;;  %v14144_v59 = vpop.eup %14143  ;;  %v2302_v1 = vadd.f32 1.0, %v14142_v58 }
 0x862   :  { %14147 = vrcp.f32 %v2295_v57 }
 0x863   :  { %14149 = vrcp.f32 %v2302_v1  ;;  %v12983_v1 = vld [vmem:[#allocation6 + $0x30] sm:$0xff]  }
 0x86b   :  { %v14146_v60 = vpop.eup %14145 }
 0x86c   :  { %v14148_v61 = vpop.eup %14147  ;;  %v2306_v62 = vmul.f32 %v14146_v60, %v14144_v59 }
 0x86d   :  { %v2305_v2 = vmul.f32 %v14148_v61, %v14595_v17  ;;  %v14150_v4 = vpop.eup %14149  ;;  %v12969_v17 = vld [vmem:[%s15674_s8] sm:$0xff]  }
 0x86f   :  { %v14766_v3 = vadd.f32 %v2306_v62, %v2305_v2  ;;  %v12985_v2 = vld [vmem:[%s15668_s2] sm:$0xff]  }
 0x871   :  { %14151 = vtanh.f32 %v14766_v3 }
 0x87b   :  { %v14152_v5 = vpop.eup %14151 }
 0x87c   :  { %v2309_v6 = vmul.f32 %v14152_v5, %v14150_v4  ;;  %v12986_v4 = vld [vmem:[%s15668_s2 + $0x8] sm:$0xff]   ;;  %v12987_v5 = vld [vmem:[%s15668_s2 + $0x10] sm:$0xff]  }
 0x87e   :  { %v14769_v7 = vpack.c.bf16 %v2309_v6, %v2309_v6  ;;  %v12988_v6 = vld [vmem:[%s15668_s2 + $0x18] sm:$0xff]  }
 0x880   :  { %2750 = vmatmul.mubr.bf16.vlgmr.msra.gmra.mrb[24].mxu0 %v14769_v7  ;;  %2791 = vmatmul.mubr.bf16.vlgmr.msra.gmra.mrb[24].mxu1 %v14769_v7 }
 0x881   :  { %12103 = vmatprep.mubr.msk.bf16.mxu0 %vm14400_vm0, %v14399_v0  ;;  %12123 = vmatprep.mubr.msk.bf16.mxu1 %vm14400_vm0, %v14399_v0 }
 0x882   :  { %12088 = vmatpush3.bf16.msra.mxu0 %v12969_v17  ;;  %12108 = vmatpush3.bf16.msra.mxu1 %v12977_v19  ;;  %v12989_v17 = vld [vmem:[%s15668_s2 + $0x20] sm:$0xff]  }
 0x883   :  { %12089 = vmatprep.subr.bf16.mxu0 %v14399_v0  ;;  %12109 = vmatprep.subr.bf16.mxu1 %v14399_v0 }
 0x886   :  { %12090 = vmatpush3.bf16.msra.mxu0 %v12970_v9  ;;  %12110 = vmatpush3.bf16.msra.mxu1 %v12978_v20  ;;  %v12990_v9 = vld [vmem:[%s15668_s2 + $0x28] sm:$0xff]  }
 0x887   :  { %12091 = vmatprep.subr.bf16.mxu0 %v14399_v0  ;;  %12111 = vmatprep.subr.bf16.mxu1 %v14399_v0 }
 0x88a   :  { %12092 = vmatpush3.bf16.msra.mxu0 %v12971_v10  ;;  %12112 = vmatpush3.bf16.msra.mxu1 %v12979_v22  ;;  %v10826_v10 = vld [vmem:[%s15675_s9] ss:$0 sm:$0xff]  ;;  %v12991_v22 = vld [vmem:[%s15668_s2 + $0x30] sm:$0xff]  }
 0x88b   :  { %12093 = vmatprep.subr.bf16.mxu0 %v14399_v0  ;;  %12113 = vmatprep.subr.bf16.mxu1 %v14399_v0 }
 0x88e   :  { %12094 = vmatpush3.bf16.msra.mxu0 %v12972_v11  ;;  %12114 = vmatpush3.bf16.msra.mxu1 %v12980_v23  ;;  %v12992_v23 = vld [vmem:[%s15668_s2 + $0x38] sm:$0xff]  }
 0x88f   :  { %12095 = vmatprep.subr.bf16.mxu0 %v14399_v0  ;;  %12115 = vmatprep.subr.bf16.mxu1 %v14399_v0 }
 0x892   :  { %12096 = vmatpush3.bf16.msra.mxu0 %v12973_v14  ;;  %12116 = vmatpush3.bf16.msra.mxu1 %v12981_v24  ;;  %v12993_v24 = vld [vmem:[%s15670_s4] sm:$0xff]  }
 0x893   :  { %12097 = vmatprep.subr.bf16.mxu0 %v14399_v0  ;;  %12117 = vmatprep.subr.bf16.mxu1 %v14399_v0 }
 0x896   :  { %12098 = vmatpush3.bf16.msra.mxu0 %v12974_v15  ;;  %12118 = vmatpush3.bf16.msra.mxu1 %v12982_v25  ;;  %v12994_v25 = vld [vmem:[%s15670_s4 + $0x8] sm:$0xff]  }
 0x897   :  { %12099 = vmatprep.subr.bf16.mxu0 %v14399_v0  ;;  %12119 = vmatprep.subr.bf16.mxu1 %v14399_v0 }
 0x89a   :  { %12100 = vmatpush3.bf16.msra.mxu0 %v12975_v16  ;;  %12120 = vmatpush3.bf16.msra.mxu1 %v12983_v1  ;;  %v13049_v1 = vld [vmem:[#allocation4 + $0x100] ss:$16 sps:$4 sm:$0xff]  }
 0x89b   :  { %12101 = vmatprep.subr.bf16.mxu0 %v14399_v0  ;;  %12121 = vmatprep.subr.bf16.mxu1 %v14399_v0 }
 0x89e   :  { %12102 = vmatpush3.bf16.msra.mxu0 %v12976_v18 }
 0x89f   :  { %12127 = vmatprep.subr.bf16.mxu0 %v14399_v0 }
 0x953   :  { %v2751_v29 = vpop.f32.mrb[24].mxu0  ;;  %v2792_v30 = vpop.f32.mrb[24].mxu1 }
 0x954   :  { %v2752_v31 = vadd.f32 %v2751_v29, %v2380_v27  ;;  %v2753_v32 = vpop.f32.mrb[25].mxu0  ;;  %v2794_v33 = vpop.f32.mrb[25].mxu1  ;;  %v2793_v45 = vadd.f32 %v2792_v30, %v2388_v42  ;;  %v12996_v27 = vld [vmem:[%s15670_s4 + $0x18] sm:$0xff]   ;;  %v12998_v29 = vld [vmem:[%s15670_s4 + $0x28] sm:$0xff]   ;;  %v10835_v30 = vld [vmem:[%s15677_s11] ss:$0 sm:$0xff] }
 0x955   :  { %v2754_v34 = vadd.f32 %v2753_v32, %v2384_v28  ;;  %v2755_v35 = vpop.f32.mrb[26].mxu0  ;;  %v2796_v36 = vpop.f32.mrb[26].mxu1  ;;  %v2795_v41 = vadd.f32 %v2794_v33, %v2392_v40  ;;  %v12997_v28 = vld [vmem:[%s15670_s4 + $0x20] sm:$0xff]   ;;  %v12999_v40 = vld [vmem:[%s15670_s4 + $0x30] sm:$0xff]  }
 0x956   :  { %v10823_v37 = vmul.f32 -1.442695, %v2752_v31  ;;  %v2756_v38 = vpop.f32.mrb[27].mxu0  ;;  %v2797_v39 = vpop.f32.mrb[27].mxu1  ;;  %v3056_v31 = vstv %s3055_s26  ;;  %v10846_v35 = vld [vmem:[%s15667_s1 + $0x10] sm:$0xff] }
 0x957   :  { %v10824_v13 = vmul.f32 -1.442695, %v2754_v34  ;;  %v10825_v43 = vmul.f32 -1.442695, %v2795_v41  ;;  %vm3057_vm4 = vcmp.eq.s32.totalorder %v3056_v31, 1 }
 0x958   :  { %14153 = vpow2.f32 %v10823_v37  ;;  %v13001_v41 = vld [vmem:[#allocation4] ss:$16 sps:$4 sm:$0xff]   ;;  %v13003_v42 = vld [vmem:[#allocation4 + $0x4] ss:$16 sps:$4 sm:$0xff]   ;;  %v13016_v31 = vld [vmem:[#allocation4 + $0x48] ss:$16 sps:$4 sm:$0xff]  }
 0x959   :  { %14155 = vpow2.f32 %v10824_v13 }
 0x95a   :  { %14157 = vpow2.f32 %v10825_v43  ;;  %v13006_v43 = vld [vmem:[#allocation4 + $0xc] ss:$16 sps:$4 sm:$0xff]  }
 0x95b   :  { %14159 = vtanh.f32 %v2793_v45  ;;  %v13009_v45 = vld [vmem:[#allocation4 + $0x24] ss:$16 sps:$4 sm:$0xff]  }
 0x962   :  { %v14154_v47 = vpop.eup %14153 }
 0x963   :  { %v14156_v48 = vpop.eup %14155  ;;  %v2802_v49 = vadd.f32 1.0, %v14154_v47  ;;  %v13007_v47 = vld [vmem:[#allocation4 + $0x20] ss:$16 sps:$4 sm:$0xff]  }
 0x964   :  { %v2808_v50 = vadd.f32 1.0, %v14156_v48  ;;  %v14158_v52 = vpop.eup %14157  ;;  %v13015_v48 = vld [vmem:[#allocation4 + $0x44] ss:$16 sps:$4 sm:$0xff]  }
 0x965   :  { %14161 = vrcp.f32 %v2802_v49  ;;  %v14160_v21 = vpop.eup %14159  ;;  %v2815_v56 = vadd.f32 1.0, %v14158_v52  ;;  %v13013_v49 = vld [vmem:[#allocation4 + $0x40] ss:$16 sps:$4 sm:$0xff]  }
 0x966   :  { %14163 = vrcp.f32 %v2808_v50  ;;  %v13021_v50 = vld [vmem:[#allocation4 + $0x64] ss:$16 sps:$4 sm:$0xff]   ;;  %v13019_v52 = vld [vmem:[#allocation4 + $0x60] ss:$16 sps:$4 sm:$0xff]  }
 0x967   :  { %14165 = vrcp.f32 %v2815_v56  ;;  %v13039_v56 = vld [vmem:[#allocation4 + $0xc4] ss:$16 sps:$4 sm:$0xff]  }
 0x96f   :  { %v14162_v53 = vpop.eup %14161 }
 0x970   :  { %v14164_v12 = vpop.eup %14163  ;;  %v2819_v55 = vmul.f32 %v14162_v53, %v14160_v21  ;;  %v13027_v21 = vld [vmem:[#allocation4 + $0x84] ss:$16 sps:$4 sm:$0xff]   ;;  %v13025_v53 = vld [vmem:[#allocation4 + $0x80] ss:$16 sps:$4 sm:$0xff]  }
 0x971   :  { %v2818_v57 = vmul.f32 %v14164_v12, %v14651_v8  ;;  %v14166_v59 = vpop.eup %14165  ;;  %v12984_v8 = vld [vmem:[#allocation6 + $0x38] sm:$0xff]   ;;  %v13033_v12 = vld [vmem:[#allocation4 + $0xa4] ss:$16 sps:$4 sm:$0xff]  }
 0x972   :  { %12122 = vmatpush3.bf16.msra.mxu1 %v12984_v8  ;;  %v13057_v8 = vld [vmem:[#allocation4 + $0x124] ss:$16 sps:$4 sm:$0xff]  }
 0x973   :  { %v14823_v58 = vadd.f32 %v2819_v55, %v2818_v57  ;;  %12147 = vmatprep.subr.bf16.mxu1 %v14399_v0  ;;  %v13031_v55 = vld [vmem:[#allocation4 + $0xa0] ss:$16 sps:$4 sm:$0xff]  }
 0x974   :  { %v13037_v57 = vld [vmem:[#allocation4 + $0xc0] ss:$16 sps:$4 sm:$0xff]  }
 0x975   :  { %14167 = vtanh.f32 %v14823_v58 }
 0x97f   :  { %v14168_v60 = vpop.eup %14167 }
 0x980   :  { %v2822_v61 = vmul.f32 %v14168_v60, %v14166_v59  ;;  %v13045_v59 = vld [vmem:[#allocation4 + $0xe4] ss:$16 sps:$4 sm:$0xff]   ;;  %v13043_v60 = vld [vmem:[#allocation4 + $0xe0] ss:$16 sps:$4 sm:$0xff]  }
 0x982   :  { %v14826_v62 = vpack.c.bf16 %v2822_v61, %v2822_v61  ;;  %v13051_v61 = vld [vmem:[#allocation4 + $0x104] ss:$16 sps:$4 sm:$0xff]  }
 0x984   :  { %12104 = vmatmul.mubr.bf16.vlgmr.msra.gmra.mrb[28].mxu0 %v14826_v62 }
 0x985   :  { %12143 = vmatprep.mubr.msk.bf16.mxu0 %vm14400_vm0, %v14399_v0  ;;  %12128 = vmatpush3.bf16.msra.mxu0 %v12985_v2  ;;  %v13055_v2 = vld [vmem:[#allocation4 + $0x120] ss:$16 sps:$4 sm:$0xff]  }
 0x986   :  { %12129 = vmatprep.subr.bf16.mxu0 %v14399_v0 }
 0x989   :  { %12130 = vmatpush3.bf16.msra.mxu0 %v12986_v4  ;;  %v13063_v4 = vld [vmem:[#allocation4 + $0x144] ss:$16 sps:$4 sm:$0xff]  }
 0x98a   :  { %12131 = vmatprep.subr.bf16.mxu0 %v14399_v0 }
 0x98d   :  { %12132 = vmatpush3.bf16.msra.mxu0 %v12987_v5  ;;  %v13061_v5 = vld [vmem:[#allocation4 + $0x140] ss:$16 sps:$4 sm:$0xff]  }
 0x98e   :  { %12133 = vmatprep.subr.bf16.mxu0 %v14399_v0 }
 0x991   :  { %12134 = vmatpush3.bf16.msra.mxu0 %v12988_v6  ;;  %v13069_v6 = vld [vmem:[#allocation4 + $0x164] ss:$16 sps:$4 sm:$0xff]  }
 0x992   :  { %12135 = vmatprep.subr.bf16.mxu0 %v14399_v0 }
 0x995   :  { %12136 = vmatpush3.bf16.msra.mxu0 %v12989_v17  ;;  %v13067_v17 = vld [vmem:[#allocation4 + $0x160] ss:$16 sps:$4 sm:$0xff]  }
 0x996   :  { %12137 = vmatprep.subr.bf16.mxu0 %v14399_v0 }
 0x999   :  { %12138 = vmatpush3.bf16.msra.mxu0 %v12990_v9  ;;  %v13075_v9 = vld [vmem:[#allocation4 + $0x184] ss:$16 sps:$4 sm:$0xff]  }
 0x99a   :  { %12139 = vmatprep.subr.bf16.mxu0 %v14399_v0 }
 0x99d   :  { %12140 = vmatpush3.bf16.msra.mxu0 %v12991_v22 }
 0x99e   :  { %12141 = vmatprep.subr.bf16.mxu0 %v14399_v0 }
 0x9a1   :  { %12142 = vmatpush3.bf16.msra.mxu0 %v12992_v23 }
 0x9a2   :  { %3692 = vmatprep.subr.bf16.mxu0 %v13003_v42  ;;  %v13060_v42 = vld [vmem:[#allocation4 + $0x12c] ss:$16 sps:$4 sm:$0xff]  }
 0xa57   :  { %v2929_v11 = vpop.f32.mrb[28].mxu0 }
 0xa58   :  { %v2930_v14 = vadd.f32 %v10826_v10, %v2929_v11  ;;  %v12105_v15 = vpop.f32.mrb[29].mxu0  ;;  %v13073_v10 = vld [vmem:[#allocation4 + $0x180] ss:$16 sps:$4 sm:$0xff]   ;;  %v13081_v11 = vld [vmem:[#allocation4 + $0x1a4] ss:$16 sps:$4 sm:$0xff]  }
 0xa59   :  { %v2932_v16 = vpop.f32.mrb[30].mxu0  ;;  %v13087_v15 = vld [vmem:[#allocation4 + $0x1c4] ss:$16 sps:$4 sm:$0xff]  }
 0xa5a   :  { %v2935_v18 = vmax.f32 %v2930_v14, 0.0  ;;  %v12106_v19 = vpop.f32.mrb[31].mxu0  ;;  %v13079_v14 = vld [vmem:[#allocation4 + $0x1a0] ss:$16 sps:$4 sm:$0xff]  }
 0xa5b   :  { %v13085_v16 = vld [vmem:[#allocation4 + $0x1c0] ss:$16 sps:$4 sm:$0xff]  }
 0xa5c   :  { %v2936_v20 = vpack.c.bf16 %v2935_v18, %v2935_v18  ;;  %v10847_v18 = vld [vmem:[%s15669_s3] ss:$0 sm:$0xff] }
 0xa5e   :  { %12124 = vmatmul.mubr.bf16.vlgmr.msra.gmra.mrb[28].mxu1 %v2936_v20 }
 0xa5f   :  { %12163 = vmatprep.mubr.msk.bf16.mxu1 %vm14400_vm0, %v14399_v0  ;;  %12148 = vmatpush3.bf16.msra.mxu1 %v12993_v24 }
 0xa60   :  { %12149 = vmatprep.subr.bf16.mxu1 %v14399_v0 }
 0xa63   :  { %12150 = vmatpush3.bf16.msra.mxu1 %v12994_v25 }
 0xa64   :  { %12151 = vmatprep.subr.bf16.mxu1 %v14399_v0 }
 0xa67   :  { %12152 = vmatpush3.bf16.msra.mxu1 %v12995_v26  ;;  %v13004_v26 = vld [vmem:[#allocation4 + $0x8] ss:$16 sps:$4 sm:$0xff]  }
 0xa68   :  { %12153 = vmatprep.subr.bf16.mxu1 %v14399_v0 }
 0xa6b   :  { %12154 = vmatpush3.bf16.msra.mxu1 %v12996_v27 }
 0xa6c   :  { %12155 = vmatprep.subr.bf16.mxu1 %v14399_v0 }
 0xa6f   :  { %12156 = vmatpush3.bf16.msra.mxu1 %v12997_v28  ;;  %v13012_v28 = vld [vmem:[#allocation4 + $0x2c] ss:$16 sps:$4 sm:$0xff]  }
 0xa70   :  { %12157 = vmatprep.subr.bf16.mxu1 %v14399_v0 }
 0xa73   :  { %12158 = vmatpush3.bf16.msra.mxu1 %v12998_v29  ;;  %v13010_v29 = vld [vmem:[#allocation4 + $0x28] ss:$16 sps:$4 sm:$0xff]  }
 0xa74   :  { %12159 = vmatprep.subr.bf16.mxu1 %v14399_v0 }
 0xa77   :  { %12160 = vmatpush3.bf16.msra.mxu1 %v12999_v40  ;;  %v13046_v40 = vld [vmem:[#allocation4 + $0xe8] ss:$16 sps:$4 sm:$0xff]  }
 0xa78   :  { %12161 = vmatprep.subr.bf16.mxu1 %v14399_v0 }
 0xb31   :  { %v3042_v32 = vpop.f32.mrb[28].mxu1 }
 0xb32   :  { %v3043_v33 = vadd.f32 %v10835_v30, %v3042_v32  ;;  %v12125_v34 = vpop.f32.mrb[29].mxu1  ;;  %v13018_v30 = vld [vmem:[#allocation4 + $0x4c] ss:$16 sps:$4 sm:$0xff]  }
 0xb33   :  { %v3045_v36 = vpop.f32.mrb[30].mxu1  ;;  %v13024_v32 = vld [vmem:[#allocation4 + $0x6c] ss:$16 sps:$4 sm:$0xff]  }
 0xb34   :  { %v3048_v37 = vadd.f32 %v3043_v33, %v14735_v54  ;;  %v12126_v38 = vpop.f32.mrb[31].mxu1  ;;  %v13000_v54 = vld [vmem:[%s15670_s4 + $0x38] sm:$0xff]  }
 0xb35   :  { %12162 = vmatpush3.bf16.msra.mxu1 %v13000_v54  ;;  %v13022_v33 = vld [vmem:[#allocation4 + $0x68] ss:$16 sps:$4 sm:$0xff]   ;;  %v13030_v34 = vld [vmem:[#allocation4 + $0x8c] ss:$16 sps:$4 sm:$0xff]  }
 0xb36   :  { %10844 = vst [vmem:[%s15678_s12 + $0x8] sm:$0xff] %v3048_v37  ;;  %v14903_v39 = vsel %vm3057_vm4, %v10846_v35, %v3048_v37  ;;  %3733 = vmatprep.subr.bf16.mxu1 %v13006_v43  ;;  %v13028_v35 = vld [vmem:[#allocation4 + $0x88] ss:$16 sps:$4 sm:$0xff]   ;;  %v13036_v36 = vld [vmem:[#allocation4 + $0xac] ss:$16 sps:$4 sm:$0xff]  }
 0xb37   :  { %v3059_v13 = vpack.c.bf16 %v14903_v39, %v14903_v39  ;;  %v13034_v37 = vld [vmem:[#allocation4 + $0xa8] ss:$16 sps:$4 sm:$0xff]   ;;  %v13054_v54 = vld [vmem:[#allocation4 + $0x10c] ss:$16 sps:$4 sm:$0xff]  }
 0xb38   :  { %v13040_v38 = vld [vmem:[#allocation4 + $0xc8] ss:$16 sps:$4 sm:$0xff]  }
 0xb39   :  { %12144 = vmatmul.mubr.bf16.vlgmr.msra.gmra.mrb[32].mxu0 %v3059_v13  ;;  %v13048_v13 = vld [vmem:[#allocation4 + $0xec] ss:$16 sps:$4 sm:$0xff]   ;;  %v13058_v43 = vld [vmem:[#allocation4 + $0x128] ss:$16 sps:$4 sm:$0xff]  }
 0xb3a   :  { %3724 = vmatprep.mubr.bf16.mxu0 %v14769_v7  ;;  %3693 = vmatpush1.bf16.msra.mxu0 %v13001_v41  ;;  %v13052_v41 = vld [vmem:[#allocation4 + $0x108] ss:$16 sps:$4 sm:$0xff]  }
 0xb3b   :  { %3694 = vmatprep.subr.bf16.mxu0 %v13009_v45  ;;  %v13066_v45 = vld [vmem:[#allocation4 + $0x14c] ss:$16 sps:$4 sm:$0xff]  }
 0xb3e   :  { %3695 = vmatpush1.bf16.msra.mxu0 %v13007_v47  ;;  %v13064_v47 = vld [vmem:[#allocation4 + $0x148] ss:$16 sps:$4 sm:$0xff]  }
 0xb3f   :  { %3696 = vmatprep.subr.bf16.mxu0 %v13015_v48  ;;  %v13072_v48 = vld [vmem:[#allocation4 + $0x16c] ss:$16 sps:$4 sm:$0xff]  }
 0xb42   :  { %3697 = vmatpush1.bf16.msra.mxu0 %v13013_v49  ;;  %v13070_v49 = vld [vmem:[#allocation4 + $0x168] ss:$16 sps:$4 sm:$0xff]  }
 0xb43   :  { %3698 = vmatprep.subr.bf16.mxu0 %v13021_v50  ;;  %v13078_v50 = vld [vmem:[#allocation4 + $0x18c] ss:$16 sps:$4 sm:$0xff]  }
 0xb46   :  { %3699 = vmatpush1.bf16.msra.mxu0 %v13019_v52  ;;  %v13076_v52 = vld [vmem:[#allocation4 + $0x188] ss:$16 sps:$4 sm:$0xff]  }
 0xb47   :  { %3700 = vmatprep.subr.bf16.mxu0 %v13027_v21  ;;  %v13084_v21 = vld [vmem:[#allocation4 + $0x1ac] ss:$16 sps:$4 sm:$0xff]  }
 0xb4a   :  { %3701 = vmatpush1.bf16.msra.mxu0 %v13025_v53  ;;  %v13082_v53 = vld [vmem:[#allocation4 + $0x1a8] ss:$16 sps:$4 sm:$0xff]  }
 0xb4b   :  { %3702 = vmatprep.subr.bf16.mxu0 %v13033_v12  ;;  %v13090_v12 = vld [vmem:[#allocation4 + $0x1cc] ss:$16 sps:$4 sm:$0xff]  }
 0xb4e   :  { %3703 = vmatpush1.bf16.msra.mxu0 %v13031_v55  ;;  %v13088_v55 = vld [vmem:[#allocation4 + $0x1c8] ss:$16 sps:$4 sm:$0xff]  }
 0xb4f   :  { %3704 = vmatprep.subr.bf16.mxu0 %v13039_v56  ;;  %v13093_v56 = vld [vmem:[#allocation4 + $0x1e4] ss:$16 sps:$4 sm:$0xff]  }
 0xb52   :  { %3705 = vmatpush1.bf16.msra.mxu0 %v13037_v57  ;;  %v13096_v57 = vld [vmem:[#allocation4 + $0x1ec] ss:$16 sps:$4 sm:$0xff]  }
 0xb53   :  { %3706 = vmatprep.subr.bf16.mxu0 %v13045_v59  ;;  %v13091_v59 = vld [vmem:[#allocation4 + $0x1e0] ss:$16 sps:$4 sm:$0xff]  }
 0xb56   :  { %3707 = vmatpush1.bf16.msra.mxu0 %v13043_v60  ;;  %v13094_v60 = vld [vmem:[#allocation4 + $0x1e8] ss:$16 sps:$4 sm:$0xff]  }
 0xb57   :  { %3708 = vmatprep.subr.bf16.mxu0 %v13051_v61  ;;  %v13099_v61 = vld [vmem:[#allocation4 + $0x204] ss:$16 sps:$4 sm:$0xff]  }
 0xb5a   :  { %3709 = vmatpush1.bf16.msra.mxu0 %v13049_v1  ;;  %v13102_v1 = vld [vmem:[#allocation4 + $0x20c] ss:$16 sps:$4 sm:$0xff]  }
 0xb5b   :  { %3710 = vmatprep.subr.bf16.mxu0 %v13057_v8  ;;  %v10856_v8 = vld [vmem:[%s15671_s5] ss:$0 sm:$0xff] }
 0xb5e   :  { %3711 = vmatpush1.bf16.msra.mxu0 %v13055_v2 }
 0xb5f   :  { %3712 = vmatprep.subr.bf16.mxu0 %v13063_v4 }
 0xb62   :  { %3713 = vmatpush1.bf16.msra.mxu0 %v13061_v5 }
 0xb63   :  { %3714 = vmatprep.subr.bf16.mxu0 %v13069_v6 }
 0xb66   :  { %3715 = vmatpush1.bf16.msra.mxu0 %v13067_v17 }
 0xb67   :  { %3716 = vmatprep.subr.bf16.mxu0 %v13075_v9 }
 0xb6a   :  { %3717 = vmatpush1.bf16.msra.mxu0 %v13073_v10 }
 0xb6b   :  { %3718 = vmatprep.subr.bf16.mxu0 %v13081_v11  ;;  %v13097_v11 = vld [vmem:[#allocation4 + $0x200] ss:$16 sps:$4 sm:$0xff]  }
 0xb6e   :  { %3719 = vmatpush1.bf16.msra.mxu0 %v13079_v14  ;;  %v13100_v14 = vld [vmem:[#allocation4 + $0x208] ss:$16 sps:$4 sm:$0xff]  }
 0xb6f   :  { %3720 = vmatprep.subr.bf16.mxu0 %v13087_v15  ;;  %v13105_v15 = vld [vmem:[#allocation4 + $0x224] ss:$16 sps:$4 sm:$0xff]  }
 0xb72   :  { %3721 = vmatpush1.bf16.msra.mxu0 %v13085_v16  ;;  %v13108_v16 = vld [vmem:[#allocation4 + $0x22c] ss:$16 sps:$4 sm:$0xff]  }
 0xb73   :  { %3722 = vmatprep.subr.bf16.mxu0 %v13093_v56  ;;  %v13165_v56 = vld [vmem:[#allocation4 + $0x364] ss:$16 sps:$4 sm:$0xff]  }
 0xb76   :  { %3723 = vmatpush1.bf16.msra.mxu0 %v13091_v59  ;;  %v13163_v59 = vld [vmem:[#allocation4 + $0x360] ss:$16 sps:$4 sm:$0xff]  }
 0xb77   :  { %4205 = vmatprep.subr.bf16.mxu0 %v13099_v61  ;;  %v13169_v61 = vld [vmem:[#allocation4 + $0x380] ss:$16 sps:$4 sm:$0xff]  }
 0xc0c   :  { %v3165_v19 = vpop.f32.mrb[32].mxu0 }
 0xc0d   :  { %v3166_v20 = vadd.f32 %v10847_v18, %v3165_v19  ;;  %v12145_v22 = vpop.f32.mrb[33].mxu0  ;;  %v13103_v18 = vld [vmem:[#allocation4 + $0x220] ss:$16 sps:$4 sm:$0xff]   ;;  %v13106_v19 = vld [vmem:[#allocation4 + $0x228] ss:$16 sps:$4 sm:$0xff]  }
 0xc0e   :  { %v3168_v23 = vpop.f32.mrb[34].mxu0  ;;  %v13114_v22 = vld [vmem:[#allocation4 + $0x24c] ss:$16 sps:$4 sm:$0xff]  }
 0xc0f   :  { %v3171_v24 = vmax.f32 %v3166_v20, 0.0  ;;  %v12146_v25 = vpop.f32.mrb[35].mxu0  ;;  %v13111_v20 = vld [vmem:[#allocation4 + $0x244] ss:$16 sps:$4 sm:$0xff]   ;;  %v13109_v23 = vld [vmem:[#allocation4 + $0x240] ss:$16 sps:$4 sm:$0xff]  }
 0xc10   :  { %v13117_v25 = vld [vmem:[#allocation4 + $0x264] ss:$16 sps:$4 sm:$0xff]  }
 0xc11   :  { %v3172_v27 = vpack.c.bf16 %v3171_v24, %v3171_v24  ;;  %v13112_v24 = vld [vmem:[#allocation4 + $0x248] ss:$16 sps:$4 sm:$0xff]  }
 0xc13   :  { %12164 = vmatmul.mubr.bf16.vlgmr.msra.gmra.mrb[32].mxu1 %v3172_v27  ;;  %v13115_v27 = vld [vmem:[#allocation4 + $0x260] ss:$16 sps:$4 sm:$0xff]  }
 0xc14   :  { %3765 = vmatprep.mubr.bf16.mxu1 %v14769_v7  ;;  %3734 = vmatpush1.bf16.msra.mxu1 %v13004_v26  ;;  %v13042_v7 = vld [vmem:[#allocation4 + $0xcc] ss:$16 sps:$4 sm:$0xff]  }
 0xc15   :  { %3735 = vmatprep.subr.bf16.mxu1 %v13012_v28  ;;  %v13120_v26 = vld [vmem:[#allocation4 + $0x26c] ss:$16 sps:$4 sm:$0xff]   ;;  %v13123_v28 = vld [vmem:[#allocation4 + $0x284] ss:$16 sps:$4 sm:$0xff]  }
 0xc18   :  { %3736 = vmatpush1.bf16.msra.mxu1 %v13010_v29  ;;  %v13126_v29 = vld [vmem:[#allocation4 + $0x28c] ss:$16 sps:$4 sm:$0xff]  }
 0xc19   :  { %3737 = vmatprep.subr.bf16.mxu1 %v13018_v30  ;;  %v13121_v30 = vld [vmem:[#allocation4 + $0x280] ss:$16 sps:$4 sm:$0xff]  }
 0xc1c   :  { %3738 = vmatpush1.bf16.msra.mxu1 %v13016_v31  ;;  %v13124_v31 = vld [vmem:[#allocation4 + $0x288] ss:$16 sps:$4 sm:$0xff]  }
 0xc1d   :  { %3739 = vmatprep.subr.bf16.mxu1 %v13024_v32  ;;  %v13129_v32 = vld [vmem:[#allocation4 + $0x2a4] ss:$16 sps:$4 sm:$0xff]  }
 0xc20   :  { %3740 = vmatpush1.bf16.msra.mxu1 %v13022_v33  ;;  %v13132_v33 = vld [vmem:[#allocation4 + $0x2ac] ss:$16 sps:$4 sm:$0xff]  }
 0xc21   :  { %3741 = vmatprep.subr.bf16.mxu1 %v13030_v34  ;;  %v13127_v34 = vld [vmem:[#allocation4 + $0x2a0] ss:$16 sps:$4 sm:$0xff]  }
 0xc24   :  { %3742 = vmatpush1.bf16.msra.mxu1 %v13028_v35  ;;  %v13130_v35 = vld [vmem:[#allocation4 + $0x2a8] ss:$16 sps:$4 sm:$0xff]  }
 0xc25   :  { %3743 = vmatprep.subr.bf16.mxu1 %v13036_v36  ;;  %v13135_v36 = vld [vmem:[#allocation4 + $0x2c4] ss:$16 sps:$4 sm:$0xff]  }
 0xc28   :  { %3744 = vmatpush1.bf16.msra.mxu1 %v13034_v37  ;;  %v13138_v37 = vld [vmem:[#allocation4 + $0x2cc] ss:$16 sps:$4 sm:$0xff]  }
 0xc29   :  { %3745 = vmatprep.subr.bf16.mxu1 %v13042_v7  ;;  %v13133_v7 = vld [vmem:[#allocation4 + $0x2c0] ss:$16 sps:$4 sm:$0xff]  }
 0xc2c   :  { %3746 = vmatpush1.bf16.msra.mxu1 %v13040_v38  ;;  %v13136_v38 = vld [vmem:[#allocation4 + $0x2c8] ss:$16 sps:$4 sm:$0xff]  }
 0xc2d   :  { %3747 = vmatprep.subr.bf16.mxu1 %v13048_v13  ;;  %v13141_v13 = vld [vmem:[#allocation4 + $0x2e4] ss:$16 sps:$4 sm:$0xff]  }
 0xc30   :  { %3748 = vmatpush1.bf16.msra.mxu1 %v13046_v40  ;;  %v13144_v40 = vld [vmem:[#allocation4 + $0x2ec] ss:$16 sps:$4 sm:$0xff]  }
 0xc31   :  { %3749 = vmatprep.subr.bf16.mxu1 %v13054_v54  ;;  %v13139_v54 = vld [vmem:[#allocation4 + $0x2e0] ss:$16 sps:$4 sm:$0xff]  }
 0xc34   :  { %3750 = vmatpush1.bf16.msra.mxu1 %v13052_v41  ;;  %v13142_v41 = vld [vmem:[#allocation4 + $0x2e8] ss:$16 sps:$4 sm:$0xff]  }
 0xc35   :  { %3751 = vmatprep.subr.bf16.mxu1 %v13060_v42  ;;  %v13147_v42 = vld [vmem:[#allocation4 + $0x304] ss:$16 sps:$4 sm:$0xff]  }
 0xc38   :  { %3752 = vmatpush1.bf16.msra.mxu1 %v13058_v43  ;;  %v13150_v43 = vld [vmem:[#allocation4 + $0x30c] ss:$16 sps:$4 sm:$0xff]  }
 0xc39   :  { %3753 = vmatprep.subr.bf16.mxu1 %v13066_v45  ;;  %v13145_v45 = vld [vmem:[#allocation4 + $0x300] ss:$16 sps:$4 sm:$0xff]  }
 0xc3c   :  { %3754 = vmatpush1.bf16.msra.mxu1 %v13064_v47  ;;  %v13148_v47 = vld [vmem:[#allocation4 + $0x308] ss:$16 sps:$4 sm:$0xff]  }
 0xc3d   :  { %3755 = vmatprep.subr.bf16.mxu1 %v13072_v48  ;;  %v13153_v48 = vld [vmem:[#allocation4 + $0x324] ss:$16 sps:$4 sm:$0xff]  }
 0xc40   :  { %3756 = vmatpush1.bf16.msra.mxu1 %v13070_v49  ;;  %v13156_v49 = vld [vmem:[#allocation4 + $0x32c] ss:$16 sps:$4 sm:$0xff]  }
 0xc41   :  { %3757 = vmatprep.subr.bf16.mxu1 %v13078_v50  ;;  %v13151_v50 = vld [vmem:[#allocation4 + $0x320] ss:$16 sps:$4 sm:$0xff]  }
 0xc44   :  { %3758 = vmatpush1.bf16.msra.mxu1 %v13076_v52  ;;  %v13154_v52 = vld [vmem:[#allocation4 + $0x328] ss:$16 sps:$4 sm:$0xff]  }
 0xc45   :  { %3759 = vmatprep.subr.bf16.mxu1 %v13084_v21  ;;  %v13159_v21 = vld [vmem:[#allocation4 + $0x344] ss:$16 sps:$4 sm:$0xff]  }
 0xc48   :  { %3760 = vmatpush1.bf16.msra.mxu1 %v13082_v53  ;;  %v13162_v53 = vld [vmem:[#allocation4 + $0x34c] ss:$16 sps:$4 sm:$0xff]  }
 0xc49   :  { %3761 = vmatprep.subr.bf16.mxu1 %v13090_v12  ;;  %v13157_v12 = vld [vmem:[#allocation4 + $0x340] ss:$16 sps:$4 sm:$0xff]  }
 0xc4c   :  { %3762 = vmatpush1.bf16.msra.mxu1 %v13088_v55  ;;  %v13160_v55 = vld [vmem:[#allocation4 + $0x348] ss:$16 sps:$4 sm:$0xff]  }
 0xc4d   :  { %3763 = vmatprep.subr.bf16.mxu1 %v13096_v57  ;;  %v13168_v57 = vld [vmem:[#allocation4 + $0x36c] ss:$16 sps:$4 sm:$0xff]  }
 0xc50   :  { %3764 = vmatpush1.bf16.msra.mxu1 %v13094_v60  ;;  %v13166_v60 = vld [vmem:[#allocation4 + $0x368] ss:$16 sps:$4 sm:$0xff]  }
 0xc51   :  { %4246 = vmatprep.subr.bf16.mxu1 %v13102_v1  ;;  %v13171_v1 = vld [vmem:[#allocation4 + $0x384] ss:$16 sps:$4 sm:$0xff]  }
 0xce6   :  { %v3278_v2 = vpop.f32.mrb[32].mxu1 }
 0xce7   :  { %v3279_v4 = vadd.f32 %v10856_v8, %v3278_v2  ;;  %v12165_v5 = vpop.f32.mrb[33].mxu1  ;;  %v13172_v8 = vld [vmem:[#allocation4 + $0x388] ss:$16 sps:$4 sm:$0xff]   ;;  %v13174_v2 = vld [vmem:[#allocation4 + $0x38c] ss:$16 sps:$4 sm:$0xff]  }
 0xce8   :  { %v3281_v6 = vpop.f32.mrb[34].mxu1  ;;  %v13180_v5 = vld [vmem:[#allocation4 + $0x3ac] ss:$16 sps:$4 sm:$0xff]  }
 0xce9   :  { %v3284_v17 = vmax.f32 %v3279_v4, 0.0  ;;  %v12166_v9 = vpop.f32.mrb[35].mxu1  ;;  %v13177_v4 = vld [vmem:[#allocation4 + $0x3a4] ss:$16 sps:$4 sm:$0xff]   ;;  %v13175_v6 = vld [vmem:[#allocation4 + $0x3a0] ss:$16 sps:$4 sm:$0xff]  }
 0xcea   :  { %v13183_v9 = vld [vmem:[#allocation4 + $0x3c4] ss:$16 sps:$4 sm:$0xff]  }
 0xceb   :  { %v3285_v10 = vpack.c.bf16 %v3284_v17, %v3284_v17  ;;  %v13178_v17 = vld [vmem:[#allocation4 + $0x3a8] ss:$16 sps:$4 sm:$0xff]  }
 0xced   :  { %3725 = vmatmul.mubr.bf16.vlgmr.msra.gmra.mrb[36].mxu0 %v3285_v10  ;;  %3766 = vmatmul.mubr.bf16.vlgmr.msra.gmra.mrb[36].mxu1 %v3285_v10  ;;  %v13186_v10 = vld [vmem:[#allocation4 + $0x3cc] ss:$16 sps:$4 sm:$0xff]  }
 0xcee   :  { %4237 = vmatprep.mubr.bf16.mxu0 %v14826_v62  ;;  %4278 = vmatprep.mubr.bf16.mxu1 %v14826_v62  ;;  %v13118_v62 = vld [vmem:[#allocation4 + $0x268] ss:$16 sps:$4 sm:$0xff]  }
 0xcef   :  { %4206 = vmatpush1.bf16.msra.mxu0 %v13097_v11  ;;  %4247 = vmatpush1.bf16.msra.mxu1 %v13100_v14  ;;  %v13181_v11 = vld [vmem:[#allocation4 + $0x3c0] ss:$16 sps:$4 sm:$0xff]   ;;  %v13184_v14 = vld [vmem:[#allocation4 + $0x3c8] ss:$16 sps:$4 sm:$0xff]  }
 0xcf0   :  { %4207 = vmatprep.subr.bf16.mxu0 %v13105_v15  ;;  %4248 = vmatprep.subr.bf16.mxu1 %v13108_v16  ;;  %v13189_v15 = vld [vmem:[#allocation4 + $0x3e4] ss:$16 sps:$4 sm:$0xff]   ;;  %v13192_v16 = vld [vmem:[#allocation4 + $0x3ec] ss:$16 sps:$4 sm:$0xff]  }
 0xcf3   :  { %4208 = vmatpush1.bf16.msra.mxu0 %v13103_v18  ;;  %4249 = vmatpush1.bf16.msra.mxu1 %v13106_v19  ;;  %v13187_v18 = vld [vmem:[#allocation4 + $0x3e0] ss:$16 sps:$4 sm:$0xff]   ;;  %v13190_v19 = vld [vmem:[#allocation4 + $0x3e8] ss:$16 sps:$4 sm:$0xff]  }
 0xcf4   :  { %4209 = vmatprep.subr.bf16.mxu0 %v13111_v20  ;;  %4250 = vmatprep.subr.bf16.mxu1 %v13114_v22  ;;  %v3350_v20 = vld [vmem:[%s15673_s7] sm:$0xf] }
 0xcf5   :  { %v3355_v22 = vrot.slane %v3350_v20, %v14580_v44 }
 0xcf7   :  { %4210 = vmatpush1.bf16.msra.mxu0 %v13109_v23  ;;  %4251 = vmatpush1.bf16.msra.mxu1 %v13112_v24  ;;  %v3359_v23 = vrot.slane %v3350_v20, %v14585_v46 }
 0xcf8   :  { %4211 = vmatprep.subr.bf16.mxu0 %v13117_v25  ;;  %4252 = vmatprep.subr.bf16.mxu1 %v13120_v26 }
 0xcfb   :  { %4212 = vmatpush1.bf16.msra.mxu0 %v13115_v27  ;;  %4253 = vmatpush1.bf16.msra.mxu1 %v13118_v62 }
 0xcfc   :  { %4213 = vmatprep.subr.bf16.mxu0 %v13123_v28  ;;  %4254 = vmatprep.subr.bf16.mxu1 %v13126_v29 }
 0xcff   :  { %4214 = vmatpush1.bf16.msra.mxu0 %v13121_v30  ;;  %4255 = vmatpush1.bf16.msra.mxu1 %v13124_v31 }
 0xd00   :  { %4215 = vmatprep.subr.bf16.mxu0 %v13129_v32  ;;  %4256 = vmatprep.subr.bf16.mxu1 %v13132_v33 }
 0xd03   :  { %4216 = vmatpush1.bf16.msra.mxu0 %v13127_v34  ;;  %4257 = vmatpush1.bf16.msra.mxu1 %v13130_v35  ;;  %v3367_v35 = vrot.slane %v3350_v20, %v14589_v51 }
 0xd04   :  { %4217 = vmatprep.subr.bf16.mxu0 %v13135_v36  ;;  %4258 = vmatprep.subr.bf16.mxu1 %v13138_v37  ;;  %v3363_v37 = vrot.slane %v3350_v20, %v14592_v63 }
 0xd07   :  { %4218 = vmatpush1.bf16.msra.mxu0 %v13133_v7  ;;  %4259 = vmatpush1.bf16.msra.mxu1 %v13136_v38 }
 0xd08   :  { %4219 = vmatprep.subr.bf16.mxu0 %v13141_v13  ;;  %4260 = vmatprep.subr.bf16.mxu1 %v13144_v40 }
 0xd0b   :  { %4220 = vmatpush1.bf16.msra.mxu0 %v13139_v54  ;;  %4261 = vmatpush1.bf16.msra.mxu1 %v13142_v41 }
 0xd0c   :  { %4221 = vmatprep.subr.bf16.mxu0 %v13147_v42  ;;  %4262 = vmatprep.subr.bf16.mxu1 %v13150_v43 }
 0xd0f   :  { %4222 = vmatpush1.bf16.msra.mxu0 %v13145_v45  ;;  %4263 = vmatpush1.bf16.msra.mxu1 %v13148_v47 }
 0xd10   :  { %4223 = vmatprep.subr.bf16.mxu0 %v13153_v48  ;;  %4264 = vmatprep.subr.bf16.mxu1 %v13156_v49 }
 0xd13   :  { %4224 = vmatpush1.bf16.msra.mxu0 %v13151_v50  ;;  %4265 = vmatpush1.bf16.msra.mxu1 %v13154_v52 }
 0xd14   :  { %4225 = vmatprep.subr.bf16.mxu0 %v13159_v21  ;;  %4266 = vmatprep.subr.bf16.mxu1 %v13162_v53 }
 0xd17   :  { %4226 = vmatpush1.bf16.msra.mxu0 %v13157_v12  ;;  %4267 = vmatpush1.bf16.msra.mxu1 %v13160_v55 }
 0xd18   :  { %4227 = vmatprep.subr.bf16.mxu0 %v13165_v56  ;;  %4268 = vmatprep.subr.bf16.mxu1 %v13168_v57  ;;  %v13194_v56 = vld [vmem:[%s15674_s8 + $0x8] sm:$0xff]   ;;  %v13195_v57 = vld [vmem:[%s15674_s8 + $0x10] sm:$0xff]  }
 0xd1b   :  { %4228 = vmatpush1.bf16.msra.mxu0 %v13163_v59  ;;  %4269 = vmatpush1.bf16.msra.mxu1 %v13166_v60  ;;  %v13196_v59 = vld [vmem:[%s15674_s8 + $0x18] sm:$0xff]   ;;  %v13197_v60 = vld [vmem:[%s15674_s8 + $0x20] sm:$0xff]  }
 0xd1c   :  { %4229 = vmatprep.subr.bf16.mxu0 %v13171_v1  ;;  %4270 = vmatprep.subr.bf16.mxu1 %v13174_v2  ;;  %v13199_v1 = vld [vmem:[%s15674_s8 + $0x30] sm:$0xff]   ;;  %v13201_v2 = vld [vmem:[#allocation6] sm:$0xff]  }
 0xd1f   :  { %4230 = vmatpush1.bf16.msra.mxu0 %v13169_v61  ;;  %4271 = vmatpush1.bf16.msra.mxu1 %v13172_v8  ;;  %v13198_v61 = vld [vmem:[%s15674_s8 + $0x28] sm:$0xff]   ;;  %v13200_v8 = vld [vmem:[%s15674_s8 + $0x38] sm:$0xff]  }
 0xd20   :  { %4231 = vmatprep.subr.bf16.mxu0 %v13177_v4  ;;  %4272 = vmatprep.subr.bf16.mxu1 %v13180_v5  ;;  %v13202_v4 = vld [vmem:[#allocation6 + $0x8] sm:$0xff]   ;;  %v13203_v5 = vld [vmem:[#allocation6 + $0x10] sm:$0xff]  }
 0xd23   :  { %4232 = vmatpush1.bf16.msra.mxu0 %v13175_v6  ;;  %4273 = vmatpush1.bf16.msra.mxu1 %v13178_v17  ;;  %v13204_v6 = vld [vmem:[#allocation6 + $0x18] sm:$0xff]   ;;  %v13205_v17 = vld [vmem:[#allocation6 + $0x20] sm:$0xff]  }
 0xd24   :  { %4233 = vmatprep.subr.bf16.mxu0 %v13183_v9  ;;  %4274 = vmatprep.subr.bf16.mxu1 %v13186_v10  ;;  %v13206_v9 = vld [vmem:[#allocation6 + $0x28] sm:$0xff]   ;;  %v10932_v10 = vld [vmem:[%s15673_s7 + $0x4] sm:$0xf] }
 0xd27   :  { %4234 = vmatpush1.bf16.msra.mxu0 %v13181_v11  ;;  %4275 = vmatpush1.bf16.msra.mxu1 %v13184_v14  ;;  %v3868_v11 = vrot.slane %v10932_v10, %v14580_v44  ;;  %v3872_v14 = vrot.slane %v10932_v10, %v14585_v46 }
 0xd28   :  { %4235 = vmatprep.subr.bf16.mxu0 %v13189_v15  ;;  %4276 = vmatprep.subr.bf16.mxu1 %v13192_v16 }
 0xd2b   :  { %4236 = vmatpush1.bf16.msra.mxu0 %v13187_v18  ;;  %4277 = vmatpush1.bf16.msra.mxu1 %v13190_v19 }
 0xd2c   :  { %12167 = vmatprep.subr.bf16.mxu0 %v14399_v0  ;;  %12187 = vmatprep.subr.bf16.mxu1 %v14399_v0 }
 0xdc0   :  { %v3726_v24 = vpop.f32.mrb[36].mxu0  ;;  %v3767_v25 = vpop.f32.mrb[36].mxu1 }
 0xdc1   :  { %v3727_v26 = vadd.f32 %v3726_v24, %v3355_v22  ;;  %v3728_v27 = vpop.f32.mrb[37].mxu0  ;;  %v3769_v62 = vpop.f32.mrb[37].mxu1  ;;  %v3768_v38 = vadd.f32 %v3767_v25, %v3363_v37 }
 0xdc2   :  { %v3729_v28 = vadd.f32 %v3728_v27, %v3359_v23  ;;  %v3730_v29 = vpop.f32.mrb[38].mxu0  ;;  %v3771_v30 = vpop.f32.mrb[38].mxu1  ;;  %v3770_v36 = vadd.f32 %v3769_v62, %v3367_v35 }
 0xdc3   :  { %v10929_v31 = vmul.f32 -1.442695, %v3727_v26  ;;  %v3731_v32 = vpop.f32.mrb[39].mxu0  ;;  %v3772_v33 = vpop.f32.mrb[39].mxu1  ;;  %v3876_v30 = vrot.slane %v10932_v10, %v14592_v63 }
 0xdc4   :  { %v10930_v34 = vmul.f32 -1.442695, %v3729_v28  ;;  %v10931_v7 = vmul.f32 -1.442695, %v3770_v36  ;;  %v3880_v28 = vrot.slane %v10932_v10, %v14589_v51  ;;  %v13219_v10 = vld [vmem:[%s15670_s4 + $0x10] sm:$0xff]  }
 0xdc5   :  { %14169 = vpow2.f32 %v10929_v31 }
 0xdc6   :  { %14171 = vpow2.f32 %v10930_v34 }
 0xdc7   :  { %14173 = vpow2.f32 %v10931_v7 }
 0xdc8   :  { %14175 = vtanh.f32 %v3768_v38 }
 0xdcf   :  { %v14170_v13 = vpop.eup %14169 }
 0xdd0   :  { %v14172_v40 = vpop.eup %14171  ;;  %v3777_v54 = vadd.f32 1.0, %v14170_v13 }
 0xdd1   :  { %v3783_v41 = vadd.f32 1.0, %v14172_v40  ;;  %v14174_v42 = vpop.eup %14173 }
 0xdd2   :  { %14177 = vrcp.f32 %v3777_v54  ;;  %v14176_v43 = vpop.eup %14175  ;;  %v3790_v49 = vadd.f32 1.0, %v14174_v42 }
 0xdd3   :  { %14179 = vrcp.f32 %v3783_v41 }
 0xdd4   :  { %14181 = vrcp.f32 %v3790_v49  ;;  %v13207_v49 = vld [vmem:[#allocation6 + $0x30] sm:$0xff]  }
 0xddc   :  { %v14178_v45 = vpop.eup %14177 }
 0xddd   :  { %v14180_v47 = vpop.eup %14179  ;;  %v3794_v48 = vmul.f32 %v14178_v45, %v14176_v43 }
 0xdde   :  { %v3793_v50 = vmul.f32 %v14180_v47, %v14766_v3  ;;  %v14182_v21 = vpop.eup %14181  ;;  %v13193_v3 = vld [vmem:[%s15674_s8] sm:$0xff]  }
 0xde0   :  { %v14934_v52 = vadd.f32 %v3794_v48, %v3793_v50  ;;  %v13209_v50 = vld [vmem:[%s15668_s2] sm:$0xff]  }
 0xde2   :  { %14183 = vtanh.f32 %v14934_v52 }
 0xdec   :  { %v14184_v53 = vpop.eup %14183 }
 0xded   :  { %v3797_v12 = vmul.f32 %v14184_v53, %v14182_v21  ;;  %v13210_v21 = vld [vmem:[%s15668_s2 + $0x8] sm:$0xff]   ;;  %v13211_v53 = vld [vmem:[%s15668_s2 + $0x10] sm:$0xff]  }
 0xdef   :  { %v14937_v55 = vpack.c.bf16 %v3797_v12, %v3797_v12  ;;  %v13212_v12 = vld [vmem:[%s15668_s2 + $0x18] sm:$0xff]  }
 0xdf1   :  { %4238 = vmatmul.mubr.bf16.vlgmr.msra.gmra.mrb[40].mxu0 %v14937_v55  ;;  %4279 = vmatmul.mubr.bf16.vlgmr.msra.gmra.mrb[40].mxu1 %v14937_v55 }
 0xdf2   :  { %12183 = vmatprep.mubr.msk.bf16.mxu0 %vm14400_vm0, %v14399_v0  ;;  %12203 = vmatprep.mubr.msk.bf16.mxu1 %vm14400_vm0, %v14399_v0 }
 0xdf3   :  { %12168 = vmatpush3.bf16.msra.mxu0 %v13193_v3  ;;  %12188 = vmatpush3.bf16.msra.mxu1 %v13201_v2  ;;  %v13213_v3 = vld [vmem:[%s15668_s2 + $0x20] sm:$0xff]  }
 0xdf4   :  { %12169 = vmatprep.subr.bf16.mxu0 %v14399_v0  ;;  %12189 = vmatprep.subr.bf16.mxu1 %v14399_v0 }
 0xdf7   :  { %12170 = vmatpush3.bf16.msra.mxu0 %v13194_v56  ;;  %12190 = vmatpush3.bf16.msra.mxu1 %v13202_v4  ;;  %v13214_v56 = vld [vmem:[%s15668_s2 + $0x28] sm:$0xff]  }
 0xdf8   :  { %12171 = vmatprep.subr.bf16.mxu0 %v14399_v0  ;;  %12191 = vmatprep.subr.bf16.mxu1 %v14399_v0 }
 0xdfb   :  { %12172 = vmatpush3.bf16.msra.mxu0 %v13195_v57  ;;  %12192 = vmatpush3.bf16.msra.mxu1 %v13203_v5  ;;  %v11000_v57 = vld [vmem:[%s15675_s9] ss:$0 sm:$0xff]  ;;  %v13215_v5 = vld [vmem:[%s15668_s2 + $0x30] sm:$0xff]  }
 0xdfc   :  { %12173 = vmatprep.subr.bf16.mxu0 %v14399_v0  ;;  %12193 = vmatprep.subr.bf16.mxu1 %v14399_v0 }
 0xdff   :  { %12174 = vmatpush3.bf16.msra.mxu0 %v13196_v59  ;;  %12194 = vmatpush3.bf16.msra.mxu1 %v13204_v6  ;;  %v13216_v6 = vld [vmem:[%s15668_s2 + $0x38] sm:$0xff]  }
 0xe00   :  { %12175 = vmatprep.subr.bf16.mxu0 %v14399_v0  ;;  %12195 = vmatprep.subr.bf16.mxu1 %v14399_v0 }
 0xe03   :  { %12176 = vmatpush3.bf16.msra.mxu0 %v13197_v60  ;;  %12196 = vmatpush3.bf16.msra.mxu1 %v13205_v17  ;;  %v13217_v17 = vld [vmem:[%s15670_s4] sm:$0xff]  }
 0xe04   :  { %12177 = vmatprep.subr.bf16.mxu0 %v14399_v0  ;;  %12197 = vmatprep.subr.bf16.mxu1 %v14399_v0 }
 0xe07   :  { %12178 = vmatpush3.bf16.msra.mxu0 %v13198_v61  ;;  %12198 = vmatpush3.bf16.msra.mxu1 %v13206_v9  ;;  %v13218_v9 = vld [vmem:[%s15670_s4 + $0x8] sm:$0xff]  }
 0xe08   :  { %12179 = vmatprep.subr.bf16.mxu0 %v14399_v0  ;;  %12199 = vmatprep.subr.bf16.mxu1 %v14399_v0 }
 0xe0b   :  { %12180 = vmatpush3.bf16.msra.mxu0 %v13199_v1  ;;  %12200 = vmatpush3.bf16.msra.mxu1 %v13207_v49  ;;  %v13273_v49 = vld [vmem:[#allocation4 + $0x100] ss:$16 sps:$4 sm:$0xff]  }
 0xe0c   :  { %12181 = vmatprep.subr.bf16.mxu0 %v14399_v0  ;;  %12201 = vmatprep.subr.bf16.mxu1 %v14399_v0 }
 0xe0f   :  { %12182 = vmatpush3.bf16.msra.mxu0 %v13200_v8 }
 0xe10   :  { %12207 = vmatprep.subr.bf16.mxu0 %v14399_v0 }
 0xec4   :  { %v4239_v15 = vpop.f32.mrb[40].mxu0  ;;  %v4280_v16 = vpop.f32.mrb[40].mxu1 }
 0xec5   :  { %v4240_v18 = vadd.f32 %v4239_v15, %v3868_v11  ;;  %v4241_v19 = vpop.f32.mrb[41].mxu0  ;;  %v4282_v20 = vpop.f32.mrb[41].mxu1  ;;  %v4281_v32 = vadd.f32 %v4280_v16, %v3876_v30  ;;  %v13220_v11 = vld [vmem:[%s15670_s4 + $0x18] sm:$0xff]   ;;  %v13222_v15 = vld [vmem:[%s15670_s4 + $0x28] sm:$0xff]   ;;  %v11009_v16 = vld [vmem:[%s15677_s11] ss:$0 sm:$0xff] }
 0xec6   :  { %v4242_v22 = vadd.f32 %v4241_v19, %v3872_v14  ;;  %v4243_v23 = vpop.f32.mrb[42].mxu0  ;;  %v4284_v24 = vpop.f32.mrb[42].mxu1  ;;  %v4283_v29 = vadd.f32 %v4282_v20, %v3880_v28  ;;  %v13221_v14 = vld [vmem:[%s15670_s4 + $0x20] sm:$0xff]   ;;  %v13223_v28 = vld [vmem:[%s15670_s4 + $0x30] sm:$0xff]  }
 0xec7   :  { %v10997_v25 = vmul.f32 -1.442695, %v4240_v18  ;;  %v4244_v26 = vpop.f32.mrb[43].mxu0  ;;  %v4285_v27 = vpop.f32.mrb[43].mxu1  ;;  %v4544_v18 = vstv %s4543_s29  ;;  %v11020_v23 = vld [vmem:[%s15667_s1 + $0x18] sm:$0xff] }
 0xec8   :  { %v10998_v62 = vmul.f32 -1.442695, %v4242_v22  ;;  %v10999_v31 = vmul.f32 -1.442695, %v4283_v29  ;;  %vm4545_vm5 = vcmp.eq.s32.totalorder %v4544_v18, 1 }
 0xec9   :  { %14185 = vpow2.f32 %v10997_v25  ;;  %v13225_v29 = vld [vmem:[#allocation4] ss:$16 sps:$4 sm:$0xff]   ;;  %v13227_v30 = vld [vmem:[#allocation4 + $0x4] ss:$16 sps:$4 sm:$0xff]   ;;  %v13240_v18 = vld [vmem:[#allocation4 + $0x48] ss:$16 sps:$4 sm:$0xff]  }
 0xeca   :  { %14187 = vpow2.f32 %v10998_v62 }
 0xecb   :  { %14189 = vpow2.f32 %v10999_v31  ;;  %v13230_v31 = vld [vmem:[#allocation4 + $0xc] ss:$16 sps:$4 sm:$0xff]  }
 0xecc   :  { %14191 = vtanh.f32 %v4281_v32  ;;  %v13233_v32 = vld [vmem:[#allocation4 + $0x24] ss:$16 sps:$4 sm:$0xff]  }
 0xed3   :  { %v14186_v33 = vpop.eup %14185 }
 0xed4   :  { %v14188_v34 = vpop.eup %14187  ;;  %v4290_v35 = vadd.f32 1.0, %v14186_v33  ;;  %v13231_v33 = vld [vmem:[#allocation4 + $0x20] ss:$16 sps:$4 sm:$0xff]  }
 0xed5   :  { %v4296_v36 = vadd.f32 1.0, %v14188_v34  ;;  %v14190_v37 = vpop.eup %14189  ;;  %v13239_v34 = vld [vmem:[#allocation4 + $0x44] ss:$16 sps:$4 sm:$0xff]  }
 0xed6   :  { %14193 = vrcp.f32 %v4290_v35  ;;  %v14192_v7 = vpop.eup %14191  ;;  %v4303_v54 = vadd.f32 1.0, %v14190_v37  ;;  %v13237_v35 = vld [vmem:[#allocation4 + $0x40] ss:$16 sps:$4 sm:$0xff]  }
 0xed7   :  { %14195 = vrcp.f32 %v4296_v36  ;;  %v13245_v36 = vld [vmem:[#allocation4 + $0x64] ss:$16 sps:$4 sm:$0xff]   ;;  %v13243_v37 = vld [vmem:[#allocation4 + $0x60] ss:$16 sps:$4 sm:$0xff]  }
 0xed8   :  { %14197 = vrcp.f32 %v4303_v54  ;;  %v13263_v54 = vld [vmem:[#allocation4 + $0xc4] ss:$16 sps:$4 sm:$0xff]  }
 0xee0   :  { %v14194_v38 = vpop.eup %14193 }
 0xee1   :  { %v14196_v13 = vpop.eup %14195  ;;  %v4307_v40 = vmul.f32 %v14194_v38, %v14192_v7  ;;  %v13251_v7 = vld [vmem:[#allocation4 + $0x84] ss:$16 sps:$4 sm:$0xff]   ;;  %v13249_v38 = vld [vmem:[#allocation4 + $0x80] ss:$16 sps:$4 sm:$0xff]  }
 0xee2   :  { %v4306_v41 = vmul.f32 %v14196_v13, %v14823_v58  ;;  %v14198_v43 = vpop.eup %14197  ;;  %v13208_v58 = vld [vmem:[#allocation6 + $0x38] sm:$0xff]   ;;  %v13257_v13 = vld [vmem:[#allocation4 + $0xa4] ss:$16 sps:$4 sm:$0xff]  }
 0xee3   :  { %12202 = vmatpush3.bf16.msra.mxu1 %v13208_v58  ;;  %v13281_v58 = vld [vmem:[#allocation4 + $0x124] ss:$16 sps:$4 sm:$0xff]  }
 0xee4   :  { %v14991_v42 = vadd.f32 %v4307_v40, %v4306_v41  ;;  %12227 = vmatprep.subr.bf16.mxu1 %v14399_v0  ;;  %v13255_v40 = vld [vmem:[#allocation4 + $0xa0] ss:$16 sps:$4 sm:$0xff]  }
 0xee5   :  { %v13261_v41 = vld [vmem:[#allocation4 + $0xc0] ss:$16 sps:$4 sm:$0xff]  }
 0xee6   :  { %14199 = vtanh.f32 %v14991_v42 }
 0xef0   :  { %v14200_v45 = vpop.eup %14199 }
 0xef1   :  { %v4310_v47 = vmul.f32 %v14200_v45, %v14198_v43  ;;  %v13269_v43 = vld [vmem:[#allocation4 + $0xe4] ss:$16 sps:$4 sm:$0xff]   ;;  %v13267_v45 = vld [vmem:[#allocation4 + $0xe0] ss:$16 sps:$4 sm:$0xff]  }
 0xef3   :  { %v14994_v48 = vpack.c.bf16 %v4310_v47, %v4310_v47  ;;  %v13275_v47 = vld [vmem:[#allocation4 + $0x104] ss:$16 sps:$4 sm:$0xff]  }
 0xef5   :  { %12184 = vmatmul.mubr.bf16.vlgmr.msra.gmra.mrb[44].mxu0 %v14994_v48 }
 0xef6   :  { %12223 = vmatprep.mubr.msk.bf16.mxu0 %vm14400_vm0, %v14399_v0  ;;  %12208 = vmatpush3.bf16.msra.mxu0 %v13209_v50  ;;  %v13279_v50 = vld [vmem:[#allocation4 + $0x120] ss:$16 sps:$4 sm:$0xff]  }
 0xef7   :  { %12209 = vmatprep.subr.bf16.mxu0 %v14399_v0 }
 0xefa   :  { %12210 = vmatpush3.bf16.msra.mxu0 %v13210_v21  ;;  %v13287_v21 = vld [vmem:[#allocation4 + $0x144] ss:$16 sps:$4 sm:$0xff]  }
 0xefb   :  { %12211 = vmatprep.subr.bf16.mxu0 %v14399_v0 }
 0xefe   :  { %12212 = vmatpush3.bf16.msra.mxu0 %v13211_v53  ;;  %v13285_v53 = vld [vmem:[#allocation4 + $0x140] ss:$16 sps:$4 sm:$0xff]  }
 0xeff   :  { %12213 = vmatprep.subr.bf16.mxu0 %v14399_v0 }
 0xf02   :  { %12214 = vmatpush3.bf16.msra.mxu0 %v13212_v12  ;;  %v13293_v12 = vld [vmem:[#allocation4 + $0x164] ss:$16 sps:$4 sm:$0xff]  }
 0xf03   :  { %12215 = vmatprep.subr.bf16.mxu0 %v14399_v0 }
 0xf06   :  { %12216 = vmatpush3.bf16.msra.mxu0 %v13213_v3  ;;  %v13291_v3 = vld [vmem:[#allocation4 + $0x160] ss:$16 sps:$4 sm:$0xff]  }
 0xf07   :  { %12217 = vmatprep.subr.bf16.mxu0 %v14399_v0 }
 0xf0a   :  { %12218 = vmatpush3.bf16.msra.mxu0 %v13214_v56  ;;  %v13299_v56 = vld [vmem:[#allocation4 + $0x184] ss:$16 sps:$4 sm:$0xff]  }
 0xf0b   :  { %12219 = vmatprep.subr.bf16.mxu0 %v14399_v0 }
 0xf0e   :  { %12220 = vmatpush3.bf16.msra.mxu0 %v13215_v5 }
 0xf0f   :  { %12221 = vmatprep.subr.bf16.mxu0 %v14399_v0 }
 0xf12   :  { %12222 = vmatpush3.bf16.msra.mxu0 %v13216_v6 }
 0xf13   :  { %5180 = vmatprep.subr.bf16.mxu0 %v13227_v30  ;;  %v13284_v30 = vld [vmem:[#allocation4 + $0x12c] ss:$16 sps:$4 sm:$0xff]  }
 0xfc8   :  { %v4417_v59 = vpop.f32.mrb[44].mxu0 }
 0xfc9   :  { %v4418_v60 = vadd.f32 %v11000_v57, %v4417_v59  ;;  %v12185_v61 = vpop.f32.mrb[45].mxu0  ;;  %v13297_v57 = vld [vmem:[#allocation4 + $0x180] ss:$16 sps:$4 sm:$0xff]   ;;  %v13305_v59 = vld [vmem:[#allocation4 + $0x1a4] ss:$16 sps:$4 sm:$0xff]  }
 0xfca   :  { %v4420_v1 = vpop.f32.mrb[46].mxu0  ;;  %v13311_v61 = vld [vmem:[#allocation4 + $0x1c4] ss:$16 sps:$4 sm:$0xff]  }
 0xfcb   :  { %v4423_v8 = vmax.f32 %v4418_v60, 0.0  ;;  %v12186_v2 = vpop.f32.mrb[47].mxu0  ;;  %v13303_v60 = vld [vmem:[#allocation4 + $0x1a0] ss:$16 sps:$4 sm:$0xff]  }
 0xfcc   :  { %v13309_v1 = vld [vmem:[#allocation4 + $0x1c0] ss:$16 sps:$4 sm:$0xff]  }
 0xfcd   :  { %v4424_v4 = vpack.c.bf16 %v4423_v8, %v4423_v8  ;;  %v11021_v8 = vld [vmem:[%s15669_s3] ss:$0 sm:$0xff] }
 0xfcf   :  { %12204 = vmatmul.mubr.bf16.vlgmr.msra.gmra.mrb[44].mxu1 %v4424_v4 }
 0xfd0   :  { %12243 = vmatprep.mubr.msk.bf16.mxu1 %vm14400_vm0, %v14399_v0  ;;  %12228 = vmatpush3.bf16.msra.mxu1 %v13217_v17 }
 0xfd1   :  { %12229 = vmatprep.subr.bf16.mxu1 %v14399_v0 }
 0xfd4   :  { %12230 = vmatpush3.bf16.msra.mxu1 %v13218_v9 }
 0xfd5   :  { %12231 = vmatprep.subr.bf16.mxu1 %v14399_v0 }
 0xfd8   :  { %12232 = vmatpush3.bf16.msra.mxu1 %v13219_v10  ;;  %v13228_v10 = vld [vmem:[#allocation4 + $0x8] ss:$16 sps:$4 sm:$0xff]  }
 0xfd9   :  { %12233 = vmatprep.subr.bf16.mxu1 %v14399_v0 }
 0xfdc   :  { %12234 = vmatpush3.bf16.msra.mxu1 %v13220_v11 }
 0xfdd   :  { %12235 = vmatprep.subr.bf16.mxu1 %v14399_v0 }
 0xfe0   :  { %12236 = vmatpush3.bf16.msra.mxu1 %v13221_v14  ;;  %v13236_v14 = vld [vmem:[#allocation4 + $0x2c] ss:$16 sps:$4 sm:$0xff]  }
 0xfe1   :  { %12237 = vmatprep.subr.bf16.mxu1 %v14399_v0 }
 0xfe4   :  { %12238 = vmatpush3.bf16.msra.mxu1 %v13222_v15  ;;  %v13234_v15 = vld [vmem:[#allocation4 + $0x28] ss:$16 sps:$4 sm:$0xff]  }
 0xfe5   :  { %12239 = vmatprep.subr.bf16.mxu1 %v14399_v0 }
 0xfe8   :  { %12240 = vmatpush3.bf16.msra.mxu1 %v13223_v28  ;;  %v13270_v28 = vld [vmem:[#allocation4 + $0xe8] ss:$16 sps:$4 sm:$0xff]  }
 0xfe9   :  { %12241 = vmatprep.subr.bf16.mxu1 %v14399_v0 }
0x10a2   :  { %v4530_v19 = vpop.f32.mrb[44].mxu1 }
0x10a3   :  { %v4531_v20 = vadd.f32 %v11009_v16, %v4530_v19  ;;  %v12205_v22 = vpop.f32.mrb[45].mxu1  ;;  %v13242_v16 = vld [vmem:[#allocation4 + $0x4c] ss:$16 sps:$4 sm:$0xff]  }
0x10a4   :  { %v4533_v24 = vpop.f32.mrb[46].mxu1  ;;  %v13248_v19 = vld [vmem:[#allocation4 + $0x6c] ss:$16 sps:$4 sm:$0xff]  }
0x10a5   :  { %v4536_v25 = vadd.f32 %v4531_v20, %v14903_v39  ;;  %v12206_v26 = vpop.f32.mrb[47].mxu1  ;;  %v13224_v39 = vld [vmem:[%s15670_s4 + $0x38] sm:$0xff]  }
0x10a6   :  { %12242 = vmatpush3.bf16.msra.mxu1 %v13224_v39  ;;  %v13246_v20 = vld [vmem:[#allocation4 + $0x68] ss:$16 sps:$4 sm:$0xff]   ;;  %v13254_v22 = vld [vmem:[#allocation4 + $0x8c] ss:$16 sps:$4 sm:$0xff]  }
0x10a7   :  { %11018 = vst [vmem:[%s15678_s12 + $0x10] sm:$0xff] %v4536_v25  ;;  %v15071_v27 = vsel %vm4545_vm5, %v11020_v23, %v4536_v25  ;;  %5221 = vmatprep.subr.bf16.mxu1 %v13230_v31  ;;  %v13252_v23 = vld [vmem:[#allocation4 + $0x88] ss:$16 sps:$4 sm:$0xff]   ;;  %v13260_v24 = vld [vmem:[#allocation4 + $0xac] ss:$16 sps:$4 sm:$0xff]  }
0x10a8   :  { %v4547_v62 = vpack.c.bf16 %v15071_v27, %v15071_v27  ;;  %v13258_v25 = vld [vmem:[#allocation4 + $0xa8] ss:$16 sps:$4 sm:$0xff]   ;;  %v13278_v39 = vld [vmem:[#allocation4 + $0x10c] ss:$16 sps:$4 sm:$0xff]  }
0x10a9   :  { %v13264_v26 = vld [vmem:[#allocation4 + $0xc8] ss:$16 sps:$4 sm:$0xff]  }
0x10aa   :  { %12224 = vmatmul.mubr.bf16.vlgmr.msra.gmra.mrb[48].mxu0 %v4547_v62  ;;  %v13272_v62 = vld [vmem:[#allocation4 + $0xec] ss:$16 sps:$4 sm:$0xff]   ;;  %v13282_v31 = vld [vmem:[#allocation4 + $0x128] ss:$16 sps:$4 sm:$0xff]  }
0x10ab   :  { %5212 = vmatprep.mubr.bf16.mxu0 %v14937_v55  ;;  %5181 = vmatpush1.bf16.msra.mxu0 %v13225_v29  ;;  %v13276_v29 = vld [vmem:[#allocation4 + $0x108] ss:$16 sps:$4 sm:$0xff]  }
0x10ac   :  { %5182 = vmatprep.subr.bf16.mxu0 %v13233_v32  ;;  %v13290_v32 = vld [vmem:[#allocation4 + $0x14c] ss:$16 sps:$4 sm:$0xff]  }
0x10af   :  { %5183 = vmatpush1.bf16.msra.mxu0 %v13231_v33  ;;  %v13288_v33 = vld [vmem:[#allocation4 + $0x148] ss:$16 sps:$4 sm:$0xff]  }
0x10b0   :  { %5184 = vmatprep.subr.bf16.mxu0 %v13239_v34  ;;  %v13296_v34 = vld [vmem:[#allocation4 + $0x16c] ss:$16 sps:$4 sm:$0xff]  }
0x10b3   :  { %5185 = vmatpush1.bf16.msra.mxu0 %v13237_v35  ;;  %v13294_v35 = vld [vmem:[#allocation4 + $0x168] ss:$16 sps:$4 sm:$0xff]  }
0x10b4   :  { %5186 = vmatprep.subr.bf16.mxu0 %v13245_v36  ;;  %v13302_v36 = vld [vmem:[#allocation4 + $0x18c] ss:$16 sps:$4 sm:$0xff]  }
0x10b7   :  { %5187 = vmatpush1.bf16.msra.mxu0 %v13243_v37  ;;  %v13300_v37 = vld [vmem:[#allocation4 + $0x188] ss:$16 sps:$4 sm:$0xff]  }
0x10b8   :  { %5188 = vmatprep.subr.bf16.mxu0 %v13251_v7  ;;  %v13308_v7 = vld [vmem:[#allocation4 + $0x1ac] ss:$16 sps:$4 sm:$0xff]  }
0x10bb   :  { %5189 = vmatpush1.bf16.msra.mxu0 %v13249_v38  ;;  %v13306_v38 = vld [vmem:[#allocation4 + $0x1a8] ss:$16 sps:$4 sm:$0xff]  }
0x10bc   :  { %5190 = vmatprep.subr.bf16.mxu0 %v13257_v13  ;;  %v13314_v13 = vld [vmem:[#allocation4 + $0x1cc] ss:$16 sps:$4 sm:$0xff]  }
0x10bf   :  { %5191 = vmatpush1.bf16.msra.mxu0 %v13255_v40  ;;  %v13312_v40 = vld [vmem:[#allocation4 + $0x1c8] ss:$16 sps:$4 sm:$0xff]  }
0x10c0   :  { %5192 = vmatprep.subr.bf16.mxu0 %v13263_v54  ;;  %v13317_v54 = vld [vmem:[#allocation4 + $0x1e4] ss:$16 sps:$4 sm:$0xff]  }
0x10c3   :  { %5193 = vmatpush1.bf16.msra.mxu0 %v13261_v41  ;;  %v13320_v41 = vld [vmem:[#allocation4 + $0x1ec] ss:$16 sps:$4 sm:$0xff]  }
0x10c4   :  { %5194 = vmatprep.subr.bf16.mxu0 %v13269_v43  ;;  %v13315_v43 = vld [vmem:[#allocation4 + $0x1e0] ss:$16 sps:$4 sm:$0xff]  }
0x10c7   :  { %5195 = vmatpush1.bf16.msra.mxu0 %v13267_v45  ;;  %v13318_v45 = vld [vmem:[#allocation4 + $0x1e8] ss:$16 sps:$4 sm:$0xff]  }
0x10c8   :  { %5196 = vmatprep.subr.bf16.mxu0 %v13275_v47  ;;  %v13323_v47 = vld [vmem:[#allocation4 + $0x204] ss:$16 sps:$4 sm:$0xff]  }
0x10cb   :  { %5197 = vmatpush1.bf16.msra.mxu0 %v13273_v49  ;;  %v13326_v49 = vld [vmem:[#allocation4 + $0x20c] ss:$16 sps:$4 sm:$0xff]  }
0x10cc   :  { %5198 = vmatprep.subr.bf16.mxu0 %v13281_v58  ;;  %v11030_v58 = vld [vmem:[%s15671_s5] ss:$0 sm:$0xff] }
0x10cf   :  { %5199 = vmatpush1.bf16.msra.mxu0 %v13279_v50 }
0x10d0   :  { %5200 = vmatprep.subr.bf16.mxu0 %v13287_v21 }
0x10d3   :  { %5201 = vmatpush1.bf16.msra.mxu0 %v13285_v53 }
0x10d4   :  { %5202 = vmatprep.subr.bf16.mxu0 %v13293_v12 }
0x10d7   :  { %5203 = vmatpush1.bf16.msra.mxu0 %v13291_v3 }
0x10d8   :  { %5204 = vmatprep.subr.bf16.mxu0 %v13299_v56 }
0x10db   :  { %5205 = vmatpush1.bf16.msra.mxu0 %v13297_v57 }
0x10dc   :  { %5206 = vmatprep.subr.bf16.mxu0 %v13305_v59  ;;  %v13321_v59 = vld [vmem:[#allocation4 + $0x200] ss:$16 sps:$4 sm:$0xff]  }
0x10df   :  { %5207 = vmatpush1.bf16.msra.mxu0 %v13303_v60  ;;  %v13324_v60 = vld [vmem:[#allocation4 + $0x208] ss:$16 sps:$4 sm:$0xff]  }
0x10e0   :  { %5208 = vmatprep.subr.bf16.mxu0 %v13311_v61  ;;  %v13329_v61 = vld [vmem:[#allocation4 + $0x224] ss:$16 sps:$4 sm:$0xff]  }
0x10e3   :  { %5209 = vmatpush1.bf16.msra.mxu0 %v13309_v1  ;;  %v13332_v1 = vld [vmem:[#allocation4 + $0x22c] ss:$16 sps:$4 sm:$0xff]  }
0x10e4   :  { %5210 = vmatprep.subr.bf16.mxu0 %v13317_v54  ;;  %v13389_v54 = vld [vmem:[#allocation4 + $0x364] ss:$16 sps:$4 sm:$0xff]  }
0x10e7   :  { %5211 = vmatpush1.bf16.msra.mxu0 %v13315_v43  ;;  %v13387_v43 = vld [vmem:[#allocation4 + $0x360] ss:$16 sps:$4 sm:$0xff]  }
0x10e8   :  { %5693 = vmatprep.subr.bf16.mxu0 %v13323_v47  ;;  %v13393_v47 = vld [vmem:[#allocation4 + $0x380] ss:$16 sps:$4 sm:$0xff]  }
0x117d   :  { %v4653_v2 = vpop.f32.mrb[48].mxu0 }
0x117e   :  { %v4654_v4 = vadd.f32 %v11021_v8, %v4653_v2  ;;  %v12225_v5 = vpop.f32.mrb[49].mxu0  ;;  %v13327_v8 = vld [vmem:[#allocation4 + $0x220] ss:$16 sps:$4 sm:$0xff]   ;;  %v13330_v2 = vld [vmem:[#allocation4 + $0x228] ss:$16 sps:$4 sm:$0xff]  }
0x117f   :  { %v4656_v6 = vpop.f32.mrb[50].mxu0  ;;  %v13338_v5 = vld [vmem:[#allocation4 + $0x24c] ss:$16 sps:$4 sm:$0xff]  }
0x1180   :  { %v4659_v17 = vmax.f32 %v4654_v4, 0.0  ;;  %v12226_v9 = vpop.f32.mrb[51].mxu0  ;;  %v13335_v4 = vld [vmem:[#allocation4 + $0x244] ss:$16 sps:$4 sm:$0xff]   ;;  %v13333_v6 = vld [vmem:[#allocation4 + $0x240] ss:$16 sps:$4 sm:$0xff]  }
0x1181   :  { %v13341_v9 = vld [vmem:[#allocation4 + $0x264] ss:$16 sps:$4 sm:$0xff]  }
0x1182   :  { %v4660_v11 = vpack.c.bf16 %v4659_v17, %v4659_v17  ;;  %v13336_v17 = vld [vmem:[#allocation4 + $0x248] ss:$16 sps:$4 sm:$0xff]  }
0x1184   :  { %12244 = vmatmul.mubr.bf16.vlgmr.msra.gmra.mrb[48].mxu1 %v4660_v11  ;;  %v13339_v11 = vld [vmem:[#allocation4 + $0x260] ss:$16 sps:$4 sm:$0xff]  }
0x1185   :  { %5253 = vmatprep.mubr.bf16.mxu1 %v14937_v55  ;;  %5222 = vmatpush1.bf16.msra.mxu1 %v13228_v10  ;;  %v13266_v55 = vld [vmem:[#allocation4 + $0xcc] ss:$16 sps:$4 sm:$0xff]  }
0x1186   :  { %5223 = vmatprep.subr.bf16.mxu1 %v13236_v14  ;;  %v13344_v10 = vld [vmem:[#allocation4 + $0x26c] ss:$16 sps:$4 sm:$0xff]   ;;  %v13347_v14 = vld [vmem:[#allocation4 + $0x284] ss:$16 sps:$4 sm:$0xff]  }
0x1189   :  { %5224 = vmatpush1.bf16.msra.mxu1 %v13234_v15  ;;  %v13350_v15 = vld [vmem:[#allocation4 + $0x28c] ss:$16 sps:$4 sm:$0xff]  }
0x118a   :  { %5225 = vmatprep.subr.bf16.mxu1 %v13242_v16  ;;  %v13345_v16 = vld [vmem:[#allocation4 + $0x280] ss:$16 sps:$4 sm:$0xff]  }
0x118d   :  { %5226 = vmatpush1.bf16.msra.mxu1 %v13240_v18  ;;  %v13348_v18 = vld [vmem:[#allocation4 + $0x288] ss:$16 sps:$4 sm:$0xff]  }
0x118e   :  { %5227 = vmatprep.subr.bf16.mxu1 %v13248_v19  ;;  %v13353_v19 = vld [vmem:[#allocation4 + $0x2a4] ss:$16 sps:$4 sm:$0xff]  }
0x1191   :  { %5228 = vmatpush1.bf16.msra.mxu1 %v13246_v20  ;;  %v13356_v20 = vld [vmem:[#allocation4 + $0x2ac] ss:$16 sps:$4 sm:$0xff]  }
0x1192   :  { %5229 = vmatprep.subr.bf16.mxu1 %v13254_v22  ;;  %v13351_v22 = vld [vmem:[#allocation4 + $0x2a0] ss:$16 sps:$4 sm:$0xff]  }
0x1195   :  { %5230 = vmatpush1.bf16.msra.mxu1 %v13252_v23  ;;  %v13354_v23 = vld [vmem:[#allocation4 + $0x2a8] ss:$16 sps:$4 sm:$0xff]  }
0x1196   :  { %5231 = vmatprep.subr.bf16.mxu1 %v13260_v24  ;;  %v13359_v24 = vld [vmem:[#allocation4 + $0x2c4] ss:$16 sps:$4 sm:$0xff]  }
0x1199   :  { %5232 = vmatpush1.bf16.msra.mxu1 %v13258_v25  ;;  %v13362_v25 = vld [vmem:[#allocation4 + $0x2cc] ss:$16 sps:$4 sm:$0xff]  }
0x119a   :  { %5233 = vmatprep.subr.bf16.mxu1 %v13266_v55  ;;  %v13357_v55 = vld [vmem:[#allocation4 + $0x2c0] ss:$16 sps:$4 sm:$0xff]  }
0x119d   :  { %5234 = vmatpush1.bf16.msra.mxu1 %v13264_v26  ;;  %v13360_v26 = vld [vmem:[#allocation4 + $0x2c8] ss:$16 sps:$4 sm:$0xff]  }
0x119e   :  { %5235 = vmatprep.subr.bf16.mxu1 %v13272_v62  ;;  %v13365_v62 = vld [vmem:[#allocation4 + $0x2e4] ss:$16 sps:$4 sm:$0xff]  }
0x11a1   :  { %5236 = vmatpush1.bf16.msra.mxu1 %v13270_v28  ;;  %v13368_v28 = vld [vmem:[#allocation4 + $0x2ec] ss:$16 sps:$4 sm:$0xff]  }
0x11a2   :  { %5237 = vmatprep.subr.bf16.mxu1 %v13278_v39  ;;  %v13363_v39 = vld [vmem:[#allocation4 + $0x2e0] ss:$16 sps:$4 sm:$0xff]  }
0x11a5   :  { %5238 = vmatpush1.bf16.msra.mxu1 %v13276_v29  ;;  %v13366_v29 = vld [vmem:[#allocation4 + $0x2e8] ss:$16 sps:$4 sm:$0xff]  }
0x11a6   :  { %5239 = vmatprep.subr.bf16.mxu1 %v13284_v30  ;;  %v13371_v30 = vld [vmem:[#allocation4 + $0x304] ss:$16 sps:$4 sm:$0xff]  }
0x11a9   :  { %5240 = vmatpush1.bf16.msra.mxu1 %v13282_v31  ;;  %v13374_v31 = vld [vmem:[#allocation4 + $0x30c] ss:$16 sps:$4 sm:$0xff]  }
0x11aa   :  { %5241 = vmatprep.subr.bf16.mxu1 %v13290_v32  ;;  %v13369_v32 = vld [vmem:[#allocation4 + $0x300] ss:$16 sps:$4 sm:$0xff]  }
0x11ad   :  { %5242 = vmatpush1.bf16.msra.mxu1 %v13288_v33  ;;  %v13372_v33 = vld [vmem:[#allocation4 + $0x308] ss:$16 sps:$4 sm:$0xff]  }
0x11ae   :  { %5243 = vmatprep.subr.bf16.mxu1 %v13296_v34  ;;  %v13377_v34 = vld [vmem:[#allocation4 + $0x324] ss:$16 sps:$4 sm:$0xff]  }
0x11b1   :  { %5244 = vmatpush1.bf16.msra.mxu1 %v13294_v35  ;;  %v13380_v35 = vld [vmem:[#allocation4 + $0x32c] ss:$16 sps:$4 sm:$0xff]  }
0x11b2   :  { %5245 = vmatprep.subr.bf16.mxu1 %v13302_v36  ;;  %v13375_v36 = vld [vmem:[#allocation4 + $0x320] ss:$16 sps:$4 sm:$0xff]  }
0x11b5   :  { %5246 = vmatpush1.bf16.msra.mxu1 %v13300_v37  ;;  %v13378_v37 = vld [vmem:[#allocation4 + $0x328] ss:$16 sps:$4 sm:$0xff]  }
0x11b6   :  { %5247 = vmatprep.subr.bf16.mxu1 %v13308_v7  ;;  %v13383_v7 = vld [vmem:[#allocation4 + $0x344] ss:$16 sps:$4 sm:$0xff]  }
0x11b9   :  { %5248 = vmatpush1.bf16.msra.mxu1 %v13306_v38  ;;  %v13386_v38 = vld [vmem:[#allocation4 + $0x34c] ss:$16 sps:$4 sm:$0xff]  }
0x11ba   :  { %5249 = vmatprep.subr.bf16.mxu1 %v13314_v13  ;;  %v13381_v13 = vld [vmem:[#allocation4 + $0x340] ss:$16 sps:$4 sm:$0xff]  }
0x11bd   :  { %5250 = vmatpush1.bf16.msra.mxu1 %v13312_v40  ;;  %v13384_v40 = vld [vmem:[#allocation4 + $0x348] ss:$16 sps:$4 sm:$0xff]  }
0x11be   :  { %5251 = vmatprep.subr.bf16.mxu1 %v13320_v41  ;;  %v13392_v41 = vld [vmem:[#allocation4 + $0x36c] ss:$16 sps:$4 sm:$0xff]  }
0x11c1   :  { %5252 = vmatpush1.bf16.msra.mxu1 %v13318_v45  ;;  %v13390_v45 = vld [vmem:[#allocation4 + $0x368] ss:$16 sps:$4 sm:$0xff]  }
0x11c2   :  { %5734 = vmatprep.subr.bf16.mxu1 %v13326_v49  ;;  %v13395_v49 = vld [vmem:[#allocation4 + $0x384] ss:$16 sps:$4 sm:$0xff]  }
0x1257   :  { %v4766_v50 = vpop.f32.mrb[48].mxu1 }
0x1258   :  { %v4767_v21 = vadd.f32 %v11030_v58, %v4766_v50  ;;  %v12245_v53 = vpop.f32.mrb[49].mxu1  ;;  %v13396_v58 = vld [vmem:[#allocation4 + $0x388] ss:$16 sps:$4 sm:$0xff]   ;;  %v13398_v50 = vld [vmem:[#allocation4 + $0x38c] ss:$16 sps:$4 sm:$0xff]  }
0x1259   :  { %v4769_v12 = vpop.f32.mrb[50].mxu1  ;;  %v13404_v53 = vld [vmem:[#allocation4 + $0x3ac] ss:$16 sps:$4 sm:$0xff]  }
0x125a   :  { %v4772_v3 = vmax.f32 %v4767_v21, 0.0  ;;  %v12246_v56 = vpop.f32.mrb[51].mxu1  ;;  %v13401_v21 = vld [vmem:[#allocation4 + $0x3a4] ss:$16 sps:$4 sm:$0xff]   ;;  %v13399_v12 = vld [vmem:[#allocation4 + $0x3a0] ss:$16 sps:$4 sm:$0xff]  }
0x125b   :  { %v13407_v56 = vld [vmem:[#allocation4 + $0x3c4] ss:$16 sps:$4 sm:$0xff]  }
0x125c   :  { %v4773_v57 = vpack.c.bf16 %v4772_v3, %v4772_v3  ;;  %v13402_v3 = vld [vmem:[#allocation4 + $0x3a8] ss:$16 sps:$4 sm:$0xff]  }
0x125e   :  { %5213 = vmatmul.mubr.bf16.vlgmr.msra.gmra.mrb[52].mxu0 %v4773_v57  ;;  %5254 = vmatmul.mubr.bf16.vlgmr.msra.gmra.mrb[52].mxu1 %v4773_v57  ;;  %v13410_v57 = vld [vmem:[#allocation4 + $0x3cc] ss:$16 sps:$4 sm:$0xff]  }
0x125f   :  { %5725 = vmatprep.mubr.bf16.mxu0 %v14994_v48  ;;  %5766 = vmatprep.mubr.bf16.mxu1 %v14994_v48  ;;  %v13342_v48 = vld [vmem:[#allocation4 + $0x268] ss:$16 sps:$4 sm:$0xff]  }
0x1260   :  { %5694 = vmatpush1.bf16.msra.mxu0 %v13321_v59  ;;  %5735 = vmatpush1.bf16.msra.mxu1 %v13324_v60  ;;  %v13405_v59 = vld [vmem:[#allocation4 + $0x3c0] ss:$16 sps:$4 sm:$0xff]   ;;  %v13408_v60 = vld [vmem:[#allocation4 + $0x3c8] ss:$16 sps:$4 sm:$0xff]  }
0x1261   :  { %5695 = vmatprep.subr.bf16.mxu0 %v13329_v61  ;;  %5736 = vmatprep.subr.bf16.mxu1 %v13332_v1  ;;  %v13413_v61 = vld [vmem:[#allocation4 + $0x3e4] ss:$16 sps:$4 sm:$0xff]   ;;  %v13416_v1 = vld [vmem:[#allocation4 + $0x3ec] ss:$16 sps:$4 sm:$0xff]  }
0x1264   :  { %5696 = vmatpush1.bf16.msra.mxu0 %v13327_v8  ;;  %5737 = vmatpush1.bf16.msra.mxu1 %v13330_v2  ;;  %v13411_v8 = vld [vmem:[#allocation4 + $0x3e0] ss:$16 sps:$4 sm:$0xff]   ;;  %v13414_v2 = vld [vmem:[#allocation4 + $0x3e8] ss:$16 sps:$4 sm:$0xff]  }
0x1265   :  { %5697 = vmatprep.subr.bf16.mxu0 %v13335_v4  ;;  %5738 = vmatprep.subr.bf16.mxu1 %v13338_v5  ;;  %v4838_v4 = vld [vmem:[%s15673_s7] sm:$0xf] }
0x1266   :  { %v4843_v5 = vrot.slane %v4838_v4, %v14580_v44 }
0x1268   :  { %5698 = vmatpush1.bf16.msra.mxu0 %v13333_v6  ;;  %5739 = vmatpush1.bf16.msra.mxu1 %v13336_v17  ;;  %v4847_v6 = vrot.slane %v4838_v4, %v14585_v46 }
0x1269   :  { %5699 = vmatprep.subr.bf16.mxu0 %v13341_v9  ;;  %5740 = vmatprep.subr.bf16.mxu1 %v13344_v10 }
0x126c   :  { %5700 = vmatpush1.bf16.msra.mxu0 %v13339_v11  ;;  %5741 = vmatpush1.bf16.msra.mxu1 %v13342_v48 }
0x126d   :  { %5701 = vmatprep.subr.bf16.mxu0 %v13347_v14  ;;  %5742 = vmatprep.subr.bf16.mxu1 %v13350_v15 }
0x1270   :  { %5702 = vmatpush1.bf16.msra.mxu0 %v13345_v16  ;;  %5743 = vmatpush1.bf16.msra.mxu1 %v13348_v18 }
0x1271   :  { %5703 = vmatprep.subr.bf16.mxu0 %v13353_v19  ;;  %5744 = vmatprep.subr.bf16.mxu1 %v13356_v20 }
0x1274   :  { %5704 = vmatpush1.bf16.msra.mxu0 %v13351_v22  ;;  %5745 = vmatpush1.bf16.msra.mxu1 %v13354_v23  ;;  %v4855_v23 = vrot.slane %v4838_v4, %v14589_v51 }
0x1275   :  { %5705 = vmatprep.subr.bf16.mxu0 %v13359_v24  ;;  %5746 = vmatprep.subr.bf16.mxu1 %v13362_v25  ;;  %v4851_v25 = vrot.slane %v4838_v4, %v14592_v63 }
0x1278   :  { %5706 = vmatpush1.bf16.msra.mxu0 %v13357_v55  ;;  %5747 = vmatpush1.bf16.msra.mxu1 %v13360_v26 }
0x1279   :  { %5707 = vmatprep.subr.bf16.mxu0 %v13365_v62  ;;  %5748 = vmatprep.subr.bf16.mxu1 %v13368_v28 }
0x127c   :  { %5708 = vmatpush1.bf16.msra.mxu0 %v13363_v39  ;;  %5749 = vmatpush1.bf16.msra.mxu1 %v13366_v29 }
0x127d   :  { %5709 = vmatprep.subr.bf16.mxu0 %v13371_v30  ;;  %5750 = vmatprep.subr.bf16.mxu1 %v13374_v31 }
0x1280   :  { %5710 = vmatpush1.bf16.msra.mxu0 %v13369_v32  ;;  %5751 = vmatpush1.bf16.msra.mxu1 %v13372_v33 }
0x1281   :  { %5711 = vmatprep.subr.bf16.mxu0 %v13377_v34  ;;  %5752 = vmatprep.subr.bf16.mxu1 %v13380_v35 }
0x1284   :  { %5712 = vmatpush1.bf16.msra.mxu0 %v13375_v36  ;;  %5753 = vmatpush1.bf16.msra.mxu1 %v13378_v37 }
0x1285   :  { %5713 = vmatprep.subr.bf16.mxu0 %v13383_v7  ;;  %5754 = vmatprep.subr.bf16.mxu1 %v13386_v38 }
0x1288   :  { %5714 = vmatpush1.bf16.msra.mxu0 %v13381_v13  ;;  %5755 = vmatpush1.bf16.msra.mxu1 %v13384_v40 }
0x1289   :  { %5715 = vmatprep.subr.bf16.mxu0 %v13389_v54  ;;  %5756 = vmatprep.subr.bf16.mxu1 %v13392_v41  ;;  %v13418_v54 = vld [vmem:[%s15674_s8 + $0x8] sm:$0xff]   ;;  %v13419_v41 = vld [vmem:[%s15674_s8 + $0x10] sm:$0xff]  }
0x128c   :  { %5716 = vmatpush1.bf16.msra.mxu0 %v13387_v43  ;;  %5757 = vmatpush1.bf16.msra.mxu1 %v13390_v45  ;;  %v13420_v43 = vld [vmem:[%s15674_s8 + $0x18] sm:$0xff]   ;;  %v13421_v45 = vld [vmem:[%s15674_s8 + $0x20] sm:$0xff]  }
0x128d   :  { %5717 = vmatprep.subr.bf16.mxu0 %v13395_v49  ;;  %5758 = vmatprep.subr.bf16.mxu1 %v13398_v50  ;;  %v13423_v49 = vld [vmem:[%s15674_s8 + $0x30] sm:$0xff]   ;;  %v13425_v50 = vld [vmem:[#allocation6] sm:$0xff]  }
0x1290   :  { %5718 = vmatpush1.bf16.msra.mxu0 %v13393_v47  ;;  %5759 = vmatpush1.bf16.msra.mxu1 %v13396_v58  ;;  %v13422_v47 = vld [vmem:[%s15674_s8 + $0x28] sm:$0xff]   ;;  %v13424_v58 = vld [vmem:[%s15674_s8 + $0x38] sm:$0xff]  }
0x1291   :  { %5719 = vmatprep.subr.bf16.mxu0 %v13401_v21  ;;  %5760 = vmatprep.subr.bf16.mxu1 %v13404_v53  ;;  %v13426_v21 = vld [vmem:[#allocation6 + $0x8] sm:$0xff]   ;;  %v13427_v53 = vld [vmem:[#allocation6 + $0x10] sm:$0xff]  }
0x1294   :  { %5720 = vmatpush1.bf16.msra.mxu0 %v13399_v12  ;;  %5761 = vmatpush1.bf16.msra.mxu1 %v13402_v3  ;;  %v13428_v12 = vld [vmem:[#allocation6 + $0x18] sm:$0xff]   ;;  %v13429_v3 = vld [vmem:[#allocation6 + $0x20] sm:$0xff]  }
0x1295   :  { %5721 = vmatprep.subr.bf16.mxu0 %v13407_v56  ;;  %5762 = vmatprep.subr.bf16.mxu1 %v13410_v57  ;;  %v13430_v56 = vld [vmem:[#allocation6 + $0x28] sm:$0xff]   ;;  %v11106_v57 = vld [vmem:[%s15673_s7 + $0x4] sm:$0xf] }
0x1298   :  { %5722 = vmatpush1.bf16.msra.mxu0 %v13405_v59  ;;  %5763 = vmatpush1.bf16.msra.mxu1 %v13408_v60  ;;  %v5356_v59 = vrot.slane %v11106_v57, %v14580_v44  ;;  %v5360_v60 = vrot.slane %v11106_v57, %v14585_v46 }
0x1299   :  { %5723 = vmatprep.subr.bf16.mxu0 %v13413_v61  ;;  %5764 = vmatprep.subr.bf16.mxu1 %v13416_v1 }
0x129c   :  { %5724 = vmatpush1.bf16.msra.mxu0 %v13411_v8  ;;  %5765 = vmatpush1.bf16.msra.mxu1 %v13414_v2 }
0x129d   :  { %12247 = vmatprep.subr.bf16.mxu0 %v14399_v0  ;;  %12267 = vmatprep.subr.bf16.mxu1 %v14399_v0 }
0x1331   :  { %v5214_v17 = vpop.f32.mrb[52].mxu0  ;;  %v5255_v9 = vpop.f32.mrb[52].mxu1 }
0x1332   :  { %v5215_v10 = vadd.f32 %v5214_v17, %v4843_v5  ;;  %v5216_v11 = vpop.f32.mrb[53].mxu0  ;;  %v5257_v48 = vpop.f32.mrb[53].mxu1  ;;  %v5256_v26 = vadd.f32 %v5255_v9, %v4851_v25 }
0x1333   :  { %v5217_v14 = vadd.f32 %v5216_v11, %v4847_v6  ;;  %v5218_v15 = vpop.f32.mrb[54].mxu0  ;;  %v5259_v16 = vpop.f32.mrb[54].mxu1  ;;  %v5258_v24 = vadd.f32 %v5257_v48, %v4855_v23 }
0x1334   :  { %v11103_v18 = vmul.f32 -1.442695, %v5215_v10  ;;  %v5219_v19 = vpop.f32.mrb[55].mxu0  ;;  %v5260_v20 = vpop.f32.mrb[55].mxu1  ;;  %v5364_v16 = vrot.slane %v11106_v57, %v14592_v63 }
0x1335   :  { %v11104_v22 = vmul.f32 -1.442695, %v5217_v14  ;;  %v11105_v55 = vmul.f32 -1.442695, %v5258_v24  ;;  %v5368_v14 = vrot.slane %v11106_v57, %v14589_v51  ;;  %v13443_v57 = vld [vmem:[%s15670_s4 + $0x10] sm:$0xff]  }
0x1336   :  { %14201 = vpow2.f32 %v11103_v18 }
0x1337   :  { %14203 = vpow2.f32 %v11104_v22 }
0x1338   :  { %14205 = vpow2.f32 %v11105_v55 }
0x1339   :  { %14207 = vtanh.f32 %v5256_v26 }
0x1340   :  { %v14202_v62 = vpop.eup %14201 }
0x1341   :  { %v14204_v28 = vpop.eup %14203  ;;  %v5265_v39 = vadd.f32 1.0, %v14202_v62 }
0x1342   :  { %v5271_v29 = vadd.f32 1.0, %v14204_v28  ;;  %v14206_v30 = vpop.eup %14205 }
0x1343   :  { %14209 = vrcp.f32 %v5265_v39  ;;  %v14208_v31 = vpop.eup %14207  ;;  %v5278_v35 = vadd.f32 1.0, %v14206_v30 }
0x1344   :  { %14211 = vrcp.f32 %v5271_v29 }
0x1345   :  { %14213 = vrcp.f32 %v5278_v35  ;;  %v13431_v35 = vld [vmem:[#allocation6 + $0x30] sm:$0xff]  }
0x134d   :  { %v14210_v32 = vpop.eup %14209 }
0x134e   :  { %v14212_v33 = vpop.eup %14211  ;;  %v5282_v34 = vmul.f32 %v14210_v32, %v14208_v31 }
0x134f   :  { %v5281_v36 = vmul.f32 %v14212_v33, %v14934_v52  ;;  %v14214_v7 = vpop.eup %14213  ;;  %v13417_v52 = vld [vmem:[%s15674_s8] sm:$0xff]  }
0x1351   :  { %v15102_v37 = vadd.f32 %v5282_v34, %v5281_v36  ;;  %v13433_v36 = vld [vmem:[%s15668_s2] sm:$0xff]  }
0x1353   :  { %14215 = vtanh.f32 %v15102_v37 }
0x135d   :  { %v14216_v38 = vpop.eup %14215 }
0x135e   :  { %v5285_v13 = vmul.f32 %v14216_v38, %v14214_v7  ;;  %v13434_v7 = vld [vmem:[%s15668_s2 + $0x8] sm:$0xff]   ;;  %v13435_v38 = vld [vmem:[%s15668_s2 + $0x10] sm:$0xff]  }
0x1360   :  { %v15105_v40 = vpack.c.bf16 %v5285_v13, %v5285_v13  ;;  %v13436_v13 = vld [vmem:[%s15668_s2 + $0x18] sm:$0xff]  }
0x1362   :  { %5726 = vmatmul.mubr.bf16.vlgmr.msra.gmra.mrb[56].mxu0 %v15105_v40  ;;  %5767 = vmatmul.mubr.bf16.vlgmr.msra.gmra.mrb[56].mxu1 %v15105_v40 }
0x1363   :  { %12263 = vmatprep.mubr.msk.bf16.mxu0 %vm14400_vm0, %v14399_v0  ;;  %12283 = vmatprep.mubr.msk.bf16.mxu1 %vm14400_vm0, %v14399_v0 }
0x1364   :  { %12248 = vmatpush3.bf16.msra.mxu0 %v13417_v52  ;;  %12268 = vmatpush3.bf16.msra.mxu1 %v13425_v50  ;;  %v13437_v52 = vld [vmem:[%s15668_s2 + $0x20] sm:$0xff]  }
0x1365   :  { %12249 = vmatprep.subr.bf16.mxu0 %v14399_v0  ;;  %12269 = vmatprep.subr.bf16.mxu1 %v14399_v0 }
0x1368   :  { %12250 = vmatpush3.bf16.msra.mxu0 %v13418_v54  ;;  %12270 = vmatpush3.bf16.msra.mxu1 %v13426_v21  ;;  %v13438_v54 = vld [vmem:[%s15668_s2 + $0x28] sm:$0xff]  }
0x1369   :  { %12251 = vmatprep.subr.bf16.mxu0 %v14399_v0  ;;  %12271 = vmatprep.subr.bf16.mxu1 %v14399_v0 }
0x136c   :  { %12252 = vmatpush3.bf16.msra.mxu0 %v13419_v41  ;;  %12272 = vmatpush3.bf16.msra.mxu1 %v13427_v53  ;;  %v11174_v41 = vld [vmem:[%s15675_s9] ss:$0 sm:$0xff]  ;;  %v13439_v53 = vld [vmem:[%s15668_s2 + $0x30] sm:$0xff]  }
0x136d   :  { %12253 = vmatprep.subr.bf16.mxu0 %v14399_v0  ;;  %12273 = vmatprep.subr.bf16.mxu1 %v14399_v0 }
0x1370   :  { %12254 = vmatpush3.bf16.msra.mxu0 %v13420_v43  ;;  %12274 = vmatpush3.bf16.msra.mxu1 %v13428_v12  ;;  %v13440_v12 = vld [vmem:[%s15668_s2 + $0x38] sm:$0xff]  }
0x1371   :  { %12255 = vmatprep.subr.bf16.mxu0 %v14399_v0  ;;  %12275 = vmatprep.subr.bf16.mxu1 %v14399_v0 }
0x1374   :  { %12256 = vmatpush3.bf16.msra.mxu0 %v13421_v45  ;;  %12276 = vmatpush3.bf16.msra.mxu1 %v13429_v3  ;;  %v13441_v3 = vld [vmem:[%s15670_s4] sm:$0xff]  }
0x1375   :  { %12257 = vmatprep.subr.bf16.mxu0 %v14399_v0  ;;  %12277 = vmatprep.subr.bf16.mxu1 %v14399_v0 }
0x1378   :  { %12258 = vmatpush3.bf16.msra.mxu0 %v13422_v47  ;;  %12278 = vmatpush3.bf16.msra.mxu1 %v13430_v56  ;;  %v13442_v56 = vld [vmem:[%s15670_s4 + $0x8] sm:$0xff]  }
0x1379   :  { %12259 = vmatprep.subr.bf16.mxu0 %v14399_v0  ;;  %12279 = vmatprep.subr.bf16.mxu1 %v14399_v0 }
0x137c   :  { %12260 = vmatpush3.bf16.msra.mxu0 %v13423_v49  ;;  %12280 = vmatpush3.bf16.msra.mxu1 %v13431_v35  ;;  %v13497_v35 = vld [vmem:[#allocation4 + $0x100] ss:$16 sps:$4 sm:$0xff]  }
0x137d   :  { %12261 = vmatprep.subr.bf16.mxu0 %v14399_v0  ;;  %12281 = vmatprep.subr.bf16.mxu1 %v14399_v0 }
0x1380   :  { %12262 = vmatpush3.bf16.msra.mxu0 %v13424_v58 }
0x1381   :  { %12287 = vmatprep.subr.bf16.mxu0 %v14399_v0 }
0x1435   :  { %v5727_v61 = vpop.f32.mrb[56].mxu0  ;;  %v5768_v1 = vpop.f32.mrb[56].mxu1 }
0x1436   :  { %v5728_v8 = vadd.f32 %v5727_v61, %v5356_v59  ;;  %v5729_v2 = vpop.f32.mrb[57].mxu0  ;;  %v5770_v4 = vpop.f32.mrb[57].mxu1  ;;  %v5769_v19 = vadd.f32 %v5768_v1, %v5364_v16  ;;  %v13444_v59 = vld [vmem:[%s15670_s4 + $0x18] sm:$0xff]   ;;  %v13446_v61 = vld [vmem:[%s15670_s4 + $0x28] sm:$0xff]   ;;  %v11183_v1 = vld [vmem:[%s15677_s11] ss:$0 sm:$0xff] }
0x1437   :  { %v5730_v5 = vadd.f32 %v5729_v2, %v5360_v60  ;;  %v5731_v6 = vpop.f32.mrb[58].mxu0  ;;  %v5772_v17 = vpop.f32.mrb[58].mxu1  ;;  %v5771_v15 = vadd.f32 %v5770_v4, %v5368_v14  ;;  %v13445_v60 = vld [vmem:[%s15670_s4 + $0x20] sm:$0xff]   ;;  %v13447_v14 = vld [vmem:[%s15670_s4 + $0x30] sm:$0xff]  }
0x1438   :  { %v11171_v9 = vmul.f32 -1.442695, %v5728_v8  ;;  %v5732_v10 = vpop.f32.mrb[59].mxu0  ;;  %v5773_v11 = vpop.f32.mrb[59].mxu1  ;;  %v6032_v8 = vstv %s6031_s27  ;;  %v11194_v6 = vld [vmem:[%s15667_s1 + $0x20] sm:$0xff] }
0x1439   :  { %v11172_v48 = vmul.f32 -1.442695, %v5730_v5  ;;  %v11173_v18 = vmul.f32 -1.442695, %v5771_v15  ;;  %vm6033_vm6 = vcmp.eq.s32.totalorder %v6032_v8, 1 }
0x143a   :  { %14217 = vpow2.f32 %v11171_v9  ;;  %v13449_v15 = vld [vmem:[#allocation4] ss:$16 sps:$4 sm:$0xff]   ;;  %v13451_v16 = vld [vmem:[#allocation4 + $0x4] ss:$16 sps:$4 sm:$0xff]   ;;  %v13464_v8 = vld [vmem:[#allocation4 + $0x48] ss:$16 sps:$4 sm:$0xff]  }
0x143b   :  { %14219 = vpow2.f32 %v11172_v48 }
0x143c   :  { %14221 = vpow2.f32 %v11173_v18  ;;  %v13454_v18 = vld [vmem:[#allocation4 + $0xc] ss:$16 sps:$4 sm:$0xff]  }
0x143d   :  { %14223 = vtanh.f32 %v5769_v19  ;;  %v13457_v19 = vld [vmem:[#allocation4 + $0x24] ss:$16 sps:$4 sm:$0xff]  }
0x1444   :  { %v14218_v20 = vpop.eup %14217 }
0x1445   :  { %v14220_v22 = vpop.eup %14219  ;;  %v5778_v23 = vadd.f32 1.0, %v14218_v20  ;;  %v13455_v20 = vld [vmem:[#allocation4 + $0x20] ss:$16 sps:$4 sm:$0xff]  }
0x1446   :  { %v5784_v24 = vadd.f32 1.0, %v14220_v22  ;;  %v14222_v25 = vpop.eup %14221  ;;  %v13463_v22 = vld [vmem:[#allocation4 + $0x44] ss:$16 sps:$4 sm:$0xff]  }
0x1447   :  { %14225 = vrcp.f32 %v5778_v23  ;;  %v14224_v55 = vpop.eup %14223  ;;  %v5791_v39 = vadd.f32 1.0, %v14222_v25  ;;  %v13461_v23 = vld [vmem:[#allocation4 + $0x40] ss:$16 sps:$4 sm:$0xff]  }
0x1448   :  { %14227 = vrcp.f32 %v5784_v24  ;;  %v13469_v24 = vld [vmem:[#allocation4 + $0x64] ss:$16 sps:$4 sm:$0xff]   ;;  %v13467_v25 = vld [vmem:[#allocation4 + $0x60] ss:$16 sps:$4 sm:$0xff]  }
0x1449   :  { %14229 = vrcp.f32 %v5791_v39  ;;  %v13487_v39 = vld [vmem:[#allocation4 + $0xc4] ss:$16 sps:$4 sm:$0xff]  }
0x1451   :  { %v14226_v26 = vpop.eup %14225 }
0x1452   :  { %v14228_v62 = vpop.eup %14227  ;;  %v5795_v28 = vmul.f32 %v14226_v26, %v14224_v55  ;;  %v13475_v55 = vld [vmem:[#allocation4 + $0x84] ss:$16 sps:$4 sm:$0xff]   ;;  %v13473_v26 = vld [vmem:[#allocation4 + $0x80] ss:$16 sps:$4 sm:$0xff]  }
0x1453   :  { %v5794_v29 = vmul.f32 %v14228_v62, %v14991_v42  ;;  %v14230_v31 = vpop.eup %14229  ;;  %v13432_v42 = vld [vmem:[#allocation6 + $0x38] sm:$0xff]   ;;  %v13481_v62 = vld [vmem:[#allocation4 + $0xa4] ss:$16 sps:$4 sm:$0xff]  }
0x1454   :  { %12282 = vmatpush3.bf16.msra.mxu1 %v13432_v42  ;;  %v13505_v42 = vld [vmem:[#allocation4 + $0x124] ss:$16 sps:$4 sm:$0xff]  }
0x1455   :  { %v15159_v30 = vadd.f32 %v5795_v28, %v5794_v29  ;;  %12307 = vmatprep.subr.bf16.mxu1 %v14399_v0  ;;  %v13479_v28 = vld [vmem:[#allocation4 + $0xa0] ss:$16 sps:$4 sm:$0xff]  }
0x1456   :  { %v13485_v29 = vld [vmem:[#allocation4 + $0xc0] ss:$16 sps:$4 sm:$0xff]  }
0x1457   :  { %14231 = vtanh.f32 %v15159_v30 }
0x1461   :  { %v14232_v32 = vpop.eup %14231 }
0x1462   :  { %v5798_v33 = vmul.f32 %v14232_v32, %v14230_v31  ;;  %v13493_v31 = vld [vmem:[#allocation4 + $0xe4] ss:$16 sps:$4 sm:$0xff]   ;;  %v13491_v32 = vld [vmem:[#allocation4 + $0xe0] ss:$16 sps:$4 sm:$0xff]  }
0x1464   :  { %v15162_v34 = vpack.c.bf16 %v5798_v33, %v5798_v33  ;;  %v13499_v33 = vld [vmem:[#allocation4 + $0x104] ss:$16 sps:$4 sm:$0xff]  }
0x1466   :  { %12264 = vmatmul.mubr.bf16.vlgmr.msra.gmra.mrb[60].mxu0 %v15162_v34 }
0x1467   :  { %12303 = vmatprep.mubr.msk.bf16.mxu0 %vm14400_vm0, %v14399_v0  ;;  %12288 = vmatpush3.bf16.msra.mxu0 %v13433_v36  ;;  %v13503_v36 = vld [vmem:[#allocation4 + $0x120] ss:$16 sps:$4 sm:$0xff]  }
0x1468   :  { %12289 = vmatprep.subr.bf16.mxu0 %v14399_v0 }
0x146b   :  { %12290 = vmatpush3.bf16.msra.mxu0 %v13434_v7  ;;  %v13511_v7 = vld [vmem:[#allocation4 + $0x144] ss:$16 sps:$4 sm:$0xff]  }
0x146c   :  { %12291 = vmatprep.subr.bf16.mxu0 %v14399_v0 }
0x146f   :  { %12292 = vmatpush3.bf16.msra.mxu0 %v13435_v38  ;;  %v13509_v38 = vld [vmem:[#allocation4 + $0x140] ss:$16 sps:$4 sm:$0xff]  }
0x1470   :  { %12293 = vmatprep.subr.bf16.mxu0 %v14399_v0 }
0x1473   :  { %12294 = vmatpush3.bf16.msra.mxu0 %v13436_v13  ;;  %v13517_v13 = vld [vmem:[#allocation4 + $0x164] ss:$16 sps:$4 sm:$0xff]  }
0x1474   :  { %12295 = vmatprep.subr.bf16.mxu0 %v14399_v0 }
0x1477   :  { %12296 = vmatpush3.bf16.msra.mxu0 %v13437_v52  ;;  %v13515_v52 = vld [vmem:[#allocation4 + $0x160] ss:$16 sps:$4 sm:$0xff]  }
0x1478   :  { %12297 = vmatprep.subr.bf16.mxu0 %v14399_v0 }
0x147b   :  { %12298 = vmatpush3.bf16.msra.mxu0 %v13438_v54  ;;  %v13523_v54 = vld [vmem:[#allocation4 + $0x184] ss:$16 sps:$4 sm:$0xff]  }
0x147c   :  { %12299 = vmatprep.subr.bf16.mxu0 %v14399_v0 }
0x147f   :  { %12300 = vmatpush3.bf16.msra.mxu0 %v13439_v53 }
0x1480   :  { %12301 = vmatprep.subr.bf16.mxu0 %v14399_v0 }
0x1483   :  { %12302 = vmatpush3.bf16.msra.mxu0 %v13440_v12 }
0x1484   :  { %6668 = vmatprep.subr.bf16.mxu0 %v13451_v16  ;;  %v13508_v16 = vld [vmem:[#allocation4 + $0x12c] ss:$16 sps:$4 sm:$0xff]  }
0x1539   :  { %v5905_v43 = vpop.f32.mrb[60].mxu0 }
0x153a   :  { %v5906_v45 = vadd.f32 %v11174_v41, %v5905_v43  ;;  %v12265_v47 = vpop.f32.mrb[61].mxu0  ;;  %v13521_v41 = vld [vmem:[#allocation4 + $0x180] ss:$16 sps:$4 sm:$0xff]   ;;  %v13529_v43 = vld [vmem:[#allocation4 + $0x1a4] ss:$16 sps:$4 sm:$0xff]  }
0x153b   :  { %v5908_v49 = vpop.f32.mrb[62].mxu0  ;;  %v13535_v47 = vld [vmem:[#allocation4 + $0x1c4] ss:$16 sps:$4 sm:$0xff]  }
0x153c   :  { %v5911_v58 = vmax.f32 %v5906_v45, 0.0  ;;  %v12266_v50 = vpop.f32.mrb[63].mxu0  ;;  %v13527_v45 = vld [vmem:[#allocation4 + $0x1a0] ss:$16 sps:$4 sm:$0xff]  }
0x153d   :  { %v13533_v49 = vld [vmem:[#allocation4 + $0x1c0] ss:$16 sps:$4 sm:$0xff]  }
0x153e   :  { %v5912_v21 = vpack.c.bf16 %v5911_v58, %v5911_v58  ;;  %v11195_v58 = vld [vmem:[%s15669_s3] ss:$0 sm:$0xff] }
0x1540   :  { %12284 = vmatmul.mubr.bf16.vlgmr.msra.gmra.mrb[60].mxu1 %v5912_v21 }
0x1541   :  { %12323 = vmatprep.mubr.msk.bf16.mxu1 %vm14400_vm0, %v14399_v0  ;;  %12308 = vmatpush3.bf16.msra.mxu1 %v13441_v3 }
0x1542   :  { %12309 = vmatprep.subr.bf16.mxu1 %v14399_v0 }
0x1545   :  { %12310 = vmatpush3.bf16.msra.mxu1 %v13442_v56 }
0x1546   :  { %12311 = vmatprep.subr.bf16.mxu1 %v14399_v0 }
0x1549   :  { %12312 = vmatpush3.bf16.msra.mxu1 %v13443_v57  ;;  %v13452_v57 = vld [vmem:[#allocation4 + $0x8] ss:$16 sps:$4 sm:$0xff]  }
0x154a   :  { %12313 = vmatprep.subr.bf16.mxu1 %v14399_v0 }
0x154d   :  { %12314 = vmatpush3.bf16.msra.mxu1 %v13444_v59 }
0x154e   :  { %12315 = vmatprep.subr.bf16.mxu1 %v14399_v0 }
0x1551   :  { %12316 = vmatpush3.bf16.msra.mxu1 %v13445_v60  ;;  %v13460_v60 = vld [vmem:[#allocation4 + $0x2c] ss:$16 sps:$4 sm:$0xff]  }
0x1552   :  { %12317 = vmatprep.subr.bf16.mxu1 %v14399_v0 }
0x1555   :  { %12318 = vmatpush3.bf16.msra.mxu1 %v13446_v61  ;;  %v13458_v61 = vld [vmem:[#allocation4 + $0x28] ss:$16 sps:$4 sm:$0xff]  }
0x1556   :  { %12319 = vmatprep.subr.bf16.mxu1 %v14399_v0 }
0x1559   :  { %12320 = vmatpush3.bf16.msra.mxu1 %v13447_v14  ;;  %v13494_v14 = vld [vmem:[#allocation4 + $0xe8] ss:$16 sps:$4 sm:$0xff]  }
0x155a   :  { %12321 = vmatprep.subr.bf16.mxu1 %v14399_v0 }
0x1613   :  { %v6018_v2 = vpop.f32.mrb[60].mxu1 }
0x1614   :  { %v6019_v4 = vadd.f32 %v11183_v1, %v6018_v2  ;;  %v12285_v5 = vpop.f32.mrb[61].mxu1  ;;  %v13466_v1 = vld [vmem:[#allocation4 + $0x4c] ss:$16 sps:$4 sm:$0xff]  }
0x1615   :  { %v6021_v17 = vpop.f32.mrb[62].mxu1  ;;  %v13472_v2 = vld [vmem:[#allocation4 + $0x6c] ss:$16 sps:$4 sm:$0xff]  }
0x1616   :  { %v6024_v9 = vadd.f32 %v6019_v4, %v15071_v27  ;;  %v12286_v10 = vpop.f32.mrb[63].mxu1  ;;  %v13448_v27 = vld [vmem:[%s15670_s4 + $0x38] sm:$0xff]  }
0x1617   :  { %12322 = vmatpush3.bf16.msra.mxu1 %v13448_v27  ;;  %v13470_v4 = vld [vmem:[#allocation4 + $0x68] ss:$16 sps:$4 sm:$0xff]   ;;  %v13478_v5 = vld [vmem:[#allocation4 + $0x8c] ss:$16 sps:$4 sm:$0xff]  }
0x1618   :  { %11192 = vst [vmem:[%s15678_s12 + $0x18] sm:$0xff] %v6024_v9  ;;  %v15239_v11 = vsel %vm6033_vm6, %v11194_v6, %v6024_v9  ;;  %6709 = vmatprep.subr.bf16.mxu1 %v13454_v18  ;;  %v13476_v6 = vld [vmem:[#allocation4 + $0x88] ss:$16 sps:$4 sm:$0xff]   ;;  %v13484_v17 = vld [vmem:[#allocation4 + $0xac] ss:$16 sps:$4 sm:$0xff]  }
0x1619   :  { %v6035_v48 = vpack.c.bf16 %v15239_v11, %v15239_v11  ;;  %v13482_v9 = vld [vmem:[#allocation4 + $0xa8] ss:$16 sps:$4 sm:$0xff]   ;;  %v13502_v27 = vld [vmem:[#allocation4 + $0x10c] ss:$16 sps:$4 sm:$0xff]  }
0x161a   :  { %v13488_v10 = vld [vmem:[#allocation4 + $0xc8] ss:$16 sps:$4 sm:$0xff]  }
0x161b   :  { %12304 = vmatmul.mubr.bf16.vlgmr.msra.gmra.mrb[64].mxu0 %v6035_v48  ;;  %v13496_v48 = vld [vmem:[#allocation4 + $0xec] ss:$16 sps:$4 sm:$0xff]   ;;  %v13506_v18 = vld [vmem:[#allocation4 + $0x128] ss:$16 sps:$4 sm:$0xff]  }
0x161c   :  { %6700 = vmatprep.mubr.bf16.mxu0 %v15105_v40  ;;  %6669 = vmatpush1.bf16.msra.mxu0 %v13449_v15  ;;  %v13500_v15 = vld [vmem:[#allocation4 + $0x108] ss:$16 sps:$4 sm:$0xff]  }
0x161d   :  { %6670 = vmatprep.subr.bf16.mxu0 %v13457_v19  ;;  %v13514_v19 = vld [vmem:[#allocation4 + $0x14c] ss:$16 sps:$4 sm:$0xff]  }
0x1620   :  { %6671 = vmatpush1.bf16.msra.mxu0 %v13455_v20  ;;  %v13512_v20 = vld [vmem:[#allocation4 + $0x148] ss:$16 sps:$4 sm:$0xff]  }
0x1621   :  { %6672 = vmatprep.subr.bf16.mxu0 %v13463_v22  ;;  %v13520_v22 = vld [vmem:[#allocation4 + $0x16c] ss:$16 sps:$4 sm:$0xff]  }
0x1624   :  { %6673 = vmatpush1.bf16.msra.mxu0 %v13461_v23  ;;  %v13518_v23 = vld [vmem:[#allocation4 + $0x168] ss:$16 sps:$4 sm:$0xff]  }
0x1625   :  { %6674 = vmatprep.subr.bf16.mxu0 %v13469_v24  ;;  %v13526_v24 = vld [vmem:[#allocation4 + $0x18c] ss:$16 sps:$4 sm:$0xff]  }
0x1628   :  { %6675 = vmatpush1.bf16.msra.mxu0 %v13467_v25  ;;  %v13524_v25 = vld [vmem:[#allocation4 + $0x188] ss:$16 sps:$4 sm:$0xff]  }
0x1629   :  { %6676 = vmatprep.subr.bf16.mxu0 %v13475_v55  ;;  %v13532_v55 = vld [vmem:[#allocation4 + $0x1ac] ss:$16 sps:$4 sm:$0xff]  }
0x162c   :  { %6677 = vmatpush1.bf16.msra.mxu0 %v13473_v26  ;;  %v13530_v26 = vld [vmem:[#allocation4 + $0x1a8] ss:$16 sps:$4 sm:$0xff]  }
0x162d   :  { %6678 = vmatprep.subr.bf16.mxu0 %v13481_v62  ;;  %v13538_v62 = vld [vmem:[#allocation4 + $0x1cc] ss:$16 sps:$4 sm:$0xff]  }
0x1630   :  { %6679 = vmatpush1.bf16.msra.mxu0 %v13479_v28  ;;  %v13536_v28 = vld [vmem:[#allocation4 + $0x1c8] ss:$16 sps:$4 sm:$0xff]  }
0x1631   :  { %6680 = vmatprep.subr.bf16.mxu0 %v13487_v39  ;;  %v13541_v39 = vld [vmem:[#allocation4 + $0x1e4] ss:$16 sps:$4 sm:$0xff]  }
0x1634   :  { %6681 = vmatpush1.bf16.msra.mxu0 %v13485_v29  ;;  %v13544_v29 = vld [vmem:[#allocation4 + $0x1ec] ss:$16 sps:$4 sm:$0xff]  }
0x1635   :  { %6682 = vmatprep.subr.bf16.mxu0 %v13493_v31  ;;  %v13539_v31 = vld [vmem:[#allocation4 + $0x1e0] ss:$16 sps:$4 sm:$0xff]  }
0x1638   :  { %6683 = vmatpush1.bf16.msra.mxu0 %v13491_v32  ;;  %v13542_v32 = vld [vmem:[#allocation4 + $0x1e8] ss:$16 sps:$4 sm:$0xff]  }
0x1639   :  { %6684 = vmatprep.subr.bf16.mxu0 %v13499_v33  ;;  %v13547_v33 = vld [vmem:[#allocation4 + $0x204] ss:$16 sps:$4 sm:$0xff]  }
0x163c   :  { %6685 = vmatpush1.bf16.msra.mxu0 %v13497_v35  ;;  %v13550_v35 = vld [vmem:[#allocation4 + $0x20c] ss:$16 sps:$4 sm:$0xff]  }
0x163d   :  { %6686 = vmatprep.subr.bf16.mxu0 %v13505_v42  ;;  %v11204_v42 = vld [vmem:[%s15671_s5] ss:$0 sm:$0xff] }
0x1640   :  { %6687 = vmatpush1.bf16.msra.mxu0 %v13503_v36 }
0x1641   :  { %6688 = vmatprep.subr.bf16.mxu0 %v13511_v7 }
0x1644   :  { %6689 = vmatpush1.bf16.msra.mxu0 %v13509_v38 }
0x1645   :  { %6690 = vmatprep.subr.bf16.mxu0 %v13517_v13 }
0x1648   :  { %6691 = vmatpush1.bf16.msra.mxu0 %v13515_v52 }
0x1649   :  { %6692 = vmatprep.subr.bf16.mxu0 %v13523_v54 }
0x164c   :  { %6693 = vmatpush1.bf16.msra.mxu0 %v13521_v41 }
0x164d   :  { %6694 = vmatprep.subr.bf16.mxu0 %v13529_v43  ;;  %v13545_v43 = vld [vmem:[#allocation4 + $0x200] ss:$16 sps:$4 sm:$0xff]  }
0x1650   :  { %6695 = vmatpush1.bf16.msra.mxu0 %v13527_v45  ;;  %v13548_v45 = vld [vmem:[#allocation4 + $0x208] ss:$16 sps:$4 sm:$0xff]  }
0x1651   :  { %6696 = vmatprep.subr.bf16.mxu0 %v13535_v47  ;;  %v13553_v47 = vld [vmem:[#allocation4 + $0x224] ss:$16 sps:$4 sm:$0xff]  }
0x1654   :  { %6697 = vmatpush1.bf16.msra.mxu0 %v13533_v49  ;;  %v13556_v49 = vld [vmem:[#allocation4 + $0x22c] ss:$16 sps:$4 sm:$0xff]  }
0x1655   :  { %6698 = vmatprep.subr.bf16.mxu0 %v13541_v39  ;;  %v13613_v39 = vld [vmem:[#allocation4 + $0x364] ss:$16 sps:$4 sm:$0xff]  }
0x1658   :  { %6699 = vmatpush1.bf16.msra.mxu0 %v13539_v31  ;;  %v13611_v31 = vld [vmem:[#allocation4 + $0x360] ss:$16 sps:$4 sm:$0xff]  }
0x1659   :  { %7181 = vmatprep.subr.bf16.mxu0 %v13547_v33  ;;  %v13617_v33 = vld [vmem:[#allocation4 + $0x380] ss:$16 sps:$4 sm:$0xff]  }
0x16ee   :  { %v6141_v50 = vpop.f32.mrb[64].mxu0 }
0x16ef   :  { %v6142_v21 = vadd.f32 %v11195_v58, %v6141_v50  ;;  %v12305_v53 = vpop.f32.mrb[65].mxu0  ;;  %v13551_v58 = vld [vmem:[#allocation4 + $0x220] ss:$16 sps:$4 sm:$0xff]   ;;  %v13554_v50 = vld [vmem:[#allocation4 + $0x228] ss:$16 sps:$4 sm:$0xff]  }
0x16f0   :  { %v6144_v12 = vpop.f32.mrb[66].mxu0  ;;  %v13562_v53 = vld [vmem:[#allocation4 + $0x24c] ss:$16 sps:$4 sm:$0xff]  }
0x16f1   :  { %v6147_v3 = vmax.f32 %v6142_v21, 0.0  ;;  %v12306_v56 = vpop.f32.mrb[67].mxu0  ;;  %v13559_v21 = vld [vmem:[#allocation4 + $0x244] ss:$16 sps:$4 sm:$0xff]   ;;  %v13557_v12 = vld [vmem:[#allocation4 + $0x240] ss:$16 sps:$4 sm:$0xff]  }
0x16f2   :  { %v13565_v56 = vld [vmem:[#allocation4 + $0x264] ss:$16 sps:$4 sm:$0xff]  }
0x16f3   :  { %v6148_v59 = vpack.c.bf16 %v6147_v3, %v6147_v3  ;;  %v13560_v3 = vld [vmem:[#allocation4 + $0x248] ss:$16 sps:$4 sm:$0xff]  }
0x16f5   :  { %12324 = vmatmul.mubr.bf16.vlgmr.msra.gmra.mrb[64].mxu1 %v6148_v59  ;;  %v13563_v59 = vld [vmem:[#allocation4 + $0x260] ss:$16 sps:$4 sm:$0xff]  }
0x16f6   :  { %6741 = vmatprep.mubr.bf16.mxu1 %v15105_v40  ;;  %6710 = vmatpush1.bf16.msra.mxu1 %v13452_v57  ;;  %v13490_v40 = vld [vmem:[#allocation4 + $0xcc] ss:$16 sps:$4 sm:$0xff]  }
0x16f7   :  { %6711 = vmatprep.subr.bf16.mxu1 %v13460_v60  ;;  %v13568_v57 = vld [vmem:[#allocation4 + $0x26c] ss:$16 sps:$4 sm:$0xff]   ;;  %v13571_v60 = vld [vmem:[#allocation4 + $0x284] ss:$16 sps:$4 sm:$0xff]  }
0x16fa   :  { %6712 = vmatpush1.bf16.msra.mxu1 %v13458_v61  ;;  %v13574_v61 = vld [vmem:[#allocation4 + $0x28c] ss:$16 sps:$4 sm:$0xff]  }
0x16fb   :  { %6713 = vmatprep.subr.bf16.mxu1 %v13466_v1  ;;  %v13569_v1 = vld [vmem:[#allocation4 + $0x280] ss:$16 sps:$4 sm:$0xff]  }
0x16fe   :  { %6714 = vmatpush1.bf16.msra.mxu1 %v13464_v8  ;;  %v13572_v8 = vld [vmem:[#allocation4 + $0x288] ss:$16 sps:$4 sm:$0xff]  }
0x16ff   :  { %6715 = vmatprep.subr.bf16.mxu1 %v13472_v2  ;;  %v13577_v2 = vld [vmem:[#allocation4 + $0x2a4] ss:$16 sps:$4 sm:$0xff]  }
0x1702   :  { %6716 = vmatpush1.bf16.msra.mxu1 %v13470_v4  ;;  %v13580_v4 = vld [vmem:[#allocation4 + $0x2ac] ss:$16 sps:$4 sm:$0xff]  }
0x1703   :  { %6717 = vmatprep.subr.bf16.mxu1 %v13478_v5  ;;  %v13575_v5 = vld [vmem:[#allocation4 + $0x2a0] ss:$16 sps:$4 sm:$0xff]  }
0x1706   :  { %6718 = vmatpush1.bf16.msra.mxu1 %v13476_v6  ;;  %v13578_v6 = vld [vmem:[#allocation4 + $0x2a8] ss:$16 sps:$4 sm:$0xff]  }
0x1707   :  { %6719 = vmatprep.subr.bf16.mxu1 %v13484_v17  ;;  %v13583_v17 = vld [vmem:[#allocation4 + $0x2c4] ss:$16 sps:$4 sm:$0xff]  }
0x170a   :  { %6720 = vmatpush1.bf16.msra.mxu1 %v13482_v9  ;;  %v13586_v9 = vld [vmem:[#allocation4 + $0x2cc] ss:$16 sps:$4 sm:$0xff]  }
0x170b   :  { %6721 = vmatprep.subr.bf16.mxu1 %v13490_v40  ;;  %v13581_v40 = vld [vmem:[#allocation4 + $0x2c0] ss:$16 sps:$4 sm:$0xff]  }
0x170e   :  { %6722 = vmatpush1.bf16.msra.mxu1 %v13488_v10  ;;  %v13584_v10 = vld [vmem:[#allocation4 + $0x2c8] ss:$16 sps:$4 sm:$0xff]  }
0x170f   :  { %6723 = vmatprep.subr.bf16.mxu1 %v13496_v48  ;;  %v13589_v48 = vld [vmem:[#allocation4 + $0x2e4] ss:$16 sps:$4 sm:$0xff]  }
0x1712   :  { %6724 = vmatpush1.bf16.msra.mxu1 %v13494_v14  ;;  %v13592_v14 = vld [vmem:[#allocation4 + $0x2ec] ss:$16 sps:$4 sm:$0xff]  }
0x1713   :  { %6725 = vmatprep.subr.bf16.mxu1 %v13502_v27  ;;  %v13587_v27 = vld [vmem:[#allocation4 + $0x2e0] ss:$16 sps:$4 sm:$0xff]  }
0x1716   :  { %6726 = vmatpush1.bf16.msra.mxu1 %v13500_v15  ;;  %v13590_v15 = vld [vmem:[#allocation4 + $0x2e8] ss:$16 sps:$4 sm:$0xff]  }
0x1717   :  { %6727 = vmatprep.subr.bf16.mxu1 %v13508_v16  ;;  %v13595_v16 = vld [vmem:[#allocation4 + $0x304] ss:$16 sps:$4 sm:$0xff]  }
0x171a   :  { %6728 = vmatpush1.bf16.msra.mxu1 %v13506_v18  ;;  %v13598_v18 = vld [vmem:[#allocation4 + $0x30c] ss:$16 sps:$4 sm:$0xff]  }
0x171b   :  { %6729 = vmatprep.subr.bf16.mxu1 %v13514_v19  ;;  %v13593_v19 = vld [vmem:[#allocation4 + $0x300] ss:$16 sps:$4 sm:$0xff]  }
0x171e   :  { %6730 = vmatpush1.bf16.msra.mxu1 %v13512_v20  ;;  %v13596_v20 = vld [vmem:[#allocation4 + $0x308] ss:$16 sps:$4 sm:$0xff]  }
0x171f   :  { %6731 = vmatprep.subr.bf16.mxu1 %v13520_v22  ;;  %v13601_v22 = vld [vmem:[#allocation4 + $0x324] ss:$16 sps:$4 sm:$0xff]  }
0x1722   :  { %6732 = vmatpush1.bf16.msra.mxu1 %v13518_v23  ;;  %v13604_v23 = vld [vmem:[#allocation4 + $0x32c] ss:$16 sps:$4 sm:$0xff]  }
0x1723   :  { %6733 = vmatprep.subr.bf16.mxu1 %v13526_v24  ;;  %v13599_v24 = vld [vmem:[#allocation4 + $0x320] ss:$16 sps:$4 sm:$0xff]  }
0x1726   :  { %6734 = vmatpush1.bf16.msra.mxu1 %v13524_v25  ;;  %v13602_v25 = vld [vmem:[#allocation4 + $0x328] ss:$16 sps:$4 sm:$0xff]  }
0x1727   :  { %6735 = vmatprep.subr.bf16.mxu1 %v13532_v55  ;;  %v13607_v55 = vld [vmem:[#allocation4 + $0x344] ss:$16 sps:$4 sm:$0xff]  }
0x172a   :  { %6736 = vmatpush1.bf16.msra.mxu1 %v13530_v26  ;;  %v13610_v26 = vld [vmem:[#allocation4 + $0x34c] ss:$16 sps:$4 sm:$0xff]  }
0x172b   :  { %6737 = vmatprep.subr.bf16.mxu1 %v13538_v62  ;;  %v13605_v62 = vld [vmem:[#allocation4 + $0x340] ss:$16 sps:$4 sm:$0xff]  }
0x172e   :  { %6738 = vmatpush1.bf16.msra.mxu1 %v13536_v28  ;;  %v13608_v28 = vld [vmem:[#allocation4 + $0x348] ss:$16 sps:$4 sm:$0xff]  }
0x172f   :  { %6739 = vmatprep.subr.bf16.mxu1 %v13544_v29  ;;  %v13616_v29 = vld [vmem:[#allocation4 + $0x36c] ss:$16 sps:$4 sm:$0xff]  }
0x1732   :  { %6740 = vmatpush1.bf16.msra.mxu1 %v13542_v32  ;;  %v13614_v32 = vld [vmem:[#allocation4 + $0x368] ss:$16 sps:$4 sm:$0xff]  }
0x1733   :  { %7222 = vmatprep.subr.bf16.mxu1 %v13550_v35  ;;  %v13619_v35 = vld [vmem:[#allocation4 + $0x384] ss:$16 sps:$4 sm:$0xff]  }
0x17c8   :  { %v6254_v36 = vpop.f32.mrb[64].mxu1 }
0x17c9   :  { %v6255_v7 = vadd.f32 %v11204_v42, %v6254_v36  ;;  %v12325_v38 = vpop.f32.mrb[65].mxu1  ;;  %v13620_v42 = vld [vmem:[#allocation4 + $0x388] ss:$16 sps:$4 sm:$0xff]   ;;  %v13622_v36 = vld [vmem:[#allocation4 + $0x38c] ss:$16 sps:$4 sm:$0xff]  }
0x17ca   :  { %v6257_v13 = vpop.f32.mrb[66].mxu1  ;;  %v13628_v38 = vld [vmem:[#allocation4 + $0x3ac] ss:$16 sps:$4 sm:$0xff]  }
0x17cb   :  { %v6260_v52 = vmax.f32 %v6255_v7, 0.0  ;;  %v12326_v54 = vpop.f32.mrb[67].mxu1  ;;  %v13625_v7 = vld [vmem:[#allocation4 + $0x3a4] ss:$16 sps:$4 sm:$0xff]   ;;  %v13623_v13 = vld [vmem:[#allocation4 + $0x3a0] ss:$16 sps:$4 sm:$0xff]  }
0x17cc   :  { %v13631_v54 = vld [vmem:[#allocation4 + $0x3c4] ss:$16 sps:$4 sm:$0xff]  }
0x17cd   :  { %v6261_v41 = vpack.c.bf16 %v6260_v52, %v6260_v52  ;;  %v13626_v52 = vld [vmem:[#allocation4 + $0x3a8] ss:$16 sps:$4 sm:$0xff]  }
0x17cf   :  { %6701 = vmatmul.mubr.bf16.vlgmr.msra.gmra.mrb[68].mxu0 %v6261_v41  ;;  %6742 = vmatmul.mubr.bf16.vlgmr.msra.gmra.mrb[68].mxu1 %v6261_v41  ;;  %v13634_v41 = vld [vmem:[#allocation4 + $0x3cc] ss:$16 sps:$4 sm:$0xff]  }
0x17d0   :  { %7213 = vmatprep.mubr.bf16.mxu0 %v15162_v34  ;;  %7254 = vmatprep.mubr.bf16.mxu1 %v15162_v34  ;;  %v13566_v34 = vld [vmem:[#allocation4 + $0x268] ss:$16 sps:$4 sm:$0xff]  }
0x17d1   :  { %7182 = vmatpush1.bf16.msra.mxu0 %v13545_v43  ;;  %7223 = vmatpush1.bf16.msra.mxu1 %v13548_v45  ;;  %v13629_v43 = vld [vmem:[#allocation4 + $0x3c0] ss:$16 sps:$4 sm:$0xff]   ;;  %v13632_v45 = vld [vmem:[#allocation4 + $0x3c8] ss:$16 sps:$4 sm:$0xff]  }
0x17d2   :  { %7183 = vmatprep.subr.bf16.mxu0 %v13553_v47  ;;  %7224 = vmatprep.subr.bf16.mxu1 %v13556_v49  ;;  %v13637_v47 = vld [vmem:[#allocation4 + $0x3e4] ss:$16 sps:$4 sm:$0xff]   ;;  %v13640_v49 = vld [vmem:[#allocation4 + $0x3ec] ss:$16 sps:$4 sm:$0xff]  }
0x17d5   :  { %7184 = vmatpush1.bf16.msra.mxu0 %v13551_v58  ;;  %7225 = vmatpush1.bf16.msra.mxu1 %v13554_v50  ;;  %v13635_v58 = vld [vmem:[#allocation4 + $0x3e0] ss:$16 sps:$4 sm:$0xff]   ;;  %v13638_v50 = vld [vmem:[#allocation4 + $0x3e8] ss:$16 sps:$4 sm:$0xff]  }
0x17d6   :  { %7185 = vmatprep.subr.bf16.mxu0 %v13559_v21  ;;  %7226 = vmatprep.subr.bf16.mxu1 %v13562_v53  ;;  %v6326_v21 = vld [vmem:[%s15673_s7] sm:$0xf] }
0x17d7   :  { %v6331_v53 = vrot.slane %v6326_v21, %v14580_v44 }
0x17d9   :  { %7186 = vmatpush1.bf16.msra.mxu0 %v13557_v12  ;;  %7227 = vmatpush1.bf16.msra.mxu1 %v13560_v3  ;;  %v6335_v12 = vrot.slane %v6326_v21, %v14585_v46 }
0x17da   :  { %7187 = vmatprep.subr.bf16.mxu0 %v13565_v56  ;;  %7228 = vmatprep.subr.bf16.mxu1 %v13568_v57 }
0x17dd   :  { %7188 = vmatpush1.bf16.msra.mxu0 %v13563_v59  ;;  %7229 = vmatpush1.bf16.msra.mxu1 %v13566_v34 }
0x17de   :  { %7189 = vmatprep.subr.bf16.mxu0 %v13571_v60  ;;  %7230 = vmatprep.subr.bf16.mxu1 %v13574_v61 }
0x17e1   :  { %7190 = vmatpush1.bf16.msra.mxu0 %v13569_v1  ;;  %7231 = vmatpush1.bf16.msra.mxu1 %v13572_v8 }
0x17e2   :  { %7191 = vmatprep.subr.bf16.mxu0 %v13577_v2  ;;  %7232 = vmatprep.subr.bf16.mxu1 %v13580_v4 }
0x17e5   :  { %7192 = vmatpush1.bf16.msra.mxu0 %v13575_v5  ;;  %7233 = vmatpush1.bf16.msra.mxu1 %v13578_v6  ;;  %v6343_v6 = vrot.slane %v6326_v21, %v14589_v51 }
0x17e6   :  { %7193 = vmatprep.subr.bf16.mxu0 %v13583_v17  ;;  %7234 = vmatprep.subr.bf16.mxu1 %v13586_v9  ;;  %v6339_v9 = vrot.slane %v6326_v21, %v14592_v63 }
0x17e9   :  { %7194 = vmatpush1.bf16.msra.mxu0 %v13581_v40  ;;  %7235 = vmatpush1.bf16.msra.mxu1 %v13584_v10 }
0x17ea   :  { %7195 = vmatprep.subr.bf16.mxu0 %v13589_v48  ;;  %7236 = vmatprep.subr.bf16.mxu1 %v13592_v14 }
0x17ed   :  { %7196 = vmatpush1.bf16.msra.mxu0 %v13587_v27  ;;  %7237 = vmatpush1.bf16.msra.mxu1 %v13590_v15 }
0x17ee   :  { %7197 = vmatprep.subr.bf16.mxu0 %v13595_v16  ;;  %7238 = vmatprep.subr.bf16.mxu1 %v13598_v18 }
0x17f1   :  { %7198 = vmatpush1.bf16.msra.mxu0 %v13593_v19  ;;  %7239 = vmatpush1.bf16.msra.mxu1 %v13596_v20 }
0x17f2   :  { %7199 = vmatprep.subr.bf16.mxu0 %v13601_v22  ;;  %7240 = vmatprep.subr.bf16.mxu1 %v13604_v23 }
0x17f5   :  { %7200 = vmatpush1.bf16.msra.mxu0 %v13599_v24  ;;  %7241 = vmatpush1.bf16.msra.mxu1 %v13602_v25 }
0x17f6   :  { %7201 = vmatprep.subr.bf16.mxu0 %v13607_v55  ;;  %7242 = vmatprep.subr.bf16.mxu1 %v13610_v26 }
0x17f9   :  { %7202 = vmatpush1.bf16.msra.mxu0 %v13605_v62  ;;  %7243 = vmatpush1.bf16.msra.mxu1 %v13608_v28 }
0x17fa   :  { %7203 = vmatprep.subr.bf16.mxu0 %v13613_v39  ;;  %7244 = vmatprep.subr.bf16.mxu1 %v13616_v29  ;;  %v13642_v39 = vld [vmem:[%s15674_s8 + $0x8] sm:$0xff]   ;;  %v13643_v29 = vld [vmem:[%s15674_s8 + $0x10] sm:$0xff]  }
0x17fd   :  { %7204 = vmatpush1.bf16.msra.mxu0 %v13611_v31  ;;  %7245 = vmatpush1.bf16.msra.mxu1 %v13614_v32  ;;  %v13644_v31 = vld [vmem:[%s15674_s8 + $0x18] sm:$0xff]   ;;  %v13645_v32 = vld [vmem:[%s15674_s8 + $0x20] sm:$0xff]  }
0x17fe   :  { %7205 = vmatprep.subr.bf16.mxu0 %v13619_v35  ;;  %7246 = vmatprep.subr.bf16.mxu1 %v13622_v36  ;;  %v13647_v35 = vld [vmem:[%s15674_s8 + $0x30] sm:$0xff]   ;;  %v13649_v36 = vld [vmem:[#allocation6] sm:$0xff]  }
0x1801   :  { %7206 = vmatpush1.bf16.msra.mxu0 %v13617_v33  ;;  %7247 = vmatpush1.bf16.msra.mxu1 %v13620_v42  ;;  %v13646_v33 = vld [vmem:[%s15674_s8 + $0x28] sm:$0xff]   ;;  %v13648_v42 = vld [vmem:[%s15674_s8 + $0x38] sm:$0xff]  }
0x1802   :  { %7207 = vmatprep.subr.bf16.mxu0 %v13625_v7  ;;  %7248 = vmatprep.subr.bf16.mxu1 %v13628_v38  ;;  %v13650_v7 = vld [vmem:[#allocation6 + $0x8] sm:$0xff]   ;;  %v13651_v38 = vld [vmem:[#allocation6 + $0x10] sm:$0xff]  }
0x1805   :  { %7208 = vmatpush1.bf16.msra.mxu0 %v13623_v13  ;;  %7249 = vmatpush1.bf16.msra.mxu1 %v13626_v52  ;;  %v13652_v13 = vld [vmem:[#allocation6 + $0x18] sm:$0xff]   ;;  %v13653_v52 = vld [vmem:[#allocation6 + $0x20] sm:$0xff]  }
0x1806   :  { %7209 = vmatprep.subr.bf16.mxu0 %v13631_v54  ;;  %7250 = vmatprep.subr.bf16.mxu1 %v13634_v41  ;;  %v13654_v54 = vld [vmem:[#allocation6 + $0x28] sm:$0xff]   ;;  %v11280_v41 = vld [vmem:[%s15673_s7 + $0x4] sm:$0xf] }
0x1809   :  { %7210 = vmatpush1.bf16.msra.mxu0 %v13629_v43  ;;  %7251 = vmatpush1.bf16.msra.mxu1 %v13632_v45  ;;  %v6844_v43 = vrot.slane %v11280_v41, %v14580_v44  ;;  %v6848_v45 = vrot.slane %v11280_v41, %v14585_v46 }
0x180a   :  { %7211 = vmatprep.subr.bf16.mxu0 %v13637_v47  ;;  %7252 = vmatprep.subr.bf16.mxu1 %v13640_v49 }
0x180d   :  { %7212 = vmatpush1.bf16.msra.mxu0 %v13635_v58  ;;  %7253 = vmatpush1.bf16.msra.mxu1 %v13638_v50 }
0x180e   :  { %12327 = vmatprep.subr.bf16.mxu0 %v14399_v0  ;;  %12347 = vmatprep.subr.bf16.mxu1 %v14399_v0 }
0x18a2   :  { %v6702_v3 = vpop.f32.mrb[68].mxu0  ;;  %v6743_v56 = vpop.f32.mrb[68].mxu1 }
0x18a3   :  { %v6703_v57 = vadd.f32 %v6702_v3, %v6331_v53  ;;  %v6704_v59 = vpop.f32.mrb[69].mxu0  ;;  %v6745_v34 = vpop.f32.mrb[69].mxu1  ;;  %v6744_v10 = vadd.f32 %v6743_v56, %v6339_v9 }
0x18a4   :  { %v6705_v60 = vadd.f32 %v6704_v59, %v6335_v12  ;;  %v6706_v61 = vpop.f32.mrb[70].mxu0  ;;  %v6747_v1 = vpop.f32.mrb[70].mxu1  ;;  %v6746_v17 = vadd.f32 %v6745_v34, %v6343_v6 }
0x18a5   :  { %v11277_v8 = vmul.f32 -1.442695, %v6703_v57  ;;  %v6707_v2 = vpop.f32.mrb[71].mxu0  ;;  %v6748_v4 = vpop.f32.mrb[71].mxu1  ;;  %v6852_v1 = vrot.slane %v11280_v41, %v14592_v63 }
0x18a6   :  { %v11278_v5 = vmul.f32 -1.442695, %v6705_v60  ;;  %v11279_v40 = vmul.f32 -1.442695, %v6746_v17  ;;  %v6856_v60 = vrot.slane %v11280_v41, %v14589_v51  ;;  %v13667_v41 = vld [vmem:[%s15670_s4 + $0x10] sm:$0xff]  }
0x18a7   :  { %14233 = vpow2.f32 %v11277_v8 }
0x18a8   :  { %14235 = vpow2.f32 %v11278_v5 }
0x18a9   :  { %14237 = vpow2.f32 %v11279_v40 }
0x18aa   :  { %14239 = vtanh.f32 %v6744_v10 }
0x18b1   :  { %v14234_v48 = vpop.eup %14233 }
0x18b2   :  { %v14236_v14 = vpop.eup %14235  ;;  %v6753_v27 = vadd.f32 1.0, %v14234_v48 }
0x18b3   :  { %v6759_v15 = vadd.f32 1.0, %v14236_v14  ;;  %v14238_v16 = vpop.eup %14237 }
0x18b4   :  { %14241 = vrcp.f32 %v6753_v27  ;;  %v14240_v18 = vpop.eup %14239  ;;  %v6766_v23 = vadd.f32 1.0, %v14238_v16 }
0x18b5   :  { %14243 = vrcp.f32 %v6759_v15 }
0x18b6   :  { %14245 = vrcp.f32 %v6766_v23  ;;  %v13655_v23 = vld [vmem:[#allocation6 + $0x30] sm:$0xff]  }
0x18be   :  { %v14242_v19 = vpop.eup %14241 }
0x18bf   :  { %v14244_v20 = vpop.eup %14243  ;;  %v6770_v22 = vmul.f32 %v14242_v19, %v14240_v18 }
0x18c0   :  { %v6769_v24 = vmul.f32 %v14244_v20, %v15102_v37  ;;  %v14246_v55 = vpop.eup %14245  ;;  %v13641_v37 = vld [vmem:[%s15674_s8] sm:$0xff]  }
0x18c2   :  { %v15270_v25 = vadd.f32 %v6770_v22, %v6769_v24  ;;  %v13657_v24 = vld [vmem:[%s15668_s2] sm:$0xff]  }
0x18c4   :  { %14247 = vtanh.f32 %v15270_v25 }
0x18ce   :  { %v14248_v26 = vpop.eup %14247 }
0x18cf   :  { %v6773_v62 = vmul.f32 %v14248_v26, %v14246_v55  ;;  %v13658_v55 = vld [vmem:[%s15668_s2 + $0x8] sm:$0xff]   ;;  %v13659_v26 = vld [vmem:[%s15668_s2 + $0x10] sm:$0xff]  }
0x18d1   :  { %v15273_v28 = vpack.c.bf16 %v6773_v62, %v6773_v62  ;;  %v13660_v62 = vld [vmem:[%s15668_s2 + $0x18] sm:$0xff]  }
0x18d3   :  { %7214 = vmatmul.mubr.bf16.vlgmr.msra.gmra.mrb[72].mxu0 %v15273_v28  ;;  %7255 = vmatmul.mubr.bf16.vlgmr.msra.gmra.mrb[72].mxu1 %v15273_v28 }
0x18d4   :  { %12343 = vmatprep.mubr.msk.bf16.mxu0 %vm14400_vm0, %v14399_v0  ;;  %12363 = vmatprep.mubr.msk.bf16.mxu1 %vm14400_vm0, %v14399_v0 }
0x18d5   :  { %12328 = vmatpush3.bf16.msra.mxu0 %v13641_v37  ;;  %12348 = vmatpush3.bf16.msra.mxu1 %v13649_v36  ;;  %v13661_v37 = vld [vmem:[%s15668_s2 + $0x20] sm:$0xff]  }
0x18d6   :  { %12329 = vmatprep.subr.bf16.mxu0 %v14399_v0  ;;  %12349 = vmatprep.subr.bf16.mxu1 %v14399_v0 }
0x18d9   :  { %12330 = vmatpush3.bf16.msra.mxu0 %v13642_v39  ;;  %12350 = vmatpush3.bf16.msra.mxu1 %v13650_v7  ;;  %v13662_v39 = vld [vmem:[%s15668_s2 + $0x28] sm:$0xff]  }
0x18da   :  { %12331 = vmatprep.subr.bf16.mxu0 %v14399_v0  ;;  %12351 = vmatprep.subr.bf16.mxu1 %v14399_v0 }
0x18dd   :  { %12332 = vmatpush3.bf16.msra.mxu0 %v13643_v29  ;;  %12352 = vmatpush3.bf16.msra.mxu1 %v13651_v38  ;;  %v11348_v29 = vld [vmem:[%s15675_s9] ss:$0 sm:$0xff]  ;;  %v13663_v38 = vld [vmem:[%s15668_s2 + $0x30] sm:$0xff]  }
0x18de   :  { %12333 = vmatprep.subr.bf16.mxu0 %v14399_v0  ;;  %12353 = vmatprep.subr.bf16.mxu1 %v14399_v0 }
0x18e1   :  { %12334 = vmatpush3.bf16.msra.mxu0 %v13644_v31  ;;  %12354 = vmatpush3.bf16.msra.mxu1 %v13652_v13  ;;  %v13664_v13 = vld [vmem:[%s15668_s2 + $0x38] sm:$0xff]  }
0x18e2   :  { %12335 = vmatprep.subr.bf16.mxu0 %v14399_v0  ;;  %12355 = vmatprep.subr.bf16.mxu1 %v14399_v0 }
0x18e5   :  { %12336 = vmatpush3.bf16.msra.mxu0 %v13645_v32  ;;  %12356 = vmatpush3.bf16.msra.mxu1 %v13653_v52  ;;  %v13665_v52 = vld [vmem:[%s15670_s4] sm:$0xff]  }
0x18e6   :  { %12337 = vmatprep.subr.bf16.mxu0 %v14399_v0  ;;  %12357 = vmatprep.subr.bf16.mxu1 %v14399_v0 }
0x18e9   :  { %12338 = vmatpush3.bf16.msra.mxu0 %v13646_v33  ;;  %12358 = vmatpush3.bf16.msra.mxu1 %v13654_v54  ;;  %v13666_v54 = vld [vmem:[%s15670_s4 + $0x8] sm:$0xff]  }
0x18ea   :  { %12339 = vmatprep.subr.bf16.mxu0 %v14399_v0  ;;  %12359 = vmatprep.subr.bf16.mxu1 %v14399_v0 }
0x18ed   :  { %12340 = vmatpush3.bf16.msra.mxu0 %v13647_v35  ;;  %12360 = vmatpush3.bf16.msra.mxu1 %v13655_v23  ;;  %v13721_v23 = vld [vmem:[#allocation4 + $0x100] ss:$16 sps:$4 sm:$0xff]  }
0x18ee   :  { %12341 = vmatprep.subr.bf16.mxu0 %v14399_v0  ;;  %12361 = vmatprep.subr.bf16.mxu1 %v14399_v0 }
0x18f1   :  { %12342 = vmatpush3.bf16.msra.mxu0 %v13648_v42 }
0x18f2   :  { %12367 = vmatprep.subr.bf16.mxu0 %v14399_v0 }
0x19a6   :  { %v7215_v47 = vpop.f32.mrb[72].mxu0  ;;  %v7256_v49 = vpop.f32.mrb[72].mxu1 }
0x19a7   :  { %v7216_v58 = vadd.f32 %v7215_v47, %v6844_v43  ;;  %v7217_v50 = vpop.f32.mrb[73].mxu0  ;;  %v7258_v21 = vpop.f32.mrb[73].mxu1  ;;  %v7257_v2 = vadd.f32 %v7256_v49, %v6852_v1  ;;  %v13668_v43 = vld [vmem:[%s15670_s4 + $0x18] sm:$0xff]   ;;  %v13670_v47 = vld [vmem:[%s15670_s4 + $0x28] sm:$0xff]   ;;  %v11357_v49 = vld [vmem:[%s15677_s11] ss:$0 sm:$0xff] }
0x19a8   :  { %v7218_v53 = vadd.f32 %v7217_v50, %v6848_v45  ;;  %v7219_v12 = vpop.f32.mrb[74].mxu0  ;;  %v7260_v3 = vpop.f32.mrb[74].mxu1  ;;  %v7259_v61 = vadd.f32 %v7258_v21, %v6856_v60  ;;  %v13669_v45 = vld [vmem:[%s15670_s4 + $0x20] sm:$0xff]   ;;  %v13671_v60 = vld [vmem:[%s15670_s4 + $0x30] sm:$0xff]  }
0x19a9   :  { %v11345_v56 = vmul.f32 -1.442695, %v7216_v58  ;;  %v7220_v57 = vpop.f32.mrb[75].mxu0  ;;  %v7261_v59 = vpop.f32.mrb[75].mxu1  ;;  %v7520_v58 = vstv %s7519_s15  ;;  %v11368_v12 = vld [vmem:[%s15667_s1 + $0x28] sm:$0xff] }
0x19aa   :  { %v11346_v34 = vmul.f32 -1.442695, %v7218_v53  ;;  %v11347_v8 = vmul.f32 -1.442695, %v7259_v61  ;;  %vm7521_vm7 = vcmp.eq.s32.totalorder %v7520_v58, 1 }
0x19ab   :  { %14249 = vpow2.f32 %v11345_v56  ;;  %v13673_v61 = vld [vmem:[#allocation4] ss:$16 sps:$4 sm:$0xff]   ;;  %v13675_v1 = vld [vmem:[#allocation4 + $0x4] ss:$16 sps:$4 sm:$0xff]   ;;  %v13688_v58 = vld [vmem:[#allocation4 + $0x48] ss:$16 sps:$4 sm:$0xff]  }
0x19ac   :  { %14251 = vpow2.f32 %v11346_v34 }
0x19ad   :  { %14253 = vpow2.f32 %v11347_v8  ;;  %v13678_v8 = vld [vmem:[#allocation4 + $0xc] ss:$16 sps:$4 sm:$0xff]  }
0x19ae   :  { %14255 = vtanh.f32 %v7257_v2  ;;  %v13681_v2 = vld [vmem:[#allocation4 + $0x24] ss:$16 sps:$4 sm:$0xff]  }
0x19b5   :  { %v14250_v4 = vpop.eup %14249 }
0x19b6   :  { %v14252_v5 = vpop.eup %14251  ;;  %v7266_v6 = vadd.f32 1.0, %v14250_v4  ;;  %v13679_v4 = vld [vmem:[#allocation4 + $0x20] ss:$16 sps:$4 sm:$0xff]  }
0x19b7   :  { %v7272_v17 = vadd.f32 1.0, %v14252_v5  ;;  %v14254_v9 = vpop.eup %14253  ;;  %v13687_v5 = vld [vmem:[#allocation4 + $0x44] ss:$16 sps:$4 sm:$0xff]  }
0x19b8   :  { %14257 = vrcp.f32 %v7266_v6  ;;  %v14256_v40 = vpop.eup %14255  ;;  %v7279_v27 = vadd.f32 1.0, %v14254_v9  ;;  %v13685_v6 = vld [vmem:[#allocation4 + $0x40] ss:$16 sps:$4 sm:$0xff]  }
0x19b9   :  { %14259 = vrcp.f32 %v7272_v17  ;;  %v13693_v17 = vld [vmem:[#allocation4 + $0x64] ss:$16 sps:$4 sm:$0xff]   ;;  %v13691_v9 = vld [vmem:[#allocation4 + $0x60] ss:$16 sps:$4 sm:$0xff]  }
0x19ba   :  { %14261 = vrcp.f32 %v7279_v27  ;;  %v13711_v27 = vld [vmem:[#allocation4 + $0xc4] ss:$16 sps:$4 sm:$0xff]  }
0x19c2   :  { %v14258_v10 = vpop.eup %14257 }
0x19c3   :  { %v14260_v48 = vpop.eup %14259  ;;  %v7283_v14 = vmul.f32 %v14258_v10, %v14256_v40  ;;  %v13699_v40 = vld [vmem:[#allocation4 + $0x84] ss:$16 sps:$4 sm:$0xff]   ;;  %v13697_v10 = vld [vmem:[#allocation4 + $0x80] ss:$16 sps:$4 sm:$0xff]  }
0x19c4   :  { %v7282_v15 = vmul.f32 %v14260_v48, %v15159_v30  ;;  %v14262_v18 = vpop.eup %14261  ;;  %v13656_v30 = vld [vmem:[#allocation6 + $0x38] sm:$0xff]   ;;  %v13705_v48 = vld [vmem:[#allocation4 + $0xa4] ss:$16 sps:$4 sm:$0xff]  }
0x19c5   :  { %12362 = vmatpush3.bf16.msra.mxu1 %v13656_v30  ;;  %v13729_v30 = vld [vmem:[#allocation4 + $0x124] ss:$16 sps:$4 sm:$0xff]  }
0x19c6   :  { %v15327_v16 = vadd.f32 %v7283_v14, %v7282_v15  ;;  %12387 = vmatprep.subr.bf16.mxu1 %v14399_v0  ;;  %v13703_v14 = vld [vmem:[#allocation4 + $0xa0] ss:$16 sps:$4 sm:$0xff]  }
0x19c7   :  { %v13709_v15 = vld [vmem:[#allocation4 + $0xc0] ss:$16 sps:$4 sm:$0xff]  }
0x19c8   :  { %14263 = vtanh.f32 %v15327_v16 }
0x19d2   :  { %v14264_v19 = vpop.eup %14263 }
0x19d3   :  { %v7286_v20 = vmul.f32 %v14264_v19, %v14262_v18  ;;  %v13717_v18 = vld [vmem:[#allocation4 + $0xe4] ss:$16 sps:$4 sm:$0xff]   ;;  %v13715_v19 = vld [vmem:[#allocation4 + $0xe0] ss:$16 sps:$4 sm:$0xff]  }
0x19d5   :  { %v15330_v22 = vpack.c.bf16 %v7286_v20, %v7286_v20  ;;  %v13723_v20 = vld [vmem:[#allocation4 + $0x104] ss:$16 sps:$4 sm:$0xff]  }
0x19d7   :  { %12344 = vmatmul.mubr.bf16.vlgmr.msra.gmra.mrb[76].mxu0 %v15330_v22 }
0x19d8   :  { %12383 = vmatprep.mubr.msk.bf16.mxu0 %vm14400_vm0, %v14399_v0  ;;  %12368 = vmatpush3.bf16.msra.mxu0 %v13657_v24  ;;  %v13727_v24 = vld [vmem:[#allocation4 + $0x120] ss:$16 sps:$4 sm:$0xff]  }
0x19d9   :  { %12369 = vmatprep.subr.bf16.mxu0 %v14399_v0 }
0x19dc   :  { %12370 = vmatpush3.bf16.msra.mxu0 %v13658_v55  ;;  %v13735_v55 = vld [vmem:[#allocation4 + $0x144] ss:$16 sps:$4 sm:$0xff]  }
0x19dd   :  { %12371 = vmatprep.subr.bf16.mxu0 %v14399_v0 }
0x19e0   :  { %12372 = vmatpush3.bf16.msra.mxu0 %v13659_v26  ;;  %v13733_v26 = vld [vmem:[#allocation4 + $0x140] ss:$16 sps:$4 sm:$0xff]  }
0x19e1   :  { %12373 = vmatprep.subr.bf16.mxu0 %v14399_v0 }
0x19e4   :  { %12374 = vmatpush3.bf16.msra.mxu0 %v13660_v62  ;;  %v13741_v62 = vld [vmem:[#allocation4 + $0x164] ss:$16 sps:$4 sm:$0xff]  }
0x19e5   :  { %12375 = vmatprep.subr.bf16.mxu0 %v14399_v0 }
0x19e8   :  { %12376 = vmatpush3.bf16.msra.mxu0 %v13661_v37  ;;  %v13739_v37 = vld [vmem:[#allocation4 + $0x160] ss:$16 sps:$4 sm:$0xff]  }
0x19e9   :  { %12377 = vmatprep.subr.bf16.mxu0 %v14399_v0 }
0x19ec   :  { %12378 = vmatpush3.bf16.msra.mxu0 %v13662_v39  ;;  %v13747_v39 = vld [vmem:[#allocation4 + $0x184] ss:$16 sps:$4 sm:$0xff]  }
0x19ed   :  { %12379 = vmatprep.subr.bf16.mxu0 %v14399_v0 }
0x19f0   :  { %12380 = vmatpush3.bf16.msra.mxu0 %v13663_v38 }
0x19f1   :  { %12381 = vmatprep.subr.bf16.mxu0 %v14399_v0 }
0x19f4   :  { %12382 = vmatpush3.bf16.msra.mxu0 %v13664_v13 }
0x19f5   :  { %8156 = vmatprep.subr.bf16.mxu0 %v13675_v1  ;;  %v13732_v1 = vld [vmem:[#allocation4 + $0x12c] ss:$16 sps:$4 sm:$0xff]  }
0x1aaa   :  { %v7393_v31 = vpop.f32.mrb[76].mxu0 }
0x1aab   :  { %v7394_v32 = vadd.f32 %v11348_v29, %v7393_v31  ;;  %v12345_v33 = vpop.f32.mrb[77].mxu0  ;;  %v13745_v29 = vld [vmem:[#allocation4 + $0x180] ss:$16 sps:$4 sm:$0xff]   ;;  %v13753_v31 = vld [vmem:[#allocation4 + $0x1a4] ss:$16 sps:$4 sm:$0xff]  }
0x1aac   :  { %v7396_v35 = vpop.f32.mrb[78].mxu0  ;;  %v13759_v33 = vld [vmem:[#allocation4 + $0x1c4] ss:$16 sps:$4 sm:$0xff]  }
0x1aad   :  { %v7399_v42 = vmax.f32 %v7394_v32, 0.0  ;;  %v12346_v36 = vpop.f32.mrb[79].mxu0  ;;  %v13751_v32 = vld [vmem:[#allocation4 + $0x1a0] ss:$16 sps:$4 sm:$0xff]  }
0x1aae   :  { %v13757_v35 = vld [vmem:[#allocation4 + $0x1c0] ss:$16 sps:$4 sm:$0xff]  }
0x1aaf   :  { %v7400_v7 = vpack.c.bf16 %v7399_v42, %v7399_v42  ;;  %v11369_v42 = vld [vmem:[%s15669_s3] ss:$0 sm:$0xff] }
0x1ab1   :  { %12364 = vmatmul.mubr.bf16.vlgmr.msra.gmra.mrb[76].mxu1 %v7400_v7 }
0x1ab2   :  { %12403 = vmatprep.mubr.msk.bf16.mxu1 %vm14400_vm0, %v14399_v0  ;;  %12388 = vmatpush3.bf16.msra.mxu1 %v13665_v52 }
0x1ab3   :  { %12389 = vmatprep.subr.bf16.mxu1 %v14399_v0 }
0x1ab6   :  { %12390 = vmatpush3.bf16.msra.mxu1 %v13666_v54 }
0x1ab7   :  { %12391 = vmatprep.subr.bf16.mxu1 %v14399_v0 }
0x1aba   :  { %12392 = vmatpush3.bf16.msra.mxu1 %v13667_v41  ;;  %v13676_v41 = vld [vmem:[#allocation4 + $0x8] ss:$16 sps:$4 sm:$0xff]  }
0x1abb   :  { %12393 = vmatprep.subr.bf16.mxu1 %v14399_v0 }
0x1abe   :  { %12394 = vmatpush3.bf16.msra.mxu1 %v13668_v43 }
0x1abf   :  { %12395 = vmatprep.subr.bf16.mxu1 %v14399_v0 }
0x1ac2   :  { %12396 = vmatpush3.bf16.msra.mxu1 %v13669_v45  ;;  %v13684_v45 = vld [vmem:[#allocation4 + $0x2c] ss:$16 sps:$4 sm:$0xff]  }
0x1ac3   :  { %12397 = vmatprep.subr.bf16.mxu1 %v14399_v0 }
0x1ac6   :  { %12398 = vmatpush3.bf16.msra.mxu1 %v13670_v47  ;;  %v13682_v47 = vld [vmem:[#allocation4 + $0x28] ss:$16 sps:$4 sm:$0xff]  }
0x1ac7   :  { %12399 = vmatprep.subr.bf16.mxu1 %v14399_v0 }
0x1aca   :  { %12400 = vmatpush3.bf16.msra.mxu1 %v13671_v60  ;;  %v13718_v60 = vld [vmem:[#allocation4 + $0xe8] ss:$16 sps:$4 sm:$0xff]  }
0x1acb   :  { %12401 = vmatprep.subr.bf16.mxu1 %v14399_v0 }
0x1b84   :  { %v7506_v50 = vpop.f32.mrb[76].mxu1 }
0x1b85   :  { %v7507_v21 = vadd.f32 %v11357_v49, %v7506_v50  ;;  %v12365_v53 = vpop.f32.mrb[77].mxu1  ;;  %v13690_v49 = vld [vmem:[#allocation4 + $0x4c] ss:$16 sps:$4 sm:$0xff]  }
0x1b86   :  { %v7509_v3 = vpop.f32.mrb[78].mxu1  ;;  %v13696_v50 = vld [vmem:[#allocation4 + $0x6c] ss:$16 sps:$4 sm:$0xff]  }
0x1b87   :  { %v7512_v56 = vadd.f32 %v7507_v21, %v15239_v11  ;;  %v12366_v57 = vpop.f32.mrb[79].mxu1  ;;  %v13672_v11 = vld [vmem:[%s15670_s4 + $0x38] sm:$0xff]  }
0x1b88   :  { %12402 = vmatpush3.bf16.msra.mxu1 %v13672_v11  ;;  %v13694_v21 = vld [vmem:[#allocation4 + $0x68] ss:$16 sps:$4 sm:$0xff]   ;;  %v13702_v53 = vld [vmem:[#allocation4 + $0x8c] ss:$16 sps:$4 sm:$0xff]  }
0x1b89   :  { %11366 = vst [vmem:[%s15678_s12 + $0x20] sm:$0xff] %v7512_v56  ;;  %v15407_v59 = vsel %vm7521_vm7, %v11368_v12, %v7512_v56  ;;  %8197 = vmatprep.subr.bf16.mxu1 %v13678_v8  ;;  %v13700_v12 = vld [vmem:[#allocation4 + $0x88] ss:$16 sps:$4 sm:$0xff]   ;;  %v13708_v3 = vld [vmem:[#allocation4 + $0xac] ss:$16 sps:$4 sm:$0xff]  }
0x1b8a   :  { %v7523_v34 = vpack.c.bf16 %v15407_v59, %v15407_v59  ;;  %v13706_v56 = vld [vmem:[#allocation4 + $0xa8] ss:$16 sps:$4 sm:$0xff]   ;;  %v13726_v11 = vld [vmem:[#allocation4 + $0x10c] ss:$16 sps:$4 sm:$0xff]  }
0x1b8b   :  { %v13712_v57 = vld [vmem:[#allocation4 + $0xc8] ss:$16 sps:$4 sm:$0xff]  }
0x1b8c   :  { %12384 = vmatmul.mubr.bf16.vlgmr.msra.gmra.mrb[80].mxu0 %v7523_v34  ;;  %v13720_v34 = vld [vmem:[#allocation4 + $0xec] ss:$16 sps:$4 sm:$0xff]   ;;  %v13730_v8 = vld [vmem:[#allocation4 + $0x128] ss:$16 sps:$4 sm:$0xff]  }
0x1b8d   :  { %8188 = vmatprep.mubr.bf16.mxu0 %v15273_v28  ;;  %8157 = vmatpush1.bf16.msra.mxu0 %v13673_v61  ;;  %v13724_v61 = vld [vmem:[#allocation4 + $0x108] ss:$16 sps:$4 sm:$0xff]  }
0x1b8e   :  { %8158 = vmatprep.subr.bf16.mxu0 %v13681_v2  ;;  %v13738_v2 = vld [vmem:[#allocation4 + $0x14c] ss:$16 sps:$4 sm:$0xff]  }
0x1b91   :  { %8159 = vmatpush1.bf16.msra.mxu0 %v13679_v4  ;;  %v13736_v4 = vld [vmem:[#allocation4 + $0x148] ss:$16 sps:$4 sm:$0xff]  }
0x1b92   :  { %8160 = vmatprep.subr.bf16.mxu0 %v13687_v5  ;;  %v13744_v5 = vld [vmem:[#allocation4 + $0x16c] ss:$16 sps:$4 sm:$0xff]  }
0x1b95   :  { %8161 = vmatpush1.bf16.msra.mxu0 %v13685_v6  ;;  %v13742_v6 = vld [vmem:[#allocation4 + $0x168] ss:$16 sps:$4 sm:$0xff]  }
0x1b96   :  { %8162 = vmatprep.subr.bf16.mxu0 %v13693_v17  ;;  %v13750_v17 = vld [vmem:[#allocation4 + $0x18c] ss:$16 sps:$4 sm:$0xff]  }
0x1b99   :  { %8163 = vmatpush1.bf16.msra.mxu0 %v13691_v9  ;;  %v13748_v9 = vld [vmem:[#allocation4 + $0x188] ss:$16 sps:$4 sm:$0xff]  }
0x1b9a   :  { %8164 = vmatprep.subr.bf16.mxu0 %v13699_v40  ;;  %v13756_v40 = vld [vmem:[#allocation4 + $0x1ac] ss:$16 sps:$4 sm:$0xff]  }
0x1b9d   :  { %8165 = vmatpush1.bf16.msra.mxu0 %v13697_v10  ;;  %v13754_v10 = vld [vmem:[#allocation4 + $0x1a8] ss:$16 sps:$4 sm:$0xff]  }
0x1b9e   :  { %8166 = vmatprep.subr.bf16.mxu0 %v13705_v48  ;;  %v13762_v48 = vld [vmem:[#allocation4 + $0x1cc] ss:$16 sps:$4 sm:$0xff]  }
0x1ba1   :  { %8167 = vmatpush1.bf16.msra.mxu0 %v13703_v14  ;;  %v13760_v14 = vld [vmem:[#allocation4 + $0x1c8] ss:$16 sps:$4 sm:$0xff]  }
0x1ba2   :  { %8168 = vmatprep.subr.bf16.mxu0 %v13711_v27  ;;  %v13765_v27 = vld [vmem:[#allocation4 + $0x1e4] ss:$16 sps:$4 sm:$0xff]  }
0x1ba5   :  { %8169 = vmatpush1.bf16.msra.mxu0 %v13709_v15  ;;  %v13768_v15 = vld [vmem:[#allocation4 + $0x1ec] ss:$16 sps:$4 sm:$0xff]  }
0x1ba6   :  { %8170 = vmatprep.subr.bf16.mxu0 %v13717_v18  ;;  %v13763_v18 = vld [vmem:[#allocation4 + $0x1e0] ss:$16 sps:$4 sm:$0xff]  }
0x1ba9   :  { %8171 = vmatpush1.bf16.msra.mxu0 %v13715_v19  ;;  %v13766_v19 = vld [vmem:[#allocation4 + $0x1e8] ss:$16 sps:$4 sm:$0xff]  }
0x1baa   :  { %8172 = vmatprep.subr.bf16.mxu0 %v13723_v20  ;;  %v13771_v20 = vld [vmem:[#allocation4 + $0x204] ss:$16 sps:$4 sm:$0xff]  }
0x1bad   :  { %8173 = vmatpush1.bf16.msra.mxu0 %v13721_v23  ;;  %v13774_v23 = vld [vmem:[#allocation4 + $0x20c] ss:$16 sps:$4 sm:$0xff]  }
0x1bae   :  { %8174 = vmatprep.subr.bf16.mxu0 %v13729_v30  ;;  %v11378_v30 = vld [vmem:[%s15671_s5] ss:$0 sm:$0xff] }
0x1bb1   :  { %8175 = vmatpush1.bf16.msra.mxu0 %v13727_v24 }
0x1bb2   :  { %8176 = vmatprep.subr.bf16.mxu0 %v13735_v55 }
0x1bb5   :  { %8177 = vmatpush1.bf16.msra.mxu0 %v13733_v26 }
0x1bb6   :  { %8178 = vmatprep.subr.bf16.mxu0 %v13741_v62 }
0x1bb9   :  { %8179 = vmatpush1.bf16.msra.mxu0 %v13739_v37 }
0x1bba   :  { %8180 = vmatprep.subr.bf16.mxu0 %v13747_v39 }
0x1bbd   :  { %8181 = vmatpush1.bf16.msra.mxu0 %v13745_v29 }
0x1bbe   :  { %8182 = vmatprep.subr.bf16.mxu0 %v13753_v31  ;;  %v13769_v31 = vld [vmem:[#allocation4 + $0x200] ss:$16 sps:$4 sm:$0xff]  }
0x1bc1   :  { %8183 = vmatpush1.bf16.msra.mxu0 %v13751_v32  ;;  %v13772_v32 = vld [vmem:[#allocation4 + $0x208] ss:$16 sps:$4 sm:$0xff]  }
0x1bc2   :  { %8184 = vmatprep.subr.bf16.mxu0 %v13759_v33  ;;  %v13777_v33 = vld [vmem:[#allocation4 + $0x224] ss:$16 sps:$4 sm:$0xff]  }
0x1bc5   :  { %8185 = vmatpush1.bf16.msra.mxu0 %v13757_v35  ;;  %v13780_v35 = vld [vmem:[#allocation4 + $0x22c] ss:$16 sps:$4 sm:$0xff]  }
0x1bc6   :  { %8186 = vmatprep.subr.bf16.mxu0 %v13765_v27  ;;  %v13837_v27 = vld [vmem:[#allocation4 + $0x364] ss:$16 sps:$4 sm:$0xff]  }
0x1bc9   :  { %8187 = vmatpush1.bf16.msra.mxu0 %v13763_v18  ;;  %v13835_v18 = vld [vmem:[#allocation4 + $0x360] ss:$16 sps:$4 sm:$0xff]  }
0x1bca   :  { %8669 = vmatprep.subr.bf16.mxu0 %v13771_v20  ;;  %v13841_v20 = vld [vmem:[#allocation4 + $0x380] ss:$16 sps:$4 sm:$0xff]  }
0x1c5f   :  { %v7629_v36 = vpop.f32.mrb[80].mxu0 }
0x1c60   :  { %v7630_v7 = vadd.f32 %v11369_v42, %v7629_v36  ;;  %v12385_v38 = vpop.f32.mrb[81].mxu0  ;;  %v13775_v42 = vld [vmem:[#allocation4 + $0x220] ss:$16 sps:$4 sm:$0xff]   ;;  %v13778_v36 = vld [vmem:[#allocation4 + $0x228] ss:$16 sps:$4 sm:$0xff]  }
0x1c61   :  { %v7632_v13 = vpop.f32.mrb[82].mxu0  ;;  %v13786_v38 = vld [vmem:[#allocation4 + $0x24c] ss:$16 sps:$4 sm:$0xff]  }
0x1c62   :  { %v7635_v52 = vmax.f32 %v7630_v7, 0.0  ;;  %v12386_v54 = vpop.f32.mrb[83].mxu0  ;;  %v13783_v7 = vld [vmem:[#allocation4 + $0x244] ss:$16 sps:$4 sm:$0xff]   ;;  %v13781_v13 = vld [vmem:[#allocation4 + $0x240] ss:$16 sps:$4 sm:$0xff]  }
0x1c63   :  { %v13789_v54 = vld [vmem:[#allocation4 + $0x264] ss:$16 sps:$4 sm:$0xff]  }
0x1c64   :  { %v7636_v43 = vpack.c.bf16 %v7635_v52, %v7635_v52  ;;  %v13784_v52 = vld [vmem:[#allocation4 + $0x248] ss:$16 sps:$4 sm:$0xff]  }
0x1c66   :  { %12404 = vmatmul.mubr.bf16.vlgmr.msra.gmra.mrb[80].mxu1 %v7636_v43  ;;  %v13787_v43 = vld [vmem:[#allocation4 + $0x260] ss:$16 sps:$4 sm:$0xff]  }
0x1c67   :  { %8229 = vmatprep.mubr.bf16.mxu1 %v15273_v28  ;;  %8198 = vmatpush1.bf16.msra.mxu1 %v13676_v41  ;;  %v13714_v28 = vld [vmem:[#allocation4 + $0xcc] ss:$16 sps:$4 sm:$0xff]  }
0x1c68   :  { %8199 = vmatprep.subr.bf16.mxu1 %v13684_v45  ;;  %v13792_v41 = vld [vmem:[#allocation4 + $0x26c] ss:$16 sps:$4 sm:$0xff]   ;;  %v13795_v45 = vld [vmem:[#allocation4 + $0x284] ss:$16 sps:$4 sm:$0xff]  }
0x1c6b   :  { %8200 = vmatpush1.bf16.msra.mxu1 %v13682_v47  ;;  %v13798_v47 = vld [vmem:[#allocation4 + $0x28c] ss:$16 sps:$4 sm:$0xff]  }
0x1c6c   :  { %8201 = vmatprep.subr.bf16.mxu1 %v13690_v49  ;;  %v13793_v49 = vld [vmem:[#allocation4 + $0x280] ss:$16 sps:$4 sm:$0xff]  }
0x1c6f   :  { %8202 = vmatpush1.bf16.msra.mxu1 %v13688_v58  ;;  %v13796_v58 = vld [vmem:[#allocation4 + $0x288] ss:$16 sps:$4 sm:$0xff]  }
0x1c70   :  { %8203 = vmatprep.subr.bf16.mxu1 %v13696_v50  ;;  %v13801_v50 = vld [vmem:[#allocation4 + $0x2a4] ss:$16 sps:$4 sm:$0xff]  }
0x1c73   :  { %8204 = vmatpush1.bf16.msra.mxu1 %v13694_v21  ;;  %v13804_v21 = vld [vmem:[#allocation4 + $0x2ac] ss:$16 sps:$4 sm:$0xff]  }
0x1c74   :  { %8205 = vmatprep.subr.bf16.mxu1 %v13702_v53  ;;  %v13799_v53 = vld [vmem:[#allocation4 + $0x2a0] ss:$16 sps:$4 sm:$0xff]  }
0x1c77   :  { %8206 = vmatpush1.bf16.msra.mxu1 %v13700_v12  ;;  %v13802_v12 = vld [vmem:[#allocation4 + $0x2a8] ss:$16 sps:$4 sm:$0xff]  }
0x1c78   :  { %8207 = vmatprep.subr.bf16.mxu1 %v13708_v3  ;;  %v13807_v3 = vld [vmem:[#allocation4 + $0x2c4] ss:$16 sps:$4 sm:$0xff]  }
0x1c7b   :  { %8208 = vmatpush1.bf16.msra.mxu1 %v13706_v56  ;;  %v13810_v56 = vld [vmem:[#allocation4 + $0x2cc] ss:$16 sps:$4 sm:$0xff]  }
0x1c7c   :  { %8209 = vmatprep.subr.bf16.mxu1 %v13714_v28  ;;  %v13805_v28 = vld [vmem:[#allocation4 + $0x2c0] ss:$16 sps:$4 sm:$0xff]  }
0x1c7f   :  { %8210 = vmatpush1.bf16.msra.mxu1 %v13712_v57  ;;  %v13808_v57 = vld [vmem:[#allocation4 + $0x2c8] ss:$16 sps:$4 sm:$0xff]  }
0x1c80   :  { %8211 = vmatprep.subr.bf16.mxu1 %v13720_v34  ;;  %v13813_v34 = vld [vmem:[#allocation4 + $0x2e4] ss:$16 sps:$4 sm:$0xff]  }
0x1c83   :  { %8212 = vmatpush1.bf16.msra.mxu1 %v13718_v60  ;;  %v13816_v60 = vld [vmem:[#allocation4 + $0x2ec] ss:$16 sps:$4 sm:$0xff]  }
0x1c84   :  { %8213 = vmatprep.subr.bf16.mxu1 %v13726_v11  ;;  %v13811_v11 = vld [vmem:[#allocation4 + $0x2e0] ss:$16 sps:$4 sm:$0xff]  }
0x1c87   :  { %8214 = vmatpush1.bf16.msra.mxu1 %v13724_v61  ;;  %v13814_v61 = vld [vmem:[#allocation4 + $0x2e8] ss:$16 sps:$4 sm:$0xff]  }
0x1c88   :  { %8215 = vmatprep.subr.bf16.mxu1 %v13732_v1  ;;  %v13819_v1 = vld [vmem:[#allocation4 + $0x304] ss:$16 sps:$4 sm:$0xff]  }
0x1c8b   :  { %8216 = vmatpush1.bf16.msra.mxu1 %v13730_v8  ;;  %v13822_v8 = vld [vmem:[#allocation4 + $0x30c] ss:$16 sps:$4 sm:$0xff]  }
0x1c8c   :  { %8217 = vmatprep.subr.bf16.mxu1 %v13738_v2  ;;  %v13817_v2 = vld [vmem:[#allocation4 + $0x300] ss:$16 sps:$4 sm:$0xff]  }
0x1c8f   :  { %8218 = vmatpush1.bf16.msra.mxu1 %v13736_v4  ;;  %v13820_v4 = vld [vmem:[#allocation4 + $0x308] ss:$16 sps:$4 sm:$0xff]  }
0x1c90   :  { %8219 = vmatprep.subr.bf16.mxu1 %v13744_v5  ;;  %v13825_v5 = vld [vmem:[#allocation4 + $0x324] ss:$16 sps:$4 sm:$0xff]  }
0x1c93   :  { %8220 = vmatpush1.bf16.msra.mxu1 %v13742_v6  ;;  %v13828_v6 = vld [vmem:[#allocation4 + $0x32c] ss:$16 sps:$4 sm:$0xff]  }
0x1c94   :  { %8221 = vmatprep.subr.bf16.mxu1 %v13750_v17  ;;  %v13823_v17 = vld [vmem:[#allocation4 + $0x320] ss:$16 sps:$4 sm:$0xff]  }
0x1c97   :  { %8222 = vmatpush1.bf16.msra.mxu1 %v13748_v9  ;;  %v13826_v9 = vld [vmem:[#allocation4 + $0x328] ss:$16 sps:$4 sm:$0xff]  }
0x1c98   :  { %8223 = vmatprep.subr.bf16.mxu1 %v13756_v40  ;;  %v13831_v40 = vld [vmem:[#allocation4 + $0x344] ss:$16 sps:$4 sm:$0xff]  }
0x1c9b   :  { %8224 = vmatpush1.bf16.msra.mxu1 %v13754_v10  ;;  %v13834_v10 = vld [vmem:[#allocation4 + $0x34c] ss:$16 sps:$4 sm:$0xff]  }
0x1c9c   :  { %8225 = vmatprep.subr.bf16.mxu1 %v13762_v48  ;;  %v13829_v48 = vld [vmem:[#allocation4 + $0x340] ss:$16 sps:$4 sm:$0xff]  }
0x1c9f   :  { %8226 = vmatpush1.bf16.msra.mxu1 %v13760_v14  ;;  %v13832_v14 = vld [vmem:[#allocation4 + $0x348] ss:$16 sps:$4 sm:$0xff]  }
0x1ca0   :  { %8227 = vmatprep.subr.bf16.mxu1 %v13768_v15  ;;  %v13840_v15 = vld [vmem:[#allocation4 + $0x36c] ss:$16 sps:$4 sm:$0xff]  }
0x1ca3   :  { %8228 = vmatpush1.bf16.msra.mxu1 %v13766_v19  ;;  %v13838_v19 = vld [vmem:[#allocation4 + $0x368] ss:$16 sps:$4 sm:$0xff]  }
0x1ca4   :  { %8710 = vmatprep.subr.bf16.mxu1 %v13774_v23  ;;  %v13843_v23 = vld [vmem:[#allocation4 + $0x384] ss:$16 sps:$4 sm:$0xff]  }
0x1d39   :  { %v7742_v24 = vpop.f32.mrb[80].mxu1 }
0x1d3a   :  { %v7743_v55 = vadd.f32 %v11378_v30, %v7742_v24  ;;  %v12405_v26 = vpop.f32.mrb[81].mxu1  ;;  %v13844_v30 = vld [vmem:[#allocation4 + $0x388] ss:$16 sps:$4 sm:$0xff]   ;;  %v13846_v24 = vld [vmem:[#allocation4 + $0x38c] ss:$16 sps:$4 sm:$0xff]  }
0x1d3b   :  { %v7745_v62 = vpop.f32.mrb[82].mxu1  ;;  %v13852_v26 = vld [vmem:[#allocation4 + $0x3ac] ss:$16 sps:$4 sm:$0xff]  }
0x1d3c   :  { %v7748_v37 = vmax.f32 %v7743_v55, 0.0  ;;  %v12406_v39 = vpop.f32.mrb[83].mxu1  ;;  %v13849_v55 = vld [vmem:[#allocation4 + $0x3a4] ss:$16 sps:$4 sm:$0xff]   ;;  %v13847_v62 = vld [vmem:[#allocation4 + $0x3a0] ss:$16 sps:$4 sm:$0xff]  }
0x1d3d   :  { %v13855_v39 = vld [vmem:[#allocation4 + $0x3c4] ss:$16 sps:$4 sm:$0xff]  }
0x1d3e   :  { %v7749_v29 = vpack.c.bf16 %v7748_v37, %v7748_v37  ;;  %v13850_v37 = vld [vmem:[#allocation4 + $0x3a8] ss:$16 sps:$4 sm:$0xff]  }
0x1d40   :  { %8189 = vmatmul.mubr.bf16.vlgmr.msra.gmra.mrb[84].mxu0 %v7749_v29  ;;  %8230 = vmatmul.mubr.bf16.vlgmr.msra.gmra.mrb[84].mxu1 %v7749_v29  ;;  %v13858_v29 = vld [vmem:[#allocation4 + $0x3cc] ss:$16 sps:$4 sm:$0xff]  }
0x1d41   :  { %8701 = vmatprep.mubr.bf16.mxu0 %v15330_v22  ;;  %8742 = vmatprep.mubr.bf16.mxu1 %v15330_v22  ;;  %v13790_v22 = vld [vmem:[#allocation4 + $0x268] ss:$16 sps:$4 sm:$0xff]  }
0x1d42   :  { %8670 = vmatpush1.bf16.msra.mxu0 %v13769_v31  ;;  %8711 = vmatpush1.bf16.msra.mxu1 %v13772_v32  ;;  %v13853_v31 = vld [vmem:[#allocation4 + $0x3c0] ss:$16 sps:$4 sm:$0xff]   ;;  %v13856_v32 = vld [vmem:[#allocation4 + $0x3c8] ss:$16 sps:$4 sm:$0xff]  }
0x1d43   :  { %8671 = vmatprep.subr.bf16.mxu0 %v13777_v33  ;;  %8712 = vmatprep.subr.bf16.mxu1 %v13780_v35  ;;  %v13861_v33 = vld [vmem:[#allocation4 + $0x3e4] ss:$16 sps:$4 sm:$0xff]   ;;  %v13864_v35 = vld [vmem:[#allocation4 + $0x3ec] ss:$16 sps:$4 sm:$0xff]  }
0x1d46   :  { %8672 = vmatpush1.bf16.msra.mxu0 %v13775_v42  ;;  %8713 = vmatpush1.bf16.msra.mxu1 %v13778_v36  ;;  %v13859_v42 = vld [vmem:[#allocation4 + $0x3e0] ss:$16 sps:$4 sm:$0xff]   ;;  %v13862_v36 = vld [vmem:[#allocation4 + $0x3e8] ss:$16 sps:$4 sm:$0xff]  }
0x1d47   :  { %8673 = vmatprep.subr.bf16.mxu0 %v13783_v7  ;;  %8714 = vmatprep.subr.bf16.mxu1 %v13786_v38  ;;  %v7814_v7 = vld [vmem:[%s15673_s7] sm:$0xf] }
0x1d48   :  { %v7819_v38 = vrot.slane %v7814_v7, %v14580_v44 }
0x1d4a   :  { %8674 = vmatpush1.bf16.msra.mxu0 %v13781_v13  ;;  %8715 = vmatpush1.bf16.msra.mxu1 %v13784_v52  ;;  %v7823_v13 = vrot.slane %v7814_v7, %v14585_v46 }
0x1d4b   :  { %8675 = vmatprep.subr.bf16.mxu0 %v13789_v54  ;;  %8716 = vmatprep.subr.bf16.mxu1 %v13792_v41 }
0x1d4e   :  { %8676 = vmatpush1.bf16.msra.mxu0 %v13787_v43  ;;  %8717 = vmatpush1.bf16.msra.mxu1 %v13790_v22 }
0x1d4f   :  { %8677 = vmatprep.subr.bf16.mxu0 %v13795_v45  ;;  %8718 = vmatprep.subr.bf16.mxu1 %v13798_v47 }
0x1d52   :  { %8678 = vmatpush1.bf16.msra.mxu0 %v13793_v49  ;;  %8719 = vmatpush1.bf16.msra.mxu1 %v13796_v58 }
0x1d53   :  { %8679 = vmatprep.subr.bf16.mxu0 %v13801_v50  ;;  %8720 = vmatprep.subr.bf16.mxu1 %v13804_v21 }
0x1d56   :  { %8680 = vmatpush1.bf16.msra.mxu0 %v13799_v53  ;;  %8721 = vmatpush1.bf16.msra.mxu1 %v13802_v12  ;;  %v7831_v12 = vrot.slane %v7814_v7, %v14589_v51 }
0x1d57   :  { %8681 = vmatprep.subr.bf16.mxu0 %v13807_v3  ;;  %8722 = vmatprep.subr.bf16.mxu1 %v13810_v56  ;;  %v7827_v56 = vrot.slane %v7814_v7, %v14592_v63 }
0x1d5a   :  { %8682 = vmatpush1.bf16.msra.mxu0 %v13805_v28  ;;  %8723 = vmatpush1.bf16.msra.mxu1 %v13808_v57 }
0x1d5b   :  { %8683 = vmatprep.subr.bf16.mxu0 %v13813_v34  ;;  %8724 = vmatprep.subr.bf16.mxu1 %v13816_v60 }
0x1d5e   :  { %8684 = vmatpush1.bf16.msra.mxu0 %v13811_v11  ;;  %8725 = vmatpush1.bf16.msra.mxu1 %v13814_v61 }
0x1d5f   :  { %8685 = vmatprep.subr.bf16.mxu0 %v13819_v1  ;;  %8726 = vmatprep.subr.bf16.mxu1 %v13822_v8 }
0x1d62   :  { %8686 = vmatpush1.bf16.msra.mxu0 %v13817_v2  ;;  %8727 = vmatpush1.bf16.msra.mxu1 %v13820_v4 }
0x1d63   :  { %8687 = vmatprep.subr.bf16.mxu0 %v13825_v5  ;;  %8728 = vmatprep.subr.bf16.mxu1 %v13828_v6 }
0x1d66   :  { %8688 = vmatpush1.bf16.msra.mxu0 %v13823_v17  ;;  %8729 = vmatpush1.bf16.msra.mxu1 %v13826_v9 }
0x1d67   :  { %8689 = vmatprep.subr.bf16.mxu0 %v13831_v40  ;;  %8730 = vmatprep.subr.bf16.mxu1 %v13834_v10 }
0x1d6a   :  { %8690 = vmatpush1.bf16.msra.mxu0 %v13829_v48  ;;  %8731 = vmatpush1.bf16.msra.mxu1 %v13832_v14 }
0x1d6b   :  { %8691 = vmatprep.subr.bf16.mxu0 %v13837_v27  ;;  %8732 = vmatprep.subr.bf16.mxu1 %v13840_v15  ;;  %v13866_v27 = vld [vmem:[%s15674_s8 + $0x8] sm:$0xff]   ;;  %v13867_v15 = vld [vmem:[%s15674_s8 + $0x10] sm:$0xff]  }
0x1d6e   :  { %8692 = vmatpush1.bf16.msra.mxu0 %v13835_v18  ;;  %8733 = vmatpush1.bf16.msra.mxu1 %v13838_v19  ;;  %v13868_v18 = vld [vmem:[%s15674_s8 + $0x18] sm:$0xff]   ;;  %v13869_v19 = vld [vmem:[%s15674_s8 + $0x20] sm:$0xff]  }
0x1d6f   :  { %8693 = vmatprep.subr.bf16.mxu0 %v13843_v23  ;;  %8734 = vmatprep.subr.bf16.mxu1 %v13846_v24  ;;  %v13871_v23 = vld [vmem:[%s15674_s8 + $0x30] sm:$0xff]   ;;  %v13873_v24 = vld [vmem:[#allocation6] sm:$0xff]  }
0x1d72   :  { %8694 = vmatpush1.bf16.msra.mxu0 %v13841_v20  ;;  %8735 = vmatpush1.bf16.msra.mxu1 %v13844_v30  ;;  %v13870_v20 = vld [vmem:[%s15674_s8 + $0x28] sm:$0xff]   ;;  %v13872_v30 = vld [vmem:[%s15674_s8 + $0x38] sm:$0xff]  }
0x1d73   :  { %8695 = vmatprep.subr.bf16.mxu0 %v13849_v55  ;;  %8736 = vmatprep.subr.bf16.mxu1 %v13852_v26  ;;  %v13874_v55 = vld [vmem:[#allocation6 + $0x8] sm:$0xff]   ;;  %v13875_v26 = vld [vmem:[#allocation6 + $0x10] sm:$0xff]  }
0x1d76   :  { %8696 = vmatpush1.bf16.msra.mxu0 %v13847_v62  ;;  %8737 = vmatpush1.bf16.msra.mxu1 %v13850_v37  ;;  %v13876_v62 = vld [vmem:[#allocation6 + $0x18] sm:$0xff]   ;;  %v13877_v37 = vld [vmem:[#allocation6 + $0x20] sm:$0xff]  }
0x1d77   :  { %8697 = vmatprep.subr.bf16.mxu0 %v13855_v39  ;;  %8738 = vmatprep.subr.bf16.mxu1 %v13858_v29  ;;  %v13878_v39 = vld [vmem:[#allocation6 + $0x28] sm:$0xff]   ;;  %v11454_v29 = vld [vmem:[%s15673_s7 + $0x4] sm:$0xf] }
0x1d7a   :  { %8698 = vmatpush1.bf16.msra.mxu0 %v13853_v31  ;;  %8739 = vmatpush1.bf16.msra.mxu1 %v13856_v32  ;;  %v8332_v31 = vrot.slane %v11454_v29, %v14580_v44  ;;  %v8336_v32 = vrot.slane %v11454_v29, %v14585_v46 }
0x1d7b   :  { %8699 = vmatprep.subr.bf16.mxu0 %v13861_v33  ;;  %8740 = vmatprep.subr.bf16.mxu1 %v13864_v35 }
0x1d7e   :  { %8700 = vmatpush1.bf16.msra.mxu0 %v13859_v42  ;;  %8741 = vmatpush1.bf16.msra.mxu1 %v13862_v36 }
0x1d7f   :  { %12407 = vmatprep.subr.bf16.mxu0 %v14399_v0  ;;  %12427 = vmatprep.subr.bf16.mxu1 %v14399_v0 }
0x1e13   :  { %v8190_v52 = vpop.f32.mrb[84].mxu0  ;;  %v8231_v54 = vpop.f32.mrb[84].mxu1 }
0x1e14   :  { %v8191_v41 = vadd.f32 %v8190_v52, %v7819_v38  ;;  %v8192_v43 = vpop.f32.mrb[85].mxu0  ;;  %v8233_v22 = vpop.f32.mrb[85].mxu1  ;;  %v8232_v57 = vadd.f32 %v8231_v54, %v7827_v56 }
0x1e15   :  { %v8193_v45 = vadd.f32 %v8192_v43, %v7823_v13  ;;  %v8194_v47 = vpop.f32.mrb[86].mxu0  ;;  %v8235_v49 = vpop.f32.mrb[86].mxu1  ;;  %v8234_v3 = vadd.f32 %v8233_v22, %v7831_v12 }
0x1e16   :  { %v11451_v58 = vmul.f32 -1.442695, %v8191_v41  ;;  %v8195_v50 = vpop.f32.mrb[87].mxu0  ;;  %v8236_v21 = vpop.f32.mrb[87].mxu1  ;;  %v8340_v49 = vrot.slane %v11454_v29, %v14592_v63 }
0x1e17   :  { %v11452_v53 = vmul.f32 -1.442695, %v8193_v45  ;;  %v11453_v28 = vmul.f32 -1.442695, %v8234_v3  ;;  %v8344_v45 = vrot.slane %v11454_v29, %v14589_v51  ;;  %v13891_v29 = vld [vmem:[%s15670_s4 + $0x10] sm:$0xff]  }
0x1e18   :  { %14265 = vpow2.f32 %v11451_v58 }
0x1e19   :  { %14267 = vpow2.f32 %v11452_v53 }
0x1e1a   :  { %14269 = vpow2.f32 %v11453_v28 }
0x1e1b   :  { %14271 = vtanh.f32 %v8232_v57 }
0x1e22   :  { %v14266_v34 = vpop.eup %14265 }
0x1e23   :  { %v14268_v60 = vpop.eup %14267  ;;  %v8241_v11 = vadd.f32 1.0, %v14266_v34 }
0x1e24   :  { %v8247_v61 = vadd.f32 1.0, %v14268_v60  ;;  %v14270_v1 = vpop.eup %14269 }
0x1e25   :  { %14273 = vrcp.f32 %v8241_v11  ;;  %v14272_v8 = vpop.eup %14271  ;;  %v8254_v6 = vadd.f32 1.0, %v14270_v1 }
0x1e26   :  { %14275 = vrcp.f32 %v8247_v61 }
0x1e27   :  { %14277 = vrcp.f32 %v8254_v6  ;;  %v13879_v6 = vld [vmem:[#allocation6 + $0x30] sm:$0xff]  }
0x1e2f   :  { %v14274_v2 = vpop.eup %14273 }
0x1e30   :  { %v14276_v4 = vpop.eup %14275  ;;  %v8258_v5 = vmul.f32 %v14274_v2, %v14272_v8 }
0x1e31   :  { %v8257_v17 = vmul.f32 %v14276_v4, %v15270_v25  ;;  %v14278_v40 = vpop.eup %14277  ;;  %v13865_v25 = vld [vmem:[%s15674_s8] sm:$0xff]  }
0x1e33   :  { %v15438_v9 = vadd.f32 %v8258_v5, %v8257_v17  ;;  %v13881_v17 = vld [vmem:[%s15668_s2] sm:$0xff]  }
0x1e35   :  { %14279 = vtanh.f32 %v15438_v9 }
0x1e3f   :  { %v14280_v10 = vpop.eup %14279 }
0x1e40   :  { %v8261_v48 = vmul.f32 %v14280_v10, %v14278_v40  ;;  %v13882_v40 = vld [vmem:[%s15668_s2 + $0x8] sm:$0xff]   ;;  %v13883_v10 = vld [vmem:[%s15668_s2 + $0x10] sm:$0xff]  }
0x1e42   :  { %v15441_v14 = vpack.c.bf16 %v8261_v48, %v8261_v48  ;;  %v13884_v48 = vld [vmem:[%s15668_s2 + $0x18] sm:$0xff]  }
0x1e44   :  { %8702 = vmatmul.mubr.bf16.vlgmr.msra.gmra.mrb[88].mxu0 %v15441_v14  ;;  %8743 = vmatmul.mubr.bf16.vlgmr.msra.gmra.mrb[88].mxu1 %v15441_v14 }
0x1e45   :  { %12423 = vmatprep.mubr.msk.bf16.mxu0 %vm14400_vm0, %v14399_v0  ;;  %12443 = vmatprep.mubr.msk.bf16.mxu1 %vm14400_vm0, %v14399_v0 }
0x1e46   :  { %12408 = vmatpush3.bf16.msra.mxu0 %v13865_v25  ;;  %12428 = vmatpush3.bf16.msra.mxu1 %v13873_v24  ;;  %v13885_v25 = vld [vmem:[%s15668_s2 + $0x20] sm:$0xff]  }
0x1e47   :  { %12409 = vmatprep.subr.bf16.mxu0 %v14399_v0  ;;  %12429 = vmatprep.subr.bf16.mxu1 %v14399_v0 }
0x1e4a   :  { %12410 = vmatpush3.bf16.msra.mxu0 %v13866_v27  ;;  %12430 = vmatpush3.bf16.msra.mxu1 %v13874_v55  ;;  %v13886_v27 = vld [vmem:[%s15668_s2 + $0x28] sm:$0xff]  }
0x1e4b   :  { %12411 = vmatprep.subr.bf16.mxu0 %v14399_v0  ;;  %12431 = vmatprep.subr.bf16.mxu1 %v14399_v0 }
0x1e4e   :  { %12412 = vmatpush3.bf16.msra.mxu0 %v13867_v15  ;;  %12432 = vmatpush3.bf16.msra.mxu1 %v13875_v26  ;;  %v11522_v15 = vld [vmem:[%s15675_s9] ss:$0 sm:$0xff]  ;;  %v13887_v26 = vld [vmem:[%s15668_s2 + $0x30] sm:$0xff]  }
0x1e4f   :  { %12413 = vmatprep.subr.bf16.mxu0 %v14399_v0  ;;  %12433 = vmatprep.subr.bf16.mxu1 %v14399_v0 }
0x1e52   :  { %12414 = vmatpush3.bf16.msra.mxu0 %v13868_v18  ;;  %12434 = vmatpush3.bf16.msra.mxu1 %v13876_v62  ;;  %v13888_v62 = vld [vmem:[%s15668_s2 + $0x38] sm:$0xff]  }
0x1e53   :  { %12415 = vmatprep.subr.bf16.mxu0 %v14399_v0  ;;  %12435 = vmatprep.subr.bf16.mxu1 %v14399_v0 }
0x1e56   :  { %12416 = vmatpush3.bf16.msra.mxu0 %v13869_v19  ;;  %12436 = vmatpush3.bf16.msra.mxu1 %v13877_v37  ;;  %v13889_v37 = vld [vmem:[%s15670_s4] sm:$0xff]  }
0x1e57   :  { %12417 = vmatprep.subr.bf16.mxu0 %v14399_v0  ;;  %12437 = vmatprep.subr.bf16.mxu1 %v14399_v0 }
0x1e5a   :  { %12418 = vmatpush3.bf16.msra.mxu0 %v13870_v20  ;;  %12438 = vmatpush3.bf16.msra.mxu1 %v13878_v39  ;;  %v13890_v39 = vld [vmem:[%s15670_s4 + $0x8] sm:$0xff]  }
0x1e5b   :  { %12419 = vmatprep.subr.bf16.mxu0 %v14399_v0  ;;  %12439 = vmatprep.subr.bf16.mxu1 %v14399_v0 }
0x1e5e   :  { %12420 = vmatpush3.bf16.msra.mxu0 %v13871_v23  ;;  %12440 = vmatpush3.bf16.msra.mxu1 %v13879_v6  ;;  %v13945_v6 = vld [vmem:[#allocation4 + $0x100] ss:$16 sps:$4 sm:$0xff]  }
0x1e5f   :  { %12421 = vmatprep.subr.bf16.mxu0 %v14399_v0  ;;  %12441 = vmatprep.subr.bf16.mxu1 %v14399_v0 }
0x1e62   :  { %12422 = vmatpush3.bf16.msra.mxu0 %v13872_v30 }
0x1e63   :  { %12447 = vmatprep.subr.bf16.mxu0 %v14399_v0 }
0x1f17   :  { %v8703_v33 = vpop.f32.mrb[88].mxu0  ;;  %v8744_v35 = vpop.f32.mrb[88].mxu1 }
0x1f18   :  { %v8704_v42 = vadd.f32 %v8703_v33, %v8332_v31  ;;  %v8705_v36 = vpop.f32.mrb[89].mxu0  ;;  %v8746_v7 = vpop.f32.mrb[89].mxu1  ;;  %v8745_v50 = vadd.f32 %v8744_v35, %v8340_v49  ;;  %v13892_v31 = vld [vmem:[%s15670_s4 + $0x18] sm:$0xff]   ;;  %v13894_v33 = vld [vmem:[%s15670_s4 + $0x28] sm:$0xff]   ;;  %v11531_v35 = vld [vmem:[%s15677_s11] ss:$0 sm:$0xff] }
0x1f19   :  { %v8706_v38 = vadd.f32 %v8705_v36, %v8336_v32  ;;  %v8707_v13 = vpop.f32.mrb[90].mxu0  ;;  %v8748_v52 = vpop.f32.mrb[90].mxu1  ;;  %v8747_v47 = vadd.f32 %v8746_v7, %v8344_v45  ;;  %v13893_v32 = vld [vmem:[%s15670_s4 + $0x20] sm:$0xff]   ;;  %v13895_v45 = vld [vmem:[%s15670_s4 + $0x30] sm:$0xff]  }
0x1f1a   :  { %v11519_v54 = vmul.f32 -1.442695, %v8704_v42  ;;  %v8708_v41 = vpop.f32.mrb[91].mxu0  ;;  %v8749_v43 = vpop.f32.mrb[91].mxu1  ;;  %v9008_v42 = vstv %s9007_s17  ;;  %v11542_v13 = vld [vmem:[%s15667_s1 + $0x30] sm:$0xff] }
0x1f1b   :  { %v11520_v22 = vmul.f32 -1.442695, %v8706_v38  ;;  %v11521_v58 = vmul.f32 -1.442695, %v8747_v47  ;;  %vm9009_vm8 = vcmp.eq.s32.totalorder %v9008_v42, 1 }
0x1f1c   :  { %14281 = vpow2.f32 %v11519_v54  ;;  %v13897_v47 = vld [vmem:[#allocation4] ss:$16 sps:$4 sm:$0xff]   ;;  %v13899_v49 = vld [vmem:[#allocation4 + $0x4] ss:$16 sps:$4 sm:$0xff]   ;;  %v13912_v42 = vld [vmem:[#allocation4 + $0x48] ss:$16 sps:$4 sm:$0xff]  }
0x1f1d   :  { %14283 = vpow2.f32 %v11520_v22 }
0x1f1e   :  { %14285 = vpow2.f32 %v11521_v58  ;;  %v13902_v58 = vld [vmem:[#allocation4 + $0xc] ss:$16 sps:$4 sm:$0xff]  }
0x1f1f   :  { %14287 = vtanh.f32 %v8745_v50  ;;  %v13905_v50 = vld [vmem:[#allocation4 + $0x24] ss:$16 sps:$4 sm:$0xff]  }
0x1f26   :  { %v14282_v21 = vpop.eup %14281 }
0x1f27   :  { %v14284_v53 = vpop.eup %14283  ;;  %v8754_v12 = vadd.f32 1.0, %v14282_v21  ;;  %v13903_v21 = vld [vmem:[#allocation4 + $0x20] ss:$16 sps:$4 sm:$0xff]  }
0x1f28   :  { %v8760_v3 = vadd.f32 1.0, %v14284_v53  ;;  %v14286_v56 = vpop.eup %14285  ;;  %v13911_v53 = vld [vmem:[#allocation4 + $0x44] ss:$16 sps:$4 sm:$0xff]  }
0x1f29   :  { %14289 = vrcp.f32 %v8754_v12  ;;  %v14288_v28 = vpop.eup %14287  ;;  %v8767_v11 = vadd.f32 1.0, %v14286_v56  ;;  %v13909_v12 = vld [vmem:[#allocation4 + $0x40] ss:$16 sps:$4 sm:$0xff]  }
0x1f2a   :  { %14291 = vrcp.f32 %v8760_v3  ;;  %v13917_v3 = vld [vmem:[#allocation4 + $0x64] ss:$16 sps:$4 sm:$0xff]   ;;  %v13915_v56 = vld [vmem:[#allocation4 + $0x60] ss:$16 sps:$4 sm:$0xff]  }
0x1f2b   :  { %14293 = vrcp.f32 %v8767_v11  ;;  %v13935_v11 = vld [vmem:[#allocation4 + $0xc4] ss:$16 sps:$4 sm:$0xff]  }
0x1f33   :  { %v14290_v57 = vpop.eup %14289 }
0x1f34   :  { %v14292_v34 = vpop.eup %14291  ;;  %v8771_v60 = vmul.f32 %v14290_v57, %v14288_v28  ;;  %v13923_v28 = vld [vmem:[#allocation4 + $0x84] ss:$16 sps:$4 sm:$0xff]   ;;  %v13921_v57 = vld [vmem:[#allocation4 + $0x80] ss:$16 sps:$4 sm:$0xff]  }
0x1f35   :  { %v8770_v61 = vmul.f32 %v14292_v34, %v15327_v16  ;;  %v14294_v8 = vpop.eup %14293  ;;  %v13880_v16 = vld [vmem:[#allocation6 + $0x38] sm:$0xff]   ;;  %v13929_v34 = vld [vmem:[#allocation4 + $0xa4] ss:$16 sps:$4 sm:$0xff]  }
0x1f36   :  { %12442 = vmatpush3.bf16.msra.mxu1 %v13880_v16  ;;  %v13953_v16 = vld [vmem:[#allocation4 + $0x124] ss:$16 sps:$4 sm:$0xff]  }
0x1f37   :  { %v15495_v1 = vadd.f32 %v8771_v60, %v8770_v61  ;;  %12467 = vmatprep.subr.bf16.mxu1 %v14399_v0  ;;  %v13927_v60 = vld [vmem:[#allocation4 + $0xa0] ss:$16 sps:$4 sm:$0xff]  }
0x1f38   :  { %v13933_v61 = vld [vmem:[#allocation4 + $0xc0] ss:$16 sps:$4 sm:$0xff]  }
0x1f39   :  { %14295 = vtanh.f32 %v15495_v1 }
0x1f43   :  { %v14296_v2 = vpop.eup %14295 }
0x1f44   :  { %v8774_v4 = vmul.f32 %v14296_v2, %v14294_v8  ;;  %v13941_v8 = vld [vmem:[#allocation4 + $0xe4] ss:$16 sps:$4 sm:$0xff]   ;;  %v13939_v2 = vld [vmem:[#allocation4 + $0xe0] ss:$16 sps:$4 sm:$0xff]  }
0x1f46   :  { %v15498_v5 = vpack.c.bf16 %v8774_v4, %v8774_v4  ;;  %v13947_v4 = vld [vmem:[#allocation4 + $0x104] ss:$16 sps:$4 sm:$0xff]  }
0x1f48   :  { %12424 = vmatmul.mubr.bf16.vlgmr.msra.gmra.mrb[92].mxu0 %v15498_v5 }
0x1f49   :  { %12463 = vmatprep.mubr.msk.bf16.mxu0 %vm14400_vm0, %v14399_v0  ;;  %12448 = vmatpush3.bf16.msra.mxu0 %v13881_v17  ;;  %v13951_v17 = vld [vmem:[#allocation4 + $0x120] ss:$16 sps:$4 sm:$0xff]  }
0x1f4a   :  { %12449 = vmatprep.subr.bf16.mxu0 %v14399_v0 }
0x1f4d   :  { %12450 = vmatpush3.bf16.msra.mxu0 %v13882_v40  ;;  %v13959_v40 = vld [vmem:[#allocation4 + $0x144] ss:$16 sps:$4 sm:$0xff]  }
0x1f4e   :  { %12451 = vmatprep.subr.bf16.mxu0 %v14399_v0 }
0x1f51   :  { %12452 = vmatpush3.bf16.msra.mxu0 %v13883_v10  ;;  %v13957_v10 = vld [vmem:[#allocation4 + $0x140] ss:$16 sps:$4 sm:$0xff]  }
0x1f52   :  { %12453 = vmatprep.subr.bf16.mxu0 %v14399_v0 }
0x1f55   :  { %12454 = vmatpush3.bf16.msra.mxu0 %v13884_v48  ;;  %v13965_v48 = vld [vmem:[#allocation4 + $0x164] ss:$16 sps:$4 sm:$0xff]  }
0x1f56   :  { %12455 = vmatprep.subr.bf16.mxu0 %v14399_v0 }
0x1f59   :  { %12456 = vmatpush3.bf16.msra.mxu0 %v13885_v25  ;;  %v13963_v25 = vld [vmem:[#allocation4 + $0x160] ss:$16 sps:$4 sm:$0xff]  }
0x1f5a   :  { %12457 = vmatprep.subr.bf16.mxu0 %v14399_v0 }
0x1f5d   :  { %12458 = vmatpush3.bf16.msra.mxu0 %v13886_v27  ;;  %v13971_v27 = vld [vmem:[#allocation4 + $0x184] ss:$16 sps:$4 sm:$0xff]  }
0x1f5e   :  { %12459 = vmatprep.subr.bf16.mxu0 %v14399_v0 }
0x1f61   :  { %12460 = vmatpush3.bf16.msra.mxu0 %v13887_v26 }
0x1f62   :  { %12461 = vmatprep.subr.bf16.mxu0 %v14399_v0 }
0x1f65   :  { %12462 = vmatpush3.bf16.msra.mxu0 %v13888_v62 }
0x1f66   :  { %9644 = vmatprep.subr.bf16.mxu0 %v13899_v49  ;;  %v13956_v49 = vld [vmem:[#allocation4 + $0x12c] ss:$16 sps:$4 sm:$0xff]  }
0x201b   :  { %v8881_v18 = vpop.f32.mrb[92].mxu0 }
0x201c   :  { %v8882_v19 = vadd.f32 %v11522_v15, %v8881_v18  ;;  %v12425_v20 = vpop.f32.mrb[93].mxu0  ;;  %v13969_v15 = vld [vmem:[#allocation4 + $0x180] ss:$16 sps:$4 sm:$0xff]   ;;  %v13977_v18 = vld [vmem:[#allocation4 + $0x1a4] ss:$16 sps:$4 sm:$0xff]  }
0x201d   :  { %v8884_v23 = vpop.f32.mrb[94].mxu0  ;;  %v13983_v20 = vld [vmem:[#allocation4 + $0x1c4] ss:$16 sps:$4 sm:$0xff]  }
0x201e   :  { %v8887_v30 = vmax.f32 %v8882_v19, 0.0  ;;  %v12426_v24 = vpop.f32.mrb[95].mxu0  ;;  %v13975_v19 = vld [vmem:[#allocation4 + $0x1a0] ss:$16 sps:$4 sm:$0xff]  }
0x201f   :  { %v13981_v23 = vld [vmem:[#allocation4 + $0x1c0] ss:$16 sps:$4 sm:$0xff]  }
0x2020   :  { %v8888_v55 = vpack.c.bf16 %v8887_v30, %v8887_v30  ;;  %v11543_v30 = vld [vmem:[%s15669_s3] ss:$0 sm:$0xff] }
0x2022   :  { %12444 = vmatmul.mubr.bf16.vlgmr.msra.gmra.mrb[92].mxu1 %v8888_v55 }
0x2023   :  { %12483 = vmatprep.mubr.msk.bf16.mxu1 %vm14400_vm0, %v14399_v0  ;;  %12468 = vmatpush3.bf16.msra.mxu1 %v13889_v37 }
0x2024   :  { %12469 = vmatprep.subr.bf16.mxu1 %v14399_v0 }
0x2027   :  { %12470 = vmatpush3.bf16.msra.mxu1 %v13890_v39 }
0x2028   :  { %12471 = vmatprep.subr.bf16.mxu1 %v14399_v0 }
0x202b   :  { %12472 = vmatpush3.bf16.msra.mxu1 %v13891_v29  ;;  %v13900_v29 = vld [vmem:[#allocation4 + $0x8] ss:$16 sps:$4 sm:$0xff]  }
0x202c   :  { %12473 = vmatprep.subr.bf16.mxu1 %v14399_v0 }
0x202f   :  { %12474 = vmatpush3.bf16.msra.mxu1 %v13892_v31 }
0x2030   :  { %12475 = vmatprep.subr.bf16.mxu1 %v14399_v0 }
0x2033   :  { %12476 = vmatpush3.bf16.msra.mxu1 %v13893_v32  ;;  %v13908_v32 = vld [vmem:[#allocation4 + $0x2c] ss:$16 sps:$4 sm:$0xff]  }
0x2034   :  { %12477 = vmatprep.subr.bf16.mxu1 %v14399_v0 }
0x2037   :  { %12478 = vmatpush3.bf16.msra.mxu1 %v13894_v33  ;;  %v13906_v33 = vld [vmem:[#allocation4 + $0x28] ss:$16 sps:$4 sm:$0xff]  }
0x2038   :  { %12479 = vmatprep.subr.bf16.mxu1 %v14399_v0 }
0x203b   :  { %12480 = vmatpush3.bf16.msra.mxu1 %v13895_v45  ;;  %v13942_v45 = vld [vmem:[#allocation4 + $0xe8] ss:$16 sps:$4 sm:$0xff]  }
0x203c   :  { %12481 = vmatprep.subr.bf16.mxu1 %v14399_v0 }
0x20f5   :  { %v8994_v36 = vpop.f32.mrb[92].mxu1 }
0x20f6   :  { %v8995_v7 = vadd.f32 %v11531_v35, %v8994_v36  ;;  %v12445_v38 = vpop.f32.mrb[93].mxu1  ;;  %v13914_v35 = vld [vmem:[#allocation4 + $0x4c] ss:$16 sps:$4 sm:$0xff]  }
0x20f7   :  { %v8997_v52 = vpop.f32.mrb[94].mxu1  ;;  %v13920_v36 = vld [vmem:[#allocation4 + $0x6c] ss:$16 sps:$4 sm:$0xff]  }
0x20f8   :  { %v9000_v54 = vadd.f32 %v8995_v7, %v15407_v59  ;;  %v12446_v41 = vpop.f32.mrb[95].mxu1  ;;  %v13896_v59 = vld [vmem:[%s15670_s4 + $0x38] sm:$0xff]  }
0x20f9   :  { %12482 = vmatpush3.bf16.msra.mxu1 %v13896_v59  ;;  %v13918_v7 = vld [vmem:[#allocation4 + $0x68] ss:$16 sps:$4 sm:$0xff]   ;;  %v13926_v38 = vld [vmem:[#allocation4 + $0x8c] ss:$16 sps:$4 sm:$0xff]  }
0x20fa   :  { %11540 = vst [vmem:[%s15678_s12 + $0x28] sm:$0xff] %v9000_v54  ;;  %v15575_v43 = vsel %vm9009_vm8, %v11542_v13, %v9000_v54  ;;  %9685 = vmatprep.subr.bf16.mxu1 %v13902_v58  ;;  %v13924_v13 = vld [vmem:[#allocation4 + $0x88] ss:$16 sps:$4 sm:$0xff]   ;;  %v13932_v52 = vld [vmem:[#allocation4 + $0xac] ss:$16 sps:$4 sm:$0xff]  }
0x20fb   :  { %v9011_v22 = vpack.c.bf16 %v15575_v43, %v15575_v43  ;;  %v13930_v54 = vld [vmem:[#allocation4 + $0xa8] ss:$16 sps:$4 sm:$0xff]   ;;  %v13950_v59 = vld [vmem:[#allocation4 + $0x10c] ss:$16 sps:$4 sm:$0xff]  }
0x20fc   :  { %v13936_v41 = vld [vmem:[#allocation4 + $0xc8] ss:$16 sps:$4 sm:$0xff]  }
0x20fd   :  { %12464 = vmatmul.mubr.bf16.vlgmr.msra.gmra.mrb[96].mxu0 %v9011_v22  ;;  %v13944_v22 = vld [vmem:[#allocation4 + $0xec] ss:$16 sps:$4 sm:$0xff]   ;;  %v13954_v58 = vld [vmem:[#allocation4 + $0x128] ss:$16 sps:$4 sm:$0xff]  }
0x20fe   :  { %9676 = vmatprep.mubr.bf16.mxu0 %v15441_v14  ;;  %9645 = vmatpush1.bf16.msra.mxu0 %v13897_v47  ;;  %v13948_v47 = vld [vmem:[#allocation4 + $0x108] ss:$16 sps:$4 sm:$0xff]  }
0x20ff   :  { %9646 = vmatprep.subr.bf16.mxu0 %v13905_v50  ;;  %v13962_v50 = vld [vmem:[#allocation4 + $0x14c] ss:$16 sps:$4 sm:$0xff]  }
0x2102   :  { %9647 = vmatpush1.bf16.msra.mxu0 %v13903_v21  ;;  %v13960_v21 = vld [vmem:[#allocation4 + $0x148] ss:$16 sps:$4 sm:$0xff]  }
0x2103   :  { %9648 = vmatprep.subr.bf16.mxu0 %v13911_v53  ;;  %v13968_v53 = vld [vmem:[#allocation4 + $0x16c] ss:$16 sps:$4 sm:$0xff]  }
0x2106   :  { %9649 = vmatpush1.bf16.msra.mxu0 %v13909_v12  ;;  %v13966_v12 = vld [vmem:[#allocation4 + $0x168] ss:$16 sps:$4 sm:$0xff]  }
0x2107   :  { %9650 = vmatprep.subr.bf16.mxu0 %v13917_v3  ;;  %v13974_v3 = vld [vmem:[#allocation4 + $0x18c] ss:$16 sps:$4 sm:$0xff]  }
0x210a   :  { %9651 = vmatpush1.bf16.msra.mxu0 %v13915_v56  ;;  %v13972_v56 = vld [vmem:[#allocation4 + $0x188] ss:$16 sps:$4 sm:$0xff]  }
0x210b   :  { %9652 = vmatprep.subr.bf16.mxu0 %v13923_v28  ;;  %v13980_v28 = vld [vmem:[#allocation4 + $0x1ac] ss:$16 sps:$4 sm:$0xff]  }
0x210e   :  { %9653 = vmatpush1.bf16.msra.mxu0 %v13921_v57  ;;  %v13978_v57 = vld [vmem:[#allocation4 + $0x1a8] ss:$16 sps:$4 sm:$0xff]  }
0x210f   :  { %9654 = vmatprep.subr.bf16.mxu0 %v13929_v34  ;;  %v13986_v34 = vld [vmem:[#allocation4 + $0x1cc] ss:$16 sps:$4 sm:$0xff]  }
0x2112   :  { %9655 = vmatpush1.bf16.msra.mxu0 %v13927_v60  ;;  %v13984_v60 = vld [vmem:[#allocation4 + $0x1c8] ss:$16 sps:$4 sm:$0xff]  }
0x2113   :  { %9656 = vmatprep.subr.bf16.mxu0 %v13935_v11  ;;  %v13989_v11 = vld [vmem:[#allocation4 + $0x1e4] ss:$16 sps:$4 sm:$0xff]  }
0x2116   :  { %9657 = vmatpush1.bf16.msra.mxu0 %v13933_v61  ;;  %v13992_v61 = vld [vmem:[#allocation4 + $0x1ec] ss:$16 sps:$4 sm:$0xff]  }
0x2117   :  { %9658 = vmatprep.subr.bf16.mxu0 %v13941_v8  ;;  %v13987_v8 = vld [vmem:[#allocation4 + $0x1e0] ss:$16 sps:$4 sm:$0xff]  }
0x211a   :  { %9659 = vmatpush1.bf16.msra.mxu0 %v13939_v2  ;;  %v13990_v2 = vld [vmem:[#allocation4 + $0x1e8] ss:$16 sps:$4 sm:$0xff]  }
0x211b   :  { %9660 = vmatprep.subr.bf16.mxu0 %v13947_v4  ;;  %v13995_v4 = vld [vmem:[#allocation4 + $0x204] ss:$16 sps:$4 sm:$0xff]  }
0x211e   :  { %9661 = vmatpush1.bf16.msra.mxu0 %v13945_v6  ;;  %v13998_v6 = vld [vmem:[#allocation4 + $0x20c] ss:$16 sps:$4 sm:$0xff]  }
0x211f   :  { %9662 = vmatprep.subr.bf16.mxu0 %v13953_v16  ;;  %v11552_v16 = vld [vmem:[%s15671_s5] ss:$0 sm:$0xff] }
0x2122   :  { %9663 = vmatpush1.bf16.msra.mxu0 %v13951_v17 }
0x2123   :  { %9664 = vmatprep.subr.bf16.mxu0 %v13959_v40 }
0x2126   :  { %9665 = vmatpush1.bf16.msra.mxu0 %v13957_v10 }
0x2127   :  { %9666 = vmatprep.subr.bf16.mxu0 %v13965_v48 }
0x212a   :  { %9667 = vmatpush1.bf16.msra.mxu0 %v13963_v25 }
0x212b   :  { %9668 = vmatprep.subr.bf16.mxu0 %v13971_v27 }
0x212e   :  { %9669 = vmatpush1.bf16.msra.mxu0 %v13969_v15 }
0x212f   :  { %9670 = vmatprep.subr.bf16.mxu0 %v13977_v18  ;;  %v13993_v18 = vld [vmem:[#allocation4 + $0x200] ss:$16 sps:$4 sm:$0xff]  }
0x2132   :  { %9671 = vmatpush1.bf16.msra.mxu0 %v13975_v19  ;;  %v13996_v19 = vld [vmem:[#allocation4 + $0x208] ss:$16 sps:$4 sm:$0xff]  }
0x2133   :  { %9672 = vmatprep.subr.bf16.mxu0 %v13983_v20  ;;  %v14001_v20 = vld [vmem:[#allocation4 + $0x224] ss:$16 sps:$4 sm:$0xff]  }
0x2136   :  { %9673 = vmatpush1.bf16.msra.mxu0 %v13981_v23  ;;  %v14004_v23 = vld [vmem:[#allocation4 + $0x22c] ss:$16 sps:$4 sm:$0xff]  }
0x2137   :  { %9674 = vmatprep.subr.bf16.mxu0 %v13989_v11  ;;  %v14061_v11 = vld [vmem:[#allocation4 + $0x364] ss:$16 sps:$4 sm:$0xff]  }
0x213a   :  { %9675 = vmatpush1.bf16.msra.mxu0 %v13987_v8  ;;  %v14059_v8 = vld [vmem:[#allocation4 + $0x360] ss:$16 sps:$4 sm:$0xff]  }
0x213b   :  { %10157 = vmatprep.subr.bf16.mxu0 %v13995_v4  ;;  %v14067_v4 = vld [vmem:[#allocation4 + $0x384] ss:$16 sps:$4 sm:$0xff]  }
0x21d0   :  { %v9117_v24 = vpop.f32.mrb[96].mxu0 }
0x21d1   :  { %v9118_v55 = vadd.f32 %v11543_v30, %v9117_v24  ;;  %v12465_v26 = vpop.f32.mrb[97].mxu0  ;;  %v13999_v30 = vld [vmem:[#allocation4 + $0x220] ss:$16 sps:$4 sm:$0xff]   ;;  %v14002_v24 = vld [vmem:[#allocation4 + $0x228] ss:$16 sps:$4 sm:$0xff]  }
0x21d2   :  { %v9120_v62 = vpop.f32.mrb[98].mxu0  ;;  %v14010_v26 = vld [vmem:[#allocation4 + $0x24c] ss:$16 sps:$4 sm:$0xff]  }
0x21d3   :  { %v9123_v37 = vmax.f32 %v9118_v55, 0.0  ;;  %v12466_v39 = vpop.f32.mrb[99].mxu0  ;;  %v14007_v55 = vld [vmem:[#allocation4 + $0x244] ss:$16 sps:$4 sm:$0xff]   ;;  %v14005_v62 = vld [vmem:[#allocation4 + $0x240] ss:$16 sps:$4 sm:$0xff]  }
0x21d4   :  { %v14013_v39 = vld [vmem:[#allocation4 + $0x264] ss:$16 sps:$4 sm:$0xff]  }
0x21d5   :  { %v9124_v31 = vpack.c.bf16 %v9123_v37, %v9123_v37  ;;  %v14008_v37 = vld [vmem:[#allocation4 + $0x248] ss:$16 sps:$4 sm:$0xff]  }
0x21d7   :  { %12484 = vmatmul.mubr.bf16.vlgmr.msra.gmra.mrb[96].mxu1 %v9124_v31  ;;  %v14011_v31 = vld [vmem:[#allocation4 + $0x260] ss:$16 sps:$4 sm:$0xff]  }
0x21d8   :  { %9717 = vmatprep.mubr.bf16.mxu1 %v15441_v14  ;;  %9686 = vmatpush1.bf16.msra.mxu1 %v13900_v29  ;;  %v13938_v14 = vld [vmem:[#allocation4 + $0xcc] ss:$16 sps:$4 sm:$0xff]  }
0x21d9   :  { %9687 = vmatprep.subr.bf16.mxu1 %v13908_v32  ;;  %v14016_v29 = vld [vmem:[#allocation4 + $0x26c] ss:$16 sps:$4 sm:$0xff]   ;;  %v14019_v32 = vld [vmem:[#allocation4 + $0x284] ss:$16 sps:$4 sm:$0xff]  }
0x21dc   :  { %9688 = vmatpush1.bf16.msra.mxu1 %v13906_v33  ;;  %v14022_v33 = vld [vmem:[#allocation4 + $0x28c] ss:$16 sps:$4 sm:$0xff]  }
0x21dd   :  { %9689 = vmatprep.subr.bf16.mxu1 %v13914_v35  ;;  %v14017_v35 = vld [vmem:[#allocation4 + $0x280] ss:$16 sps:$4 sm:$0xff]  }
0x21e0   :  { %9690 = vmatpush1.bf16.msra.mxu1 %v13912_v42  ;;  %v14020_v42 = vld [vmem:[#allocation4 + $0x288] ss:$16 sps:$4 sm:$0xff]  }
0x21e1   :  { %9691 = vmatprep.subr.bf16.mxu1 %v13920_v36  ;;  %v14025_v36 = vld [vmem:[#allocation4 + $0x2a4] ss:$16 sps:$4 sm:$0xff]  }
0x21e4   :  { %9692 = vmatpush1.bf16.msra.mxu1 %v13918_v7  ;;  %v14028_v7 = vld [vmem:[#allocation4 + $0x2ac] ss:$16 sps:$4 sm:$0xff]  }
0x21e5   :  { %9693 = vmatprep.subr.bf16.mxu1 %v13926_v38  ;;  %v14023_v38 = vld [vmem:[#allocation4 + $0x2a0] ss:$16 sps:$4 sm:$0xff]  }
0x21e8   :  { %9694 = vmatpush1.bf16.msra.mxu1 %v13924_v13  ;;  %v14026_v13 = vld [vmem:[#allocation4 + $0x2a8] ss:$16 sps:$4 sm:$0xff]  }
0x21e9   :  { %9695 = vmatprep.subr.bf16.mxu1 %v13932_v52  ;;  %v14031_v52 = vld [vmem:[#allocation4 + $0x2c4] ss:$16 sps:$4 sm:$0xff]  }
0x21ec   :  { %9696 = vmatpush1.bf16.msra.mxu1 %v13930_v54  ;;  %v14034_v54 = vld [vmem:[#allocation4 + $0x2cc] ss:$16 sps:$4 sm:$0xff]  }
0x21ed   :  { %9697 = vmatprep.subr.bf16.mxu1 %v13938_v14  ;;  %v14029_v14 = vld [vmem:[#allocation4 + $0x2c0] ss:$16 sps:$4 sm:$0xff]  }
0x21f0   :  { %9698 = vmatpush1.bf16.msra.mxu1 %v13936_v41  ;;  %v14032_v41 = vld [vmem:[#allocation4 + $0x2c8] ss:$16 sps:$4 sm:$0xff]  }
0x21f1   :  { %9699 = vmatprep.subr.bf16.mxu1 %v13944_v22  ;;  %v14037_v22 = vld [vmem:[#allocation4 + $0x2e4] ss:$16 sps:$4 sm:$0xff]  }
0x21f4   :  { %9700 = vmatpush1.bf16.msra.mxu1 %v13942_v45  ;;  %v14040_v45 = vld [vmem:[#allocation4 + $0x2ec] ss:$16 sps:$4 sm:$0xff]  }
0x21f5   :  { %9701 = vmatprep.subr.bf16.mxu1 %v13950_v59  ;;  %v14035_v59 = vld [vmem:[#allocation4 + $0x2e0] ss:$16 sps:$4 sm:$0xff]  }
0x21f8   :  { %9702 = vmatpush1.bf16.msra.mxu1 %v13948_v47  ;;  %v14038_v47 = vld [vmem:[#allocation4 + $0x2e8] ss:$16 sps:$4 sm:$0xff]  }
0x21f9   :  { %9703 = vmatprep.subr.bf16.mxu1 %v13956_v49  ;;  %v14043_v49 = vld [vmem:[#allocation4 + $0x304] ss:$16 sps:$4 sm:$0xff]  }
0x21fc   :  { %9704 = vmatpush1.bf16.msra.mxu1 %v13954_v58  ;;  %v14046_v58 = vld [vmem:[#allocation4 + $0x30c] ss:$16 sps:$4 sm:$0xff]  }
0x21fd   :  { %9705 = vmatprep.subr.bf16.mxu1 %v13962_v50  ;;  %v14041_v50 = vld [vmem:[#allocation4 + $0x300] ss:$16 sps:$4 sm:$0xff]  }
0x2200   :  { %9706 = vmatpush1.bf16.msra.mxu1 %v13960_v21  ;;  %v14044_v21 = vld [vmem:[#allocation4 + $0x308] ss:$16 sps:$4 sm:$0xff]  }
0x2201   :  { %9707 = vmatprep.subr.bf16.mxu1 %v13968_v53  ;;  %v14049_v53 = vld [vmem:[#allocation4 + $0x324] ss:$16 sps:$4 sm:$0xff]  }
0x2204   :  { %9708 = vmatpush1.bf16.msra.mxu1 %v13966_v12  ;;  %v14052_v12 = vld [vmem:[#allocation4 + $0x32c] ss:$16 sps:$4 sm:$0xff]  }
0x2205   :  { %9709 = vmatprep.subr.bf16.mxu1 %v13974_v3  ;;  %v14047_v3 = vld [vmem:[#allocation4 + $0x320] ss:$16 sps:$4 sm:$0xff]  }
0x2208   :  { %9710 = vmatpush1.bf16.msra.mxu1 %v13972_v56  ;;  %v14050_v56 = vld [vmem:[#allocation4 + $0x328] ss:$16 sps:$4 sm:$0xff]  }
0x2209   :  { %9711 = vmatprep.subr.bf16.mxu1 %v13980_v28  ;;  %v14055_v28 = vld [vmem:[#allocation4 + $0x344] ss:$16 sps:$4 sm:$0xff]  }
0x220c   :  { %9712 = vmatpush1.bf16.msra.mxu1 %v13978_v57  ;;  %v14058_v57 = vld [vmem:[#allocation4 + $0x34c] ss:$16 sps:$4 sm:$0xff]  }
0x220d   :  { %9713 = vmatprep.subr.bf16.mxu1 %v13986_v34  ;;  %v14053_v34 = vld [vmem:[#allocation4 + $0x340] ss:$16 sps:$4 sm:$0xff]  }
0x2210   :  { %9714 = vmatpush1.bf16.msra.mxu1 %v13984_v60  ;;  %v14056_v60 = vld [vmem:[#allocation4 + $0x348] ss:$16 sps:$4 sm:$0xff]  }
0x2211   :  { %9715 = vmatprep.subr.bf16.mxu1 %v13992_v61  ;;  %v14064_v61 = vld [vmem:[#allocation4 + $0x36c] ss:$16 sps:$4 sm:$0xff]  }
0x2214   :  { %9716 = vmatpush1.bf16.msra.mxu1 %v13990_v2  ;;  %v14062_v2 = vld [vmem:[#allocation4 + $0x368] ss:$16 sps:$4 sm:$0xff]  }
0x2215   :  { %10198 = vmatprep.subr.bf16.mxu1 %v13998_v6  ;;  %v14070_v6 = vld [vmem:[#allocation4 + $0x38c] ss:$16 sps:$4 sm:$0xff]  }
0x22aa   :  { %v9230_v17 = vpop.f32.mrb[96].mxu1 }
0x22ab   :  { %v9231_v40 = vadd.f32 %v11552_v16, %v9230_v17  ;;  %v12485_v10 = vpop.f32.mrb[97].mxu1  ;;  %v14065_v16 = vld [vmem:[#allocation4 + $0x380] ss:$16 sps:$4 sm:$0xff]   ;;  %v14068_v17 = vld [vmem:[#allocation4 + $0x388] ss:$16 sps:$4 sm:$0xff]  }
0x22ac   :  { %v9233_v48 = vpop.f32.mrb[98].mxu1  ;;  %v14071_v10 = vld [vmem:[#allocation4 + $0x3a0] ss:$16 sps:$4 sm:$0xff]  }
0x22ad   :  { %v9236_v25 = vmax.f32 %v9231_v40, 0.0  ;;  %v12486_v27 = vpop.f32.mrb[99].mxu1  ;;  %v14073_v40 = vld [vmem:[#allocation4 + $0x3a4] ss:$16 sps:$4 sm:$0xff]   ;;  %v14074_v48 = vld [vmem:[#allocation4 + $0x3a8] ss:$16 sps:$4 sm:$0xff]  }
0x22ae   :  { %v14079_v27 = vld [vmem:[#allocation4 + $0x3c4] ss:$16 sps:$4 sm:$0xff]  }
0x22af   :  { %v9237_v15 = vpack.c.bf16 %v9236_v25, %v9236_v25  ;;  %v14076_v25 = vld [vmem:[#allocation4 + $0x3ac] ss:$16 sps:$4 sm:$0xff]  }
0x22b1   :  { %9677 = vmatmul.mubr.bf16.vlgmr.msra.gmra.mrb[100].mxu0 %v9237_v15  ;;  %9718 = vmatmul.mubr.bf16.vlgmr.msra.gmra.mrb[100].mxu1 %v9237_v15  ;;  %v14082_v15 = vld [vmem:[#allocation4 + $0x3cc] ss:$16 sps:$4 sm:$0xff]  }
0x22b2   :  { %10189 = vmatprep.mubr.bf16.mxu0 %v15498_v5  ;;  %10230 = vmatprep.mubr.bf16.mxu1 %v15498_v5  ;;  %v14014_v5 = vld [vmem:[#allocation4 + $0x268] ss:$16 sps:$4 sm:$0xff]  }
0x22b3   :  { %10158 = vmatpush1.bf16.msra.mxu0 %v13993_v18  ;;  %10199 = vmatpush1.bf16.msra.mxu1 %v13996_v19  ;;  %v14077_v18 = vld [vmem:[#allocation4 + $0x3c0] ss:$16 sps:$4 sm:$0xff]   ;;  %v14080_v19 = vld [vmem:[#allocation4 + $0x3c8] ss:$16 sps:$4 sm:$0xff]  }
0x22b4   :  { %10159 = vmatprep.subr.bf16.mxu0 %v14001_v20  ;;  %10200 = vmatprep.subr.bf16.mxu1 %v14004_v23  ;;  %v14085_v20 = vld [vmem:[#allocation4 + $0x3e4] ss:$16 sps:$4 sm:$0xff]   ;;  %v14088_v23 = vld [vmem:[#allocation4 + $0x3ec] ss:$16 sps:$4 sm:$0xff]  }
0x22b7   :  { %10160 = vmatpush1.bf16.msra.mxu0 %v13999_v30  ;;  %10201 = vmatpush1.bf16.msra.mxu1 %v14002_v24  ;;  %v14083_v30 = vld [vmem:[#allocation4 + $0x3e0] ss:$16 sps:$4 sm:$0xff]   ;;  %v14086_v24 = vld [vmem:[#allocation4 + $0x3e8] ss:$16 sps:$4 sm:$0xff]  }
0x22b8   :  { %10161 = vmatprep.subr.bf16.mxu0 %v14007_v55  ;;  %10202 = vmatprep.subr.bf16.mxu1 %v14010_v26  ;;  %v9302_v55 = vld [vmem:[%s15673_s7] sm:$0xf] }
0x22b9   :  { %v9307_v26 = vrot.slane %v9302_v55, %v14580_v44 }
0x22bb   :  { %10162 = vmatpush1.bf16.msra.mxu0 %v14005_v62  ;;  %10203 = vmatpush1.bf16.msra.mxu1 %v14008_v37  ;;  %v9311_v62 = vrot.slane %v9302_v55, %v14585_v46 }
0x22bc   :  { %10163 = vmatprep.subr.bf16.mxu0 %v14013_v39  ;;  %10204 = vmatprep.subr.bf16.mxu1 %v14016_v29 }
0x22bf   :  { %10164 = vmatpush1.bf16.msra.mxu0 %v14011_v31  ;;  %10205 = vmatpush1.bf16.msra.mxu1 %v14014_v5 }
0x22c0   :  { %10165 = vmatprep.subr.bf16.mxu0 %v14019_v32  ;;  %10206 = vmatprep.subr.bf16.mxu1 %v14022_v33 }
0x22c3   :  { %10166 = vmatpush1.bf16.msra.mxu0 %v14017_v35  ;;  %10207 = vmatpush1.bf16.msra.mxu1 %v14020_v42 }
0x22c4   :  { %10167 = vmatprep.subr.bf16.mxu0 %v14025_v36  ;;  %10208 = vmatprep.subr.bf16.mxu1 %v14028_v7 }
0x22c7   :  { %10168 = vmatpush1.bf16.msra.mxu0 %v14023_v38  ;;  %10209 = vmatpush1.bf16.msra.mxu1 %v14026_v13  ;;  %v9319_v13 = vrot.slane %v9302_v55, %v14589_v51 }
0x22c8   :  { %10169 = vmatprep.subr.bf16.mxu0 %v14031_v52  ;;  %10210 = vmatprep.subr.bf16.mxu1 %v14034_v54  ;;  %v9315_v54 = vrot.slane %v9302_v55, %v14592_v63 }
0x22cb   :  { %10170 = vmatpush1.bf16.msra.mxu0 %v14029_v14  ;;  %10211 = vmatpush1.bf16.msra.mxu1 %v14032_v41 }
0x22cc   :  { %10171 = vmatprep.subr.bf16.mxu0 %v14037_v22  ;;  %10212 = vmatprep.subr.bf16.mxu1 %v14040_v45 }
0x22cf   :  { %10172 = vmatpush1.bf16.msra.mxu0 %v14035_v59  ;;  %10213 = vmatpush1.bf16.msra.mxu1 %v14038_v47 }
0x22d0   :  { %10173 = vmatprep.subr.bf16.mxu0 %v14043_v49  ;;  %10214 = vmatprep.subr.bf16.mxu1 %v14046_v58 }
0x22d3   :  { %10174 = vmatpush1.bf16.msra.mxu0 %v14041_v50  ;;  %10215 = vmatpush1.bf16.msra.mxu1 %v14044_v21 }
0x22d4   :  { %10175 = vmatprep.subr.bf16.mxu0 %v14049_v53  ;;  %10216 = vmatprep.subr.bf16.mxu1 %v14052_v12 }
0x22d7   :  { %10176 = vmatpush1.bf16.msra.mxu0 %v14047_v3  ;;  %10217 = vmatpush1.bf16.msra.mxu1 %v14050_v56 }
0x22d8   :  { %10177 = vmatprep.subr.bf16.mxu0 %v14055_v28  ;;  %10218 = vmatprep.subr.bf16.mxu1 %v14058_v57 }
0x22db   :  { %10178 = vmatpush1.bf16.msra.mxu0 %v14053_v34  ;;  %10219 = vmatpush1.bf16.msra.mxu1 %v14056_v60 }
0x22dc   :  { %10179 = vmatprep.subr.bf16.mxu0 %v14061_v11  ;;  %10220 = vmatprep.subr.bf16.mxu1 %v14064_v61  ;;  %v14089_v11 = vld [vmem:[%s15674_s8] sm:$0xff]   ;;  %v14091_v61 = vld [vmem:[%s15674_s8 + $0x10] sm:$0xff]  }
0x22df   :  { %10180 = vmatpush1.bf16.msra.mxu0 %v14059_v8  ;;  %10221 = vmatpush1.bf16.msra.mxu1 %v14062_v2  ;;  %v14092_v8 = vld [vmem:[%s15674_s8 + $0x18] sm:$0xff]   ;;  %v14093_v2 = vld [vmem:[%s15674_s8 + $0x20] sm:$0xff]  }
0x22e0   :  { %10181 = vmatprep.subr.bf16.mxu0 %v14067_v4  ;;  %10222 = vmatprep.subr.bf16.mxu1 %v14070_v6  ;;  %v14094_v4 = vld [vmem:[%s15674_s8 + $0x28] sm:$0xff]   ;;  %v14095_v6 = vld [vmem:[%s15674_s8 + $0x30] sm:$0xff]  }
0x22e3   :  { %10182 = vmatpush1.bf16.msra.mxu0 %v14065_v16  ;;  %10223 = vmatpush1.bf16.msra.mxu1 %v14068_v17  ;;  %v14096_v16 = vld [vmem:[%s15674_s8 + $0x38] sm:$0xff]   ;;  %v14097_v17 = vld [vmem:[#allocation6] sm:$0xff]  }
0x22e4   :  { %10183 = vmatprep.subr.bf16.mxu0 %v14073_v40  ;;  %10224 = vmatprep.subr.bf16.mxu1 %v14076_v25  ;;  %v14098_v40 = vld [vmem:[#allocation6 + $0x8] sm:$0xff]   ;;  %v14101_v25 = vld [vmem:[#allocation6 + $0x20] sm:$0xff]  }
0x22e7   :  { %10184 = vmatpush1.bf16.msra.mxu0 %v14071_v10  ;;  %10225 = vmatpush1.bf16.msra.mxu1 %v14074_v48  ;;  %v14099_v10 = vld [vmem:[#allocation6 + $0x10] sm:$0xff]   ;;  %v14100_v48 = vld [vmem:[#allocation6 + $0x18] sm:$0xff]  }
0x22e8   :  { %10185 = vmatprep.subr.bf16.mxu0 %v14079_v27  ;;  %10226 = vmatprep.subr.bf16.mxu1 %v14082_v15  ;;  %v14102_v27 = vld [vmem:[#allocation6 + $0x28] sm:$0xff]   ;;  %v11628_v15 = vld [vmem:[%s15673_s7 + $0x4] sm:$0xf] }
0x22eb   :  { %10186 = vmatpush1.bf16.msra.mxu0 %v14077_v18  ;;  %10227 = vmatpush1.bf16.msra.mxu1 %v14080_v19  ;;  %v9820_v18 = vrot.slane %v11628_v15, %v14580_v44  ;;  %v9824_v19 = vrot.slane %v11628_v15, %v14585_v46  ;;  %v9828_v44 = vrot.slane %v11628_v15, %v14592_v63 }
0x22ec   :  { %10187 = vmatprep.subr.bf16.mxu0 %v14085_v20  ;;  %10228 = vmatprep.subr.bf16.mxu1 %v14088_v23 }
0x22ef   :  { %10188 = vmatpush1.bf16.msra.mxu0 %v14083_v30  ;;  %10229 = vmatpush1.bf16.msra.mxu1 %v14086_v24 }
0x22f0   :  { %12487 = vmatprep.subr.bf16.mxu0 %v14399_v0  ;;  %12507 = vmatprep.subr.bf16.mxu1 %v14399_v0 }
0x2384   :  { %v9678_v37 = vpop.f32.mrb[100].mxu0  ;;  %v9719_v39 = vpop.f32.mrb[100].mxu1 }
0x2385   :  { %v9679_v29 = vadd.f32 %v9678_v37, %v9307_v26  ;;  %v9680_v31 = vpop.f32.mrb[101].mxu0  ;;  %v9721_v5 = vpop.f32.mrb[101].mxu1  ;;  %v9720_v41 = vadd.f32 %v9719_v39, %v9315_v54 }
0x2386   :  { %v9681_v32 = vadd.f32 %v9680_v31, %v9311_v62  ;;  %v9682_v33 = vpop.f32.mrb[102].mxu0  ;;  %v9723_v35 = vpop.f32.mrb[102].mxu1  ;;  %v9722_v52 = vadd.f32 %v9721_v5, %v9319_v13 }
0x2387   :  { %v11625_v42 = vmul.f32 -1.442695, %v9679_v29  ;;  %v9683_v36 = vpop.f32.mrb[103].mxu0  ;;  %v9724_v7 = vpop.f32.mrb[103].mxu1 }
0x2388   :  { %v11626_v38 = vmul.f32 -1.442695, %v9681_v32  ;;  %v11627_v14 = vmul.f32 -1.442695, %v9722_v52  ;;  %v9832_v32 = vrot.slane %v11628_v15, %v14589_v51 }
0x2389   :  { %14297 = vpow2.f32 %v11625_v42 }
0x238a   :  { %14299 = vpow2.f32 %v11626_v38 }
0x238b   :  { %14301 = vpow2.f32 %v11627_v14 }
0x238c   :  { %14303 = vtanh.f32 %v9720_v41 }
0x2393   :  { %v14298_v22 = vpop.eup %14297 }
0x2394   :  { %v14300_v45 = vpop.eup %14299  ;;  %v9729_v59 = vadd.f32 1.0, %v14298_v22 }
0x2395   :  { %v9735_v47 = vadd.f32 1.0, %v14300_v45  ;;  %v14302_v49 = vpop.eup %14301 }
0x2396   :  { %14305 = vrcp.f32 %v9729_v59  ;;  %v14304_v58 = vpop.eup %14303  ;;  %v9742_v12 = vadd.f32 1.0, %v14302_v49 }
0x2397   :  { %14307 = vrcp.f32 %v9735_v47 }
0x2398   :  { %14309 = vrcp.f32 %v9742_v12 }
0x23a0   :  { %v14306_v50 = vpop.eup %14305 }
0x23a1   :  { %v14308_v21 = vpop.eup %14307  ;;  %v9746_v53 = vmul.f32 %v14306_v50, %v14304_v58  ;;  %v14103_v58 = vld [vmem:[#allocation6 + $0x30] sm:$0xff]   ;;  %v14104_v50 = vld [vmem:[#allocation6 + $0x38] sm:$0xff]  }
0x23a2   :  { %v9745_v3 = vmul.f32 %v14308_v21, %v15438_v9  ;;  %v14310_v28 = vpop.eup %14309  ;;  %v14090_v9 = vld [vmem:[%s15674_s8 + $0x8] sm:$0xff]   ;;  %v11696_v21 = vld [vmem:[%s15675_s9] ss:$0 sm:$0xff] }
0x23a4   :  { %v9747_v56 = vadd.f32 %v9746_v53, %v9745_v3 }
0x23a6   :  { %14311 = vtanh.f32 %v9747_v56 }
0x23b0   :  { %v14312_v57 = vpop.eup %14311 }
0x23b1   :  { %v9749_v34 = vmul.f32 %v14312_v57, %v14310_v28 }
0x23b3   :  { %v9750_v60 = vpack.c.bf16 %v9749_v34, %v9749_v34  ;;  %v11705_v34 = vld [vmem:[%s15677_s11] ss:$0 sm:$0xff] }
0x23b5   :  { %10190 = vmatmul.mubr.bf16.vlgmr.msra.gmra.mrb[104].mxu0 %v9750_v60  ;;  %10231 = vmatmul.mubr.bf16.vlgmr.msra.gmra.mrb[104].mxu1 %v9750_v60 }
0x23b6   :  { %12503 = vmatprep.mubr.msk.bf16.mxu0 %vm14400_vm0, %v14399_v0  ;;  %12523 = vmatprep.mubr.msk.bf16.mxu1 %vm14400_vm0, %v14399_v0 }
0x23b7   :  { %12488 = vmatpush3.bf16.msra.mxu0 %v14089_v11  ;;  %12508 = vmatpush3.bf16.msra.mxu1 %v14097_v17 }
0x23b8   :  { %12489 = vmatprep.subr.bf16.mxu0 %v14399_v0  ;;  %12509 = vmatprep.subr.bf16.mxu1 %v14399_v0 }
0x23bb   :  { %12490 = vmatpush3.bf16.msra.mxu0 %v14090_v9  ;;  %12510 = vmatpush3.bf16.msra.mxu1 %v14098_v40 }
0x23bc   :  { %12491 = vmatprep.subr.bf16.mxu0 %v14399_v0  ;;  %12511 = vmatprep.subr.bf16.mxu1 %v14399_v0 }
0x23bf   :  { %12492 = vmatpush3.bf16.msra.mxu0 %v14091_v61  ;;  %12512 = vmatpush3.bf16.msra.mxu1 %v14099_v10 }
0x23c0   :  { %12493 = vmatprep.subr.bf16.mxu0 %v14399_v0  ;;  %12513 = vmatprep.subr.bf16.mxu1 %v14399_v0 }
0x23c3   :  { %12494 = vmatpush3.bf16.msra.mxu0 %v14092_v8  ;;  %12514 = vmatpush3.bf16.msra.mxu1 %v14100_v48 }
0x23c4   :  { %12495 = vmatprep.subr.bf16.mxu0 %v14399_v0  ;;  %12515 = vmatprep.subr.bf16.mxu1 %v14399_v0 }
0x23c7   :  { %12496 = vmatpush3.bf16.msra.mxu0 %v14093_v2  ;;  %12516 = vmatpush3.bf16.msra.mxu1 %v14101_v25 }
0x23c8   :  { %12497 = vmatprep.subr.bf16.mxu0 %v14399_v0  ;;  %12517 = vmatprep.subr.bf16.mxu1 %v14399_v0 }
0x23cb   :  { %12498 = vmatpush3.bf16.msra.mxu0 %v14094_v4  ;;  %12518 = vmatpush3.bf16.msra.mxu1 %v14102_v27 }
0x23cc   :  { %12499 = vmatprep.subr.bf16.mxu0 %v14399_v0  ;;  %12519 = vmatprep.subr.bf16.mxu1 %v14399_v0 }
0x23cf   :  { %12500 = vmatpush3.bf16.msra.mxu0 %v14095_v6  ;;  %12520 = vmatpush3.bf16.msra.mxu1 %v14103_v58 }
0x23d0   :  { %12501 = vmatprep.subr.bf16.mxu0 %v14399_v0  ;;  %12521 = vmatprep.subr.bf16.mxu1 %v14399_v0 }
0x23d3   :  { %12502 = vmatpush3.bf16.msra.mxu0 %v14096_v16  ;;  %12522 = vmatpush3.bf16.msra.mxu1 %v14104_v50 }
0x2488   :  { %v10191_v20 = vpop.f32.mrb[104].mxu0  ;;  %v10232_v23 = vpop.f32.mrb[104].mxu1 }
0x2489   :  { %v10192_v30 = vadd.f32 %v10191_v20, %v9820_v18  ;;  %v10193_v24 = vpop.f32.mrb[105].mxu0  ;;  %v10234_v55 = vpop.f32.mrb[105].mxu1  ;;  %v10233_v35 = vadd.f32 %v10232_v23, %v9828_v44 }
0x248a   :  { %v10194_v26 = vadd.f32 %v10193_v24, %v9824_v19  ;;  %v10195_v62 = vpop.f32.mrb[106].mxu0  ;;  %v10236_v37 = vpop.f32.mrb[106].mxu1  ;;  %v10235_v33 = vadd.f32 %v10234_v55, %v9832_v32 }
0x248b   :  { %v11693_v39 = vmul.f32 -1.442695, %v10192_v30  ;;  %v10196_v29 = vpop.f32.mrb[107].mxu0  ;;  %v10237_v31 = vpop.f32.mrb[107].mxu1 }
0x248c   :  { %v11694_v5 = vmul.f32 -1.442695, %v10194_v26  ;;  %v11695_v46 = vmul.f32 -1.442695, %v10235_v33 }
0x248d   :  { %14313 = vpow2.f32 %v11693_v39 }
0x248e   :  { %14315 = vpow2.f32 %v11694_v5 }
0x248f   :  { %14317 = vpow2.f32 %v11695_v46 }
0x2490   :  { %14319 = vtanh.f32 %v10233_v35 }
0x2497   :  { %v14314_v42 = vpop.eup %14313 }
0x2498   :  { %v14316_v36 = vpop.eup %14315  ;;  %v10242_v7 = vadd.f32 1.0, %v14314_v42 }
0x2499   :  { %v10248_v38 = vadd.f32 1.0, %v14316_v36  ;;  %v14318_v13 = vpop.eup %14317 }
0x249a   :  { %14321 = vrcp.f32 %v10242_v7  ;;  %v14320_v52 = vpop.eup %14319  ;;  %v10255_v41 = vadd.f32 1.0, %v14318_v13 }
0x249b   :  { %14323 = vrcp.f32 %v10248_v38 }
0x249c   :  { %14325 = vrcp.f32 %v10255_v41 }
0x24a4   :  { %v14322_v54 = vpop.eup %14321 }
0x24a5   :  { %v14324_v14 = vpop.eup %14323  ;;  %v10259_v51 = vmul.f32 %v14322_v54, %v14320_v52 }
0x24a6   :  { %v10258_v22 = vmul.f32 %v14324_v14, %v15495_v1  ;;  %v14326_v63 = vpop.eup %14325 }
0x24a8   :  { %v10260_v45 = vadd.f32 %v10259_v51, %v10258_v22 }
0x24aa   :  { %14327 = vtanh.f32 %v10260_v45 }
0x24b4   :  { %v14328_v59 = vpop.eup %14327 }
0x24b5   :  { %v10262_v47 = vmul.f32 %v14328_v59, %v14326_v63 }
0x24b7   :  { %v10263_v49 = vpack.c.bf16 %v10262_v47, %v10262_v47 }
0x24b9   :  { %12504 = vmatmul.mubr.bf16.vlgmr.msra.gmra.mrb[108].mxu0 %v10263_v49 }
0x258c   :  { %v10369_v53 = vpop.f32.mrb[108].mxu0 }
0x258d   :  { %v10370_v1 = vadd.f32 %v11696_v21, %v10369_v53  ;;  %v12505_v12 = vpop.f32.mrb[109].mxu0 }
0x258e   :  { %v10372_v3 = vpop.f32.mrb[110].mxu0 }
0x258f   :  { %v10375_v56 = vmax.f32 %v10370_v1, 0.0  ;;  %v12506_v28 = vpop.f32.mrb[111].mxu0 }
0x2591   :  { %v10376_v57 = vpack.c.bf16 %v10375_v56, %v10375_v56 }
0x2593   :  { %12524 = vmatmul.mubr.bf16.vlgmr.msra.gmra.mrb[108].mxu1 %v10376_v57 }
0x2666   :  { %v10482_v60 = vpop.f32.mrb[108].mxu1 }
0x2667   :  { %v10483_v0 = vadd.f32 %v11705_v34, %v10482_v60  ;;  %v12525_v11 = vpop.f32.mrb[109].mxu1 }
0x2668   :  { %v10485_v9 = vpop.f32.mrb[110].mxu1 }
0x2669   :  { %v10488_v61 = vadd.f32 %v10483_v0, %v15575_v43  ;;  %v12526_v8 = vpop.f32.mrb[111].mxu1 }
0x266b   :  { %11714 = vst [vmem:[%s15678_s12 + $0x30] sm:$0xff] %v10488_v61 }
0x266c   :  { %10495 = vsyncpa [#allocation5], 1 }
0x266d   :  { %10496 = vsyncpa [#allocation7], 1 }

</bundles_post_ra>
